<compile_context>
chip_gen: v6e
topology: v6e:2x2x1
jax: 0.10.0
libtpu: 0.0.40
codegen_flags: <defaults>
</compile_context>

<pallas_src>
import functools

import numpy as np
import jax
import jax.numpy as jnp
from jax.experimental import pallas as pl
from jax.experimental.pallas import tpu as pltpu


# ----------------------------------------------------------------------------
# Fused DBlock kernel
# ----------------------------------------------------------------------------
def _make_dblock_kernel(H, W, K, Cin, Cout, Ho, Wo):
  HW = H * W
  P = K // 2  # circular halo; already applied to the raw input by the wrapper

  def kernel(xp_ref, pool_ref, w1_ref, b1_ref, wk_ref, bk_ref,
             w3_ref, b3_ref, ws_ref, bs_ref, o_ref, patches_ref):
    xp = xp_ref[0]                                   # (H+2P, W+2P, Cin) f32
    act = jnp.maximum(xp, 0.2 * xp)                  # LeakyReLU(0.2)

    # ---- CONV branch ------------------------------------------------------
    # LReLU -> 1x1 conv -> LReLU is evaluated on each KxK tap of the circularly
    # padded input (pointwise + 1x1 ops commute with the halo, so the
    # intermediate never needs its own circular pad).  All taps are packed into
    # one im2col matrix in VMEM scratch -> a single big bf16 MXU matmul.
    for a in range(K):
      for b in range(K):
        t = act[a:a + H, b:b + W, :].reshape(HW, Cin)
        t = jnp.dot(t.astype(jnp.bfloat16), w1_ref[...],
                    preferred_element_type=jnp.float32) + b1_ref[...]
        t = jnp.maximum(t, 0.2 * t)
        c0 = (a * K + b) * Cout
        patches_ref[:, c0:c0 + Cout] = t.astype(jnp.bfloat16)

    h = jnp.dot(patches_ref[...], wk_ref[...],
                preferred_element_type=jnp.float32) + bk_ref[...]
    h = jnp.maximum(h, 0.2 * h)                      # (HW, Cout)

    # AvgPool2d_meta(5, stride=2): circular window + stride folded into a
    # {0,1} selection matrix -> one MXU matmul, then scale by 1/25.
    pooled = jnp.dot(pool_ref[...], h.astype(jnp.bfloat16),
                     preferred_element_type=jnp.float32) * (1.0 / 25.0)
    conv = jnp.dot(pooled.astype(jnp.bfloat16), w3_ref[...],
                   preferred_element_type=jnp.float32) + b3_ref[...]

    # ---- SKIP branch ------------------------------------------------------
    x_c = xp[P:P + H, P:P + W, :].reshape(HW, Cin)   # raw (non-activated) input
    skip = jnp.dot(pool_ref[...], x_c.astype(jnp.bfloat16),
                   preferred_element_type=jnp.float32) * (1.0 / 25.0)
    c1 = jnp.dot(skip.astype(jnp.bfloat16), ws_ref[...],
                 preferred_element_type=jnp.float32) + bs_ref[...]

    # torch.cat([skip, CONV1(skip)], dim=channel) + CONV(inputs)
    out = jnp.concatenate([skip, c1], axis=-1) + conv   # (Ho*Wo, Cout)
    o_ref[0] = out.reshape(Ho, Wo, Cout)

  return kernel


def _pool_matrix(H, W, k, stride):
  """{0,1} selection matrix for a circular ('meta') k x k pooling window with
  the given stride; caller multiplies by 1/k^2.  Lets the pool run as one MXU
  matmul (wrap + stride + window folded into the matrix)."""
  Ho, Wo = H // stride, W // stride
  p = k // 2
  m = np.zeros((Ho * Wo, H * W), np.float32)
  for i in range(Ho):
    for j in range(Wo):
      for a in range(k):
        for b in range(k):
          h = (i * stride + a - p) % H
          w = (j * stride + b - p) % W
          m[i * Wo + j, h * W + w] += 1.0
  return m


def dblock_forward(params, x_nchw, *, kernel_size, stride):
  """Pallas forward of DBlock(in_channel, out_channel, kernel_size, stride)."""
  assert stride == 2, "DBlock's SKIP branch pools with stride 2; stride must be 2"
  B, Cin, H, W = x_nchw.shape
  K = kernel_size
  P = K // 2
  Cout = params["w3"].shape[-1]
  Ho, Wo = H // stride, W // stride

  # NCHW -> NHWC once; the circular halo needed by the KxK conv is folded into
  # this single pad of the raw input, so no intermediate ever needs padding or
  # leaves VMEM.
  x = jnp.transpose(x_nchw, (0, 2, 3, 1)).astype(jnp.float32)
  if P:
    x = jnp.pad(x, ((0, 0), (P, P), (P, P), (0, 0)), mode="wrap")
  Hp, Wp = H + 2 * P, W + 2 * P

  pool = jnp.asarray(_pool_matrix(H, W, 5, 2), jnp.bfloat16)   # entries {0,1}
  w1 = params["w1"].reshape(Cin, Cout).astype(jnp.bfloat16)
  wk = params["wk"].reshape(K * K * Cout, Cout).astype(jnp.bfloat16)
  w3 = params["w3"].reshape(Cout, Cout).astype(jnp.bfloat16)
  ws = params["ws"].reshape(Cin, Cout - Cin).astype(jnp.bfloat16)
  b1 = params["b1"].reshape(1, Cout).astype(jnp.float32)
  bk = params["bk"].reshape(1, Cout).astype(jnp.float32)
  b3 = params["b3"].reshape(1, Cout).astype(jnp.float32)
  bs = params["bs"].reshape(1, Cout - Cin).astype(jnp.float32)

  const = lambda i: (0, 0)
  out = pl.pallas_call(
      _make_dblock_kernel(H, W, K, Cin, Cout, Ho, Wo),
      out_shape=jax.ShapeDtypeStruct((B, Ho, Wo, Cout), jnp.float32),
      grid=(B,),
      in_specs=[
          pl.BlockSpec((1, Hp, Wp, Cin), lambda i: (i, 0, 0, 0)),
          pl.BlockSpec((Ho * Wo, H * W), const),
          pl.BlockSpec((Cin, Cout), const),
          pl.BlockSpec((1, Cout), const),
          pl.BlockSpec((K * K * Cout, Cout), const),
          pl.BlockSpec((1, Cout), const),
          pl.BlockSpec((Cout, Cout), const),
          pl.BlockSpec((1, Cout), const),
          pl.BlockSpec((Cin, Cout - Cin), const),
          pl.BlockSpec((1, Cout - Cin), const),
      ],
      out_specs=pl.BlockSpec((1, Ho, Wo, Cout), lambda i: (i, 0, 0, 0)),
      scratch_shapes=[pltpu.VMEM((H * W, K * K * Cout), jnp.bfloat16)],
      compiler_params=pltpu.CompilerParams(
          dimension_semantics=("parallel",)),
  )(x, pool, w1, b1, wk, bk, w3, b3, ws, bs)

  return jnp.transpose(out, (0, 3, 1, 2))   # back to NCHW


# ----------------------------------------------------------------------------
# Pure-JAX f32 reference (same circular 'meta' semantics) for correctness check
# ----------------------------------------------------------------------------
def _conv_same_ref(x, w_hwio, b):
  k = w_hwio.shape[0]
  p = k // 2
  if p:
    x = jnp.pad(x, ((0, 0), (p, p), (p, p), (0, 0)), mode="wrap")
  y = jax.lax.conv_general_dilated(
      x, w_hwio, window_strides=(1, 1), padding="VALID",
      dimension_numbers=("NHWC", "HWIO", "NHWC"),
      precision=jax.lax.Precision.HIGHEST)
  return y + b


def _avgpool_meta_ref(x, k, stride):
  p = k // 2
  xp = jnp.pad(x, ((0, 0), (p, p), (p, p), (0, 0)), mode="wrap")
  s = jax.lax.reduce_window(xp, jnp.float32(0), jax.lax.add,
                            (1, k, k, 1), (1, stride, stride, 1), "VALID")
  return s / float(k * k)


def dblock_reference(params, x_nchw, *, kernel_size, stride):
  del kernel_size
  lrelu = lambda v: jnp.where(v >= 0, v, 0.2 * v)
  x = jnp.transpose(x_nchw, (0, 2, 3, 1)).astype(jnp.float32)
  a = lrelu(x)
  a = _conv_same_ref(a, params["w1"], params["b1"])
  a = lrelu(a)
  a = _conv_same_ref(a, params["wk"], params["bk"])
  a = lrelu(a)
  a = _avgpool_meta_ref(a, 5, stride)
  conv = _conv_same_ref(a, params["w3"], params["b3"])
  skip = _avgpool_meta_ref(x, 5, 2)
  c1 = _conv_same_ref(skip, params["ws"], params["bs"])
  out = jnp.concatenate([skip, c1], axis=-1) + conv
  return jnp.transpose(out, (0, 3, 1, 2))


# ----------------------------------------------------------------------------
# Deterministic synthetic parameters
# ----------------------------------------------------------------------------
def init_params(key, cin, cout, kernel_size):
  def conv(k, kh, kw, ci, co, scale=0.1):
    ka, kb = jax.random.split(k)
    return (scale * jax.random.normal(ka, (kh, kw, ci, co), jnp.float32),
            scale * jax.random.normal(kb, (co,), jnp.float32))
  ks = jax.random.split(key, 4)
  p = {}
  p["w1"], p["b1"] = conv(ks[0], 1, 1, cin, cout)                       # CONV 1x1
  p["wk"], p["bk"] = conv(ks[1], kernel_size, kernel_size, cout, cout)  # CONV KxK
  p["w3"], p["b3"] = conv(ks[2], 1, 1, cout, cout)                      # CONV 1x1 (post-pool)
  p["ws"], p["bs"] = conv(ks[3], 1, 1, cin, cout - cin)                 # CONV1 (skip)
  return p


if __name__ == "__main__":
  B, CIN, COUT, H, W = 2, 128, 256, 16, 16
  KSIZE, STRIDE = 3, 2

  key = jax.random.PRNGKey(0)
  kp, kx = jax.random.split(key)
  params = init_params(kp, CIN, COUT, KSIZE)
  x = jax.random.normal(kx, (B, CIN, H, W), jnp.float32)

  fwd = jax.jit(functools.partial(dblock_forward, kernel_size=KSIZE,
                                  stride=STRIDE))
  out = jax.block_until_ready(fwd(params, x))
  assert out.shape == (B, COUT, H // STRIDE, W // STRIDE), out.shape
  assert bool(jnp.all(jnp.isfinite(out)))

  ref = jax.block_until_ready(
      jax.jit(functools.partial(dblock_reference, kernel_size=KSIZE,
                                stride=STRIDE))(params, x))
  err = float(jnp.max(jnp.abs(out - ref))) / (float(jnp.max(jnp.abs(ref))) + 1e-6)
  assert err < 6e-2, f"Pallas vs reference scaled max error too large: {err}"
  print("KERNEL_OK")
</pallas_src>

<mosaic_0001>
module attributes {stable_mosaic.version = 11 : i64} {
  func.func @kernel(%arg0: i32, %arg1: memref<1x18x18x128xf32, #tpu.memory_space<vmem>>, %arg2: memref<64x256xbf16, #tpu.memory_space<vmem>>, %arg3: memref<128x256xbf16, #tpu.memory_space<vmem>>, %arg4: memref<1x256xf32, #tpu.memory_space<vmem>>, %arg5: memref<2304x256xbf16, #tpu.memory_space<vmem>>, %arg6: memref<1x256xf32, #tpu.memory_space<vmem>>, %arg7: memref<256x256xbf16, #tpu.memory_space<vmem>>, %arg8: memref<1x256xf32, #tpu.memory_space<vmem>>, %arg9: memref<128x128xbf16, #tpu.memory_space<vmem>>, %arg10: memref<1x128xf32, #tpu.memory_space<vmem>>, %arg11: memref<1x8x8x256xf32, #tpu.memory_space<vmem>>, %arg12: memref<256x2304xbf16, #tpu.memory_space<vmem>>) attributes {dimension_semantics = [#tpu.dimension_semantics<parallel>], iteration_bounds = array<i64: 2>, scalar_prefetch = 0 : i64, scratch_operands = 1 : i64, tpu.core_type = #tpu.core_type<tc>, window_params = [{transform_indices = @transform_0, window_bounds = array<i64: 1, 18, 18, 128>}, {pipeline_mode = #tpu.pipeline_mode<synchronous>, transform_indices = @transform_1, window_bounds = array<i64: 64, 256>}, {pipeline_mode = #tpu.pipeline_mode<synchronous>, transform_indices = @transform_2, window_bounds = array<i64: 128, 256>}, {pipeline_mode = #tpu.pipeline_mode<synchronous>, transform_indices = @transform_3, window_bounds = array<i64: 1, 256>}, {pipeline_mode = #tpu.pipeline_mode<synchronous>, transform_indices = @transform_4, window_bounds = array<i64: 2304, 256>}, {pipeline_mode = #tpu.pipeline_mode<synchronous>, transform_indices = @transform_5, window_bounds = array<i64: 1, 256>}, {pipeline_mode = #tpu.pipeline_mode<synchronous>, transform_indices = @transform_6, window_bounds = array<i64: 256, 256>}, {pipeline_mode = #tpu.pipeline_mode<synchronous>, transform_indices = @transform_7, window_bounds = array<i64: 1, 256>}, {pipeline_mode = #tpu.pipeline_mode<synchronous>, transform_indices = @transform_8, window_bounds = array<i64: 128, 128>}, {pipeline_mode = #tpu.pipeline_mode<synchronous>, transform_indices = @transform_9, window_bounds = array<i64: 1, 128>}, {transform_indices = @transform_10, window_bounds = array<i64: 1, 8, 8, 256>}]} {
    %c0 = arith.constant 0 : index
    %c0_0 = arith.constant 0 : index
    %c0_1 = arith.constant 0 : index
    %c0_2 = arith.constant 0 : index
    %0 = vector.load %arg1[%c0, %c0_0, %c0_1, %c0_2] : memref<1x18x18x128xf32, #tpu.memory_space<vmem>>, vector<1x18x18x128xf32>
    %1 = vector.shape_cast %0 : vector<1x18x18x128xf32> to vector<18x18x128xf32>
    %cst = arith.constant 2.000000e-01 : f32
    %2 = vector.broadcast %cst : f32 to vector<18x18x128xf32>
    %3 = arith.mulf %2, %1 : vector<18x18x128xf32>
    %4 = arith.maximumf %1, %3 : vector<18x18x128xf32>
    %5 = vector.extract_strided_slice %4 {offsets = [0, 0, 0], sizes = [16, 16, 128], strides = [1, 1, 1]} : vector<18x18x128xf32> to vector<16x16x128xf32>
    %6 = vector.shape_cast %5 : vector<16x16x128xf32> to vector<256x128xf32>
    %7 = arith.truncf %6 : vector<256x128xf32> to vector<256x128xbf16>
    %c0_3 = arith.constant 0 : index
    %c0_4 = arith.constant 0 : index
    %8 = vector.load %arg3[%c0_3, %c0_4] : memref<128x256xbf16, #tpu.memory_space<vmem>>, vector<128x256xbf16>
    %cst_5 = arith.constant dense<0.000000e+00> : vector<256x256xf32>
    %9 = tpu.matmul %7, %8, %cst_5 {dimension_numbers = #tpu.dot_dimension_numbers<[1], [0], [0], [1], [0, 0, 1, 1], [], []>} : vector<256x128xbf16>, vector<128x256xbf16>, vector<256x256xf32> -> vector<256x256xf32>
    %c0_6 = arith.constant 0 : index
    %c0_7 = arith.constant 0 : index
    %10 = vector.load %arg4[%c0_6, %c0_7] : memref<1x256xf32, #tpu.memory_space<vmem>>, vector<1x256xf32>
    %11 = vector.broadcast %10 : vector<1x256xf32> to vector<256x256xf32>
    %12 = arith.addf %9, %11 : vector<256x256xf32>
    %cst_8 = arith.constant 2.000000e-01 : f32
    %13 = vector.broadcast %cst_8 : f32 to vector<256x256xf32>
    %14 = arith.mulf %13, %12 : vector<256x256xf32>
    %15 = arith.maximumf %12, %14 : vector<256x256xf32>
    %16 = arith.truncf %15 : vector<256x256xf32> to vector<256x256xbf16>
    %c0_9 = arith.constant 0 : index
    %c0_10 = arith.constant 0 : index
    %17 = vector.load %arg12[%c0_9, %c0_10] : memref<256x2304xbf16, #tpu.memory_space<vmem>>, vector<256x256xbf16>
    tpu.vector_store %arg12[%c0_9, %c0_10], %16 {strides = array<i32>} : memref<256x2304xbf16, #tpu.memory_space<vmem>>, vector<256x256xbf16>,
    %18 = vector.extract_strided_slice %4 {offsets = [0, 1, 0], sizes = [16, 16, 128], strides = [1, 1, 1]} : vector<18x18x128xf32> to vector<16x16x128xf32>
    %19 = vector.shape_cast %18 : vector<16x16x128xf32> to vector<256x128xf32>
    %20 = arith.truncf %19 : vector<256x128xf32> to vector<256x128xbf16>
    %c0_11 = arith.constant 0 : index
    %c0_12 = arith.constant 0 : index
    %21 = vector.load %arg3[%c0_11, %c0_12] : memref<128x256xbf16, #tpu.memory_space<vmem>>, vector<128x256xbf16>
    %cst_13 = arith.constant dense<0.000000e+00> : vector<256x256xf32>
    %22 = tpu.matmul %20, %21, %cst_13 {dimension_numbers = #tpu.dot_dimension_numbers<[1], [0], [0], [1], [0, 0, 1, 1], [], []>} : vector<256x128xbf16>, vector<128x256xbf16>, vector<256x256xf32> -> vector<256x256xf32>
    %c0_14 = arith.constant 0 : index
    %c0_15 = arith.constant 0 : index
    %23 = vector.load %arg4[%c0_14, %c0_15] : memref<1x256xf32, #tpu.memory_space<vmem>>, vector<1x256xf32>
    %24 = vector.broadcast %23 : vector<1x256xf32> to vector<256x256xf32>
    %25 = arith.addf %22, %24 : vector<256x256xf32>
    %cst_16 = arith.constant 2.000000e-01 : f32
    %26 = vector.broadcast %cst_16 : f32 to vector<256x256xf32>
    %27 = arith.mulf %26, %25 : vector<256x256xf32>
    %28 = arith.maximumf %25, %27 : vector<256x256xf32>
    %29 = arith.truncf %28 : vector<256x256xf32> to vector<256x256xbf16>
    %c0_17 = arith.constant 0 : index
    %c256 = arith.constant 256 : index
    %30 = vector.load %arg12[%c0_17, %c256] : memref<256x2304xbf16, #tpu.memory_space<vmem>>, vector<256x256xbf16>
    tpu.vector_store %arg12[%c0_17, %c256], %29 {strides = array<i32>} : memref<256x2304xbf16, #tpu.memory_space<vmem>>, vector<256x256xbf16>,
    %31 = vector.extract_strided_slice %4 {offsets = [0, 2, 0], sizes = [16, 16, 128], strides = [1, 1, 1]} : vector<18x18x128xf32> to vector<16x16x128xf32>
    %32 = vector.shape_cast %31 : vector<16x16x128xf32> to vector<256x128xf32>
    %33 = arith.truncf %32 : vector<256x128xf32> to vector<256x128xbf16>
    %c0_18 = arith.constant 0 : index
    %c0_19 = arith.constant 0 : index
    %34 = vector.load %arg3[%c0_18, %c0_19] : memref<128x256xbf16, #tpu.memory_space<vmem>>, vector<128x256xbf16>
    %cst_20 = arith.constant dense<0.000000e+00> : vector<256x256xf32>
    %35 = tpu.matmul %33, %34, %cst_20 {dimension_numbers = #tpu.dot_dimension_numbers<[1], [0], [0], [1], [0, 0, 1, 1], [], []>} : vector<256x128xbf16>, vector<128x256xbf16>, vector<256x256xf32> -> vector<256x256xf32>
    %c0_21 = arith.constant 0 : index
    %c0_22 = arith.constant 0 : index
    %36 = vector.load %arg4[%c0_21, %c0_22] : memref<1x256xf32, #tpu.memory_space<vmem>>, vector<1x256xf32>
    %37 = vector.broadcast %36 : vector<1x256xf32> to vector<256x256xf32>
    %38 = arith.addf %35, %37 : vector<256x256xf32>
    %cst_23 = arith.constant 2.000000e-01 : f32
    %39 = vector.broadcast %cst_23 : f32 to vector<256x256xf32>
    %40 = arith.mulf %39, %38 : vector<256x256xf32>
    %41 = arith.maximumf %38, %40 : vector<256x256xf32>
    %42 = arith.truncf %41 : vector<256x256xf32> to vector<256x256xbf16>
    %c0_24 = arith.constant 0 : index
    %c512 = arith.constant 512 : index
    %43 = vector.load %arg12[%c0_24, %c512] : memref<256x2304xbf16, #tpu.memory_space<vmem>>, vector<256x256xbf16>
    tpu.vector_store %arg12[%c0_24, %c512], %42 {strides = array<i32>} : memref<256x2304xbf16, #tpu.memory_space<vmem>>, vector<256x256xbf16>,
    %44 = vector.extract_strided_slice %4 {offsets = [1, 0, 0], sizes = [16, 16, 128], strides = [1, 1, 1]} : vector<18x18x128xf32> to vector<16x16x128xf32>
    %45 = vector.shape_cast %44 : vector<16x16x128xf32> to vector<256x128xf32>
    %46 = arith.truncf %45 : vector<256x128xf32> to vector<256x128xbf16>
    %c0_25 = arith.constant 0 : index
    %c0_26 = arith.constant 0 : index
    %47 = vector.load %arg3[%c0_25, %c0_26] : memref<128x256xbf16, #tpu.memory_space<vmem>>, vector<128x256xbf16>
    %cst_27 = arith.constant dense<0.000000e+00> : vector<256x256xf32>
    %48 = tpu.matmul %46, %47, %cst_27 {dimension_numbers = #tpu.dot_dimension_numbers<[1], [0], [0], [1], [0, 0, 1, 1], [], []>} : vector<256x128xbf16>, vector<128x256xbf16>, vector<256x256xf32> -> vector<256x256xf32>
    %c0_28 = arith.constant 0 : index
    %c0_29 = arith.constant 0 : index
    %49 = vector.load %arg4[%c0_28, %c0_29] : memref<1x256xf32, #tpu.memory_space<vmem>>, vector<1x256xf32>
    %50 = vector.broadcast %49 : vector<1x256xf32> to vector<256x256xf32>
    %51 = arith.addf %48, %50 : vector<256x256xf32>
    %cst_30 = arith.constant 2.000000e-01 : f32
    %52 = vector.broadcast %cst_30 : f32 to vector<256x256xf32>
    %53 = arith.mulf %52, %51 : vector<256x256xf32>
    %54 = arith.maximumf %51, %53 : vector<256x256xf32>
    %55 = arith.truncf %54 : vector<256x256xf32> to vector<256x256xbf16>
    %c0_31 = arith.constant 0 : index
    %c768 = arith.constant 768 : index
    %56 = vector.load %arg12[%c0_31, %c768] : memref<256x2304xbf16, #tpu.memory_space<vmem>>, vector<256x256xbf16>
    tpu.vector_store %arg12[%c0_31, %c768], %55 {strides = array<i32>} : memref<256x2304xbf16, #tpu.memory_space<vmem>>, vector<256x256xbf16>,
    %57 = vector.extract_strided_slice %4 {offsets = [1, 1, 0], sizes = [16, 16, 128], strides = [1, 1, 1]} : vector<18x18x128xf32> to vector<16x16x128xf32>
    %58 = vector.shape_cast %57 : vector<16x16x128xf32> to vector<256x128xf32>
    %59 = arith.truncf %58 : vector<256x128xf32> to vector<256x128xbf16>
    %c0_32 = arith.constant 0 : index
    %c0_33 = arith.constant 0 : index
    %60 = vector.load %arg3[%c0_32, %c0_33] : memref<128x256xbf16, #tpu.memory_space<vmem>>, vector<128x256xbf16>
    %cst_34 = arith.constant dense<0.000000e+00> : vector<256x256xf32>
    %61 = tpu.matmul %59, %60, %cst_34 {dimension_numbers = #tpu.dot_dimension_numbers<[1], [0], [0], [1], [0, 0, 1, 1], [], []>} : vector<256x128xbf16>, vector<128x256xbf16>, vector<256x256xf32> -> vector<256x256xf32>
    %c0_35 = arith.constant 0 : index
    %c0_36 = arith.constant 0 : index
    %62 = vector.load %arg4[%c0_35, %c0_36] : memref<1x256xf32, #tpu.memory_space<vmem>>, vector<1x256xf32>
    %63 = vector.broadcast %62 : vector<1x256xf32> to vector<256x256xf32>
    %64 = arith.addf %61, %63 : vector<256x256xf32>
    %cst_37 = arith.constant 2.000000e-01 : f32
    %65 = vector.broadcast %cst_37 : f32 to vector<256x256xf32>
    %66 = arith.mulf %65, %64 : vector<256x256xf32>
    %67 = arith.maximumf %64, %66 : vector<256x256xf32>
    %68 = arith.truncf %67 : vector<256x256xf32> to vector<256x256xbf16>
    %c0_38 = arith.constant 0 : index
    %c1024 = arith.constant 1024 : index
    %69 = vector.load %arg12[%c0_38, %c1024] : memref<256x2304xbf16, #tpu.memory_space<vmem>>, vector<256x256xbf16>
    tpu.vector_store %arg12[%c0_38, %c1024], %68 {strides = array<i32>} : memref<256x2304xbf16, #tpu.memory_space<vmem>>, vector<256x256xbf16>,
    %70 = vector.extract_strided_slice %4 {offsets = [1, 2, 0], sizes = [16, 16, 128], strides = [1, 1, 1]} : vector<18x18x128xf32> to vector<16x16x128xf32>
    %71 = vector.shape_cast %70 : vector<16x16x128xf32> to vector<256x128xf32>
    %72 = arith.truncf %71 : vector<256x128xf32> to vector<256x128xbf16>
    %c0_39 = arith.constant 0 : index
    %c0_40 = arith.constant 0 : index
    %73 = vector.load %arg3[%c0_39, %c0_40] : memref<128x256xbf16, #tpu.memory_space<vmem>>, vector<128x256xbf16>
    %cst_41 = arith.constant dense<0.000000e+00> : vector<256x256xf32>
    %74 = tpu.matmul %72, %73, %cst_41 {dimension_numbers = #tpu.dot_dimension_numbers<[1], [0], [0], [1], [0, 0, 1, 1], [], []>} : vector<256x128xbf16>, vector<128x256xbf16>, vector<256x256xf32> -> vector<256x256xf32>
    %c0_42 = arith.constant 0 : index
    %c0_43 = arith.constant 0 : index
    %75 = vector.load %arg4[%c0_42, %c0_43] : memref<1x256xf32, #tpu.memory_space<vmem>>, vector<1x256xf32>
    %76 = vector.broadcast %75 : vector<1x256xf32> to vector<256x256xf32>
    %77 = arith.addf %74, %76 : vector<256x256xf32>
    %cst_44 = arith.constant 2.000000e-01 : f32
    %78 = vector.broadcast %cst_44 : f32 to vector<256x256xf32>
    %79 = arith.mulf %78, %77 : vector<256x256xf32>
    %80 = arith.maximumf %77, %79 : vector<256x256xf32>
    %81 = arith.truncf %80 : vector<256x256xf32> to vector<256x256xbf16>
    %c0_45 = arith.constant 0 : index
    %c1280 = arith.constant 1280 : index
    %82 = vector.load %arg12[%c0_45, %c1280] : memref<256x2304xbf16, #tpu.memory_space<vmem>>, vector<256x256xbf16>
    tpu.vector_store %arg12[%c0_45, %c1280], %81 {strides = array<i32>} : memref<256x2304xbf16, #tpu.memory_space<vmem>>, vector<256x256xbf16>,
    %83 = vector.extract_strided_slice %4 {offsets = [2, 0, 0], sizes = [16, 16, 128], strides = [1, 1, 1]} : vector<18x18x128xf32> to vector<16x16x128xf32>
    %84 = vector.shape_cast %83 : vector<16x16x128xf32> to vector<256x128xf32>
    %85 = arith.truncf %84 : vector<256x128xf32> to vector<256x128xbf16>
    %c0_46 = arith.constant 0 : index
    %c0_47 = arith.constant 0 : index
    %86 = vector.load %arg3[%c0_46, %c0_47] : memref<128x256xbf16, #tpu.memory_space<vmem>>, vector<128x256xbf16>
    %cst_48 = arith.constant dense<0.000000e+00> : vector<256x256xf32>
    %87 = tpu.matmul %85, %86, %cst_48 {dimension_numbers = #tpu.dot_dimension_numbers<[1], [0], [0], [1], [0, 0, 1, 1], [], []>} : vector<256x128xbf16>, vector<128x256xbf16>, vector<256x256xf32> -> vector<256x256xf32>
    %c0_49 = arith.constant 0 : index
    %c0_50 = arith.constant 0 : index
    %88 = vector.load %arg4[%c0_49, %c0_50] : memref<1x256xf32, #tpu.memory_space<vmem>>, vector<1x256xf32>
    %89 = vector.broadcast %88 : vector<1x256xf32> to vector<256x256xf32>
    %90 = arith.addf %87, %89 : vector<256x256xf32>
    %cst_51 = arith.constant 2.000000e-01 : f32
    %91 = vector.broadcast %cst_51 : f32 to vector<256x256xf32>
    %92 = arith.mulf %91, %90 : vector<256x256xf32>
    %93 = arith.maximumf %90, %92 : vector<256x256xf32>
    %94 = arith.truncf %93 : vector<256x256xf32> to vector<256x256xbf16>
    %c0_52 = arith.constant 0 : index
    %c1536 = arith.constant 1536 : index
    %95 = vector.load %arg12[%c0_52, %c1536] : memref<256x2304xbf16, #tpu.memory_space<vmem>>, vector<256x256xbf16>
    tpu.vector_store %arg12[%c0_52, %c1536], %94 {strides = array<i32>} : memref<256x2304xbf16, #tpu.memory_space<vmem>>, vector<256x256xbf16>,
    %96 = vector.extract_strided_slice %4 {offsets = [2, 1, 0], sizes = [16, 16, 128], strides = [1, 1, 1]} : vector<18x18x128xf32> to vector<16x16x128xf32>
    %97 = vector.shape_cast %96 : vector<16x16x128xf32> to vector<256x128xf32>
    %98 = arith.truncf %97 : vector<256x128xf32> to vector<256x128xbf16>
    %c0_53 = arith.constant 0 : index
    %c0_54 = arith.constant 0 : index
    %99 = vector.load %arg3[%c0_53, %c0_54] : memref<128x256xbf16, #tpu.memory_space<vmem>>, vector<128x256xbf16>
    %cst_55 = arith.constant dense<0.000000e+00> : vector<256x256xf32>
    %100 = tpu.matmul %98, %99, %cst_55 {dimension_numbers = #tpu.dot_dimension_numbers<[1], [0], [0], [1], [0, 0, 1, 1], [], []>} : vector<256x128xbf16>, vector<128x256xbf16>, vector<256x256xf32> -> vector<256x256xf32>
    %c0_56 = arith.constant 0 : index
    %c0_57 = arith.constant 0 : index
    %101 = vector.load %arg4[%c0_56, %c0_57] : memref<1x256xf32, #tpu.memory_space<vmem>>, vector<1x256xf32>
    %102 = vector.broadcast %101 : vector<1x256xf32> to vector<256x256xf32>
    %103 = arith.addf %100, %102 : vector<256x256xf32>
    %cst_58 = arith.constant 2.000000e-01 : f32
    %104 = vector.broadcast %cst_58 : f32 to vector<256x256xf32>
    %105 = arith.mulf %104, %103 : vector<256x256xf32>
    %106 = arith.maximumf %103, %105 : vector<256x256xf32>
    %107 = arith.truncf %106 : vector<256x256xf32> to vector<256x256xbf16>
    %c0_59 = arith.constant 0 : index
    %c1792 = arith.constant 1792 : index
    %108 = vector.load %arg12[%c0_59, %c1792] : memref<256x2304xbf16, #tpu.memory_space<vmem>>, vector<256x256xbf16>
    tpu.vector_store %arg12[%c0_59, %c1792], %107 {strides = array<i32>} : memref<256x2304xbf16, #tpu.memory_space<vmem>>, vector<256x256xbf16>,
    %109 = vector.extract_strided_slice %4 {offsets = [2, 2, 0], sizes = [16, 16, 128], strides = [1, 1, 1]} : vector<18x18x128xf32> to vector<16x16x128xf32>
    %110 = vector.shape_cast %109 : vector<16x16x128xf32> to vector<256x128xf32>
    %111 = arith.truncf %110 : vector<256x128xf32> to vector<256x128xbf16>
    %c0_60 = arith.constant 0 : index
    %c0_61 = arith.constant 0 : index
    %112 = vector.load %arg3[%c0_60, %c0_61] : memref<128x256xbf16, #tpu.memory_space<vmem>>, vector<128x256xbf16>
    %cst_62 = arith.constant dense<0.000000e+00> : vector<256x256xf32>
    %113 = tpu.matmul %111, %112, %cst_62 {dimension_numbers = #tpu.dot_dimension_numbers<[1], [0], [0], [1], [0, 0, 1, 1], [], []>} : vector<256x128xbf16>, vector<128x256xbf16>, vector<256x256xf32> -> vector<256x256xf32>
    %c0_63 = arith.constant 0 : index
    %c0_64 = arith.constant 0 : index
    %114 = vector.load %arg4[%c0_63, %c0_64] : memref<1x256xf32, #tpu.memory_space<vmem>>, vector<1x256xf32>
    %115 = vector.broadcast %114 : vector<1x256xf32> to vector<256x256xf32>
    %116 = arith.addf %113, %115 : vector<256x256xf32>
    %cst_65 = arith.constant 2.000000e-01 : f32
    %117 = vector.broadcast %cst_65 : f32 to vector<256x256xf32>
    %118 = arith.mulf %117, %116 : vector<256x256xf32>
    %119 = arith.maximumf %116, %118 : vector<256x256xf32>
    %120 = arith.truncf %119 : vector<256x256xf32> to vector<256x256xbf16>
    %c0_66 = arith.constant 0 : index
    %c2048 = arith.constant 2048 : index
    %121 = vector.load %arg12[%c0_66, %c2048] : memref<256x2304xbf16, #tpu.memory_space<vmem>>, vector<256x256xbf16>
    tpu.vector_store %arg12[%c0_66, %c2048], %120 {strides = array<i32>} : memref<256x2304xbf16, #tpu.memory_space<vmem>>, vector<256x256xbf16>,
    %c0_67 = arith.constant 0 : index
    %c0_68 = arith.constant 0 : index
    %122 = vector.load %arg12[%c0_67, %c0_68] : memref<256x2304xbf16, #tpu.memory_space<vmem>>, vector<256x2304xbf16>
    %c0_69 = arith.constant 0 : index
    %c0_70 = arith.constant 0 : index
    %123 = vector.load %arg5[%c0_69, %c0_70] : memref<2304x256xbf16, #tpu.memory_space<vmem>>, vector<2304x256xbf16>
    %cst_71 = arith.constant dense<0.000000e+00> : vector<256x256xf32>
    %124 = tpu.matmul %122, %123, %cst_71 {dimension_numbers = #tpu.dot_dimension_numbers<[1], [0], [0], [1], [0, 0, 1, 1], [], []>} : vector<256x2304xbf16>, vector<2304x256xbf16>, vector<256x256xf32> -> vector<256x256xf32>
    %c0_72 = arith.constant 0 : index
    %c0_73 = arith.constant 0 : index
    %125 = vector.load %arg6[%c0_72, %c0_73] : memref<1x256xf32, #tpu.memory_space<vmem>>, vector<1x256xf32>
    %126 = vector.broadcast %125 : vector<1x256xf32> to vector<256x256xf32>
    %127 = arith.addf %124, %126 : vector<256x256xf32>
    %cst_74 = arith.constant 2.000000e-01 : f32
    %128 = vector.broadcast %cst_74 : f32 to vector<256x256xf32>
    %129 = arith.mulf %128, %127 : vector<256x256xf32>
    %130 = arith.maximumf %127, %129 : vector<256x256xf32>
    %c0_75 = arith.constant 0 : index
    %c0_76 = arith.constant 0 : index
    %131 = vector.load %arg2[%c0_75, %c0_76] : memref<64x256xbf16, #tpu.memory_space<vmem>>, vector<64x256xbf16>
    %132 = arith.truncf %130 : vector<256x256xf32> to vector<256x256xbf16>
    %cst_77 = arith.constant dense<0.000000e+00> : vector<64x256xf32>
    %133 = tpu.matmul %131, %132, %cst_77 {dimension_numbers = #tpu.dot_dimension_numbers<[1], [0], [0], [1], [0, 0, 1, 1], [], []>} : vector<64x256xbf16>, vector<256x256xbf16>, vector<64x256xf32> -> vector<64x256xf32>
    %cst_78 = arith.constant 4.000000e-02 : f32
    %134 = vector.broadcast %cst_78 : f32 to vector<64x256xf32>
    %135 = arith.mulf %133, %134 : vector<64x256xf32>
    %136 = arith.truncf %135 : vector<64x256xf32> to vector<64x256xbf16>
    %c0_79 = arith.constant 0 : index
    %c0_80 = arith.constant 0 : index
    %137 = vector.load %arg7[%c0_79, %c0_80] : memref<256x256xbf16, #tpu.memory_space<vmem>>, vector<256x256xbf16>
    %cst_81 = arith.constant dense<0.000000e+00> : vector<64x256xf32>
    %138 = tpu.matmul %136, %137, %cst_81 {dimension_numbers = #tpu.dot_dimension_numbers<[1], [0], [0], [1], [0, 0, 1, 1], [], []>} : vector<64x256xbf16>, vector<256x256xbf16>, vector<64x256xf32> -> vector<64x256xf32>
    %c0_82 = arith.constant 0 : index
    %c0_83 = arith.constant 0 : index
    %139 = vector.load %arg8[%c0_82, %c0_83] : memref<1x256xf32, #tpu.memory_space<vmem>>, vector<1x256xf32>
    %140 = vector.broadcast %139 : vector<1x256xf32> to vector<64x256xf32>
    %141 = arith.addf %138, %140 : vector<64x256xf32>
    %142 = vector.extract_strided_slice %1 {offsets = [1, 1, 0], sizes = [16, 16, 128], strides = [1, 1, 1]} : vector<18x18x128xf32> to vector<16x16x128xf32>
    %143 = vector.shape_cast %142 : vector<16x16x128xf32> to vector<256x128xf32>
    %c0_84 = arith.constant 0 : index
    %c0_85 = arith.constant 0 : index
    %144 = vector.load %arg2[%c0_84, %c0_85] : memref<64x256xbf16, #tpu.memory_space<vmem>>, vector<64x256xbf16>
    %145 = arith.truncf %143 : vector<256x128xf32> to vector<256x128xbf16>
    %cst_86 = arith.constant dense<0.000000e+00> : vector<64x128xf32>
    %146 = tpu.matmul %144, %145, %cst_86 {dimension_numbers = #tpu.dot_dimension_numbers<[1], [0], [0], [1], [0, 0, 1, 1], [], []>} : vector<64x256xbf16>, vector<256x128xbf16>, vector<64x128xf32> -> vector<64x128xf32>
    %cst_87 = arith.constant 4.000000e-02 : f32
    %147 = vector.broadcast %cst_87 : f32 to vector<64x128xf32>
    %148 = arith.mulf %146, %147 : vector<64x128xf32>
    %149 = arith.truncf %148 : vector<64x128xf32> to vector<64x128xbf16>
    %c0_88 = arith.constant 0 : index
    %c0_89 = arith.constant 0 : index
    %150 = vector.load %arg9[%c0_88, %c0_89] : memref<128x128xbf16, #tpu.memory_space<vmem>>, vector<128x128xbf16>
    %cst_90 = arith.constant dense<0.000000e+00> : vector<64x128xf32>
    %151 = tpu.matmul %149, %150, %cst_90 {dimension_numbers = #tpu.dot_dimension_numbers<[1], [0], [0], [1], [0, 0, 1, 1], [], []>} : vector<64x128xbf16>, vector<128x128xbf16>, vector<64x128xf32> -> vector<64x128xf32>
    %c0_91 = arith.constant 0 : index
    %c0_92 = arith.constant 0 : index
    %152 = vector.load %arg10[%c0_91, %c0_92] : memref<1x128xf32, #tpu.memory_space<vmem>>, vector<1x128xf32>
    %153 = vector.broadcast %152 : vector<1x128xf32> to vector<64x128xf32>
    %154 = arith.addf %151, %153 : vector<64x128xf32>
    %155 = tpu.concatenate %148, %154 in 1 : vector<64x128xf32>, vector<64x128xf32> -> vector<64x256xf32>
    %156 = arith.addf %155, %141 : vector<64x256xf32>
    %157 = vector.shape_cast %156 : vector<64x256xf32> to vector<8x8x256xf32>
    %c0_93 = arith.constant 0 : index
    %c0_94 = arith.constant 0 : index
    %c0_95 = arith.constant 0 : index
    %c0_96 = arith.constant 0 : index
    %158 = vector.load %arg11[%c0_93, %c0_94, %c0_95, %c0_96] : memref<1x8x8x256xf32, #tpu.memory_space<vmem>>, vector<1x8x8x256xf32>
    %159 = vector.shape_cast %158 : vector<1x8x8x256xf32> to vector<8x8x256xf32>
    %160 = vector.shape_cast %157 : vector<8x8x256xf32> to vector<1x8x8x256xf32>
    tpu.vector_store %arg11[%c0_93, %c0_94, %c0_95, %c0_96], %160 {strides = array<i32>} : memref<1x8x8x256xf32, #tpu.memory_space<vmem>>, vector<1x8x8x256xf32>,
    return
  }
  func.func @transform_0(%arg0: i32) -> (i32, i32, i32, i32) {
    %c0_i32 = arith.constant 0 : i32
    %c0_i32_0 = arith.constant 0 : i32
    %c0_i32_1 = arith.constant 0 : i32
    %c0_i32_2 = arith.constant 0 : i32
    return %arg0, %c0_i32, %c0_i32_0, %c0_i32_1 : i32, i32, i32, i32
  }
  func.func @transform_1(%arg0: i32) -> (i32, i32) {
    %c0_i32 = arith.constant 0 : i32
    %c0_i32_0 = arith.constant 0 : i32
    %c0_i32_1 = arith.constant 0 : i32
    return %c0_i32, %c0_i32_0 : i32, i32
  }
  func.func @transform_2(%arg0: i32) -> (i32, i32) {
    %c0_i32 = arith.constant 0 : i32
    %c0_i32_0 = arith.constant 0 : i32
    %c0_i32_1 = arith.constant 0 : i32
    return %c0_i32, %c0_i32_0 : i32, i32
  }
  func.func @transform_3(%arg0: i32) -> (i32, i32) {
    %c0_i32 = arith.constant 0 : i32
    %c0_i32_0 = arith.constant 0 : i32
    %c0_i32_1 = arith.constant 0 : i32
    return %c0_i32, %c0_i32_0 : i32, i32
  }
  func.func @transform_4(%arg0: i32) -> (i32, i32) {
    %c0_i32 = arith.constant 0 : i32
    %c0_i32_0 = arith.constant 0 : i32
    %c0_i32_1 = arith.constant 0 : i32
    return %c0_i32, %c0_i32_0 : i32, i32
  }
  func.func @transform_5(%arg0: i32) -> (i32, i32) {
    %c0_i32 = arith.constant 0 : i32
    %c0_i32_0 = arith.constant 0 : i32
    %c0_i32_1 = arith.constant 0 : i32
    return %c0_i32, %c0_i32_0 : i32, i32
  }
  func.func @transform_6(%arg0: i32) -> (i32, i32) {
    %c0_i32 = arith.constant 0 : i32
    %c0_i32_0 = arith.constant 0 : i32
    %c0_i32_1 = arith.constant 0 : i32
    return %c0_i32, %c0_i32_0 : i32, i32
  }
  func.func @transform_7(%arg0: i32) -> (i32, i32) {
    %c0_i32 = arith.constant 0 : i32
    %c0_i32_0 = arith.constant 0 : i32
    %c0_i32_1 = arith.constant 0 : i32
    return %c0_i32, %c0_i32_0 : i32, i32
  }
  func.func @transform_8(%arg0: i32) -> (i32, i32) {
    %c0_i32 = arith.constant 0 : i32
    %c0_i32_0 = arith.constant 0 : i32
    %c0_i32_1 = arith.constant 0 : i32
    return %c0_i32, %c0_i32_0 : i32, i32
  }
  func.func @transform_9(%arg0: i32) -> (i32, i32) {
    %c0_i32 = arith.constant 0 : i32
    %c0_i32_0 = arith.constant 0 : i32
    %c0_i32_1 = arith.constant 0 : i32
    return %c0_i32, %c0_i32_0 : i32, i32
  }
  func.func @transform_10(%arg0: i32) -> (i32, i32, i32, i32) {
    %c0_i32 = arith.constant 0 : i32
    %c0_i32_0 = arith.constant 0 : i32
    %c0_i32_1 = arith.constant 0 : i32
    %c0_i32_2 = arith.constant 0 : i32
    return %arg0, %c0_i32, %c0_i32_0, %c0_i32_1 : i32, i32, i32, i32
  }
}

</mosaic_0001>

<bundles_post_ra>
// kernel: dblock_forward.1
= control target key start
LH: loop header
LB: loop body
LE: loop exit
PB: predicated region body
PF: predicated region fallthrough
CT: control target
= control target key end

     0   :  { %15 = vsyncpa [#allocation4], 0  ;;  %s20901_s0 = inlined_call_operand.vmem [shape: f32[2,18,18,128], index: 0, kind: input, shape index: {}]   ;;  %s20902_s1 = inlined_call_operand.vmem [shape: bf16[64,256], index: 1, kind: input, shape index: {}]   ;;  %s20903_s2 = inlined_call_operand.vmem [shape: bf16[128,256], index: 2, kind: input, shape index: {}]   ;;  %s20904_s3 = inlined_call_operand.vmem [shape: f32[1,256], index: 3, kind: input, shape index: {}]   ;;  %s20905_s4 = inlined_call_operand.vmem [shape: bf16[2304,256], index: 4, kind: input, shape index: {}]   ;;  %s20906_s5 = inlined_call_operand.vmem [shape: f32[1,256], index: 5, kind: input, shape index: {}]   ;;  %s20907_s6 = inlined_call_operand.vmem [shape: bf16[256,256], index: 6, kind: input, shape index: {}]   ;;  %s20908_s7 = inlined_call_operand.vmem [shape: f32[1,256], index: 7, kind: input, shape index: {}]   ;;  %s20909_s8 = inlined_call_operand.vmem [shape: bf16[128,128], index: 8, kind: input, shape index: {}]   ;;  %s20910_s9 = inlined_call_operand.vmem [shape: f32[1,128], index: 9, kind: input, shape index: {}]   ;;  %s20911_s10 = inlined_call_operand.hbm [shape: f32[2,8,8,256], index: 10, kind: output, shape index: {}]  }
   0x1   :  { %17 = vsyncpa [#allocation4 + $0x1], 0  ;;  %s15574_s13 = smov 0   ;;  %s15576_s14 = smov 0  }
   0x2   :  { %s15578_s15 = smov 0   ;;  %s15580_s16 = smov 0  }
   0x3 LB: > { %s15595_s17 = sadd.s32 4294967295, %s15513_s16   ;;  %s13044_s18 = sadd.s32 4294967294, %s15513_s16   ;;  %s15513_s16 = sphi %s15580_s16, %s21801_s16   ;;  %s15509_s15 = sphi %s15578_s15, %s21800_s15   ;;  %s15505_s14 = sphi %s15576_s14, %s21799_s14   ;;  %s15501_s13 = sphi %s15574_s13, %s21798_s13  }
   0x4   : > { %s15599_s19 = sadd.s32 1, %s15513_s16   ;;  %s245_s20 = sadd.s32 1, %s15509_s15 }
   0x5   : > { %s242_s21 = ssub.s32 %s15513_s16, %s15599_s19  ;;  %p255_p0 = scmp.ne.s32.totalorder %s15509_s15, %s15505_s14 }
   0x6   : > { %p243_p1 = scmp.eq.s32.totalorder %s242_s21, 0  ;;  %p256_p2 = scmp.eq.s32.totalorder %s15595_s17, 1 }
   0x7   : > { %p261_p3 = scmp.ne.s32.totalorder %s15505_s14, %s15501_s13  ;;  %p262_p4 = scmp.eq.s32.totalorder %s13044_s18, 1 }
   0x8   : > { %s15610_s22 = scalar_select %p243_p1, %s15509_s15, %s245_s20  }
   0x9   : > { %p15612_p5 = por %p256_p2, %p255_p0  ;;  %p15616_p6 = por %p262_p4, %p261_p3 }
   0xa   : > { %p13047_p7 = scmp.ge.s32.totalorder %s15513_s16, 1  ;;  %p315_p8 = scmp.lt.s32.totalorder %s15513_s16, 3 }
   0xc   : > { %p316_p9 = pnand %p13047_p7, %p315_p8 }
   0xe   : > { %319 = sbr.rel (%p316_p9) target bundleno = 1923 (0x783), region = 60 }
  0x13   : > { %v15625_v0 = vld [vmem:[%s20903_s2 + $0x74] ss:$8 sps:$4 sm:$0xff]   ;;  %p353_p10 = scmp.lt.s32.totalorder %s15595_s17, 1  ;;  %v15631_v1 = vld [vmem:[%s20903_s2 + $0x70] ss:$8 sps:$4 sm:$0xff]   ;;  %v20916_v2 = vmov 0  }
  0x14   : > { %677 = vmatprep.mubr.bf16.mxu0 %v20916_v2  ;;  %1507 = vmatprep.mubr.bf16.mxu1 %v20916_v2  ;;  %v15640_v3 = vld [vmem:[%s20903_s2 + $0x64] ss:$8 sps:$4 sm:$0xff]   ;;  %v15648_v4 = vld [vmem:[%s20903_s2 + $0x60] ss:$8 sps:$4 sm:$0xff]   ;;  %v15655_v5 = vld [vmem:[%s20903_s2 + $0x54] ss:$8 sps:$4 sm:$0xff]  }
  0x15   : > { %645 = vmatprep.subr.bf16.mxu0 %v15625_v0  ;;  %1475 = vmatprep.subr.bf16.mxu1 %v15625_v0  ;;  %s354_s11 = scalar_select %p353_p10, %s15595_s17, 1  ;;  %v15662_v6 = vld [vmem:[%s20903_s2 + $0x50] ss:$8 sps:$4 sm:$0xff]   ;;  %v15669_v7 = vld [vmem:[%s20903_s2 + $0x44] ss:$8 sps:$4 sm:$0xff]   ;;  %vm1238_vm0 = vcmask 1046528  }
  0x16   : > { %646 = vmatpush1.bf16.msra.mxu0 %v15631_v1  ;;  %1476 = vmatpush1.bf16.msra.mxu1 %v15631_v1  ;;  %v15681_v8 = vld [vmem:[%s20903_s2 + $0x40] ss:$8 sps:$4 sm:$0xff]   ;;  %v15686_v9 = vld [vmem:[%s20903_s2 + $0x34] ss:$8 sps:$4 sm:$0xff]   ;;  %v15696_v13 = vld [vmem:[%s20903_s2 + $0x30] ss:$8 sps:$4 sm:$0xff]  }
  0x17   : > { %647 = vmatprep.subr.bf16.mxu0 %v15640_v3  ;;  %1477 = vmatprep.subr.bf16.mxu1 %v15640_v3  ;;  %s14765_s25 = smul.u32 432, %s354_s11  ;;  %v15705_v17 = vld [vmem:[%s20903_s2 + $0x24] ss:$8 sps:$4 sm:$0xff]   ;;  %v15712_v18 = vld [vmem:[%s20903_s2 + $0x20] ss:$8 sps:$4 sm:$0xff]   ;;  %vm2020_vm1 = vcmask 1045504  }
  0x18   : > { %v15727_v24 = vld [vmem:[%s20903_s2 + $0x14] ss:$8 sps:$4 sm:$0xff]   ;;  %v15733_v26 = vld [vmem:[%s20903_s2 + $0x10] ss:$8 sps:$4 sm:$0xff]   ;;  %v15745_v33 = vld [vmem:[%s20903_s2 + $0x4] ss:$8 sps:$4 sm:$0xff]  }
  0x19   : > { %s15674_s12 = scalar_lea.vmem %s20901_s0, %s14765_s25  ;;  %v15757_v37 = vld [vmem:[%s20903_s2] ss:$8 sps:$4 sm:$0xff]   ;;  %s350_s29 = sand.u32 1, %s15505_s14  }
  0x1a   : > { %648 = vmatpush1.bf16.msra.mxu0 %v15648_v4  ;;  %1478 = vmatpush1.bf16.msra.mxu1 %v15648_v4  ;;  %v359_v10 = vld [vmem:[%s15674_s12] sm:$0xff]  ;;  %v360_v11 = vld [vmem:[%s15674_s12 + $0x8] sm:$0xff]  ;;  %v361_v12 = vld [vmem:[%s15674_s12 + $0x10] sm:$0x3]  ;;  %s14400_s20 = sshll.u32 %s15595_s17, 11  ;;  %s20861_s17 = scalar_lea.sflag [#allocation4], %s350_s29 }
  0x1b   : > { %649 = vmatprep.subr.bf16.mxu0 %v15655_v5  ;;  %1479 = vmatprep.subr.bf16.mxu1 %v15655_v5  ;;  %v413_v14 = vmul.f32 0.2, %v359_v10  ;;  %v414_v15 = vmul.f32 0.2, %v360_v11  ;;  %v415_v16 = vmul.f32 0.2, %v361_v12  ;;  %s20853_s27 = scalar_lea.hbm %s20911_s10, %s14400_s20 }
  0x1c   : > { %v362_v22 = vld [vmem:[%s15674_s12 + $0x18] sm:$0xff]  ;;  %v363_v23 = vld [vmem:[%s15674_s12 + $0x20] sm:$0xff]  ;;  %v364_v25 = vld [vmem:[%s15674_s12 + $0x28] sm:$0x3] }
  0x1d   : > { %v15714_v19 = vmax.f32 %v359_v10, %v413_v14  ;;  %v15716_v20 = vmax.f32 %v360_v11, %v414_v15  ;;  %v15718_v21 = vmax.f32 %v361_v12, %v415_v16  ;;  %v416_v27 = vmul.f32 0.2, %v362_v22  ;;  %v365_v36 = vld [vmem:[%s15674_s12 + $0x30] sm:$0xff]  ;;  %v366_v41 = vld [vmem:[%s15674_s12 + $0x38] sm:$0xff]  ;;  %v367_v42 = vld [vmem:[%s15674_s12 + $0x40] sm:$0x3] }
  0x1e   : > { %650 = vmatpush1.bf16.msra.mxu0 %v15662_v6  ;;  %1480 = vmatpush1.bf16.msra.mxu1 %v15662_v6  ;;  %v417_v28 = vmul.f32 0.2, %v363_v23  ;;  %v418_v32 = vmul.f32 0.2, %v364_v25  ;;  %v419_v43 = vmul.f32 0.2, %v365_v36 }
  0x1f   : > { %651 = vmatprep.subr.bf16.mxu0 %v15669_v7  ;;  %1481 = vmatprep.subr.bf16.mxu1 %v15669_v7  ;;  %v1239_v29 = vrot.slane %v15714_v19, 1  ;;  %v1240_v30 = vrot.slane %v15716_v20, 1  ;;  %v1242_v31 = vrot.slane %v15718_v21, 1  ;;  %v15747_v34 = vmax.f32 %v362_v22, %v416_v27  ;;  %v368_v51 = vld [vmem:[%s15674_s12 + $0x48] sm:$0xff]  ;;  %v369_v52 = vld [vmem:[%s15674_s12 + $0x50] sm:$0xff] }
  0x20   : > { %v15749_v35 = vmax.f32 %v363_v23, %v417_v28  ;;  %v15761_v40 = vmax.f32 %v364_v25, %v418_v32  ;;  %v521_v44 = vpack.c.bf16 %v15716_v20, %v15714_v19  ;;  %v420_v49 = vmul.f32 0.2, %v366_v41  ;;  %v370_v58 = vld [vmem:[%s15674_s12 + $0x58] sm:$0x3]  ;;  %v372_v12 = vld [vmem:[%s15674_s12 + $0x68] sm:$0xff] }
  0x21   : > { %v1241_v38 = vsel %vm1238_vm0, %v1239_v29, %v1240_v30  ;;  %v1243_v39 = vsel %vm1238_vm0, %v1240_v30, %v1242_v31  ;;  %v1244_v46 = vrot.slane %v15747_v34, 1  ;;  %v421_v50 = vmul.f32 0.2, %v367_v42  ;;  %v374_v29 = vld [vmem:[%s15674_s12 + $0x78] sm:$0xff]  ;;  %v376_v32 = vld [vmem:[%s15674_s12 + $0x88] sm:$0x3] }
  0x22   : > { %652 = vmatpush1.bf16.msra.mxu0 %v15681_v8  ;;  %1482 = vmatpush1.bf16.msra.mxu1 %v15681_v8  ;;  %v1351_v45 = vpack.c.bf16 %v1243_v39, %v1241_v38  ;;  %v1245_v47 = vrot.slane %v15749_v35, 1  ;;  %v1247_v48 = vrot.slane %v15761_v40, 1  ;;  %v15779_v54 = vmax.f32 %v365_v36, %v419_v43 }
  0x23   : > { %653 = vmatprep.subr.bf16.mxu0 %v15686_v9  ;;  %1483 = vmatprep.subr.bf16.mxu1 %v15686_v9  ;;  %v15784_v56 = vmax.f32 %v366_v41, %v420_v49  ;;  %v15786_v57 = vmax.f32 %v367_v42, %v421_v50  ;;  %v422_v59 = vmul.f32 0.2, %v368_v51  ;;  %v15795_v60 = vpack.c.bf16 %v15749_v35, %v15747_v34  ;;  %v377_v42 = vld [vmem:[%s15674_s12 + $0x90] sm:$0xff] }
  0x24   : > { %v1246_v53 = vsel %vm1238_vm0, %v1244_v46, %v1245_v47  ;;  %v1248_v55 = vsel %vm1238_vm0, %v1245_v47, %v1247_v48  ;;  %v423_v62 = vmul.f32 0.2, %v369_v52  ;;  %v1249_v63 = vrot.slane %v15779_v54, 1  ;;  %v379_v46 = vld [vmem:[%s15674_s12 + $0xa0] sm:$0x3] }
  0x25   : > { %v15797_v61 = vpack.c.bf16 %v1248_v55, %v1246_v53  ;;  %v1252_v10 = vrot.slane %v15786_v57, 1  ;;  %v424_v11 = vmul.f32 0.2, %v370_v58  ;;  %v15811_v14 = vmax.f32 %v368_v51, %v422_v59 }
  0x26   : > { %654 = vmatpush1.bf16.msra.mxu0 %v15696_v13  ;;  %1484 = vmatpush1.bf16.msra.mxu1 %v15696_v13  ;;  %v15813_v15 = vmax.f32 %v369_v52, %v423_v62  ;;  %v426_v23 = vmul.f32 0.2, %v372_v12  ;;  %v15827_v25 = vpack.c.bf16 %v15784_v56, %v15779_v54  ;;  %v431_v53 = vmul.f32 0.2, %v377_v42 }
  0x27   : > { %655 = vmatprep.subr.bf16.mxu0 %v15705_v17  ;;  %1485 = vmatprep.subr.bf16.mxu1 %v15705_v17  ;;  %v15819_v22 = vmax.f32 %v370_v58, %v424_v11  ;;  %v1254_v30 = vrot.slane %v15811_v14, 1  ;;  %v2022_v59 = vrot.slane %v15716_v20, 2  ;;  %v433_v62 = vmul.f32 0.2, %v379_v46 }
  0x28   : > { %20977 = vst [vmem:[#allocation6_spill] sm:$0xff] %v15827_v25  ;;  %v1255_v31 = vrot.slane %v15813_v15, 1  ;;  %v15845_v38 = vmax.f32 %v372_v12, %v426_v23  ;;  %v15862_v47 = vpack.c.bf16 %v15813_v15, %v15811_v14  ;;  %v2024_v20 = vrot.slane %v15718_v21, 2 }
  0x29   : > { %v15896_v11 = vmax.f32 %v377_v42, %v431_v53 }
  0x2a   : > { %656 = vmatpush1.bf16.msra.mxu0 %v15712_v18  ;;  %1486 = vmatpush1.bf16.msra.mxu1 %v15712_v18  ;;  %20978 = vst [vmem:[#allocation7_spill] sm:$0xff] %v15862_v47  ;;  %v1260_v50 = vrot.slane %v15845_v38, 1 }
  0x2b   : > { %657 = vmatprep.subr.bf16.mxu0 %v15727_v24  ;;  %1487 = vmatprep.subr.bf16.mxu1 %v15727_v24 }
  0x2e   : > { %658 = vmatpush1.bf16.msra.mxu0 %v15733_v26  ;;  %1488 = vmatpush1.bf16.msra.mxu1 %v15733_v26 }
  0x2f   : > { %659 = vmatprep.subr.bf16.mxu0 %v15745_v33  ;;  %1489 = vmatprep.subr.bf16.mxu1 %v15745_v33 }
  0x32   : > { %660 = vmatpush1.bf16.msra.mxu0 %v15757_v37  ;;  %1490 = vmatpush1.bf16.msra.mxu1 %v15757_v37 }
  0x33   : > { %2257 = vmatprep.subr.bf16.mxu0 %v15625_v0  ;;  %2911 = vmatprep.subr.bf16.mxu1 %v15625_v0  ;;  %v1250_v0 = vrot.slane %v15784_v56, 1 }
  0x35   : > { %678 = vmatmul.mubr.bf16.vlgmr.msra.gmra.mxu0 %v521_v44  ;;  %1508 = vmatmul.mubr.bf16.vlgmr.msra.gmra.mxu1 %v1351_v45  ;;  %v1253_v16 = vsel %vm1238_vm0, %v1250_v0, %v1252_v10  ;;  %v430_v44 = vmul.f32 0.2, %v376_v32  ;;  %v378_v45 = vld [vmem:[%s15674_s12 + $0x98] sm:$0xff] }
  0x36   : > { %687 = vmatprep.mubr.bf16.mxu0 %v20916_v2  ;;  %1517 = vmatprep.mubr.bf16.mxu1 %v20916_v2  ;;  %v432_v58 = vmul.f32 0.2, %v378_v45 }
  0x37   : > { %2258 = vmatpush1.bf16.msra.mxu0 %v15631_v1  ;;  %2912 = vmatpush1.bf16.msra.mxu1 %v15631_v1  ;;  %v371_v1 = vld [vmem:[%s15674_s12 + $0x60] sm:$0xff]  ;;  %v15876_v55 = vmax.f32 %v376_v32, %v430_v44  ;;  %v2027_v32 = vrot.slane %v15749_v35, 2  ;;  %v2034_v35 = vrot.slane %v15786_v57, 2  ;;  %v2037_v44 = vrot.slane %v15813_v15, 2 }
  0x38   : > { %2259 = vmatprep.subr.bf16.mxu0 %v15640_v3  ;;  %2913 = vmatprep.subr.bf16.mxu1 %v15640_v3  ;;  %v373_v3 = vld [vmem:[%s15674_s12 + $0x70] sm:$0x3] }
  0x39   : > { %v427_v28 = vmul.f32 0.2, %v373_v3  ;;  %v1267_v12 = vrot.slane %v15876_v55, 1 }
  0x3b   : > { %2260 = vmatpush1.bf16.msra.mxu0 %v15648_v4  ;;  %2914 = vmatpush1.bf16.msra.mxu1 %v15648_v4  ;;  %v1251_v4 = vsel %vm1238_vm0, %v1249_v63, %v1250_v0  ;;  %v15851_v41 = vmax.f32 %v373_v3, %v427_v28  ;;  %v15888_v63 = vld [vmem:[%s15674_s12 + $0xa8] sm:$0xff]  ;;  %v15891_v0 = vld [vmem:[%s15674_s12 + $0xb0] sm:$0xff]  ;;  %v15905_v3 = vmax.f32 %v378_v45, %v432_v58 }
  0x3c   : > { %2261 = vmatprep.subr.bf16.mxu0 %v15655_v5  ;;  %2915 = vmatprep.subr.bf16.mxu1 %v15655_v5  ;;  %v425_v5 = vmul.f32 0.2, %v371_v1  ;;  %v15829_v27 = vpack.c.bf16 %v1253_v16, %v1251_v4  ;;  %v15911_v4 = vmax.f32 %v379_v46, %v433_v62  ;;  %v434_v16 = vmul.f32 0.2, %v15888_v63 }
  0x3d   : > { %688 = vmatmul.mubr.bf16.gmra.mxu0 %v15795_v60  ;;  %1518 = vmatmul.mubr.bf16.gmra.mxu1 %v15797_v61  ;;  %v1262_v51 = vrot.slane %v15851_v41, 1  ;;  %v435_v23 = vmul.f32 0.2, %v15891_v0  ;;  %v2039_v46 = vrot.slane %v15819_v22, 2 }
  0x3e   : > { %697 = vmatprep.mubr.bf16.mxu0 %v20916_v2  ;;  %1527 = vmatprep.mubr.bf16.mxu1 %v20916_v2  ;;  %v15843_v36 = vmax.f32 %v371_v1, %v425_v5 }
  0x3f   : > { %2262 = vmatpush1.bf16.msra.mxu0 %v15662_v6  ;;  %2916 = vmatpush1.bf16.msra.mxu1 %v15662_v6  ;;  %v1257_v6 = vrot.slane %v15819_v22, 1  ;;  %v383_v22 = vld [vmem:[%s15674_s12 + $0xc0] sm:$0xff] }
  0x40   : > { %2263 = vmatprep.subr.bf16.mxu0 %v15669_v7  ;;  %2917 = vmatprep.subr.bf16.mxu1 %v15669_v7  ;;  %v375_v7 = vld [vmem:[%s15674_s12 + $0x80] sm:$0xff]  ;;  %v1259_v49 = vrot.slane %v15843_v36, 1  ;;  %v15902_v1 = vpack.c.bf16 %v15845_v38, %v15843_v36  ;;  %v2041_v53 = vrot.slane %v15843_v36, 2  ;;  %v2049_v36 = vrot.slane %v15876_v55, 2 }
  0x41   : > { %v1258_v39 = vsel %vm1238_vm0, %v1255_v31, %v1257_v6  ;;  %v429_v43 = vmul.f32 0.2, %v375_v7  ;;  %v1270_v6 = vrot.slane %v15905_v3, 1 }
  0x42   : > { %20979 = vst [vmem:[#allocation8_spill] sm:$0xff] %v15902_v1 }
  0x43   : > { %2264 = vmatpush1.bf16.msra.mxu0 %v15681_v8  ;;  %2918 = vmatpush1.bf16.msra.mxu1 %v15681_v8  ;;  %v1256_v8 = vsel %vm1238_vm0, %v1254_v30, %v1255_v31  ;;  %v15871_v52 = vmax.f32 %v375_v7, %v429_v43  ;;  %v2026_v30 = vrot.slane %v15747_v34, 2  ;;  %v2031_v34 = vrot.slane %v15779_v54, 2 }
  0x44   : > { %2265 = vmatprep.subr.bf16.mxu0 %v15686_v9  ;;  %2919 = vmatprep.subr.bf16.mxu1 %v15686_v9  ;;  %v428_v9 = vmul.f32 0.2, %v374_v29  ;;  %v15864_v48 = vpack.c.bf16 %v1258_v39, %v1256_v8  ;;  %v382_v8 = vld [vmem:[%s15674_s12 + $0xb8] sm:$0x3]  ;;  %v2029_v39 = vrot.slane %v15761_v40, 2  ;;  %v2036_v43 = vrot.slane %v15811_v14, 2 }
  0x45   : > { %698 = vmatmul.mubr.bf16.gmra.mxu0 %v15827_v25  ;;  %1528 = vmatmul.mubr.bf16.gmra.mxu1 %v15829_v27  ;;  %v1265_v10 = vrot.slane %v15871_v52, 1  ;;  %v2028_v42 = vsel %vm2020_vm1, %v2026_v30, %v2027_v32  ;;  %v14834_v40 = vld [vmem:[%s20903_s2 + $0x74] ss:$8 sps:$4 sm:$0xff]   ;;  %v15995_v30 = vpack.c.bf16 %v15905_v3, %v15896_v11 }
  0x46   : > { %707 = vmatprep.mubr.bf16.mxu0 %v20916_v2  ;;  %1537 = vmatprep.mubr.bf16.mxu1 %v20916_v2  ;;  %v2038_v14 = vsel %vm2020_vm1, %v2036_v43, %v2037_v44 }
  0x47   : > { %2266 = vmatpush1.bf16.msra.mxu0 %v15696_v13  ;;  %2920 = vmatpush1.bf16.msra.mxu1 %v15696_v13  ;;  %v15869_v13 = vmax.f32 %v374_v29, %v428_v9  ;;  %v15927_v29 = vsel %vm2020_vm1, %v2022_v59, %v2024_v20  ;;  %v1268_v31 = vsel %vm1238_vm0, %v1265_v10, %v1267_v12  ;;  %v2032_v9 = vrot.slane %v15784_v56, 2 }
  0x48   : > { %2267 = vmatprep.subr.bf16.mxu0 %v15705_v17  ;;  %2921 = vmatprep.subr.bf16.mxu1 %v15705_v17  ;;  %v2021_v17 = vrot.slane %v15714_v19, 2  ;;  %v1263_v19 = vsel %vm1238_vm0, %v1260_v50, %v1262_v51  ;;  %v2030_v56 = vsel %vm2020_vm1, %v2027_v32, %v2029_v39  ;;  %v2040_v51 = vsel %vm2020_vm1, %v2037_v44, %v2039_v46 }
  0x49   : > { %v15919_v5 = vpack.c.bf16 %v15871_v52, %v15869_v13  ;;  %v2033_v45 = vsel %vm2020_vm1, %v2031_v34, %v2032_v9  ;;  %v2035_v57 = vsel %vm2020_vm1, %v2032_v9, %v2034_v35  ;;  %v15966_v58 = vpack.c.bf16 %v2040_v51, %v2038_v14  ;;  %20986 = vst [vmem:[#allocation15_spill] sm:$0xff] %v15995_v30  ;;  %v386_v35 = vld [vmem:[%s15674_s12 + $0xd8] sm:$0xff] }
  0x4a   : > { %v15960_v15 = vpack.c.bf16 %v2035_v57, %v2033_v45  ;;  %v2046_v62 = vrot.slane %v15869_v13, 2  ;;  %v489_v20 = vmax.f32 %v15891_v0, %v435_v23  ;;  %v2052_v23 = vrot.slane %v15905_v3, 2 }
  0x4b   : > { %2268 = vmatpush1.bf16.msra.mxu0 %v15712_v18  ;;  %2922 = vmatpush1.bf16.msra.mxu1 %v15712_v18  ;;  %v1261_v18 = vsel %vm1238_vm0, %v1259_v49, %v1260_v50  ;;  %20980 = vst [vmem:[#allocation9_spill] sm:$0xff] %v15919_v5  ;;  %v436_v49 = vmul.f32 0.2, %v382_v8  ;;  %v15956_v50 = vpack.c.bf16 %v2030_v56, %v2028_v42  ;;  %20983 = vst [vmem:[#allocation12_spill] sm:$0xff] %v15966_v58  ;;  %v388_v56 = vld [vmem:[%s15674_s12 + $0xe8] sm:$0x3] }
  0x4c   : > { %2269 = vmatprep.subr.bf16.mxu0 %v15727_v24  ;;  %2923 = vmatprep.subr.bf16.mxu1 %v15727_v24  ;;  %v1264_v24 = vrot.slane %v15869_v13, 1  ;;  %v15909_v21 = vpack.c.bf16 %v1263_v19, %v1261_v18  ;;  %20982 = vst [vmem:[#allocation11_spill] sm:$0xff] %v15960_v15  ;;  %v2047_v18 = vrot.slane %v15871_v52, 2  ;;  %v488_v19 = vmax.f32 %v15888_v63, %v434_v16 }
  0x4d   : > { %708 = vmatmul.mubr.bf16.gmra.mxu0 %v15862_v47  ;;  %1538 = vmatmul.mubr.bf16.gmra.mxu1 %v15864_v48  ;;  %v490_v52 = vmax.f32 %v382_v8, %v436_v49  ;;  %v2051_v16 = vrot.slane %v15896_v11, 2  ;;  %v1275_v34 = vrot.slane %v489_v20, 1  ;;  %v2057_v49 = vrot.slane %v489_v20, 2 }
  0x4e   : > { %717 = vmatprep.mubr.bf16.mxu0 %v20916_v2  ;;  %1547 = vmatprep.mubr.bf16.mxu1 %v20916_v2  ;;  %v1266_v28 = vsel %vm1238_vm0, %v1264_v24, %v1265_v10  ;;  %v384_v24 = vld [vmem:[%s15674_s12 + $0xc8] sm:$0xff]  ;;  %v2048_v13 = vsel %vm2020_vm1, %v2046_v62, %v2047_v18  ;;  %v2050_v0 = vsel %vm2020_vm1, %v2047_v18, %v2049_v36  ;;  %v2056_v46 = vrot.slane %v488_v19, 2 }
  0x4f   : > { %2270 = vmatpush1.bf16.msra.mxu0 %v15733_v26  ;;  %2924 = vmatpush1.bf16.msra.mxu1 %v15733_v26  ;;  %v15915_v26 = vsel %vm2020_vm1, %v2021_v17, %v2022_v59  ;;  %v15951_v54 = vpack.c.bf16 %v1268_v31, %v1266_v28  ;;  %v2042_v17 = vrot.slane %v15845_v38, 2  ;;  %v2044_v59 = vrot.slane %v15851_v41, 2  ;;  %v385_v28 = vld [vmem:[%s15674_s12 + $0xd0] sm:$0x3] }
  0x50   : > { %2271 = vmatprep.subr.bf16.mxu0 %v15745_v33  ;;  %2925 = vmatprep.subr.bf16.mxu1 %v15745_v33  ;;  %v1269_v33 = vrot.slane %v15896_v11, 1  ;;  %v15988_v55 = vpack.c.bf16 %v2050_v0, %v2048_v13  ;;  %v437_v31 = vmul.f32 0.2, %v383_v22  ;;  %v438_v32 = vmul.f32 0.2, %v384_v24 }
  0x51   : > { %20981 = vst [vmem:[#allocation10_spill] sm:$0xff] %v15951_v54  ;;  %v2043_v10 = vsel %vm2020_vm1, %v2041_v53, %v2042_v17  ;;  %v2045_v41 = vsel %vm2020_vm1, %v2042_v17, %v2044_v59  ;;  %v439_v9 = vmul.f32 0.2, %v385_v28  ;;  %v2059_v57 = vrot.slane %v490_v52, 2 }
  0x52   : > { %v1271_v38 = vsel %vm1238_vm0, %v1269_v33, %v1270_v6  ;;  %v15983_v63 = vpack.c.bf16 %v2045_v41, %v2043_v10  ;;  %20985 = vst [vmem:[#allocation14_spill] sm:$0xff] %v15988_v55  ;;  %v2054_v33 = vrot.slane %v15911_v4, 2  ;;  %v491_v43 = vmax.f32 %v383_v22, %v437_v31 }
  0x53   : > { %2272 = vmatpush1.bf16.msra.mxu0 %v15757_v37  ;;  %2926 = vmatpush1.bf16.msra.mxu1 %v15757_v37  ;;  %v1272_v37 = vrot.slane %v15911_v4, 1  ;;  %v1277_v4 = vrot.slane %v490_v52, 1  ;;  %v492_v3 = vmax.f32 %v384_v24, %v438_v32  ;;  %v493_v44 = vmax.f32 %v385_v28, %v439_v9  ;;  %v390_v28 = vld [vmem:[%s15674_s12 + $0xf8] sm:$0xff]  ;;  %v391_v52 = vld [vmem:[%s15674_s12 + $0x100] sm:$0x3] }
  0x54   : > { %3575 = vmatprep.subr.bf16.mxu0 %v14834_v40  ;;  %4236 = vmatprep.subr.bf16.mxu1 %v14834_v40  ;;  %20984 = vst [vmem:[#allocation13_spill] sm:$0xff] %v15983_v63  ;;  %v2055_v8 = vsel %vm2020_vm1, %v2052_v23, %v2054_v33  ;;  %v387_v40 = vld [vmem:[%s15674_s12 + $0xe0] sm:$0xff]  ;;  %v440_v14 = vmul.f32 0.2, %v386_v35  ;;  %v2058_v53 = vsel %vm2020_vm1, %v2056_v46, %v2057_v49  ;;  %v442_v62 = vmul.f32 0.2, %v388_v56 }
  0x55   : > { %718 = vmatmul.mubr.bf16.gmra.mxu0 %v15902_v1  ;;  %1548 = vmatmul.mubr.bf16.gmra.mxu1 %v15909_v21  ;;  %v1273_v12 = vsel %vm1238_vm0, %v1270_v6, %v1272_v37  ;;  %v1274_v6 = vrot.slane %v488_v19, 1  ;;  %v2053_v37 = vsel %vm2020_vm1, %v2051_v16, %v2052_v23  ;;  %v1278_v45 = vsel %vm1238_vm0, %v1275_v34, %v1277_v4  ;;  %v392_v4 = vld [vmem:[%s15674_s12 + $0x108] sm:$0xff] }
  0x56   : > { %727 = vmatprep.mubr.bf16.mxu0 %v20916_v2  ;;  %1557 = vmatprep.mubr.bf16.mxu1 %v20916_v2  ;;  %v15999_v39 = vpack.c.bf16 %v1273_v12, %v1271_v38  ;;  %v16001_v42 = vpack.c.bf16 %v2055_v8, %v2053_v37  ;;  %v441_v51 = vmul.f32 0.2, %v387_v40  ;;  %v2060_v17 = vsel %vm2020_vm1, %v2057_v49, %v2059_v57  ;;  %v389_v38 = vld [vmem:[%s15674_s12 + $0xf0] sm:$0xff] }
  0x57   : > { %v1276_v11 = vsel %vm1238_vm0, %v1274_v6, %v1275_v34  ;;  %v16014_v22 = vpack.c.bf16 %v489_v20, %v488_v19  ;;  %v16018_v18 = vpack.c.bf16 %v2060_v17, %v2058_v53  ;;  %v1279_v24 = vrot.slane %v491_v43, 1  ;;  %v395_v17 = vld [vmem:[%s15674_s12 + $0x120] sm:$0xff] }
  0x58   : > { %20987 = vst [vmem:[#allocation16_spill] sm:$0xff] %v15999_v39  ;;  %20988 = vst [vmem:[#allocation17_spill] sm:$0xff] %v16001_v42  ;;  %v16016_v59 = vpack.c.bf16 %v1278_v45, %v1276_v11  ;;  %v1280_v10 = vrot.slane %v492_v3, 1  ;;  %v1282_v36 = vrot.slane %v493_v44, 1  ;;  %v494_v12 = vmax.f32 %v386_v35, %v440_v14 }
  0x59   : > { %20989 = vst [vmem:[#allocation18_spill] sm:$0xff] %v16014_v22  ;;  %20991 = vst [vmem:[#allocation20_spill] sm:$0xff] %v16018_v18  ;;  %v495_v41 = vmax.f32 %v387_v40, %v441_v51  ;;  %v496_v13 = vmax.f32 %v388_v56, %v442_v62  ;;  %v443_v0 = vmul.f32 0.2, %v389_v38  ;;  %v2061_v23 = vrot.slane %v491_v43, 2  ;;  %v393_v40 = vld [vmem:[%s15674_s12 + $0x110] sm:$0xff] }
  0x5a   : > { %20990 = vst [vmem:[#allocation19_spill] sm:$0xff] %v16016_v59  ;;  %v1281_v19 = vsel %vm1238_vm0, %v1279_v24, %v1280_v10  ;;  %v1283_v20 = vsel %vm1238_vm0, %v1280_v10, %v1282_v36  ;;  %v1284_v16 = vrot.slane %v494_v12, 1  ;;  %v2062_v33 = vrot.slane %v492_v3, 2 }
  0x5b   : > { %v2064_v31 = vrot.slane %v493_v44, 2  ;;  %v16029_v6 = vpack.c.bf16 %v492_v3, %v491_v43  ;;  %v16031_v32 = vpack.c.bf16 %v1283_v20, %v1281_v19  ;;  %v1285_v37 = vrot.slane %v495_v41, 1  ;;  %v394_v44 = vld [vmem:[%s15674_s12 + $0x118] sm:$0x3] }
  0x5c   : > { %v444_v8 = vmul.f32 0.2, %v390_v28  ;;  %v1287_v34 = vrot.slane %v496_v13, 1  ;;  %v445_v9 = vmul.f32 0.2, %v391_v52  ;;  %v2063_v35 = vsel %vm2020_vm1, %v2061_v23, %v2062_v33 }
  0x5d   : > { %728 = vmatmul.mubr.bf16.gmra.mxu0 %v15919_v5  ;;  %1558 = vmatmul.mubr.bf16.gmra.mxu1 %v15951_v54  ;;  %20992 = vst [vmem:[#allocation21_spill] sm:$0xff] %v16029_v6  ;;  %20993 = vst [vmem:[#allocation22_spill] sm:$0xff] %v16031_v32  ;;  %v2065_v11 = vsel %vm2020_vm1, %v2062_v33, %v2064_v31  ;;  %v1286_v43 = vsel %vm1238_vm0, %v1284_v16, %v1285_v37  ;;  %v446_v57 = vmul.f32 0.2, %v392_v4  ;;  %v397_v16 = vld [vmem:[%s15674_s12 + $0x130] sm:$0x3] }
  0x5e   : > { %737 = vmatprep.mubr.bf16.mxu0 %v20916_v2  ;;  %1567 = vmatprep.mubr.bf16.mxu1 %v20916_v2  ;;  %v16037_v56 = vpack.c.bf16 %v2065_v11, %v2063_v35  ;;  %v497_v3 = vmax.f32 %v389_v38, %v443_v0  ;;  %v1288_v45 = vsel %vm1238_vm0, %v1285_v37, %v1287_v34  ;;  %v447_v51 = vmul.f32 0.2, %v393_v40  ;;  %v396_v0 = vld [vmem:[%s15674_s12 + $0x128] sm:$0xff] }
  0x5f   : > { %v498_v46 = vmax.f32 %v390_v28, %v444_v8  ;;  %v499_v49 = vmax.f32 %v391_v52, %v445_v9  ;;  %v16046_v14 = vpack.c.bf16 %v495_v41, %v494_v12  ;;  %v16048_v53 = vpack.c.bf16 %v1288_v45, %v1286_v43 }
  0x60   : > { %20994 = vst [vmem:[#allocation23_spill] sm:$0xff] %v16037_v56  ;;  %v2066_v62 = vrot.slane %v494_v12, 2  ;;  %v2067_v24 = vrot.slane %v495_v41, 2  ;;  %v2069_v10 = vrot.slane %v496_v13, 2  ;;  %v1289_v36 = vrot.slane %v497_v3, 1 }
  0x61   : > { %20995 = vst [vmem:[#allocation24_spill] sm:$0xff] %v16046_v14  ;;  %20996 = vst [vmem:[#allocation25_spill] sm:$0xff] %v16048_v53  ;;  %v1290_v38 = vrot.slane %v498_v46, 1  ;;  %v1292_v19 = vrot.slane %v499_v49, 1  ;;  %v448_v20 = vmul.f32 0.2, %v394_v44  ;;  %v16059_v33 = vmax.f32 %v392_v4, %v446_v57 }
  0x62   : > { %v2068_v23 = vsel %vm2020_vm1, %v2066_v62, %v2067_v24  ;;  %v2070_v28 = vsel %vm2020_vm1, %v2067_v24, %v2069_v10  ;;  %v16061_v12 = vmax.f32 %v393_v40, %v447_v51  ;;  %v449_v37 = vmul.f32 0.2, %v395_v17  ;;  %v399_v10 = vld [vmem:[%s15674_s12 + $0x140] sm:$0xff] }
  0x63   : > { %v16055_v52 = vpack.c.bf16 %v2070_v28, %v2068_v23  ;;  %v1291_v41 = vsel %vm1238_vm0, %v1289_v36, %v1290_v38  ;;  %v1293_v13 = vsel %vm1238_vm0, %v1290_v38, %v1292_v19  ;;  %v16067_v31 = vmax.f32 %v394_v44, %v448_v20  ;;  %v398_v44 = vld [vmem:[%s15674_s12 + $0x138] sm:$0xff] }
  0x64   : > { %v450_v8 = vmul.f32 0.2, %v396_v0  ;;  %v16069_v34 = vpack.c.bf16 %v498_v46, %v497_v3  ;;  %v451_v9 = vmul.f32 0.2, %v397_v16  ;;  %v16071_v4 = vpack.c.bf16 %v1293_v13, %v1291_v41 }
  0x65   : > { %738 = vmatmul.mubr.bf16.gmra.mxu0 %v15995_v30  ;;  %1568 = vmatmul.mubr.bf16.gmra.mxu1 %v15999_v39  ;;  %20997 = vst [vmem:[#allocation26_spill] sm:$0xff] %v16055_v52  ;;  %v2071_v35 = vrot.slane %v497_v3, 2  ;;  %v2072_v11 = vrot.slane %v498_v46, 2  ;;  %v2074_v40 = vrot.slane %v499_v49, 2  ;;  %v1294_v43 = vrot.slane %v16059_v33, 1 }
  0x66   : > { %747 = vmatprep.mubr.bf16.mxu0 %v20916_v2  ;;  %1577 = vmatprep.mubr.bf16.mxu1 %v20916_v2  ;;  %20998 = vst [vmem:[#allocation27_spill] sm:$0xff] %v16069_v34  ;;  %20999 = vst [vmem:[#allocation28_spill] sm:$0xff] %v16071_v4  ;;  %v1295_v45 = vrot.slane %v16061_v12, 1  ;;  %v1297_v57 = vrot.slane %v16067_v31, 1  ;;  %v16079_v24 = vmax.f32 %v395_v17, %v449_v37  ;;  %v400_v46 = vld [vmem:[%s15674_s12 + $0x148] sm:$0x3] }
  0x67   : > { %v2073_v51 = vsel %vm2020_vm1, %v2071_v35, %v2072_v11  ;;  %v2075_v62 = vsel %vm2020_vm1, %v2072_v11, %v2074_v40  ;;  %v16086_v3 = vmax.f32 %v396_v0, %v450_v8  ;;  %v16093_v38 = vmax.f32 %v397_v16, %v451_v9  ;;  %v401_v8 = vld [vmem:[%s15674_s12 + $0x150] sm:$0xff]  ;;  %v402_v35 = vld [vmem:[%s15674_s12 + $0x158] sm:$0xff]  ;;  %v403_v11 = vld [vmem:[%s15674_s12 + $0x160] sm:$0x3] }
  0x68   : > { %v16082_v36 = vpack.c.bf16 %v2075_v62, %v2073_v51  ;;  %v1296_v49 = vsel %vm1238_vm0, %v1294_v43, %v1295_v45  ;;  %v1298_v17 = vsel %vm1238_vm0, %v1295_v45, %v1297_v57  ;;  %v1299_v19 = vrot.slane %v16079_v24, 1 }
  0x69   : > { %v452_v20 = vmul.f32 0.2, %v398_v44  ;;  %v16098_v0 = vpack.c.bf16 %v16061_v12, %v16059_v33  ;;  %v16100_v23 = vpack.c.bf16 %v1298_v17, %v1296_v49  ;;  %v1300_v28 = vrot.slane %v16086_v3, 1 }
  0x6a   : > { %21000 = vst [vmem:[#allocation29_spill] sm:$0xff] %v16082_v36  ;;  %v453_v41 = vmul.f32 0.2, %v399_v10  ;;  %v1302_v13 = vrot.slane %v16093_v38, 1  ;;  %v454_v37 = vmul.f32 0.2, %v400_v46 }
  0x6b   : > { %21001 = vst [vmem:[#allocation30_spill] sm:$0xff] %v16100_v23  ;;  %v16108_v16 = vmax.f32 %v398_v44, %v452_v20  ;;  %v1301_v40 = vsel %vm1238_vm0, %v1299_v19, %v1300_v28  ;;  %v455_v57 = vmul.f32 0.2, %v401_v8  ;;  %v456_v51 = vmul.f32 0.2, %v402_v35  ;;  %v404_v20 = vld [vmem:[%s15674_s12 + $0x168] sm:$0xff] }
  0x6c   : > { %v16110_v9 = vmax.f32 %v399_v10, %v453_v41  ;;  %v1303_v43 = vsel %vm1238_vm0, %v1300_v28, %v1302_v13  ;;  %v16117_v45 = vmax.f32 %v400_v46, %v454_v37  ;;  %v16121_v44 = vpack.c.bf16 %v16086_v3, %v16079_v24  ;;  %v405_v28 = vld [vmem:[%s15674_s12 + $0x170] sm:$0xff]  ;;  %v406_v13 = vld [vmem:[%s15674_s12 + $0x178] sm:$0x3] }
  0x6d   : > { %748 = vmatmul.mubr.bf16.gmra.mxu0 %v16014_v22  ;;  %1578 = vmatmul.mubr.bf16.gmra.mxu1 %v16016_v59  ;;  %v16123_v62 = vpack.c.bf16 %v1303_v43, %v1301_v40  ;;  %v1304_v10 = vrot.slane %v16108_v16, 1  ;;  %v457_v19 = vmul.f32 0.2, %v403_v11  ;;  %v16132_v46 = vmax.f32 %v401_v8, %v455_v57 }
  0x6e   : > { %757 = vmatprep.mubr.bf16.mxu0 %v20916_v2  ;;  %1587 = vmatprep.mubr.bf16.mxu1 %v20916_v2  ;;  %v1305_v49 = vrot.slane %v16110_v9, 1  ;;  %v1307_v17 = vrot.slane %v16117_v45, 1  ;;  %v16134_v41 = vmax.f32 %v402_v35, %v456_v51  ;;  %v458_v7 = vmul.f32 0.2, %v404_v20 }
  0x6f   : > { %21002 = vst [vmem:[#allocation31_spill] sm:$0xff] %v16123_v62  ;;  %v16141_v43 = vmax.f32 %v403_v11, %v457_v19  ;;  %v1309_v35 = vrot.slane %v16132_v46, 1 }
  0x70   : > { %v1306_v37 = vsel %vm1238_vm0, %v1304_v10, %v1305_v49  ;;  %v1308_v40 = vsel %vm1238_vm0, %v1305_v49, %v1307_v17  ;;  %v1310_v57 = vrot.slane %v16134_v41, 1  ;;  %v16154_v11 = vmax.f32 %v404_v20, %v458_v7 }
  0x71   : > { %v16147_v8 = vpack.c.bf16 %v1308_v40, %v1306_v37  ;;  %v1312_v51 = vrot.slane %v16141_v43, 1  ;;  %v21004_v49 = vmov 0   ;;  %v16166_v40 = vpack.c.bf16 %v16134_v41, %v16132_v46 }
  0x72   : > { %v1311_v17 = vsel %vm1238_vm0, %v1309_v35, %v1310_v57  ;;  %v1314_v7 = vrot.slane %v16154_v11, 1 }
  0x73   : > { %21003 = vst [vmem:[#allocation32_spill] sm:$0xff] %v16147_v8  ;;  %v1313_v19 = vsel %vm1238_vm0, %v1310_v57, %v1312_v51  ;;  %21005 = vst [vmem:[#allocation33_spill] sm:$0xff] %v16166_v40  ;;  %v14832_v57 = vld [vmem:[%s20903_s2 + $0x70] ss:$8 sps:$4 sm:$0xff]   ;;  %v14837_v51 = vld [vmem:[%s20903_s2 + $0x64] ss:$8 sps:$4 sm:$0xff]  }
  0x75   : > { %758 = vmatmul.mubr.bf16.gmra.mxu0 %v16029_v6  ;;  %1588 = vmatmul.mubr.bf16.gmra.mxu1 %v16031_v32 }
  0x76   : > { %767 = vmatprep.mubr.bf16.mxu0 %v20916_v2  ;;  %1597 = vmatprep.mubr.bf16.mxu1 %v20916_v2 }
  0x7d   : > { %768 = vmatmul.mubr.bf16.gmra.mxu0 %v16046_v14  ;;  %1598 = vmatmul.mubr.bf16.gmra.mxu1 %v16048_v53 }
  0x7e   : > { %777 = vmatprep.mubr.bf16.mxu0 %v20916_v2  ;;  %1607 = vmatprep.mubr.bf16.mxu1 %v20916_v2 }
  0x85   : > { %778 = vmatmul.mubr.bf16.gmra.mxu0 %v16069_v34  ;;  %1608 = vmatmul.mubr.bf16.gmra.mxu1 %v16071_v4  ;;  %v16168_v4 = vpack.c.bf16 %v1313_v19, %v1311_v17  ;;  %v21009_v17 = vpack.c.bf16 %v15927_v29, %v15915_v26  ;;  %v14835_v19 = vld [vmem:[%s20903_s2 + $0x60] ss:$8 sps:$4 sm:$0xff]   ;;  %v14843_v26 = vld [vmem:[%s20903_s2 + $0x44] ss:$8 sps:$4 sm:$0xff]  }
  0x86   : > { %787 = vmatprep.mubr.bf16.mxu0 %v20916_v2  ;;  %1617 = vmatprep.mubr.bf16.mxu1 %v20916_v2  ;;  %v14841_v29 = vld [vmem:[%s20903_s2 + $0x40] ss:$8 sps:$4 sm:$0xff]  }
  0x87   : > { %21006 = vst [vmem:[#allocation34_spill] sm:$0xff] %v16168_v4 }
  0x8d   : > { %788 = vmatmul.mubr.bf16.gmra.mxu0 %v16098_v0  ;;  %1618 = vmatmul.mubr.bf16.gmra.mxu1 %v16100_v23  ;;  %v459_v23 = vmul.f32 0.2, %v405_v28 }
  0x8e   : > { %797 = vmatprep.mubr.bf16.mxu0 %v20916_v2  ;;  %1627 = vmatprep.mubr.bf16.mxu1 %v20916_v2 }
  0x8f   : > { %v16156_v10 = vmax.f32 %v405_v28, %v459_v23 }
  0x91   : > { %v1315_v23 = vrot.slane %v16156_v10, 1 }
  0x95   : > { %798 = vmatmul.mubr.bf16.gmra.mxu0 %v16121_v44  ;;  %1628 = vmatmul.mubr.bf16.gmra.mxu1 %v16123_v62  ;;  %v16145_v62 = vpack.c.bf16 %v16110_v9, %v16108_v16 }
  0x96   : > { %807 = vmatprep.mubr.bf16.mxu0 %v20916_v2  ;;  %1637 = vmatprep.mubr.bf16.mxu1 %v20916_v2  ;;  %v460_v2 = vmul.f32 0.2, %v406_v13 }
  0x98   : > { %v16162_v37 = vmax.f32 %v406_v13, %v460_v2  ;;  %v1316_v2 = vsel %vm1238_vm0, %v1314_v7, %v1315_v23  ;;  %v16181_v13 = vpack.c.bf16 %v16156_v10, %v16154_v11  ;;  %v14840_v7 = vld [vmem:[%s20903_s2 + $0x54] ss:$8 sps:$4 sm:$0xff]  }
  0x9a   : > { %v1317_v20 = vrot.slane %v16162_v37, 1  ;;  %21007 = vst [vmem:[#allocation35_spill] sm:$0xff] %v16181_v13 }
  0x9c   : > { %v1318_v28 = vsel %vm1238_vm0, %v1315_v23, %v1317_v20  ;;  %v14846_v23 = vld [vmem:[%s20903_s2 + $0x34] ss:$8 sps:$4 sm:$0xff]   ;;  %v14844_v20 = vld [vmem:[%s20903_s2 + $0x30] ss:$8 sps:$4 sm:$0xff]  }
  0x9d   : > { %808 = vmatmul.mubr.bf16.gmra.mxu0 %v16145_v62  ;;  %1638 = vmatmul.mubr.bf16.gmra.mxu1 %v16147_v8  ;;  %v16183_v35 = vpack.c.bf16 %v1318_v28, %v1316_v2  ;;  %v14849_v2 = vld [vmem:[%s20903_s2 + $0x24] ss:$8 sps:$4 sm:$0xff]   ;;  %v14847_v28 = vld [vmem:[%s20903_s2 + $0x20] ss:$8 sps:$4 sm:$0xff]  }
  0x9e   : > { %817 = vmatprep.mubr.bf16.mxu0 %v21004_v49  ;;  %1647 = vmatprep.mubr.bf16.mxu1 %v21004_v49 }
  0x9f   : > { %21008 = vst [vmem:[#allocation36_spill] sm:$0xff] %v16183_v35 }
  0xa5   : > { %818 = vmatmul.mubr.bf16.gmra.mxu0 %v16166_v40  ;;  %1648 = vmatmul.mubr.bf16.gmra.mxu1 %v16168_v4 }
  0xa6   : > { %827 = vmatprep.mubr.bf16.mxu0 %v21004_v49  ;;  %1657 = vmatprep.mubr.bf16.mxu1 %v21004_v49 }
  0xad   : > { %828 = vmatmul.mubr.bf16.gmra.mxu0 %v16181_v13  ;;  %1658 = vmatmul.mubr.bf16.gmra.mxu1 %v16183_v35 }
  0xae   : > { %2289 = vmatprep.mubr.bf16.mxu0 %v21004_v49  ;;  %2943 = vmatprep.mubr.bf16.mxu1 %v21004_v49 }
  0xb5   : > { %2290 = vmatmul.mubr.bf16.vlgmr.msra.gmra.mxu0 %v21009_v17  ;;  %2944 = vmatmul.mubr.bf16.vlgmr.msra.gmra.mxu1 %v15795_v60  ;;  %v14838_v60 = vld [vmem:[%s20903_s2 + $0x50] ss:$8 sps:$4 sm:$0xff]   ;;  %v14855_v17 = vld [vmem:[%s20903_s2 + $0x4] ss:$8 sps:$4 sm:$0xff]  }
  0xb6   : > { %2299 = vmatprep.mubr.bf16.mxu0 %v21004_v49  ;;  %2953 = vmatprep.mubr.bf16.mxu1 %v21004_v49 }
  0xb7   : > { %3576 = vmatpush1.bf16.msra.mxu0 %v14832_v57  ;;  %4237 = vmatpush1.bf16.msra.mxu1 %v14832_v57  ;;  %v14852_v57 = vld [vmem:[%s20903_s2 + $0x14] ss:$8 sps:$4 sm:$0xff]  }
  0xb8   : > { %3577 = vmatprep.subr.bf16.mxu0 %v14837_v51  ;;  %4238 = vmatprep.subr.bf16.mxu1 %v14837_v51  ;;  %v14850_v51 = vld [vmem:[%s20903_s2 + $0x10] ss:$8 sps:$4 sm:$0xff]  }
  0xbb   : > { %3578 = vmatpush1.bf16.msra.mxu0 %v14835_v19  ;;  %4239 = vmatpush1.bf16.msra.mxu1 %v14835_v19  ;;  %v14853_v19 = vld [vmem:[%s20903_s2] ss:$8 sps:$4 sm:$0xff]  }
  0xbc   : > { %3579 = vmatprep.subr.bf16.mxu0 %v14840_v7  ;;  %4240 = vmatprep.subr.bf16.mxu1 %v14840_v7  ;;  %v14858_v7 = vld [vmem:[%s20903_s2 + $0x74] ss:$8 sps:$4 sm:$0xff]  }
  0xbd   : > { %2300 = vmatmul.mubr.bf16.gmra.mxu0 %v15956_v50  ;;  %2954 = vmatmul.mubr.bf16.gmra.mxu1 %v15827_v25 }
  0xbe   : > { %2309 = vmatprep.mubr.bf16.mxu0 %v21004_v49  ;;  %2963 = vmatprep.mubr.bf16.mxu1 %v21004_v49 }
  0xbf   : > { %3580 = vmatpush1.bf16.msra.mxu0 %v14838_v60  ;;  %4241 = vmatpush1.bf16.msra.mxu1 %v14838_v60  ;;  %v555_v60 = vlaneseq }
  0xc0   : > { %3581 = vmatprep.subr.bf16.mxu0 %v14843_v26  ;;  %4242 = vmatprep.subr.bf16.mxu1 %v14843_v26 }
  0xc1   : > { %v556_v26 = vshrl.u32 %v555_v60, 7  ;;  %v2076_v60 = vrot.slane %v16059_v33, 2 }
  0xc3   : > { %3582 = vmatpush1.bf16.msra.mxu0 %v14841_v29  ;;  %4243 = vmatpush1.bf16.msra.mxu1 %v14841_v29  ;;  %v16271_v29 = vsub.s32 0, %v556_v26 }
  0xc4   : > { %3583 = vmatprep.subr.bf16.mxu0 %v14846_v23  ;;  %4244 = vmatprep.subr.bf16.mxu1 %v14846_v23  ;;  %v553_v23 = vld [vmem:[%s20904_s3] sm:$0x3] }
  0xc5   : > { %2310 = vmatmul.mubr.bf16.gmra.mxu0 %v15960_v15  ;;  %2964 = vmatmul.mubr.bf16.gmra.mxu1 %v15862_v47  ;;  %21010 = vst [vmem:[#allocation37_spill] sm:$0xff] %v16271_v29 }
  0xc6   : > { %2319 = vmatprep.mubr.bf16.mxu0 %v21004_v49  ;;  %2973 = vmatprep.mubr.bf16.mxu1 %v21004_v49 }
  0xc7   : > { %3584 = vmatpush1.bf16.msra.mxu0 %v14844_v20  ;;  %4245 = vmatpush1.bf16.msra.mxu1 %v14844_v20  ;;  %v1383_v20 = vld [vmem:[%s20904_s3] sm:$0x3] }
  0xc8   : > { %3585 = vmatprep.subr.bf16.mxu0 %v14849_v2  ;;  %4246 = vmatprep.subr.bf16.mxu1 %v14849_v2  ;;  %v16279_v2 = vsub.s32 1, %v556_v26  ;;  %v2077_v26 = vrot.slane %v16061_v12, 2 }
  0xca   : > { %21011 = vst [vmem:[#allocation38_spill] sm:$0xff] %v16279_v2 }
  0xcb   : > { %3586 = vmatpush1.bf16.msra.mxu0 %v14847_v28  ;;  %4247 = vmatpush1.bf16.msra.mxu1 %v14847_v28  ;;  %v16282_v28 = vrot.slane %v553_v23, %v16271_v29 }
  0xcc   : > { %3587 = vmatprep.subr.bf16.mxu0 %v14852_v57  ;;  %4248 = vmatprep.subr.bf16.mxu1 %v14852_v57  ;;  %v16285_v57 = vrot.slane %v1383_v20, %v16271_v29 }
  0xcd   : > { %2320 = vmatmul.mubr.bf16.gmra.mxu0 %v15966_v58  ;;  %2974 = vmatmul.mubr.bf16.gmra.mxu1 %v15902_v1 }
  0xce   : > { %2329 = vmatprep.mubr.bf16.mxu0 %v21004_v49  ;;  %2983 = vmatprep.mubr.bf16.mxu1 %v21004_v49 }
  0xcf   : > { %3588 = vmatpush1.bf16.msra.mxu0 %v14850_v51  ;;  %4249 = vmatpush1.bf16.msra.mxu1 %v14850_v51  ;;  %v16288_v51 = vrot.slane %v553_v23, %v16279_v2 }
  0xd0   : > { %3589 = vmatprep.subr.bf16.mxu0 %v14855_v17  ;;  %4250 = vmatprep.subr.bf16.mxu1 %v14855_v17  ;;  %v16291_v17 = vrot.slane %v1383_v20, %v16279_v2  ;;  %v2082_v20 = vrot.slane %v16086_v3, 2 }
  0xd3   : > { %3590 = vmatpush1.bf16.msra.mxu0 %v14853_v19  ;;  %4251 = vmatpush1.bf16.msra.mxu1 %v14853_v19 }
  0xd4   : > { %4890 = vmatprep.subr.bf16.mxu0 %v14858_v7  ;;  %5554 = vmatprep.subr.bf16.mxu1 %v14858_v7 }
  0xd5   : > { %2330 = vmatmul.mubr.bf16.gmra.mxu0 %v15983_v63  ;;  %2984 = vmatmul.mubr.bf16.gmra.mxu1 %v15919_v5 }
  0xd6   : > { %2339 = vmatprep.mubr.bf16.mxu0 %v21004_v49  ;;  %2993 = vmatprep.mubr.bf16.mxu1 %v21004_v49 }
  0xdd   : > { %2340 = vmatmul.mubr.bf16.gmra.mxu0 %v15988_v55  ;;  %2994 = vmatmul.mubr.bf16.gmra.mxu1 %v15995_v30 }
  0xde   : > { %2349 = vmatprep.mubr.bf16.mxu0 %v21004_v49  ;;  %3003 = vmatprep.mubr.bf16.mxu1 %v21004_v49 }
  0xe5   : > { %2350 = vmatmul.mubr.bf16.gmra.mxu0 %v16001_v42  ;;  %3004 = vmatmul.mubr.bf16.gmra.mxu1 %v16014_v22  ;;  %v2081_v22 = vrot.slane %v16079_v24, 2 }
  0xe6   : > { %2359 = vmatprep.mubr.bf16.mxu0 %v21004_v49  ;;  %3013 = vmatprep.mubr.bf16.mxu1 %v21004_v49 }
  0xe7   : > { %v2083_v35 = vsel %vm2020_vm1, %v2081_v22, %v2082_v20 }
  0xed   : > { %2360 = vmatmul.mubr.bf16.gmra.mxu0 %v16018_v18  ;;  %3014 = vmatmul.mubr.bf16.gmra.mxu1 %v16029_v6  ;;  %v2079_v6 = vrot.slane %v16067_v31, 2 }
  0xee   : > { %2369 = vmatprep.mubr.bf16.mxu0 %v21004_v49  ;;  %3023 = vmatprep.mubr.bf16.mxu1 %v21004_v49 }
  0xef   : > { %v2080_v25 = vsel %vm2020_vm1, %v2077_v26, %v2079_v6 }
  0xf5   : > { %v679_v19 = vpop.f32.mrf.mxu0  ;;  %v1509_v7 = vpop.f32.mrf.mxu1  ;;  %2370 = vmatmul.mubr.bf16.gmra.mxu0 %v16037_v56  ;;  %3024 = vmatmul.mubr.bf16.gmra.mxu1 %v16046_v14  ;;  %v2084_v14 = vrot.slane %v16093_v38, 2 }
  0xf6   : > { %v680_v23 = vadd.f32 %v679_v19, %v16282_v28  ;;  %v1510_v30 = vadd.f32 %v1509_v7, %v16285_v57  ;;  %2379 = vmatprep.mubr.bf16.mxu0 %v21004_v49  ;;  %3033 = vmatprep.mubr.bf16.mxu1 %v21004_v49  ;;  %v2078_v7 = vsel %vm2020_vm1, %v2076_v60, %v2077_v26  ;;  %v2086_v60 = vrot.slane %v16108_v16, 2 }
  0xf7   : > { %v681_v5 = vpop.f32.mrf.mxu0  ;;  %v1511_v33 = vpop.f32.mrf.mxu1  ;;  %v2085_v3 = vsel %vm2020_vm1, %v2082_v20, %v2084_v14 }
  0xf8   : > { %v682_v12 = vadd.f32 %v681_v5, %v16288_v51  ;;  %v1512_v31 = vadd.f32 %v1511_v33, %v16291_v17  ;;  %v838_v1 = vmul.f32 0.2, %v680_v23  ;;  %v1668_v24 = vmul.f32 0.2, %v1510_v30 }
  0xf9   : > { %v683_v47 = vpop.f32.mrf.mxu0  ;;  %v1513_v19 = vpop.f32.mrf.mxu1 }
  0xfa   : > { %v839_v4 = vmul.f32 0.2, %v682_v12  ;;  %v1669_v38 = vmul.f32 0.2, %v1512_v31  ;;  %v684_v8 = vadd.f32 %v683_v47, %v16282_v28  ;;  %v1514_v5 = vadd.f32 %v1513_v19, %v16285_v57 }
  0xfb   : > { %v685_v53 = vpop.f32.mrf.mxu0  ;;  %v1515_v33 = vpop.f32.mrf.mxu1  ;;  %v902_v26 = vmax.f32 %v680_v23, %v838_v1  ;;  %v1732_v22 = vmax.f32 %v1510_v30, %v1668_v24 }
  0xfc   : > { %v686_v2 = vadd.f32 %v685_v53, %v16288_v51  ;;  %v1516_v29 = vadd.f32 %v1515_v33, %v16291_v17  ;;  %v840_v56 = vmul.f32 0.2, %v684_v8  ;;  %v1670_v14 = vmul.f32 0.2, %v1514_v5 }
  0xfd   : > { %v689_v20 = vpop.f32.mrf.mxu0  ;;  %v1519_v32 = vpop.f32.mrf.mxu1  ;;  %2380 = vmatmul.mubr.bf16.gmra.mxu0 %v16055_v52  ;;  %3034 = vmatmul.mubr.bf16.gmra.mxu1 %v16069_v34  ;;  %v903_v1 = vmax.f32 %v682_v12, %v839_v4  ;;  %v1733_v30 = vmax.f32 %v1512_v31, %v1669_v38 }
  0xfe   : > { %v841_v47 = vmul.f32 0.2, %v686_v2  ;;  %v1671_v19 = vmul.f32 0.2, %v1516_v29  ;;  %v690_v53 = vadd.f32 %v689_v20, %v16282_v28  ;;  %v1520_v33 = vadd.f32 %v1519_v32, %v16285_v57  ;;  %2389 = vmatprep.mubr.bf16.mxu0 %v21004_v49  ;;  %3043 = vmatprep.mubr.bf16.mxu1 %v21004_v49 }
  0xff   : > { %v904_v16 = vmax.f32 %v684_v8, %v840_v56  ;;  %v1734_v23 = vmax.f32 %v1514_v5, %v1670_v14  ;;  %v691_v24 = vpop.f32.mrf.mxu0  ;;  %v1521_v6 = vpop.f32.mrf.mxu1  ;;  %v16331_v8 = vpack.c.bf16 %v2080_v25, %v2078_v7 }
 0x100   : > { %v905_v18 = vmax.f32 %v686_v2, %v841_v47  ;;  %v1735_v52 = vmax.f32 %v1516_v29, %v1671_v19  ;;  %v842_v59 = vmul.f32 0.2, %v690_v53  ;;  %v1672_v34 = vmul.f32 0.2, %v1520_v33 }
 0x101   : > { %v16323_v42 = vpack.c.bf16 %v904_v16, %v902_v26  ;;  %v16325_v39 = vpack.c.bf16 %v1734_v23, %v1732_v22  ;;  %v692_v32 = vadd.f32 %v691_v24, %v16288_v51  ;;  %v1522_v20 = vadd.f32 %v1521_v6, %v16291_v17  ;;  %v693_v55 = vpop.f32.mrf.mxu0  ;;  %v1523_v54 = vpop.f32.mrf.mxu1  ;;  %21014 = vst [vmem:[#allocation41_spill] sm:$0xff] %v16331_v8 }
 0x102   : > { %v694_v4 = vadd.f32 %v693_v55, %v16282_v28  ;;  %v1524_v56 = vadd.f32 %v1523_v54, %v16285_v57  ;;  %v16333_v2 = vpack.c.bf16 %v2085_v3, %v2083_v35  ;;  %v16335_v5 = vpack.c.bf16 %v905_v18, %v903_v1 }
 0x103   : > { %21012 = vst [vmem:[#allocation39_spill] sm:$0xff] %v16323_v42  ;;  %21013 = vst [vmem:[#allocation40_spill] sm:$0xff] %v16325_v39  ;;  %v843_v29 = vmul.f32 0.2, %v692_v32  ;;  %v1673_v12 = vmul.f32 0.2, %v1522_v20  ;;  %v695_v31 = vpop.f32.mrf.mxu0  ;;  %v1525_v38 = vpop.f32.mrf.mxu1  ;;  %v16337_v26 = vpack.c.bf16 %v1735_v52, %v1733_v30  ;;  %v906_v47 = vmax.f32 %v690_v53, %v842_v59 }
 0x104   : > { %21015 = vst [vmem:[#allocation42_spill] sm:$0xff] %v16333_v2  ;;  %21016 = vst [vmem:[#allocation43_spill] sm:$0xff] %v16335_v5  ;;  %v844_v22 = vmul.f32 0.2, %v694_v4  ;;  %v1674_v6 = vmul.f32 0.2, %v1524_v56  ;;  %v696_v14 = vadd.f32 %v695_v31, %v16288_v51  ;;  %v1526_v55 = vadd.f32 %v1525_v38, %v16291_v17 }
 0x105   : > { %21017 = vst [vmem:[#allocation44_spill] sm:$0xff] %v16337_v26  ;;  %v1736_v54 = vmax.f32 %v1520_v33, %v1672_v34  ;;  %v699_v25 = vpop.f32.mrf.mxu0  ;;  %v1529_v7 = vpop.f32.mrf.mxu1  ;;  %2390 = vmatmul.mubr.bf16.gmra.mxu0 %v16082_v36  ;;  %3044 = vmatmul.mubr.bf16.gmra.mxu1 %v16098_v0  ;;  %v21018_v35 = vrot.slane %v16110_v9, 2  ;;  %v2089_v52 = vrot.slane %v16117_v45, 2  ;;  %v907_v59 = vmax.f32 %v692_v32, %v843_v29 }
 0x106   : > { %v908_v3 = vmax.f32 %v694_v4, %v844_v22  ;;  %v1738_v19 = vmax.f32 %v1524_v56, %v1674_v6  ;;  %v845_v1 = vmul.f32 0.2, %v696_v14  ;;  %v1675_v30 = vmul.f32 0.2, %v1526_v55  ;;  %2399 = vmatprep.mubr.bf16.mxu0 %v21004_v49  ;;  %3053 = vmatprep.mubr.bf16.mxu1 %v21004_v49 }
 0x107   : > { %v16346_v18 = vsel %vm2020_vm1, %v2086_v60, %v21018_v35  ;;  %v1737_v34 = vmax.f32 %v1522_v20, %v1673_v12  ;;  %v700_v53 = vadd.f32 %v699_v25, %v16282_v28  ;;  %v1530_v33 = vadd.f32 %v1529_v7, %v16285_v57  ;;  %v701_v16 = vpop.f32.mrf.mxu0  ;;  %v1531_v23 = vpop.f32.mrf.mxu1 }
 0x108   : > { %v16353_v60 = vpack.c.bf16 %v908_v3, %v906_v47  ;;  %v16355_v24 = vpack.c.bf16 %v1738_v19, %v1736_v54  ;;  %v909_v45 = vmax.f32 %v696_v14, %v845_v1  ;;  %v1739_v4 = vmax.f32 %v1526_v55, %v1675_v30 }
 0x109   : > { %v846_v56 = vmul.f32 0.2, %v700_v53  ;;  %v1676_v31 = vmul.f32 0.2, %v1530_v33  ;;  %v702_v38 = vadd.f32 %v701_v16, %v16288_v51  ;;  %v1532_v22 = vadd.f32 %v1531_v23, %v16291_v17  ;;  %v703_v32 = vpop.f32.mrf.mxu0  ;;  %v1533_v20 = vpop.f32.mrf.mxu1 }
 0x10a   : > { %21019 = vst [vmem:[#allocation45_spill] sm:$0xff] %v16353_v60  ;;  %21020 = vst [vmem:[#allocation46_spill] sm:$0xff] %v16355_v24  ;;  %v704_v29 = vadd.f32 %v703_v32, %v16282_v28  ;;  %v1534_v12 = vadd.f32 %v1533_v20, %v16285_v57  ;;  %v16361_v6 = vpack.c.bf16 %v909_v45, %v907_v59  ;;  %v21023_v7 = vmov %v21018_v35 }
 0x10b   : > { %v16363_v47 = vpack.c.bf16 %v1739_v4, %v1737_v34  ;;  %v847_v54 = vmul.f32 0.2, %v702_v38  ;;  %v1677_v25 = vmul.f32 0.2, %v1532_v22  ;;  %v705_v14 = vpop.f32.mrf.mxu0  ;;  %v1535_v55 = vpop.f32.mrf.mxu1  ;;  %v2090_v35 = vsel %vm2020_vm1, %v21023_v7, %v2089_v52 }
 0x10c   : > { %21021 = vst [vmem:[#allocation47_spill] sm:$0xff] %v16361_v6  ;;  %v2091_v3 = vrot.slane %v16132_v46, 2  ;;  %v848_v19 = vmul.f32 0.2, %v704_v29  ;;  %v1678_v1 = vmul.f32 0.2, %v1534_v12  ;;  %v706_v30 = vadd.f32 %v705_v14, %v16288_v51 }
 0x10d   : > { %21022 = vst [vmem:[#allocation48_spill] sm:$0xff] %v16363_v47  ;;  %v1536_v16 = vadd.f32 %v1535_v55, %v16291_v17  ;;  %v910_v59 = vmax.f32 %v700_v53, %v846_v56  ;;  %v1740_v23 = vmax.f32 %v1530_v33, %v1676_v31  ;;  %v709_v34 = vpop.f32.mrf.mxu0  ;;  %v1539_v45 = vpop.f32.mrf.mxu1  ;;  %2400 = vmatmul.mubr.bf16.gmra.mxu0 %v16331_v8  ;;  %v2092_v9 = vrot.slane %v16134_v41, 2 }
 0x10e   : > { %3054 = vmatmul.mubr.bf16.gmra.mxu1 %v16121_v44  ;;  %v2094_v52 = vrot.slane %v16141_v43, 2  ;;  %v912_v4 = vmax.f32 %v704_v29, %v848_v19  ;;  %v1742_v46 = vmax.f32 %v1534_v12, %v1678_v1  ;;  %v849_v32 = vmul.f32 0.2, %v706_v30  ;;  %2409 = vmatprep.mubr.bf16.mxu0 %v21004_v49 }
 0x10f   : > { %v1679_v20 = vmul.f32 0.2, %v1536_v16  ;;  %3063 = vmatprep.mubr.bf16.mxu1 %v21004_v49  ;;  %v911_v53 = vmax.f32 %v702_v38, %v847_v54  ;;  %v1741_v33 = vmax.f32 %v1532_v22, %v1677_v25  ;;  %v710_v56 = vadd.f32 %v709_v34, %v16282_v28  ;;  %v711_v14 = vpop.f32.mrf.mxu0  ;;  %v1541_v55 = vpop.f32.mrf.mxu1 }
 0x110   : > { %v1540_v31 = vadd.f32 %v1539_v45, %v16285_v57  ;;  %v16379_v7 = vpack.c.bf16 %v912_v4, %v910_v59  ;;  %v16381_v41 = vpack.c.bf16 %v1742_v46, %v1740_v23  ;;  %v913_v43 = vmax.f32 %v706_v30, %v849_v32 }
 0x111   : > { %v1743_v29 = vmax.f32 %v1536_v16, %v1679_v20  ;;  %v850_v12 = vmul.f32 0.2, %v710_v56  ;;  %v712_v1 = vadd.f32 %v711_v14, %v16288_v51  ;;  %v1542_v24 = vadd.f32 %v1541_v55, %v16291_v17  ;;  %v713_v38 = vpop.f32.mrf.mxu0  ;;  %v1543_v22 = vpop.f32.mrf.mxu1 }
 0x112   : > { %21024 = vst [vmem:[#allocation49_spill] sm:$0xff] %v16379_v7  ;;  %21025 = vst [vmem:[#allocation50_spill] sm:$0xff] %v16381_v41  ;;  %v1680_v19 = vmul.f32 0.2, %v1540_v31  ;;  %v714_v54 = vadd.f32 %v713_v38, %v16282_v28  ;;  %v1544_v25 = vadd.f32 %v1543_v22, %v16285_v57  ;;  %v16387_v34 = vpack.c.bf16 %v913_v43, %v911_v53 }
 0x113   : > { %v16389_v59 = vpack.c.bf16 %v1743_v29, %v1741_v33  ;;  %v851_v23 = vmul.f32 0.2, %v712_v1  ;;  %v1681_v45 = vmul.f32 0.2, %v1542_v24  ;;  %v715_v30 = vpop.f32.mrf.mxu0  ;;  %v1545_v16 = vpop.f32.mrf.mxu1  ;;  %v16392_v4 = vpack.c.bf16 %v2090_v35, %v16346_v18 }
 0x114   : > { %21026 = vst [vmem:[#allocation51_spill] sm:$0xff] %v16387_v34  ;;  %v2093_v46 = vsel %vm2020_vm1, %v2091_v3, %v2092_v9  ;;  %v852_v32 = vmul.f32 0.2, %v714_v54  ;;  %v1682_v20 = vmul.f32 0.2, %v1544_v25  ;;  %v716_v14 = vadd.f32 %v715_v30, %v16288_v51 }
 0x115   : > { %21027 = vst [vmem:[#allocation52_spill] sm:$0xff] %v16389_v59  ;;  %21028 = vst [vmem:[#allocation53_spill] sm:$0xff] %v16392_v4  ;;  %v1546_v55 = vadd.f32 %v1545_v16, %v16291_v17  ;;  %v914_v38 = vmax.f32 %v710_v56, %v850_v12  ;;  %v1744_v53 = vmax.f32 %v1540_v31, %v1680_v19  ;;  %v719_v43 = vpop.f32.mrf.mxu0  ;;  %v1549_v33 = vpop.f32.mrf.mxu1  ;;  %2410 = vmatmul.mubr.bf16.gmra.mxu0 %v16333_v2 }
 0x116   : > { %3064 = vmatmul.mubr.bf16.gmra.mxu1 %v16145_v62  ;;  %v2095_v29 = vsel %vm2020_vm1, %v2092_v9, %v2094_v52  ;;  %v916_v18 = vmax.f32 %v714_v54, %v852_v32  ;;  %v1746_v35 = vmax.f32 %v1544_v25, %v1682_v20  ;;  %v853_v3 = vmul.f32 0.2, %v716_v14  ;;  %2419 = vmatprep.mubr.bf16.mxu0 %v21004_v49  ;;  %v407_v25 = vld [vmem:[%s15674_s12 + $0x180] sm:$0xff] }
 0x117   : > { %v1683_v22 = vmul.f32 0.2, %v1546_v55  ;;  %3073 = vmatprep.mubr.bf16.mxu1 %v21004_v49  ;;  %v915_v30 = vmax.f32 %v712_v1, %v851_v23  ;;  %v1745_v56 = vmax.f32 %v1542_v24, %v1681_v45  ;;  %v720_v31 = vadd.f32 %v719_v43, %v16282_v28  ;;  %v721_v19 = vpop.f32.mrf.mxu0  ;;  %v1551_v16 = vpop.f32.mrf.mxu1 }
 0x118   : > { %v1550_v12 = vadd.f32 %v1549_v33, %v16285_v57  ;;  %v16404_v41 = vpack.c.bf16 %v916_v18, %v914_v38  ;;  %v16406_v9 = vpack.c.bf16 %v1746_v35, %v1744_v53  ;;  %v917_v52 = vmax.f32 %v716_v14, %v853_v3  ;;  %v408_v33 = vld [vmem:[%s15674_s12 + $0x188] sm:$0xff] }
 0x119   : > { %v1747_v54 = vmax.f32 %v1546_v55, %v1683_v22  ;;  %v854_v32 = vmul.f32 0.2, %v720_v31  ;;  %v722_v59 = vadd.f32 %v721_v19, %v16288_v51  ;;  %v1552_v24 = vadd.f32 %v1551_v16, %v16291_v17  ;;  %v723_v1 = vpop.f32.mrf.mxu0  ;;  %v1553_v23 = vpop.f32.mrf.mxu1 }
 0x11a   : > { %21029 = vst [vmem:[#allocation54_spill] sm:$0xff] %v16404_v41  ;;  %21030 = vst [vmem:[#allocation55_spill] sm:$0xff] %v16406_v9  ;;  %v1684_v20 = vmul.f32 0.2, %v1550_v12  ;;  %v724_v45 = vadd.f32 %v723_v1, %v16282_v28  ;;  %v1554_v43 = vadd.f32 %v1553_v23, %v16285_v57  ;;  %v16414_v38 = vpack.c.bf16 %v917_v52, %v915_v30 }
 0x11b   : > { %v16416_v53 = vpack.c.bf16 %v1747_v54, %v1745_v56  ;;  %v855_v14 = vmul.f32 0.2, %v722_v59  ;;  %v1685_v55 = vmul.f32 0.2, %v1552_v24  ;;  %v725_v18 = vpop.f32.mrf.mxu0  ;;  %v1555_v35 = vpop.f32.mrf.mxu1  ;;  %v16418_v3 = vpack.c.bf16 %v2095_v29, %v2093_v46 }
 0x11c   : > { %21031 = vst [vmem:[#allocation56_spill] sm:$0xff] %v16414_v38  ;;  %v461_v22 = vmul.f32 0.2, %v407_v25  ;;  %v856_v19 = vmul.f32 0.2, %v724_v45  ;;  %v726_v9 = vadd.f32 %v725_v18, %v16288_v51  ;;  %v1556_v1 = vadd.f32 %v1555_v35, %v16291_v17 }
 0x11d   : > { %21032 = vst [vmem:[#allocation57_spill] sm:$0xff] %v16416_v53  ;;  %21033 = vst [vmem:[#allocation58_spill] sm:$0xff] %v16418_v3  ;;  %v1686_v16 = vmul.f32 0.2, %v1554_v43  ;;  %v918_v47 = vmax.f32 %v720_v31, %v854_v32  ;;  %v1748_v23 = vmax.f32 %v1550_v12, %v1684_v20  ;;  %v729_v39 = vpop.f32.mrf.mxu0  ;;  %v1559_v30 = vpop.f32.mrf.mxu1  ;;  %2420 = vmatmul.mubr.bf16.gmra.mxu0 %v16392_v4  ;;  %v2096_v56 = vrot.slane %v16154_v11, 2 }
 0x11e   : > { %3074 = vmatmul.mubr.bf16.gmra.mxu1 %v16166_v40  ;;  %v462_v52 = vmul.f32 0.2, %v408_v33  ;;  %v920_v46 = vmax.f32 %v724_v45, %v856_v19  ;;  %v857_v54 = vmul.f32 0.2, %v726_v9  ;;  %v1687_v53 = vmul.f32 0.2, %v1556_v1  ;;  %2429 = vmatprep.mubr.bf16.mxu0 %v21004_v49 }
 0x11f   : > { %v1750_v29 = vmax.f32 %v1554_v43, %v1686_v16  ;;  %3083 = vmatprep.mubr.bf16.mxu1 %v21004_v49  ;;  %v919_v18 = vmax.f32 %v722_v59, %v855_v14  ;;  %v1749_v31 = vmax.f32 %v1552_v24, %v1685_v55  ;;  %v730_v12 = vadd.f32 %v729_v39, %v16282_v28  ;;  %v731_v20 = vpop.f32.mrf.mxu0  ;;  %v1561_v35 = vpop.f32.mrf.mxu1 }
 0x120   : > { %v1560_v32 = vadd.f32 %v1559_v30, %v16285_v57  ;;  %v16429_v26 = vpack.c.bf16 %v920_v46, %v918_v47  ;;  %v921_v45 = vmax.f32 %v726_v9, %v857_v54  ;;  %v1751_v43 = vmax.f32 %v1556_v1, %v1687_v53 }
 0x121   : > { %v16431_v11 = vpack.c.bf16 %v1750_v29, %v1748_v23  ;;  %v858_v19 = vmul.f32 0.2, %v730_v12  ;;  %v733_v41 = vpop.f32.mrf.mxu0  ;;  %v1563_v38 = vpop.f32.mrf.mxu1  ;;  %v2097_v7 = vrot.slane %v16156_v10, 2  ;;  %v2099_v59 = vrot.slane %v16162_v37, 2 }
 0x122   : > { %21034 = vst [vmem:[#allocation59_spill] sm:$0xff] %v16429_v26  ;;  %v1688_v16 = vmul.f32 0.2, %v1560_v32  ;;  %v734_v39 = vadd.f32 %v733_v41, %v16282_v28  ;;  %v1564_v24 = vadd.f32 %v1563_v38, %v16285_v57  ;;  %v16437_v14 = vpack.c.bf16 %v921_v45, %v919_v18 }
 0x123   : > { %21035 = vst [vmem:[#allocation60_spill] sm:$0xff] %v16431_v11  ;;  %v16439_v47 = vpack.c.bf16 %v1751_v43, %v1749_v31  ;;  %v735_v55 = vpop.f32.mrf.mxu0  ;;  %v1565_v23 = vpop.f32.mrf.mxu1  ;;  %v16441_v1 = vmax.f32 %v407_v25, %v461_v22  ;;  %v16443_v30 = vmax.f32 %v408_v33, %v462_v52  ;;  %v922_v46 = vmax.f32 %v730_v12, %v858_v19 }
 0x124   : > { %21036 = vst [vmem:[#allocation61_spill] sm:$0xff] %v16437_v14  ;;  %v860_v9 = vmul.f32 0.2, %v734_v39  ;;  %v1690_v53 = vmul.f32 0.2, %v1564_v24  ;;  %v2098_v37 = vsel %vm2020_vm1, %v2096_v56, %v2097_v7  ;;  %v2100_v41 = vsel %vm2020_vm1, %v2097_v7, %v2099_v59 }
 0x125   : > { %21037 = vst [vmem:[#allocation62_spill] sm:$0xff] %v16439_v47  ;;  %v739_v10 = vpop.f32.mrf.mxu0  ;;  %v1569_v29 = vpop.f32.mrf.mxu1  ;;  %2430 = vmatmul.mubr.bf16.gmra.mxu0 %v16418_v3  ;;  %v1752_v38 = vmax.f32 %v1560_v32, %v1688_v16  ;;  %v16454_v31 = vadd.f32 %v731_v20, %v16288_v51  ;;  %v16460_v7 = vpack.c.bf16 %v2100_v41, %v2098_v37 }
 0x126   : > { %3084 = vmatmul.mubr.bf16.gmra.mxu1 %v16181_v13  ;;  %v924_v54 = vmax.f32 %v734_v39, %v860_v9  ;;  %v1754_v18 = vmax.f32 %v1564_v24, %v1690_v53  ;;  %2439 = vmatprep.mubr.bf16.mxu0 %v21004_v49  ;;  %v740_v25 = vadd.f32 %v739_v10, %v16282_v28 }
 0x127   : > { %3093 = vmatprep.mubr.bf16.mxu1 %v21004_v49  ;;  %v1570_v33 = vadd.f32 %v1569_v29, %v16285_v57  ;;  %v741_v22 = vpop.f32.mrf.mxu0  ;;  %v1571_v52 = vpop.f32.mrf.mxu1  ;;  %21040 = vst [vmem:[#allocation65_spill] sm:$0xff] %v16460_v7  ;;  %v16463_v32 = vadd.f32 %v1561_v35, %v16291_v17  ;;  %v16466_v45 = vadd.f32 %v735_v55, %v16288_v51 }
 0x128   : > { %v16456_v12 = vpack.c.bf16 %v924_v54, %v922_v46  ;;  %v16458_v56 = vpack.c.bf16 %v1754_v18, %v1752_v38  ;;  %v862_v43 = vmul.f32 0.2, %v740_v25  ;;  %v16470_v59 = vpack.c.bf16 %v16443_v30, %v16441_v1 }
 0x129   : > { %v743_v19 = vpop.f32.mrf.mxu0  ;;  %v1573_v16 = vpop.f32.mrf.mxu1  ;;  %v16473_v20 = vadd.f32 %v1565_v23, %v16291_v17  ;;  %v1692_v39 = vmul.f32 0.2, %v1570_v33  ;;  %v16478_v35 = vadd.f32 %v741_v22, %v16288_v51  ;;  %v16481_v46 = vmul.f32 0.2, %v16454_v31 }
 0x12a   : > { %21038 = vst [vmem:[#allocation63_spill] sm:$0xff] %v16456_v12  ;;  %21039 = vst [vmem:[#allocation64_spill] sm:$0xff] %v16458_v56  ;;  %v744_v24 = vadd.f32 %v743_v19, %v16282_v28  ;;  %v1574_v9 = vadd.f32 %v1573_v16, %v16285_v57  ;;  %v16484_v37 = vmul.f32 0.2, %v16463_v32  ;;  %v16487_v23 = vmul.f32 0.2, %v16466_v45 }
 0x12b   : > { %21041 = vst [vmem:[#allocation66_spill] sm:$0xff] %v16470_v59  ;;  %v745_v55 = vpop.f32.mrf.mxu0  ;;  %v1575_v53 = vpop.f32.mrf.mxu1  ;;  %v926_v41 = vmax.f32 %v740_v25, %v862_v43  ;;  %v16490_v38 = vadd.f32 %v1571_v52, %v16291_v17  ;;  %v16495_v22 = vmul.f32 0.2, %v16473_v20  ;;  %v1756_v19 = vmax.f32 %v1570_v33, %v1692_v39 }
 0x12c   : > { %v864_v10 = vmul.f32 0.2, %v744_v24  ;;  %v1694_v29 = vmul.f32 0.2, %v1574_v9  ;;  %v16500_v25 = vmul.f32 0.2, %v16478_v35  ;;  %v16503_v52 = vadd.f32 %v745_v55, %v16288_v51 }
 0x12d   : > { %v749_v54 = vpop.f32.mrf.mxu0  ;;  %v1579_v18 = vpop.f32.mrf.mxu1  ;;  %2440 = vmatmul.mubr.bf16.gmra.mxu0 %v16460_v7 }
 0x12e   : > { %3094 = vmatmul.mubr.bf16.gmra.mxu1 %v16470_v59  ;;  %v928_v16 = vmax.f32 %v744_v24, %v864_v10  ;;  %v1758_v56 = vmax.f32 %v1574_v9, %v1694_v29  ;;  %3607 = vmatprep.mubr.bf16.mxu0 %v21004_v49  ;;  %v750_v43 = vadd.f32 %v749_v54, %v16282_v28  ;;  %v16521_v29 = vmul.f32 0.2, %v16490_v38 }
 0x12f   : > { %4268 = vmatprep.mubr.bf16.mxu1 %v21004_v49  ;;  %v1580_v11 = vadd.f32 %v1579_v18, %v16285_v57  ;;  %v751_v47 = vpop.f32.mrf.mxu0  ;;  %v1581_v12 = vpop.f32.mrf.mxu1  ;;  %v16514_v9 = vadd.f32 %v1575_v53, %v16291_v17  ;;  %v925_v10 = vmax.f32 %v16466_v45, %v16487_v23  ;;  %v16533_v23 = vmul.f32 0.2, %v16503_v52 }
 0x130   : > { %v16509_v39 = vpack.c.bf16 %v928_v16, %v926_v41  ;;  %v16511_v24 = vpack.c.bf16 %v1758_v56, %v1756_v19  ;;  %v866_v54 = vmul.f32 0.2, %v750_v43  ;;  %v16524_v41 = vadd.f32 %v751_v47, %v16288_v51  ;;  %v14856_v47 = vld [vmem:[%s20903_s2 + $0x70] ss:$8 sps:$4 sm:$0xff]  }
 0x131   : > { %v753_v18 = vpop.f32.mrf.mxu0  ;;  %v1583_v26 = vpop.f32.mrf.mxu1  ;;  %v1696_v33 = vmul.f32 0.2, %v1580_v11  ;;  %v16536_v16 = vadd.f32 %v1581_v12, %v16291_v17 }
 0x132   : > { %21042 = vst [vmem:[#allocation67_spill] sm:$0xff] %v16509_v39  ;;  %21043 = vst [vmem:[#allocation68_spill] sm:$0xff] %v16511_v24  ;;  %v754_v56 = vadd.f32 %v753_v18, %v16282_v28  ;;  %v1584_v53 = vadd.f32 %v1583_v26, %v16285_v57  ;;  %v14861_v26 = vld [vmem:[%s20903_s2 + $0x64] ss:$8 sps:$4 sm:$0xff]   ;;  %v16545_v18 = vmul.f32 0.2, %v16514_v9  ;;  %v930_v14 = vmax.f32 %v750_v43, %v866_v54 }
 0x133   : > { %v755_v55 = vpop.f32.mrf.mxu0  ;;  %v1585_v24 = vpop.f32.mrf.mxu1  ;;  %v1760_v42 = vmax.f32 %v1580_v11, %v1696_v33  ;;  %v16558_v5 = vmul.f32 0.2, %v16524_v41  ;;  %v16563_v43 = vmul.f32 0.2, %v16536_v16  ;;  %v14859_v54 = vld [vmem:[%s20903_s2 + $0x60] ss:$8 sps:$4 sm:$0xff]  }
 0x134   : > { %v868_v19 = vmul.f32 0.2, %v754_v56  ;;  %v1698_v45 = vmul.f32 0.2, %v1584_v53  ;;  %v16548_v39 = vadd.f32 %v755_v55, %v16288_v51  ;;  %v16553_v34 = vadd.f32 %v1585_v24, %v16291_v17 }
 0x135   : > { %v759_v60 = vpop.f32.mrf.mxu0  ;;  %v1589_v6 = vpop.f32.mrf.mxu1  ;;  %3608 = vmatmul.mubr.bf16.vlgmr.msra.gmra.mxu0 %v15797_v61 }
 0x136   : > { %4269 = vmatmul.mubr.bf16.vlgmr.msra.gmra.mxu1 %v15956_v50  ;;  %v932_v59 = vmax.f32 %v754_v56, %v868_v19  ;;  %v1762_v55 = vmax.f32 %v1584_v53, %v1698_v45  ;;  %3617 = vmatprep.mubr.bf16.mxu0 %v21004_v49  ;;  %v16566_v24 = vmul.f32 0.2, %v16548_v39  ;;  %v16569_v61 = vadd.f32 %v759_v60, %v16282_v28 }
 0x137   : > { %4278 = vmatprep.mubr.bf16.mxu1 %v21004_v49  ;;  %v16572_v50 = vadd.f32 %v1589_v6, %v16285_v57  ;;  %v761_v11 = vpop.f32.mrf.mxu0  ;;  %v1591_v33 = vpop.f32.mrf.mxu1  ;;  %4891 = vmatpush1.bf16.msra.mxu0 %v14856_v47  ;;  %v929_v56 = vmax.f32 %v16503_v52, %v16533_v23  ;;  %v14864_v6 = vld [vmem:[%s20903_s2 + $0x54] ss:$8 sps:$4 sm:$0xff]   ;;  %v16589_v45 = vmul.f32 0.2, %v16553_v34  ;;  %v21046_v53 = vmax.f32 %v16454_v31, %v16481_v46  ;;  %v14862_v31 = vld [vmem:[%s20903_s2 + $0x50] ss:$8 sps:$4 sm:$0xff]  }
 0x138   : > { %5555 = vmatpush1.bf16.msra.mxu1 %v14856_v47  ;;  %v16581_v19 = vpack.c.bf16 %v932_v59, %v930_v14  ;;  %v16583_v60 = vpack.c.bf16 %v1762_v55, %v1760_v42  ;;  %4892 = vmatprep.subr.bf16.mxu0 %v14861_v26  ;;  %v870_v47 = vmul.f32 0.2, %v16569_v61  ;;  %v16593_v12 = vadd.f32 %v761_v11, %v16288_v51 }
 0x139   : > { %v16596_v52 = vadd.f32 %v1591_v33, %v16291_v17  ;;  %v763_v14 = vpop.f32.mrf.mxu0  ;;  %v1593_v59 = vpop.f32.mrf.mxu1  ;;  %5556 = vmatprep.subr.bf16.mxu1 %v14861_v26  ;;  %v1700_v42 = vmul.f32 0.2, %v16572_v50  ;;  %v931_v11 = vmax.f32 %v16524_v41, %v16558_v5  ;;  %v933_v26 = vmax.f32 %v16548_v39, %v16566_v24  ;;  %v14867_v39 = vld [vmem:[%s20903_s2 + $0x44] ss:$8 sps:$4 sm:$0xff]  }
 0x13a   : > { %21044 = vst [vmem:[#allocation69_spill] sm:$0xff] %v16581_v19  ;;  %21045 = vst [vmem:[#allocation70_spill] sm:$0xff] %v16583_v60  ;;  %v764_v23 = vadd.f32 %v763_v14, %v16282_v28  ;;  %v1594_v55 = vadd.f32 %v1593_v59, %v16285_v57  ;;  %v16604_v60 = vpack.c.bf16 %v925_v10, %v21046_v53  ;;  %v871_v19 = vmul.f32 0.2, %v16593_v12 }
 0x13b   : > { %v765_v13 = vpop.f32.mrf.mxu0  ;;  %v1595_v14 = vpop.f32.mrf.mxu1  ;;  %4893 = vmatpush1.bf16.msra.mxu0 %v14859_v54  ;;  %v16627_v53 = vmul.f32 0.2, %v16596_v52 }
 0x13c   : > { %21047 = vst [vmem:[#allocation71_spill] sm:$0xff] %v16604_v60  ;;  %5557 = vmatpush1.bf16.msra.mxu1 %v14859_v54  ;;  %v872_v46 = vmul.f32 0.2, %v764_v23  ;;  %v1702_v10 = vmul.f32 0.2, %v1594_v55  ;;  %v766_v5 = vadd.f32 %v765_v13, %v16288_v51  ;;  %v16618_v41 = vadd.f32 %v1595_v14, %v16291_v17  ;;  %4894 = vmatprep.subr.bf16.mxu0 %v14864_v6 }
 0x13d   : > { %5558 = vmatprep.subr.bf16.mxu1 %v14864_v6  ;;  %v934_v54 = vmax.f32 %v16569_v61, %v870_v47  ;;  %v769_v59 = vpop.f32.mrf.mxu0  ;;  %v1599_v33 = vpop.f32.mrf.mxu1  ;;  %3618 = vmatmul.mubr.bf16.gmra.mxu0 %v15829_v27  ;;  %v21048_v13 = vmax.f32 %v16478_v35, %v16500_v25  ;;  %v1764_v14 = vmax.f32 %v16572_v50, %v1700_v42  ;;  %v14865_v50 = vld [vmem:[%s20903_s2 + $0x40] ss:$8 sps:$4 sm:$0xff]  }
 0x13e   : > { %4279 = vmatmul.mubr.bf16.gmra.mxu1 %v15960_v15  ;;  %v936_v60 = vmax.f32 %v764_v23, %v872_v46  ;;  %v1766_v24 = vmax.f32 %v1594_v55, %v1702_v10  ;;  %v873_v40 = vmul.f32 0.2, %v766_v5  ;;  %3627 = vmatprep.mubr.bf16.mxu0 %v21004_v49  ;;  %v16640_v61 = vmul.f32 0.2, %v16618_v41 }
 0x13f   : > { %v16634_v6 = vpack.c.bf16 %v929_v56, %v21048_v13  ;;  %4288 = vmatprep.mubr.bf16.mxu1 %v21004_v49  ;;  %v16643_v47 = vadd.f32 %v769_v59, %v16282_v28  ;;  %v16646_v15 = vadd.f32 %v1599_v33, %v16285_v57  ;;  %v771_v35 = vpop.f32.mrf.mxu0  ;;  %v1601_v25 = vpop.f32.mrf.mxu1  ;;  %4895 = vmatpush1.bf16.msra.mxu0 %v14862_v31  ;;  %v14870_v33 = vld [vmem:[%s20903_s2 + $0x34] ss:$8 sps:$4 sm:$0xff]  }
 0x140   : > { %5559 = vmatpush1.bf16.msra.mxu1 %v14862_v31  ;;  %v16651_v56 = vpack.c.bf16 %v933_v26, %v931_v11  ;;  %v935_v42 = vmax.f32 %v16593_v12, %v871_v19  ;;  %v16654_v23 = vpack.c.bf16 %v936_v60, %v934_v54  ;;  %v16656_v55 = vpack.c.bf16 %v1766_v24, %v1764_v14 }
 0x141   : > { %21049 = vst [vmem:[#allocation72_spill] sm:$0xff] %v16634_v6  ;;  %v937_v46 = vmax.f32 %v766_v5, %v873_v40  ;;  %4896 = vmatprep.subr.bf16.mxu0 %v14867_v39  ;;  %v1765_v31 = vmax.f32 %v16596_v52, %v16627_v53  ;;  %v874_v10 = vmul.f32 0.2, %v16643_v47  ;;  %v1704_v11 = vmul.f32 0.2, %v16646_v15  ;;  %v773_v12 = vpop.f32.mrf.mxu0  ;;  %v1603_v19 = vpop.f32.mrf.mxu1  ;;  %5560 = vmatprep.subr.bf16.mxu1 %v14867_v39 }
 0x142   : > { %21050 = vst [vmem:[#allocation73_spill] sm:$0xff] %v16651_v56  ;;  %21051 = vst [vmem:[#allocation74_spill] sm:$0xff] %v16654_v23  ;;  %v772_v26 = vadd.f32 %v771_v35, %v16288_v51  ;;  %v774_v60 = vadd.f32 %v773_v12, %v16282_v28  ;;  %v1604_v40 = vadd.f32 %v1603_v19, %v16285_v57  ;;  %v4121_v6 = vrot.slane %v16443_v30, 2 }
 0x143   : > { %21052 = vst [vmem:[#allocation75_spill] sm:$0xff] %v16656_v55  ;;  %v16668_v5 = vpack.c.bf16 %v937_v46, %v935_v42  ;;  %v21054_v24 = vmax.f32 %v16463_v32, %v16484_v37  ;;  %v21055_v54 = vmax.f32 %v16473_v20, %v16495_v22  ;;  %v1767_v13 = vmax.f32 %v16618_v41, %v16640_v61  ;;  %v775_v12 = vpop.f32.mrf.mxu0  ;;  %v1605_v42 = vpop.f32.mrf.mxu1  ;;  %v14868_v32 = vld [vmem:[%s20903_s2 + $0x30] ss:$8 sps:$4 sm:$0xff]   ;;  %v14873_v61 = vld [vmem:[%s20903_s2 + $0x24] ss:$8 sps:$4 sm:$0xff]  }
 0x144   : > { %v938_v14 = vmax.f32 %v16643_v47, %v874_v10  ;;  %v875_v39 = vmul.f32 0.2, %v772_v26  ;;  %v16682_v35 = vadd.f32 %v1601_v25, %v16291_v17  ;;  %4897 = vmatpush1.bf16.msra.mxu0 %v14865_v50  ;;  %5561 = vmatpush1.bf16.msra.mxu1 %v14865_v50  ;;  %v876_v20 = vmul.f32 0.2, %v774_v60 }
 0x145   : > { %21053 = vst [vmem:[#allocation76_spill] sm:$0xff] %v16668_v5  ;;  %v16676_v59 = vpack.c.bf16 %v21055_v54, %v21054_v24  ;;  %v1706_v37 = vmul.f32 0.2, %v1604_v40  ;;  %v776_v22 = vadd.f32 %v775_v12, %v16288_v51  ;;  %v16689_v41 = vadd.f32 %v1605_v42, %v16291_v17  ;;  %4898 = vmatprep.subr.bf16.mxu0 %v14870_v33  ;;  %v779_v50 = vpop.f32.mrf.mxu0  ;;  %v1609_v46 = vpop.f32.mrf.mxu1 }
 0x146   : > { %5562 = vmatprep.subr.bf16.mxu1 %v14870_v33  ;;  %v1768_v47 = vmax.f32 %v16646_v15, %v1704_v11  ;;  %v939_v25 = vmax.f32 %v772_v26, %v875_v39  ;;  %3628 = vmatmul.mubr.bf16.gmra.mxu0 %v15864_v48  ;;  %v21057_v10 = vmax.f32 %v16490_v38, %v16521_v29  ;;  %v1705_v11 = vmul.f32 0.2, %v16682_v35 }
 0x147   : > { %21056 = vst [vmem:[#allocation77_spill] sm:$0xff] %v16676_v59  ;;  %4289 = vmatmul.mubr.bf16.gmra.mxu1 %v15966_v58  ;;  %v21058_v19 = vmax.f32 %v16514_v9, %v16545_v18  ;;  %v940_v24 = vmax.f32 %v774_v60, %v876_v20  ;;  %v1770_v54 = vmax.f32 %v1604_v40, %v1706_v37  ;;  %v877_v12 = vmul.f32 0.2, %v776_v22  ;;  %v781_v9 = vpop.f32.mrf.mxu0  ;;  %v1611_v29 = vpop.f32.mrf.mxu1  ;;  %v14871_v18 = vld [vmem:[%s20903_s2 + $0x20] ss:$8 sps:$4 sm:$0xff]  }
 0x148   : > { %v1707_v15 = vmul.f32 0.2, %v16689_v41  ;;  %3637 = vmatprep.mubr.bf16.mxu0 %v21004_v49  ;;  %4298 = vmatprep.mubr.bf16.mxu1 %v21004_v49  ;;  %v16710_v26 = vadd.f32 %v779_v50, %v16282_v28  ;;  %v16713_v38 = vadd.f32 %v1609_v46, %v16285_v57  ;;  %v21060_v60 = vmax.f32 %v16536_v16, %v16563_v43  ;;  %v21084_v59 = vld [vmem:[#allocation19_spill] sm:$0xff] }
 0x149   : > { %v16703_v33 = vpack.c.bf16 %v21058_v19, %v21057_v10  ;;  %4899 = vmatpush1.bf16.msra.mxu0 %v14868_v32  ;;  %5563 = vmatpush1.bf16.msra.mxu1 %v14868_v32  ;;  %v21061_v40 = vmax.f32 %v16553_v34, %v16589_v45  ;;  %v16726_v42 = vpack.c.bf16 %v940_v24, %v938_v14  ;;  %v14876_v32 = vld [vmem:[%s20903_s2 + $0x14] ss:$8 sps:$4 sm:$0xff]   ;;  %v783_v45 = vpop.f32.mrf.mxu0  ;;  %v1613_v14 = vpop.f32.mrf.mxu1  ;;  %v14891_v58 = vld [vmem:[%s20903_s2 + $0x64] ss:$8 sps:$4 sm:$0xff]  }
 0x14a   : > { %v16728_v20 = vpack.c.bf16 %v1770_v54, %v1768_v47  ;;  %v941_v37 = vmax.f32 %v776_v22, %v877_v12  ;;  %v1771_v50 = vmax.f32 %v16689_v41, %v1707_v15  ;;  %4900 = vmatprep.subr.bf16.mxu0 %v14873_v61  ;;  %v878_v46 = vmul.f32 0.2, %v16710_v26  ;;  %5564 = vmatprep.subr.bf16.mxu1 %v14873_v61  ;;  %v14874_v61 = vld [vmem:[%s20903_s2 + $0x10] ss:$8 sps:$4 sm:$0xff]  }
 0x14b   : > { %21059 = vst [vmem:[#allocation78_spill] sm:$0xff] %v16703_v33  ;;  %v16724_v39 = vpack.c.bf16 %v21061_v40, %v21060_v60  ;;  %21063 = vst [vmem:[#allocation80_spill] sm:$0xff] %v16726_v42  ;;  %v1708_v16 = vmul.f32 0.2, %v16713_v38  ;;  %v782_v34 = vadd.f32 %v781_v9, %v16288_v51  ;;  %v1612_v43 = vadd.f32 %v1611_v29, %v16291_v17  ;;  %v785_v15 = vpop.f32.mrf.mxu0  ;;  %v1615_v9 = vpop.f32.mrf.mxu1 }
 0x14c   : > { %21064 = vst [vmem:[#allocation81_spill] sm:$0xff] %v16728_v20  ;;  %v784_v22 = vadd.f32 %v783_v45, %v16282_v28  ;;  %v1614_v41 = vadd.f32 %v1613_v14, %v16285_v57  ;;  %v16740_v47 = vpack.c.bf16 %v941_v37, %v939_v25  ;;  %v16745_v10 = vpack.c.bf16 %v1767_v13, %v1765_v31  ;;  %v14879_v31 = vld [vmem:[%s20903_s2 + $0x4] ss:$8 sps:$4 sm:$0xff]  }
 0x14d   : > { %21062 = vst [vmem:[#allocation79_spill] sm:$0xff] %v16724_v39  ;;  %v1769_v19 = vmax.f32 %v16682_v35, %v1705_v11  ;;  %v942_v24 = vmax.f32 %v16710_v26, %v878_v46  ;;  %v879_v54 = vmul.f32 0.2, %v782_v34  ;;  %v1709_v12 = vmul.f32 0.2, %v1612_v43  ;;  %4901 = vmatpush1.bf16.msra.mxu0 %v14871_v18  ;;  %5565 = vmatpush1.bf16.msra.mxu1 %v14871_v18  ;;  %v789_v11 = vpop.f32.mrf.mxu0  ;;  %v1619_v26 = vpop.f32.mrf.mxu1 }
 0x14e   : > { %21065 = vst [vmem:[#allocation82_spill] sm:$0xff] %v16740_v47  ;;  %21066 = vst [vmem:[#allocation83_spill] sm:$0xff] %v16745_v10  ;;  %v880_v25 = vmul.f32 0.2, %v784_v22  ;;  %v1710_v29 = vmul.f32 0.2, %v1614_v41  ;;  %v786_v52 = vadd.f32 %v785_v15, %v16288_v51  ;;  %v1616_v53 = vadd.f32 %v1615_v9, %v16291_v17  ;;  %4902 = vmatprep.subr.bf16.mxu0 %v14876_v32 }
 0x14f   : > { %5566 = vmatprep.subr.bf16.mxu1 %v14876_v32  ;;  %v1772_v13 = vmax.f32 %v16713_v38, %v1708_v16  ;;  %v943_v35 = vmax.f32 %v782_v34, %v879_v54  ;;  %3638 = vmatmul.mubr.bf16.gmra.mxu0 %v15909_v21  ;;  %v16760_v18 = vpack.c.bf16 %v1771_v50, %v1769_v19  ;;  %v791_v34 = vpop.f32.mrf.mxu0  ;;  %v1621_v45 = vpop.f32.mrf.mxu1  ;;  %v14877_v50 = vld [vmem:[%s20903_s2] ss:$8 sps:$4 sm:$0xff]  }
 0x150   : > { %4299 = vmatmul.mubr.bf16.gmra.mxu1 %v15983_v63  ;;  %v944_v60 = vmax.f32 %v784_v22, %v880_v25  ;;  %v1774_v40 = vmax.f32 %v1614_v41, %v1710_v29  ;;  %v881_v37 = vmul.f32 0.2, %v786_v52  ;;  %v1711_v46 = vmul.f32 0.2, %v1616_v53  ;;  %3647 = vmatprep.mubr.bf16.mxu0 %v21004_v49  ;;  %v21136_v63 = vld [vmem:[#allocation6_spill] sm:$0xff] }
 0x151   : > { %21067 = vst [vmem:[#allocation84_spill] sm:$0xff] %v16760_v18  ;;  %4308 = vmatprep.mubr.bf16.mxu1 %v21004_v49  ;;  %v1773_v32 = vmax.f32 %v1612_v43, %v1709_v12  ;;  %v790_v38 = vadd.f32 %v789_v11, %v16282_v28  ;;  %v1620_v16 = vadd.f32 %v1619_v26, %v16285_v57  ;;  %v793_v9 = vpop.f32.mrf.mxu0  ;;  %v1623_v25 = vpop.f32.mrf.mxu1 }
 0x152   : > { %4903 = vmatpush1.bf16.msra.mxu0 %v14874_v61  ;;  %5567 = vmatpush1.bf16.msra.mxu1 %v14874_v61  ;;  %v16769_v14 = vpack.c.bf16 %v944_v60, %v942_v24  ;;  %v16771_v22 = vpack.c.bf16 %v1774_v40, %v1772_v13  ;;  %v945_v41 = vmax.f32 %v786_v52, %v881_v37 }
 0x153   : > { %v1775_v19 = vmax.f32 %v1616_v53, %v1711_v46  ;;  %4904 = vmatprep.subr.bf16.mxu0 %v14879_v31  ;;  %v882_v43 = vmul.f32 0.2, %v790_v38  ;;  %v1712_v54 = vmul.f32 0.2, %v1620_v16  ;;  %v792_v12 = vadd.f32 %v791_v34, %v16288_v51  ;;  %5568 = vmatprep.subr.bf16.mxu1 %v14879_v31  ;;  %v795_v11 = vpop.f32.mrf.mxu0  ;;  %v1625_v26 = vpop.f32.mrf.mxu1 }
 0x154   : > { %21068 = vst [vmem:[#allocation85_spill] sm:$0xff] %v16769_v14  ;;  %21069 = vst [vmem:[#allocation86_spill] sm:$0xff] %v16771_v22  ;;  %v1622_v15 = vadd.f32 %v1621_v45, %v16291_v17  ;;  %v794_v61 = vadd.f32 %v793_v9, %v16282_v28  ;;  %v1624_v29 = vadd.f32 %v1623_v25, %v16285_v57 }
 0x155   : > { %v16777_v24 = vpack.c.bf16 %v945_v41, %v943_v35  ;;  %v16779_v13 = vpack.c.bf16 %v1775_v19, %v1773_v32  ;;  %v883_v52 = vmul.f32 0.2, %v792_v12  ;;  %v796_v37 = vadd.f32 %v795_v11, %v16288_v51  ;;  %v799_v45 = vpop.f32.mrf.mxu0  ;;  %v1629_v9 = vpop.f32.mrf.mxu1  ;;  %v21072_v35 = vld [vmem:[#allocation10_spill] sm:$0xff] }
 0x156   : > { %v1713_v53 = vmul.f32 0.2, %v1622_v15  ;;  %4905 = vmatpush1.bf16.msra.mxu0 %v14877_v50  ;;  %5569 = vmatpush1.bf16.msra.mxu1 %v14877_v50  ;;  %v884_v60 = vmul.f32 0.2, %v794_v61  ;;  %v1714_v40 = vmul.f32 0.2, %v1624_v29  ;;  %v1626_v31 = vadd.f32 %v1625_v26, %v16291_v17 }
 0x157   : > { %21070 = vst [vmem:[#allocation87_spill] sm:$0xff] %v16777_v24  ;;  %21071 = vst [vmem:[#allocation88_spill] sm:$0xff] %v16779_v13  ;;  %v946_v46 = vmax.f32 %v790_v38, %v882_v43  ;;  %v1776_v34 = vmax.f32 %v1620_v16, %v1712_v54  ;;  %3648 = vmatmul.mubr.bf16.gmra.mxu0 %v21072_v35  ;;  %v21073_v32 = vld [vmem:[#allocation14_spill] sm:$0xff]  ;;  %v885_v25 = vmul.f32 0.2, %v796_v37  ;;  %v801_v16 = vpop.f32.mrf.mxu0  ;;  %v1631_v43 = vpop.f32.mrf.mxu1 }
 0x158   : > { %4309 = vmatmul.mubr.bf16.gmra.mxu1 %v21073_v32  ;;  %v948_v41 = vmax.f32 %v794_v61, %v884_v60  ;;  %v1778_v19 = vmax.f32 %v1624_v29, %v1714_v40  ;;  %v1715_v22 = vmul.f32 0.2, %v1626_v31  ;;  %3657 = vmatprep.mubr.bf16.mxu0 %v21004_v49  ;;  %v947_v50 = vmax.f32 %v792_v12, %v883_v52 }
 0x159   : > { %4318 = vmatprep.mubr.bf16.mxu1 %v21004_v49  ;;  %v1777_v11 = vmax.f32 %v1622_v15, %v1713_v53  ;;  %v800_v26 = vadd.f32 %v799_v45, %v16282_v28  ;;  %v1630_v38 = vadd.f32 %v1629_v9, %v16285_v57  ;;  %v949_v61 = vmax.f32 %v796_v37, %v885_v25  ;;  %v803_v12 = vpop.f32.mrf.mxu0  ;;  %v1633_v15 = vpop.f32.mrf.mxu1 }
 0x15a   : > { %v16789_v54 = vpack.c.bf16 %v948_v41, %v946_v46  ;;  %v16791_v13 = vpack.c.bf16 %v1778_v19, %v1776_v34  ;;  %v1779_v29 = vmax.f32 %v1626_v31, %v1715_v22  ;;  %v802_v20 = vadd.f32 %v801_v16, %v16288_v51  ;;  %v14882_v16 = vld [vmem:[%s20903_s2 + $0x74] ss:$8 sps:$4 sm:$0xff]  }
 0x15b   : > { %v886_v60 = vmul.f32 0.2, %v800_v26  ;;  %v1716_v40 = vmul.f32 0.2, %v1630_v38  ;;  %v1632_v18 = vadd.f32 %v1631_v43, %v16291_v17  ;;  %v804_v52 = vadd.f32 %v803_v12, %v16282_v28  ;;  %v805_v37 = vpop.f32.mrf.mxu0  ;;  %v1635_v22 = vpop.f32.mrf.mxu1  ;;  %6215 = vmatprep.subr.bf16.mxu0 %v14882_v16 }
 0x15c   : > { %21074 = vst [vmem:[#allocation10_spill] sm:$0xff] %v16789_v54  ;;  %21075 = vst [vmem:[#allocation89_spill] sm:$0xff] %v16791_v13  ;;  %v1634_v53 = vadd.f32 %v1633_v15, %v16285_v57  ;;  %v16797_v45 = vpack.c.bf16 %v949_v61, %v947_v50  ;;  %v16799_v46 = vpack.c.bf16 %v1779_v29, %v1777_v11  ;;  %v887_v34 = vmul.f32 0.2, %v802_v20  ;;  %v21078_v29 = vld [vmem:[#allocation16_spill] sm:$0xff]  ;;  %v21079_v15 = vld [vmem:[#allocation17_spill] sm:$0xff] }
 0x15d   : > { %v1717_v9 = vmul.f32 0.2, %v1632_v18  ;;  %v888_v31 = vmul.f32 0.2, %v804_v52  ;;  %v806_v19 = vadd.f32 %v805_v37, %v16288_v51  ;;  %v1636_v25 = vadd.f32 %v1635_v22, %v16291_v17  ;;  %v809_v61 = vpop.f32.mrf.mxu0  ;;  %v1639_v11 = vpop.f32.mrf.mxu1  ;;  %v14885_v13 = vld [vmem:[%s20905_s4 + $0x74] ss:$8 sps:$4 sm:$0xff]  }
 0x15e   : > { %21076 = vst [vmem:[#allocation90_spill] sm:$0xff] %v16797_v45  ;;  %21077 = vst [vmem:[#allocation91_spill] sm:$0xff] %v16799_v46  ;;  %v1718_v41 = vmul.f32 0.2, %v1634_v53  ;;  %v950_v43 = vmax.f32 %v800_v26, %v886_v60  ;;  %v1780_v12 = vmax.f32 %v1630_v38, %v1716_v40  ;;  %v951_v50 = vmax.f32 %v802_v20, %v887_v34 }
 0x15f   : > { %3658 = vmatmul.mubr.bf16.gmra.mxu0 %v21078_v29  ;;  %v952_v37 = vmax.f32 %v804_v52, %v888_v31  ;;  %v889_v22 = vmul.f32 0.2, %v806_v19  ;;  %v1719_v55 = vmul.f32 0.2, %v1636_v25  ;;  %v1781_v26 = vmax.f32 %v1632_v18, %v1717_v9  ;;  %v811_v60 = vpop.f32.mrf.mxu0  ;;  %v1641_v40 = vpop.f32.mrf.mxu1  ;;  %10228 = vmatprep.subr.bf16.mxu1 %v14885_v13 }
 0x160   : > { %4319 = vmatmul.mubr.bf16.gmra.mxu1 %v21079_v15  ;;  %v1782_v46 = vmax.f32 %v1634_v53, %v1718_v41  ;;  %3667 = vmatprep.mubr.bf16.mxu0 %v21004_v49  ;;  %v810_v20 = vadd.f32 %v809_v61, %v16282_v28  ;;  %v1640_v38 = vadd.f32 %v1639_v11, %v16285_v57 }
 0x161   : > { %4328 = vmatprep.mubr.bf16.mxu1 %v21004_v49  ;;  %v16815_v34 = vpack.c.bf16 %v952_v37, %v950_v43  ;;  %v953_v52 = vmax.f32 %v806_v19, %v889_v22  ;;  %v1783_v53 = vmax.f32 %v1636_v25, %v1719_v55  ;;  %v812_v39 = vadd.f32 %v811_v60, %v16288_v51  ;;  %v813_v9 = vpop.f32.mrf.mxu0  ;;  %v1643_v61 = vpop.f32.mrf.mxu1 }
 0x162   : > { %v16817_v10 = vpack.c.bf16 %v1782_v46, %v1780_v12  ;;  %v890_v31 = vmul.f32 0.2, %v810_v20  ;;  %v1720_v41 = vmul.f32 0.2, %v1640_v38  ;;  %v1642_v18 = vadd.f32 %v1641_v40, %v16291_v17 }
 0x163   : > { %21080 = vst [vmem:[#allocation16_spill] sm:$0xff] %v16815_v34  ;;  %v814_v11 = vadd.f32 %v813_v9, %v16282_v28  ;;  %v1644_v33 = vadd.f32 %v1643_v61, %v16285_v57  ;;  %v16823_v16 = vpack.c.bf16 %v953_v52, %v951_v50  ;;  %v16825_v13 = vpack.c.bf16 %v1783_v53, %v1781_v26  ;;  %v815_v19 = vpop.f32.mrf.mxu0  ;;  %v1645_v55 = vpop.f32.mrf.mxu1  ;;  %v21085_v50 = vld [vmem:[#allocation20_spill] sm:$0xff] }
 0x164   : > { %21081 = vst [vmem:[#allocation92_spill] sm:$0xff] %v16817_v10  ;;  %v891_v46 = vmul.f32 0.2, %v812_v39  ;;  %v1721_v43 = vmul.f32 0.2, %v1642_v18  ;;  %v816_v37 = vadd.f32 %v815_v19, %v16288_v51  ;;  %v1646_v22 = vadd.f32 %v1645_v55, %v16291_v17 }
 0x165   : > { %21082 = vst [vmem:[#allocation93_spill] sm:$0xff] %v16823_v16  ;;  %21083 = vst [vmem:[#allocation94_spill] sm:$0xff] %v16825_v13  ;;  %v892_v25 = vmul.f32 0.2, %v814_v11  ;;  %v1722_v12 = vmul.f32 0.2, %v1644_v33  ;;  %v954_v60 = vmax.f32 %v810_v20, %v890_v31  ;;  %v1784_v40 = vmax.f32 %v1640_v38, %v1720_v41  ;;  %v819_v10 = vpop.f32.mrf.mxu0  ;;  %v1649_v9 = vpop.f32.mrf.mxu1 }
 0x166   : > { %v893_v53 = vmul.f32 0.2, %v816_v37  ;;  %v1723_v61 = vmul.f32 0.2, %v1646_v22  ;;  %v955_v13 = vmax.f32 %v812_v39, %v891_v46  ;;  %v1785_v19 = vmax.f32 %v1642_v18, %v1721_v43 }
 0x167   : > { %3668 = vmatmul.mubr.bf16.gmra.mxu0 %v21084_v59  ;;  %v956_v26 = vmax.f32 %v814_v11, %v892_v25  ;;  %v1786_v52 = vmax.f32 %v1644_v33, %v1722_v12  ;;  %v820_v55 = vadd.f32 %v819_v10, %v16282_v28  ;;  %v1650_v20 = vadd.f32 %v1649_v9, %v16285_v57  ;;  %v821_v38 = vpop.f32.mrf.mxu0  ;;  %v1651_v31 = vpop.f32.mrf.mxu1 }
 0x168   : > { %4329 = vmatmul.mubr.bf16.gmra.mxu1 %v21085_v50  ;;  %3677 = vmatprep.mubr.bf16.mxu0 %v21004_v49  ;;  %v957_v11 = vmax.f32 %v816_v37, %v893_v53  ;;  %v1787_v33 = vmax.f32 %v1646_v22, %v1723_v61  ;;  %v822_v16 = vadd.f32 %v821_v38, %v16288_v51 }
 0x169   : > { %4338 = vmatprep.mubr.bf16.mxu1 %v21004_v49  ;;  %v16835_v41 = vpack.c.bf16 %v956_v26, %v954_v60  ;;  %v16837_v34 = vpack.c.bf16 %v1786_v52, %v1784_v40  ;;  %v894_v25 = vmul.f32 0.2, %v820_v55  ;;  %v1724_v12 = vmul.f32 0.2, %v1650_v20  ;;  %v823_v39 = vpop.f32.mrf.mxu0  ;;  %v1653_v18 = vpop.f32.mrf.mxu1 }
 0x16a   : > { %v1652_v54 = vadd.f32 %v1651_v31, %v16291_v17  ;;  %v824_v10 = vadd.f32 %v823_v39, %v16282_v28  ;;  %v1654_v46 = vadd.f32 %v1653_v18, %v16285_v57  ;;  %v16843_v43 = vpack.c.bf16 %v957_v11, %v955_v13  ;;  %v21091_v13 = vld [vmem:[#allocation23_spill] sm:$0xff] }
 0x16b   : > { %21086 = vst [vmem:[#allocation19_spill] sm:$0xff] %v16835_v41  ;;  %21087 = vst [vmem:[#allocation95_spill] sm:$0xff] %v16837_v34  ;;  %v16845_v60 = vpack.c.bf16 %v1787_v33, %v1785_v19  ;;  %v895_v40 = vmul.f32 0.2, %v822_v16  ;;  %v825_v37 = vpop.f32.mrf.mxu0  ;;  %v1655_v22 = vpop.f32.mrf.mxu1  ;;  %v958_v38 = vmax.f32 %v820_v55, %v894_v25  ;;  %v1788_v31 = vmax.f32 %v1650_v20, %v1724_v12  ;;  %v21090_v41 = vld [vmem:[#allocation22_spill] sm:$0xff] }
 0x16c   : > { %21088 = vst [vmem:[#allocation96_spill] sm:$0xff] %v16843_v43  ;;  %v1725_v9 = vmul.f32 0.2, %v1652_v54  ;;  %v896_v26 = vmul.f32 0.2, %v824_v10  ;;  %v826_v53 = vadd.f32 %v825_v37, %v16288_v51  ;;  %v1656_v61 = vadd.f32 %v1655_v22, %v16291_v17 }
 0x16d   : > { %21089 = vst [vmem:[#allocation97_spill] sm:$0xff] %v16845_v60  ;;  %v1726_v52 = vmul.f32 0.2, %v1654_v46  ;;  %v829_v34 = vpop.f32.mrf.mxu0  ;;  %v1659_v39 = vpop.f32.mrf.mxu1  ;;  %v2165_v37 = vld [vmem:[%s20904_s3] sm:$0x3]  ;;  %v959_v55 = vmax.f32 %v822_v16, %v895_v40  ;;  %v21094_v40 = vld [vmem:[#allocation37_spill] sm:$0xff] }
 0x16e   : > { %v960_v19 = vmax.f32 %v824_v10, %v896_v26  ;;  %v897_v33 = vmul.f32 0.2, %v826_v53  ;;  %v1727_v18 = vmul.f32 0.2, %v1656_v61  ;;  %v1789_v20 = vmax.f32 %v1652_v54, %v1725_v9  ;;  %v2819_v43 = vld [vmem:[%s20904_s3] sm:$0x3] }
 0x16f   : > { %3678 = vmatmul.mubr.bf16.gmra.mxu0 %v21090_v41  ;;  %v1790_v11 = vmax.f32 %v1654_v46, %v1726_v52  ;;  %v830_v25 = vadd.f32 %v829_v34, %v16282_v28  ;;  %v1660_v12 = vadd.f32 %v1659_v39, %v16285_v57  ;;  %v831_v22 = vpop.f32.mrf.mxu0  ;;  %v1661_v60 = vpop.f32.mrf.mxu1  ;;  %v16867_v9 = vrot.slane %v2165_v37, %v21094_v40 }
 0x170   : > { %4339 = vmatmul.mubr.bf16.gmra.mxu1 %v21091_v13  ;;  %3687 = vmatprep.mubr.bf16.mxu0 %v21004_v49  ;;  %v16858_v10 = vpack.c.bf16 %v960_v19, %v958_v38  ;;  %v961_v26 = vmax.f32 %v826_v53, %v897_v33  ;;  %v1791_v52 = vmax.f32 %v1656_v61, %v1727_v18 }
 0x171   : > { %4348 = vmatprep.mubr.bf16.mxu1 %v21004_v49  ;;  %v16860_v46 = vpack.c.bf16 %v1790_v11, %v1788_v31  ;;  %v898_v45 = vmul.f32 0.2, %v830_v25  ;;  %v1728_v14 = vmul.f32 0.2, %v1660_v12  ;;  %v832_v54 = vadd.f32 %v831_v22, %v16288_v51  ;;  %v833_v16 = vpop.f32.mrf.mxu0  ;;  %v1663_v34 = vpop.f32.mrf.mxu1  ;;  %v21097_v22 = vld [vmem:[#allocation38_spill] sm:$0xff] }
 0x172   : > { %21092 = vst [vmem:[#allocation22_spill] sm:$0xff] %v16858_v10  ;;  %v834_v38 = vadd.f32 %v833_v16, %v16282_v28  ;;  %v1664_v31 = vadd.f32 %v1663_v34, %v16285_v57  ;;  %v16871_v39 = vpack.c.bf16 %v961_v26, %v959_v55  ;;  %v16873_v53 = vpack.c.bf16 %v1791_v52, %v1789_v20  ;;  %v21098_v16 = vld [vmem:[#allocation25_spill] sm:$0xff] }
 0x173   : > { %21093 = vst [vmem:[#allocation98_spill] sm:$0xff] %v16860_v46  ;;  %v899_v61 = vmul.f32 0.2, %v832_v54  ;;  %v1662_v19 = vadd.f32 %v1661_v60, %v16291_v17  ;;  %v835_v11 = vpop.f32.mrf.mxu0  ;;  %v1665_v33 = vpop.f32.mrf.mxu1  ;;  %v16877_v18 = vrot.slane %v2819_v43, %v21094_v40  ;;  %v16880_v46 = vrot.slane %v2165_v37, %v21097_v22  ;;  %v21099_v60 = vld [vmem:[#allocation26_spill] sm:$0xff] }
 0x174   : > { %21095 = vst [vmem:[#allocation99_spill] sm:$0xff] %v16871_v39  ;;  %21096 = vst [vmem:[#allocation100_spill] sm:$0xff] %v16873_v53  ;;  %v900_v10 = vmul.f32 0.2, %v834_v38  ;;  %v1730_v24 = vmul.f32 0.2, %v1664_v31  ;;  %v836_v28 = vadd.f32 %v835_v11, %v16288_v51  ;;  %v1666_v57 = vadd.f32 %v1665_v33, %v16291_v17 }
 0x175   : > { %v962_v55 = vmax.f32 %v830_v25, %v898_v45  ;;  %v1792_v20 = vmax.f32 %v1660_v12, %v1728_v14  ;;  %v2291_v26 = vpop.f32.mrf.mxu0  ;;  %v2945_v52 = vpop.f32.mrf.mxu1  ;;  %v16887_v34 = vrot.slane %v2819_v43, %v21097_v22  ;;  %v963_v51 = vmax.f32 %v832_v54, %v899_v61 }
 0x176   : > { %v964_v53 = vmax.f32 %v834_v38, %v900_v10  ;;  %v1794_v37 = vmax.f32 %v1664_v31, %v1730_v24  ;;  %v901_v39 = vmul.f32 0.2, %v836_v28  ;;  %v1731_v42 = vmul.f32 0.2, %v1666_v57 }
 0x177   : > { %3688 = vmatmul.mubr.bf16.gmra.mxu0 %v21098_v16  ;;  %v1729_v17 = vmul.f32 0.2, %v1662_v19  ;;  %v2292_v14 = vadd.f32 %v2291_v26, %v16867_v9  ;;  %v2946_v45 = vadd.f32 %v2945_v52, %v16877_v18  ;;  %v2293_v25 = vpop.f32.mrf.mxu0  ;;  %v2947_v12 = vpop.f32.mrf.mxu1 }
 0x178   : > { %4349 = vmatmul.mubr.bf16.gmra.mxu1 %v21099_v60  ;;  %3697 = vmatprep.mubr.bf16.mxu0 %v21004_v49  ;;  %v16893_v11 = vpack.c.bf16 %v964_v53, %v962_v55  ;;  %v16895_v43 = vpack.c.bf16 %v1794_v37, %v1792_v20  ;;  %v965_v10 = vmax.f32 %v836_v28, %v901_v39 }
 0x179   : > { %4358 = vmatprep.mubr.bf16.mxu1 %v21004_v49  ;;  %v1795_v24 = vmax.f32 %v1666_v57, %v1731_v42  ;;  %v2450_v38 = vmul.f32 0.2, %v2292_v14  ;;  %v3104_v31 = vmul.f32 0.2, %v2946_v45  ;;  %v2294_v33 = vadd.f32 %v2293_v25, %v16880_v46  ;;  %v2295_v54 = vpop.f32.mrf.mxu0  ;;  %v2949_v61 = vpop.f32.mrf.mxu1 }
 0x17a   : > { %21100 = vst [vmem:[#allocation25_spill] sm:$0xff] %v16893_v11  ;;  %21101 = vst [vmem:[#allocation101_spill] sm:$0xff] %v16895_v43  ;;  %v2948_v47 = vadd.f32 %v2947_v12, %v16887_v34  ;;  %v2296_v26 = vadd.f32 %v2295_v54, %v16867_v9  ;;  %v2950_v52 = vadd.f32 %v2949_v61, %v16877_v18  ;;  %v21103_v54 = vld [vmem:[#allocation28_spill] sm:$0xff] }
 0x17b   : > { %v16901_v23 = vpack.c.bf16 %v965_v10, %v963_v51  ;;  %v1793_v53 = vmax.f32 %v1662_v19, %v1729_v17  ;;  %v2451_v55 = vmul.f32 0.2, %v2294_v33  ;;  %v2297_v37 = vpop.f32.mrf.mxu0  ;;  %v2951_v39 = vpop.f32.mrf.mxu1  ;;  %v2514_v12 = vmax.f32 %v2292_v14, %v2450_v38 }
 0x17c   : > { %v3105_v20 = vmul.f32 0.2, %v2948_v47  ;;  %v2452_v42 = vmul.f32 0.2, %v2296_v26  ;;  %v3106_v28 = vmul.f32 0.2, %v2950_v52  ;;  %v2298_v57 = vadd.f32 %v2297_v37, %v16880_v46 }
 0x17d   : > { %21102 = vst [vmem:[#allocation102_spill] sm:$0xff] %v16901_v23  ;;  %v2952_v25 = vadd.f32 %v2951_v39, %v16887_v34  ;;  %v3168_v43 = vmax.f32 %v2946_v45, %v3104_v31  ;;  %v2301_v11 = vpop.f32.mrf.mxu0  ;;  %v2955_v5 = vpop.f32.mrf.mxu1  ;;  %v16907_v51 = vpack.c.bf16 %v1795_v24, %v1793_v53  ;;  %v2515_v37 = vmax.f32 %v2294_v33, %v2451_v55 }
 0x17e   : > { %v2516_v19 = vmax.f32 %v2296_v26, %v2452_v42  ;;  %v3170_v17 = vmax.f32 %v2950_v52, %v3106_v28  ;;  %v2453_v10 = vmul.f32 0.2, %v2298_v57  ;;  %v3169_v39 = vmax.f32 %v2948_v47, %v3105_v20 }
 0x17f   : > { %3698 = vmatmul.mubr.bf16.gmra.mxu0 %v21103_v54  ;;  %21104 = vst [vmem:[#allocation28_spill] sm:$0xff] %v16907_v51  ;;  %v3107_v61 = vmul.f32 0.2, %v2952_v25  ;;  %v2302_v14 = vadd.f32 %v2301_v11, %v16867_v9  ;;  %v2956_v45 = vadd.f32 %v2955_v5, %v16877_v18  ;;  %v2303_v38 = vpop.f32.mrf.mxu0  ;;  %v2957_v31 = vpop.f32.mrf.mxu1 }
 0x180   : > { %4359 = vmatmul.mubr.bf16.gmra.mxu1 %v16082_v36  ;;  %3707 = vmatprep.mubr.bf16.mxu0 %v21004_v49  ;;  %v16913_v23 = vpack.c.bf16 %v2516_v19, %v2514_v12  ;;  %v16915_v24 = vpack.c.bf16 %v3170_v17, %v3168_v43  ;;  %v2517_v26 = vmax.f32 %v2298_v57, %v2453_v10 }
 0x181   : > { %4368 = vmatprep.mubr.bf16.mxu1 %v21004_v49  ;;  %v3171_v52 = vmax.f32 %v2952_v25, %v3107_v61  ;;  %v2454_v53 = vmul.f32 0.2, %v2302_v14  ;;  %v3108_v42 = vmul.f32 0.2, %v2956_v45  ;;  %v2304_v28 = vadd.f32 %v2303_v38, %v16880_v46  ;;  %v2305_v33 = vpop.f32.mrf.mxu0  ;;  %v2959_v47 = vpop.f32.mrf.mxu1 }
 0x182   : > { %21105 = vst [vmem:[#allocation103_spill] sm:$0xff] %v16913_v23  ;;  %21106 = vst [vmem:[#allocation104_spill] sm:$0xff] %v16915_v24  ;;  %v2958_v51 = vadd.f32 %v2957_v31, %v16887_v34  ;;  %v2306_v11 = vadd.f32 %v2305_v33, %v16867_v9  ;;  %v2960_v5 = vadd.f32 %v2959_v47, %v16877_v18  ;;  %v21109_v23 = vld [vmem:[#allocation30_spill] sm:$0xff] }
 0x183   : > { %v16921_v55 = vpack.c.bf16 %v2517_v26, %v2515_v37  ;;  %v16923_v20 = vpack.c.bf16 %v3171_v52, %v3169_v39  ;;  %v2455_v43 = vmul.f32 0.2, %v2304_v28  ;;  %v2307_v57 = vpop.f32.mrf.mxu0  ;;  %v2961_v25 = vpop.f32.mrf.mxu1  ;;  %v2518_v38 = vmax.f32 %v2302_v14, %v2454_v53 }
 0x184   : > { %v3109_v12 = vmul.f32 0.2, %v2958_v51  ;;  %v2456_v19 = vmul.f32 0.2, %v2306_v11  ;;  %v3110_v17 = vmul.f32 0.2, %v2960_v5  ;;  %v2308_v10 = vadd.f32 %v2307_v57, %v16880_v46 }
 0x185   : > { %21107 = vst [vmem:[#allocation105_spill] sm:$0xff] %v16921_v55  ;;  %21108 = vst [vmem:[#allocation106_spill] sm:$0xff] %v16923_v20  ;;  %v2962_v61 = vadd.f32 %v2961_v25, %v16887_v34  ;;  %v3172_v31 = vmax.f32 %v2956_v45, %v3108_v42  ;;  %v2311_v24 = vpop.f32.mrf.mxu0  ;;  %v2965_v33 = vpop.f32.mrf.mxu1  ;;  %v2519_v47 = vmax.f32 %v2304_v28, %v2455_v43 }
 0x186   : > { %v2520_v37 = vmax.f32 %v2306_v11, %v2456_v19  ;;  %v3174_v39 = vmax.f32 %v2960_v5, %v3110_v17  ;;  %v2457_v26 = vmul.f32 0.2, %v2308_v10  ;;  %v3173_v57 = vmax.f32 %v2958_v51, %v3109_v12 }
 0x187   : > { %3708 = vmatmul.mubr.bf16.gmra.mxu0 %v21109_v23  ;;  %v3111_v52 = vmul.f32 0.2, %v2962_v61  ;;  %v2312_v25 = vadd.f32 %v2311_v24, %v16867_v9  ;;  %v2966_v14 = vadd.f32 %v2965_v33, %v16877_v18  ;;  %v2313_v45 = vpop.f32.mrf.mxu0  ;;  %v2967_v53 = vpop.f32.mrf.mxu1  ;;  %v409_v33 = vld [vmem:[%s15674_s12 + $0x190] sm:$0x3] }
 0x188   : > { %4369 = vmatmul.mubr.bf16.gmra.mxu1 %v16331_v8  ;;  %3717 = vmatprep.mubr.bf16.mxu0 %v21004_v49  ;;  %v16933_v42 = vpack.c.bf16 %v2520_v37, %v2518_v38  ;;  %v16935_v20 = vpack.c.bf16 %v3174_v39, %v3172_v31  ;;  %v2521_v11 = vmax.f32 %v2308_v10, %v2457_v26 }
 0x189   : > { %4378 = vmatprep.mubr.bf16.mxu1 %v21004_v49  ;;  %v3175_v5 = vmax.f32 %v2962_v61, %v3111_v52  ;;  %v2458_v19 = vmul.f32 0.2, %v2312_v25  ;;  %v3112_v17 = vmul.f32 0.2, %v2966_v14  ;;  %v2314_v55 = vadd.f32 %v2313_v45, %v16880_v46  ;;  %v2315_v51 = vpop.f32.mrf.mxu0  ;;  %v2969_v43 = vpop.f32.mrf.mxu1 }
 0x18a   : > { %21110 = vst [vmem:[#allocation30_spill] sm:$0xff] %v16933_v42  ;;  %21111 = vst [vmem:[#allocation107_spill] sm:$0xff] %v16935_v20  ;;  %v2968_v28 = vadd.f32 %v2967_v53, %v16887_v34  ;;  %v2316_v24 = vadd.f32 %v2315_v51, %v16867_v9  ;;  %v2970_v12 = vadd.f32 %v2969_v43, %v16877_v18  ;;  %v21114_v43 = vld [vmem:[#allocation31_spill] sm:$0xff] }
 0x18b   : > { %v16942_v8 = vpack.c.bf16 %v2521_v11, %v2519_v47  ;;  %v16944_v38 = vpack.c.bf16 %v3175_v5, %v3173_v57  ;;  %v2459_v31 = vmul.f32 0.2, %v2314_v55  ;;  %v2317_v61 = vpop.f32.mrf.mxu0  ;;  %v2971_v37 = vpop.f32.mrf.mxu1  ;;  %v2522_v53 = vmax.f32 %v2312_v25, %v2458_v19 }
 0x18c   : > { %v3113_v10 = vmul.f32 0.2, %v2968_v28  ;;  %v2460_v39 = vmul.f32 0.2, %v2316_v24  ;;  %v3114_v26 = vmul.f32 0.2, %v2970_v12  ;;  %v2318_v52 = vadd.f32 %v2317_v61, %v16880_v46 }
 0x18d   : > { %21112 = vst [vmem:[#allocation108_spill] sm:$0xff] %v16942_v8  ;;  %21113 = vst [vmem:[#allocation109_spill] sm:$0xff] %v16944_v38  ;;  %v2972_v45 = vadd.f32 %v2971_v37, %v16887_v34  ;;  %v3176_v20 = vmax.f32 %v2966_v14, %v3112_v17  ;;  %v2321_v51 = vpop.f32.mrf.mxu0  ;;  %v2975_v42 = vpop.f32.mrf.mxu1  ;;  %v463_v47 = vmul.f32 0.2, %v409_v33  ;;  %v2523_v61 = vmax.f32 %v2314_v55, %v2459_v31 }
 0x18e   : > { %v2524_v57 = vmax.f32 %v2316_v24, %v2460_v39  ;;  %v3178_v11 = vmax.f32 %v2970_v12, %v3114_v26  ;;  %v2461_v5 = vmul.f32 0.2, %v2318_v52  ;;  %v3177_v8 = vmax.f32 %v2968_v28, %v3113_v10 }
 0x18f   : > { %3718 = vmatmul.mubr.bf16.gmra.mxu0 %v21114_v43  ;;  %v3115_v38 = vmul.f32 0.2, %v2972_v45  ;;  %v2322_v25 = vadd.f32 %v2321_v51, %v16867_v9  ;;  %v2976_v14 = vadd.f32 %v2975_v42, %v16877_v18  ;;  %v2323_v19 = vpop.f32.mrf.mxu0  ;;  %v2977_v17 = vpop.f32.mrf.mxu1 }
 0x190   : > { %4379 = vmatmul.mubr.bf16.gmra.mxu1 %v16333_v2  ;;  %3727 = vmatprep.mubr.bf16.mxu0 %v21004_v49  ;;  %v16954_v37 = vpack.c.bf16 %v2524_v57, %v2522_v53  ;;  %v16956_v2 = vpack.c.bf16 %v3178_v11, %v3176_v20  ;;  %v2525_v24 = vmax.f32 %v2318_v52, %v2461_v5 }
 0x191   : > { %4388 = vmatprep.mubr.bf16.mxu1 %v21004_v49  ;;  %v3179_v12 = vmax.f32 %v2972_v45, %v3115_v38  ;;  %v2462_v39 = vmul.f32 0.2, %v2322_v25  ;;  %v3116_v26 = vmul.f32 0.2, %v2976_v14  ;;  %v2324_v36 = vadd.f32 %v2323_v19, %v16880_v46  ;;  %v2325_v55 = vpop.f32.mrf.mxu0  ;;  %v2979_v28 = vpop.f32.mrf.mxu1 }
 0x192   : > { %21115 = vst [vmem:[#allocation31_spill] sm:$0xff] %v16954_v37  ;;  %21116 = vst [vmem:[#allocation110_spill] sm:$0xff] %v16956_v2  ;;  %v2978_v60 = vadd.f32 %v2977_v17, %v16887_v34  ;;  %v2326_v31 = vadd.f32 %v2325_v55, %v16867_v9  ;;  %v2980_v42 = vadd.f32 %v2979_v28, %v16877_v18  ;;  %v21119_v37 = vld [vmem:[#allocation32_spill] sm:$0xff] }
 0x193   : > { %v16962_v10 = vpack.c.bf16 %v2525_v24, %v2523_v61  ;;  %v16964_v53 = vpack.c.bf16 %v3179_v12, %v3177_v8  ;;  %v2463_v20 = vmul.f32 0.2, %v2324_v36  ;;  %v2327_v52 = vpop.f32.mrf.mxu0  ;;  %v2981_v38 = vpop.f32.mrf.mxu1  ;;  %v2526_v19 = vmax.f32 %v2322_v25, %v2462_v39 }
 0x194   : > { %v3117_v51 = vmul.f32 0.2, %v2978_v60  ;;  %v2464_v45 = vmul.f32 0.2, %v2326_v31  ;;  %v3118_v57 = vmul.f32 0.2, %v2980_v42  ;;  %v2328_v11 = vadd.f32 %v2327_v52, %v16880_v46 }
 0x195   : > { %21117 = vst [vmem:[#allocation111_spill] sm:$0xff] %v16962_v10  ;;  %21118 = vst [vmem:[#allocation112_spill] sm:$0xff] %v16964_v53  ;;  %v2982_v5 = vadd.f32 %v2981_v38, %v16887_v34  ;;  %v3180_v17 = vmax.f32 %v2976_v14, %v3116_v26  ;;  %v2331_v2 = vpop.f32.mrf.mxu0  ;;  %v2985_v55 = vpop.f32.mrf.mxu1  ;;  %v16970_v8 = vmax.f32 %v409_v33, %v463_v47 }
 0x196   : > { %v2528_v61 = vmax.f32 %v2326_v31, %v2464_v45  ;;  %v3182_v24 = vmax.f32 %v2980_v42, %v3118_v57  ;;  %v2465_v12 = vmul.f32 0.2, %v2328_v11  ;;  %v2527_v52 = vmax.f32 %v2324_v36, %v2463_v20 }
 0x197   : > { %3728 = vmatmul.mubr.bf16.gmra.mxu0 %v21119_v37  ;;  %v3119_v28 = vmul.f32 0.2, %v2982_v5  ;;  %v3181_v38 = vmax.f32 %v2978_v60, %v3117_v51  ;;  %v2332_v25 = vadd.f32 %v2331_v2, %v16867_v9  ;;  %v2986_v14 = vadd.f32 %v2985_v55, %v16877_v18  ;;  %v2333_v39 = vpop.f32.mrf.mxu0  ;;  %v2987_v26 = vpop.f32.mrf.mxu1 }
 0x198   : > { %4389 = vmatmul.mubr.bf16.gmra.mxu1 %v16392_v4  ;;  %3737 = vmatprep.mubr.bf16.mxu0 %v21004_v49  ;;  %v16976_v53 = vpack.c.bf16 %v2528_v61, %v2526_v19  ;;  %v16978_v33 = vpack.c.bf16 %v3182_v24, %v3180_v17  ;;  %v2529_v47 = vmax.f32 %v2328_v11, %v2465_v12  ;;  %v3459_v61 = vrot.slane %v16441_v1, 1 }
 0x199   : > { %4398 = vmatprep.mubr.bf16.mxu1 %v21004_v49  ;;  %v3183_v31 = vmax.f32 %v2982_v5, %v3119_v28  ;;  %v2466_v42 = vmul.f32 0.2, %v2332_v25  ;;  %v3120_v45 = vmul.f32 0.2, %v2986_v14  ;;  %v2334_v57 = vadd.f32 %v2333_v39, %v16880_v46  ;;  %v2335_v36 = vpop.f32.mrf.mxu0  ;;  %v2989_v60 = vpop.f32.mrf.mxu1 }
 0x19a   : > { %21120 = vst [vmem:[#allocation113_spill] sm:$0xff] %v16976_v53  ;;  %21121 = vst [vmem:[#allocation114_spill] sm:$0xff] %v16978_v33  ;;  %v2988_v10 = vadd.f32 %v2987_v26, %v16887_v34  ;;  %v2336_v2 = vadd.f32 %v2335_v36, %v16867_v9  ;;  %v2990_v20 = vadd.f32 %v2989_v60, %v16877_v18  ;;  %v3460_v24 = vrot.slane %v16443_v30, 1 }
 0x19b   : > { %v16984_v51 = vpack.c.bf16 %v2529_v47, %v2527_v52  ;;  %v16986_v19 = vpack.c.bf16 %v3183_v31, %v3181_v38  ;;  %v2467_v17 = vmul.f32 0.2, %v2334_v57  ;;  %v2337_v11 = vpop.f32.mrf.mxu0  ;;  %v2991_v5 = vpop.f32.mrf.mxu1  ;;  %v2530_v36 = vmax.f32 %v2332_v25, %v2466_v42  ;;  %v21124_v38 = vld [vmem:[#allocation34_spill] sm:$0xff] }
 0x19c   : > { %v3121_v55 = vmul.f32 0.2, %v2988_v10  ;;  %v2468_v12 = vmul.f32 0.2, %v2336_v2  ;;  %v3122_v28 = vmul.f32 0.2, %v2990_v20  ;;  %v2338_v39 = vadd.f32 %v2337_v11, %v16880_v46 }
 0x19d   : > { %21122 = vst [vmem:[#allocation115_spill] sm:$0xff] %v16984_v51  ;;  %21123 = vst [vmem:[#allocation116_spill] sm:$0xff] %v16986_v19  ;;  %v2992_v26 = vadd.f32 %v2991_v5, %v16887_v34  ;;  %v3184_v60 = vmax.f32 %v2986_v14, %v3120_v45  ;;  %v2341_v52 = vpop.f32.mrf.mxu0  ;;  %v2995_v47 = vpop.f32.mrf.mxu1  ;;  %v3462_v31 = vrot.slane %v16970_v8, 1  ;;  %v4120_v33 = vrot.slane %v16441_v1, 2 }
 0x19e   : > { %v2532_v19 = vmax.f32 %v2336_v2, %v2468_v12  ;;  %v3186_v53 = vmax.f32 %v2990_v20, %v3122_v28  ;;  %v2469_v51 = vmul.f32 0.2, %v2338_v39  ;;  %v2531_v25 = vmax.f32 %v2334_v57, %v2467_v17 }
 0x19f   : > { %3738 = vmatmul.mubr.bf16.gmra.mxu0 %v21124_v38  ;;  %v3123_v4 = vmul.f32 0.2, %v2992_v26  ;;  %v3185_v14 = vmax.f32 %v2988_v10, %v3121_v55  ;;  %v2342_v42 = vadd.f32 %v2341_v52, %v16867_v9  ;;  %v2996_v45 = vadd.f32 %v2995_v47, %v16877_v18  ;;  %v2343_v11 = vpop.f32.mrf.mxu0  ;;  %v2997_v5 = vpop.f32.mrf.mxu1 }
 0x1a0   : > { %4399 = vmatmul.mubr.bf16.gmra.mxu1 %v16418_v3  ;;  %3747 = vmatprep.mubr.bf16.mxu0 %v21004_v49  ;;  %v17000_v3 = vpack.c.bf16 %v2532_v19, %v2530_v36  ;;  %v17002_v56 = vpack.c.bf16 %v3186_v53, %v3184_v60  ;;  %v2533_v1 = vmax.f32 %v2338_v39, %v2469_v51  ;;  %v4123_v10 = vrot.slane %v16970_v8, 2  ;;  %v21129_v8 = vld [vmem:[#allocation36_spill] sm:$0xff] }
 0x1a1   : > { %4408 = vmatprep.mubr.bf16.mxu1 %v21004_v49  ;;  %v3187_v2 = vmax.f32 %v2992_v26, %v3123_v4  ;;  %v2470_v20 = vmul.f32 0.2, %v2342_v42  ;;  %v3124_v12 = vmul.f32 0.2, %v2996_v45  ;;  %v2345_v28 = vpop.f32.mrf.mxu0  ;;  %v2999_v13 = vpop.f32.mrf.mxu1  ;;  %v3461_v39 = vsel %vm1238_vm0, %v3459_v61, %v3460_v24 }
 0x1a2   : > { %21125 = vst [vmem:[#allocation117_spill] sm:$0xff] %v17000_v3  ;;  %21126 = vst [vmem:[#allocation118_spill] sm:$0xff] %v17002_v56  ;;  %v2346_v57 = vadd.f32 %v2345_v28, %v16867_v9  ;;  %v3000_v17 = vadd.f32 %v2999_v13, %v16877_v18  ;;  %v17008_v55 = vpack.c.bf16 %v2533_v1, %v2531_v25 }
 0x1a3   : > { %v17010_v19 = vpack.c.bf16 %v3187_v2, %v3185_v14  ;;  %v2347_v53 = vpop.f32.mrf.mxu0  ;;  %v3001_v36 = vpop.f32.mrf.mxu1  ;;  %v3463_v26 = vsel %vm1238_vm0, %v3460_v24, %v3462_v31  ;;  %v2534_v60 = vmax.f32 %v2342_v42, %v2470_v20  ;;  %v4122_v13 = vsel %vm2020_vm1, %v4120_v33, %v4121_v6 }
 0x1a4   : > { %21127 = vst [vmem:[#allocation119_spill] sm:$0xff] %v17008_v55  ;;  %v2472_v51 = vmul.f32 0.2, %v2346_v57  ;;  %v3126_v4 = vmul.f32 0.2, %v3000_v17  ;;  %v4124_v47 = vsel %vm2020_vm1, %v4121_v6, %v4123_v10  ;;  %v3188_v25 = vmax.f32 %v2996_v45, %v3124_v12 }
 0x1a5   : > { %21128 = vst [vmem:[#allocation120_spill] sm:$0xff] %v17010_v19  ;;  %v2351_v30 = vpop.f32.mrf.mxu0  ;;  %v3005_v52 = vpop.f32.mrf.mxu1  ;;  %v17023_v2 = vadd.f32 %v2343_v11, %v16880_v46  ;;  %v17029_v6 = vpack.c.bf16 %v3463_v26, %v3461_v39  ;;  %v17032_v45 = vadd.f32 %v2997_v5, %v16887_v34  ;;  %v17035_v12 = vadd.f32 %v2347_v53, %v16880_v46 }
 0x1a6   : > { %v2536_v14 = vmax.f32 %v2346_v57, %v2472_v51  ;;  %v3190_v1 = vmax.f32 %v3000_v17, %v3126_v4  ;;  %v2352_v61 = vadd.f32 %v2351_v30, %v16867_v9  ;;  %v3006_v24 = vadd.f32 %v3005_v52, %v16877_v18 }
 0x1a7   : > { %3748 = vmatmul.mubr.bf16.gmra.mxu0 %v21129_v8  ;;  %v2353_v31 = vpop.f32.mrf.mxu0  ;;  %v3007_v42 = vpop.f32.mrf.mxu1  ;;  %21132 = vst [vmem:[#allocation123_spill] sm:$0xff] %v17029_v6  ;;  %v17037_v17 = vpack.c.bf16 %v4124_v47, %v4122_v13  ;;  %v17040_v11 = vadd.f32 %v3001_v36, %v16887_v34  ;;  %v17048_v53 = vmul.f32 0.2, %v17023_v2  ;;  %v17051_v13 = vmul.f32 0.2, %v17032_v45 }
 0x1a8   : > { %4409 = vmatmul.mubr.bf16.gmra.mxu1 %v16460_v7  ;;  %3757 = vmatprep.mubr.bf16.mxu0 %v21004_v49  ;;  %v17025_v20 = vpack.c.bf16 %v2536_v14, %v2534_v60  ;;  %v17027_v33 = vpack.c.bf16 %v3190_v1, %v3188_v25  ;;  %v2474_v28 = vmul.f32 0.2, %v2352_v61  ;;  %v3128_v51 = vmul.f32 0.2, %v3006_v24 }
 0x1a9   : > { %4418 = vmatprep.mubr.bf16.mxu1 %v21004_v49  ;;  %v2355_v10 = vpop.f32.mrf.mxu0  ;;  %v3009_v57 = vpop.f32.mrf.mxu1  ;;  %21133 = vst [vmem:[#allocation124_spill] sm:$0xff] %v17037_v17  ;;  %v17045_v26 = vadd.f32 %v2353_v31, %v16880_v46  ;;  %v17054_v36 = vmul.f32 0.2, %v17035_v12  ;;  %v17057_v25 = vadd.f32 %v3007_v42, %v16887_v34  ;;  %v17062_v31 = vmul.f32 0.2, %v17040_v11 }
 0x1aa   : > { %21130 = vst [vmem:[#allocation121_spill] sm:$0xff] %v17025_v20  ;;  %21131 = vst [vmem:[#allocation122_spill] sm:$0xff] %v17027_v33  ;;  %v2356_v4 = vadd.f32 %v2355_v10, %v16867_v9  ;;  %v3010_v39 = vadd.f32 %v3009_v57, %v16877_v18  ;;  %v2538_v47 = vmax.f32 %v2352_v61, %v2474_v28 }
 0x1ab   : > { %v2357_v5 = vpop.f32.mrf.mxu0  ;;  %v3011_v60 = vpop.f32.mrf.mxu1  ;;  %v3192_v10 = vmax.f32 %v3006_v24, %v3128_v51  ;;  %v17067_v61 = vmul.f32 0.2, %v17045_v26 }
 0x1ac   : > { %v2476_v30 = vmul.f32 0.2, %v2356_v4  ;;  %v3130_v52 = vmul.f32 0.2, %v3010_v39  ;;  %v17070_v42 = vadd.f32 %v2357_v5, %v16880_v46 }
 0x1ad   : > { %v2361_v14 = vpop.f32.mrf.mxu0  ;;  %v3015_v1 = vpop.f32.mrf.mxu1 }
 0x1ae   : > { %v2540_v57 = vmax.f32 %v2356_v4, %v2476_v30  ;;  %v3194_v33 = vmax.f32 %v3010_v39, %v3130_v52  ;;  %v2362_v28 = vadd.f32 %v2361_v14, %v16867_v9  ;;  %v3016_v56 = vadd.f32 %v3015_v1, %v16877_v18 }
 0x1af   : > { %3758 = vmatmul.mubr.bf16.gmra.mxu0 %v17029_v6  ;;  %v2363_v19 = vpop.f32.mrf.mxu0  ;;  %v3017_v20 = vpop.f32.mrf.mxu1  ;;  %v17081_v39 = vadd.f32 %v3011_v60, %v16887_v34  ;;  %v17088_v52 = vmul.f32 0.2, %v17057_v25  ;;  %v17103_v30 = vmul.f32 0.2, %v17070_v42 }
 0x1b0   : > { %4419 = vmatmul.mubr.bf16.gmra.mxu1 %v17037_v17  ;;  %4922 = vmatprep.mubr.bf16.mxu0 %v21004_v49  ;;  %v17076_v51 = vpack.c.bf16 %v2540_v57, %v2538_v47  ;;  %v17078_v4 = vpack.c.bf16 %v3194_v33, %v3192_v10  ;;  %v2478_v14 = vmul.f32 0.2, %v2362_v28  ;;  %v3132_v24 = vmul.f32 0.2, %v3016_v56  ;;  %v14880_v10 = vld [vmem:[%s20903_s2 + $0x70] ss:$8 sps:$4 sm:$0xff]  }
 0x1b1   : > { %5586 = vmatprep.mubr.bf16.mxu1 %v21004_v49  ;;  %v2365_v1 = vpop.f32.mrf.mxu0  ;;  %v3019_v3 = vpop.f32.mrf.mxu1  ;;  %v17091_v47 = vadd.f32 %v2363_v19, %v16880_v46  ;;  %v17106_v19 = vadd.f32 %v3017_v20, %v16887_v34  ;;  %v17115_v57 = vmul.f32 0.2, %v17081_v39 }
 0x1b2   : > { %21134 = vst [vmem:[#allocation125_spill] sm:$0xff] %v17076_v51  ;;  %21135 = vst [vmem:[#allocation126_spill] sm:$0xff] %v17078_v4  ;;  %v2366_v33 = vadd.f32 %v2365_v1, %v16867_v9  ;;  %v3020_v60 = vadd.f32 %v3019_v3, %v16877_v18  ;;  %v14883_v3 = vld [vmem:[%s20905_s4 + $0x70] ss:$8 sps:$4 sm:$0xff]   ;;  %v14888_v51 = vld [vmem:[%s20905_s4 + $0x64] ss:$8 sps:$4 sm:$0xff]   ;;  %v2542_v7 = vmax.f32 %v2362_v28, %v2478_v14 }
 0x1b3   : > { %v2367_v4 = vpop.f32.mrf.mxu0  ;;  %v3021_v1 = vpop.f32.mrf.mxu1  ;;  %v3196_v6 = vmax.f32 %v3016_v56, %v3132_v24  ;;  %v14889_v14 = vld [vmem:[%s20903_s2 + $0x60] ss:$8 sps:$4 sm:$0xff]  }
 0x1b4   : > { %v2480_v5 = vmul.f32 0.2, %v2366_v33  ;;  %v3134_v55 = vmul.f32 0.2, %v3020_v60  ;;  %v17118_v17 = vadd.f32 %v2367_v4, %v16880_v46  ;;  %v17123_v50 = vadd.f32 %v3021_v1, %v16887_v34 }
 0x1b5   : > { %v2371_v15 = vpop.f32.mrf.mxu0  ;;  %v3025_v32 = vpop.f32.mrf.mxu1  ;;  %v17131_v4 = vmul.f32 0.2, %v17091_v47 }
 0x1b6   : > { %v2544_v8 = vmax.f32 %v2366_v33, %v2480_v5  ;;  %v3198_v20 = vmax.f32 %v3020_v60, %v3134_v55  ;;  %v17142_v28 = vmul.f32 0.2, %v17118_v17  ;;  %v17145_v56 = vadd.f32 %v2371_v15, %v16867_v9 }
 0x1b7   : > { %4923 = vmatmul.mubr.bf16.vlgmr.msra.gmra.mxu0 %v21136_v63  ;;  %v14886_v63 = vld [vmem:[%s20905_s4 + $0x60] ss:$8 sps:$4 sm:$0xff]   ;;  %v17148_v24 = vadd.f32 %v3025_v32, %v16877_v18  ;;  %v2373_v55 = vpop.f32.mrf.mxu0  ;;  %v3027_v5 = vpop.f32.mrf.mxu1  ;;  %v2541_v33 = vmax.f32 %v17070_v42, %v17103_v30  ;;  %v14894_v32 = vld [vmem:[%s20905_s4 + $0x54] ss:$8 sps:$4 sm:$0xff]  }
 0x1b8   : > { %5587 = vmatmul.mubr.bf16.vlgmr.msra.gmra.mxu1 %v15829_v27  ;;  %4932 = vmatprep.mubr.bf16.mxu0 %v21004_v49  ;;  %v17139_v27 = vmul.f32 0.2, %v17106_v19  ;;  %v17157_v1 = vpack.c.bf16 %v2544_v8, %v2542_v7  ;;  %v17159_v15 = vpack.c.bf16 %v3198_v20, %v3196_v6  ;;  %v2482_v42 = vmul.f32 0.2, %v17145_v56 }
 0x1b9   : > { %5596 = vmatprep.mubr.bf16.mxu1 %v21004_v49  ;;  %6216 = vmatpush1.bf16.msra.mxu0 %v14880_v10  ;;  %v14900_v10 = vld [vmem:[%s20903_s2 + $0x54] ss:$8 sps:$4 sm:$0xff]   ;;  %v17172_v30 = vadd.f32 %v2373_v55, %v16880_v46  ;;  %v17175_v7 = vadd.f32 %v3027_v5, %v16887_v34  ;;  %v2375_v8 = vpop.f32.mrf.mxu0  ;;  %v3029_v6 = vpop.f32.mrf.mxu1  ;;  %v2543_v5 = vmax.f32 %v17091_v47, %v17131_v4  ;;  %v14897_v4 = vld [vmem:[%s20905_s4 + $0x44] ss:$8 sps:$4 sm:$0xff]  }
 0x1ba   : > { %10229 = vmatpush1.bf16.msra.mxu1 %v14883_v3  ;;  %21137 = vst [vmem:[#allocation6_spill] sm:$0xff] %v17157_v1  ;;  %21138 = vst [vmem:[#allocation127_spill] sm:$0xff] %v17159_v15  ;;  %v17168_v3 = vmul.f32 0.2, %v17123_v50  ;;  %6217 = vmatprep.subr.bf16.mxu0 %v14891_v58  ;;  %v2376_v20 = vadd.f32 %v2375_v8, %v16867_v9  ;;  %v3030_v60 = vadd.f32 %v3029_v6, %v16877_v18 }
 0x1bb   : > { %10230 = vmatprep.subr.bf16.mxu1 %v14888_v51  ;;  %v3136_v51 = vmul.f32 0.2, %v17148_v24  ;;  %v21139_v15 = vmax.f32 %v17023_v2, %v17048_v53  ;;  %v21140_v1 = vmax.f32 %v17035_v12, %v17054_v36  ;;  %v2545_v38 = vmax.f32 %v17118_v17, %v17142_v28  ;;  %v2377_v6 = vpop.f32.mrf.mxu0  ;;  %v3031_v37 = vpop.f32.mrf.mxu1  ;;  %v14892_v2 = vld [vmem:[%s20905_s4 + $0x50] ss:$8 sps:$4 sm:$0xff]  }
 0x1bc   : > { %v2483_v8 = vmul.f32 0.2, %v17172_v30  ;;  %v14898_v12 = vld [vmem:[%s20903_s2 + $0x50] ss:$8 sps:$4 sm:$0xff]   ;;  %v2484_v53 = vmul.f32 0.2, %v2376_v20  ;;  %v2378_v47 = vadd.f32 %v2377_v6, %v16880_v46  ;;  %v17203_v17 = vadd.f32 %v3031_v37, %v16887_v34 }
 0x1bd   : > { %v17186_v55 = vpack.c.bf16 %v21140_v1, %v21139_v15  ;;  %6218 = vmatpush1.bf16.msra.mxu0 %v14889_v14  ;;  %v3138_v36 = vmul.f32 0.2, %v3030_v60  ;;  %v2546_v28 = vmax.f32 %v17145_v56, %v2482_v42  ;;  %v17212_v14 = vmul.f32 0.2, %v17175_v7  ;;  %v2381_v1 = vpop.f32.mrf.mxu0  ;;  %v3035_v15 = vpop.f32.mrf.mxu1  ;;  %v21142_v6 = vld [vmem:[#allocation7_spill] sm:$0xff] }
 0x1be   : > { %10231 = vmatpush1.bf16.msra.mxu1 %v14886_v63  ;;  %6219 = vmatprep.subr.bf16.mxu0 %v14900_v10  ;;  %v14909_v37 = vld [vmem:[%s20903_s2 + $0x44] ss:$8 sps:$4 sm:$0xff]   ;;  %v3200_v56 = vmax.f32 %v17148_v24, %v3136_v51  ;;  %v2548_v42 = vmax.f32 %v2376_v20, %v2484_v53  ;;  %v2485_v58 = vmul.f32 0.2, %v2378_v47  ;;  %v14895_v24 = vld [vmem:[%s20905_s4 + $0x40] ss:$8 sps:$4 sm:$0xff]   ;;  %v2547_v51 = vmax.f32 %v17172_v30, %v2483_v8 }
 0x1bf   : > { %21141 = vst [vmem:[#allocation128_spill] sm:$0xff] %v17186_v55  ;;  %10232 = vmatprep.subr.bf16.mxu1 %v14894_v32  ;;  %4933 = vmatmul.mubr.bf16.gmra.mxu0 %v21142_v6  ;;  %v21143_v32 = vmax.f32 %v17045_v26, %v17067_v61  ;;  %v3202_v63 = vmax.f32 %v3030_v60, %v3138_v36  ;;  %v2383_v26 = vpop.f32.mrf.mxu0  ;;  %v3037_v61 = vpop.f32.mrf.mxu1 }
 0x1c0   : > { %5597 = vmatmul.mubr.bf16.gmra.mxu1 %v15864_v48  ;;  %4942 = vmatprep.mubr.bf16.mxu0 %v21004_v49  ;;  %v17228_v48 = vmul.f32 0.2, %v17203_v17  ;;  %v17231_v6 = vadd.f32 %v2381_v1, %v16867_v9  ;;  %v17234_v55 = vadd.f32 %v3035_v15, %v16877_v18  ;;  %v17242_v60 = vpack.c.bf16 %v2545_v38, %v2543_v5 }
 0x1c1   : > { %v17222_v10 = vpack.c.bf16 %v2541_v33, %v21143_v32  ;;  %5606 = vmatprep.mubr.bf16.mxu1 %v21004_v49  ;;  %6220 = vmatpush1.bf16.msra.mxu0 %v14898_v12  ;;  %v14907_v33 = vld [vmem:[%s20903_s2 + $0x40] ss:$8 sps:$4 sm:$0xff]   ;;  %v17245_v20 = vpack.c.bf16 %v2548_v42, %v2546_v28  ;;  %v17247_v53 = vpack.c.bf16 %v3202_v63, %v3200_v56  ;;  %v14918_v12 = vld [vmem:[%s20903_s2 + $0x34] ss:$8 sps:$4 sm:$0xff]  }
 0x1c2   : > { %10233 = vmatpush1.bf16.msra.mxu1 %v14892_v2  ;;  %v2549_v36 = vmax.f32 %v2378_v47, %v2485_v58  ;;  %v14903_v2 = vld [vmem:[%s20905_s4 + $0x34] ss:$8 sps:$4 sm:$0xff]   ;;  %v3201_v38 = vmax.f32 %v17175_v7, %v17212_v14  ;;  %v2486_v5 = vmul.f32 0.2, %v17231_v6  ;;  %v3140_v30 = vmul.f32 0.2, %v17234_v55  ;;  %v2385_v58 = vpop.f32.mrf.mxu0  ;;  %v3039_v47 = vpop.f32.mrf.mxu1  ;;  %6221 = vmatprep.subr.bf16.mxu0 %v14909_v37 }
 0x1c3   : > { %21144 = vst [vmem:[#allocation7_spill] sm:$0xff] %v17247_v53  ;;  %10234 = vmatprep.subr.bf16.mxu1 %v14897_v4  ;;  %v17260_v8 = vadd.f32 %v2383_v26, %v16880_v46  ;;  %v2386_v4 = vadd.f32 %v2385_v58, %v16867_v9  ;;  %v3040_v63 = vadd.f32 %v3039_v47, %v16877_v18  ;;  %v21148_v58 = vld [vmem:[#allocation8_spill] sm:$0xff]  ;;  %v14933_v47 = vld [vmem:[%s20903_s2 + $0x24] ss:$8 sps:$4 sm:$0xff]  }
 0x1c4   : > { %v17264_v28 = vpack.c.bf16 %v2549_v36, %v2547_v51  ;;  %v21145_v1 = vmax.f32 %v17032_v45, %v17051_v13  ;;  %v21146_v15 = vmax.f32 %v17040_v11, %v17062_v31  ;;  %v3203_v56 = vmax.f32 %v17203_v17, %v17228_v48  ;;  %v2387_v51 = vpop.f32.mrf.mxu0  ;;  %v3041_v36 = vpop.f32.mrf.mxu1  ;;  %v14901_v45 = vld [vmem:[%s20905_s4 + $0x30] ss:$8 sps:$4 sm:$0xff]  }
 0x1c5   : > { %v2550_v42 = vmax.f32 %v17231_v6, %v2486_v5  ;;  %v2487_v37 = vmul.f32 0.2, %v17260_v8  ;;  %v17279_v26 = vadd.f32 %v3037_v61, %v16887_v34  ;;  %6222 = vmatpush1.bf16.msra.mxu0 %v14907_v33  ;;  %v14916_v11 = vld [vmem:[%s20903_s2 + $0x30] ss:$8 sps:$4 sm:$0xff]   ;;  %v2488_v13 = vmul.f32 0.2, %v2386_v4 }
 0x1c6   : > { %v17272_v32 = vpack.c.bf16 %v21146_v15, %v21145_v1  ;;  %10235 = vmatpush1.bf16.msra.mxu1 %v14895_v24  ;;  %v3142_v31 = vmul.f32 0.2, %v3040_v63  ;;  %v2388_v17 = vadd.f32 %v2387_v51, %v16880_v46  ;;  %v17289_v48 = vadd.f32 %v3041_v36, %v16887_v34  ;;  %v14906_v6 = vld [vmem:[%s20905_s4 + $0x24] ss:$8 sps:$4 sm:$0xff]   ;;  %6223 = vmatprep.subr.bf16.mxu0 %v14918_v12  ;;  %v2391_v33 = vpop.f32.mrf.mxu0  ;;  %v3045_v5 = vpop.f32.mrf.mxu1 }
 0x1c7   : > { %10236 = vmatprep.subr.bf16.mxu1 %v14903_v2  ;;  %v3204_v61 = vmax.f32 %v17234_v55, %v3140_v30  ;;  %v2551_v24 = vmax.f32 %v17260_v8, %v2487_v37  ;;  %4943 = vmatmul.mubr.bf16.gmra.mxu0 %v21148_v58  ;;  %v21149_v2 = vmax.f32 %v17057_v25, %v17088_v52 }
 0x1c8   : > { %21147 = vst [vmem:[#allocation129_spill] sm:$0xff] %v17272_v32  ;;  %5607 = vmatmul.mubr.bf16.gmra.mxu1 %v15909_v21  ;;  %v21150_v12 = vmax.f32 %v17081_v39, %v17115_v57  ;;  %v2552_v55 = vmax.f32 %v2386_v4, %v2488_v13  ;;  %v3206_v30 = vmax.f32 %v3040_v63, %v3142_v31  ;;  %v2489_v8 = vmul.f32 0.2, %v2388_v17  ;;  %v2393_v39 = vpop.f32.mrf.mxu0  ;;  %v3047_v52 = vpop.f32.mrf.mxu1  ;;  %v14904_v57 = vld [vmem:[%s20905_s4 + $0x20] ss:$8 sps:$4 sm:$0xff]  }
 0x1c9   : > { %v3143_v15 = vmul.f32 0.2, %v17289_v48  ;;  %4952 = vmatprep.mubr.bf16.mxu0 %v21004_v49  ;;  %5616 = vmatprep.mubr.bf16.mxu1 %v21004_v49  ;;  %v3141_v21 = vmul.f32 0.2, %v17279_v26  ;;  %v17314_v37 = vadd.f32 %v2391_v33, %v16867_v9  ;;  %v17317_v25 = vadd.f32 %v3045_v5, %v16877_v18  ;;  %v14931_v4 = vld [vmem:[%s20903_s2 + $0x20] ss:$8 sps:$4 sm:$0xff]  }
 0x1ca   : > { %v17307_v1 = vpack.c.bf16 %v21150_v12, %v21149_v2  ;;  %10237 = vmatpush1.bf16.msra.mxu1 %v14901_v45  ;;  %6224 = vmatpush1.bf16.msra.mxu0 %v14916_v11  ;;  %v21152_v63 = vmax.f32 %v17106_v19, %v17139_v27  ;;  %v21153_v51 = vmax.f32 %v17123_v50, %v17168_v3  ;;  %v14912_v11 = vld [vmem:[%s20905_s4 + $0x14] ss:$8 sps:$4 sm:$0xff]   ;;  %v14910_v5 = vld [vmem:[%s20905_s4 + $0x10] ss:$8 sps:$4 sm:$0xff]  }
 0x1cb   : > { %v17333_v13 = vpack.c.bf16 %v2552_v55, %v2550_v42  ;;  %v17335_v45 = vpack.c.bf16 %v3206_v30, %v3204_v61  ;;  %v2553_v31 = vmax.f32 %v2388_v17, %v2489_v8  ;;  %v3207_v33 = vmax.f32 %v17289_v48, %v3143_v15  ;;  %10238 = vmatprep.subr.bf16.mxu1 %v14906_v6  ;;  %v14942_v19 = vld [vmem:[%s20903_s2 + $0x14] ss:$8 sps:$4 sm:$0xff]   ;;  %v2395_v17 = vpop.f32.mrf.mxu0  ;;  %v3049_v48 = vpop.f32.mrf.mxu1 }
 0x1cc   : > { %21151 = vst [vmem:[#allocation8_spill] sm:$0xff] %v17307_v1  ;;  %v17331_v36 = vpack.c.bf16 %v21153_v51, %v21152_v63  ;;  %v2490_v50 = vmul.f32 0.2, %v17314_v37  ;;  %v3144_v27 = vmul.f32 0.2, %v17317_v25  ;;  %v17347_v3 = vadd.f32 %v2393_v39, %v16880_v46  ;;  %6225 = vmatprep.subr.bf16.mxu0 %v14933_v47 }
 0x1cd   : > { %21155 = vst [vmem:[#allocation131_spill] sm:$0xff] %v17335_v45  ;;  %v17350_v42 = vadd.f32 %v3047_v52, %v16887_v34  ;;  %v2396_v6 = vadd.f32 %v2395_v17, %v16867_v9  ;;  %v3050_v61 = vadd.f32 %v3049_v48, %v16877_v18  ;;  %v17357_v58 = vpack.c.bf16 %v2553_v31, %v2551_v24  ;;  %v2397_v8 = vpop.f32.mrf.mxu0  ;;  %v3051_v15 = vpop.f32.mrf.mxu1  ;;  %v14940_v24 = vld [vmem:[%s20903_s2 + $0x10] ss:$8 sps:$4 sm:$0xff]   ;;  %v14946_v17 = vld [vmem:[%s20903_s2] ss:$8 sps:$4 sm:$0xff]  }
 0x1ce   : > { %21154 = vst [vmem:[#allocation130_spill] sm:$0xff] %v17331_v36  ;;  %v17362_v2 = vpack.c.bf16 %v3203_v56, %v3201_v38  ;;  %v3205_v12 = vmax.f32 %v17279_v26, %v3141_v21  ;;  %v2554_v55 = vmax.f32 %v17314_v37, %v2490_v50  ;;  %v2491_v47 = vmul.f32 0.2, %v17347_v3  ;;  %10239 = vmatpush1.bf16.msra.mxu1 %v14904_v57  ;;  %v14915_v56 = vld [vmem:[%s20905_s4 + $0x4] ss:$8 sps:$4 sm:$0xff]   ;;  %v21157_v57 = vld [vmem:[#allocation9_spill] sm:$0xff] }
 0x1cf   : > { %v3145_v30 = vmul.f32 0.2, %v17350_v42  ;;  %6226 = vmatpush1.bf16.msra.mxu0 %v14931_v4  ;;  %v2492_v39 = vmul.f32 0.2, %v2396_v6  ;;  %v3146_v7 = vmul.f32 0.2, %v3050_v61  ;;  %v2398_v14 = vadd.f32 %v2397_v8, %v16880_v46  ;;  %10240 = vmatprep.subr.bf16.mxu1 %v14912_v11  ;;  %v2401_v37 = vpop.f32.mrf.mxu0  ;;  %v3055_v52 = vpop.f32.mrf.mxu1 }
 0x1d0   : > { %21156 = vst [vmem:[#allocation132_spill] sm:$0xff] %v17362_v2  ;;  %v3052_v38 = vadd.f32 %v3051_v15, %v16887_v34  ;;  %6227 = vmatprep.subr.bf16.mxu0 %v14942_v19  ;;  %v3208_v26 = vmax.f32 %v17317_v25, %v3144_v27  ;;  %v2555_v21 = vmax.f32 %v17347_v3, %v2491_v47  ;;  %v14948_v4 = vld [vmem:[%s20903_s2 + $0x4] ss:$8 sps:$4 sm:$0xff]   ;;  %v17613_v2 = vld [vmem:[%s15674_s12 + $0x1a8] sm:$0x3] }
 0x1d1   : > { %4953 = vmatmul.mubr.bf16.gmra.mxu0 %v21157_v57  ;;  %5617 = vmatmul.mubr.bf16.gmra.mxu1 %v21072_v35  ;;  %v17383_v63 = vpack.c.bf16 %v3207_v33, %v3205_v12  ;;  %v2556_v51 = vmax.f32 %v2396_v6, %v2492_v39  ;;  %v3210_v31 = vmax.f32 %v3050_v61, %v3146_v7  ;;  %v2493_v11 = vmul.f32 0.2, %v2398_v14  ;;  %v2403_v27 = vpop.f32.mrf.mxu0  ;;  %v3057_v3 = vpop.f32.mrf.mxu1  ;;  %v14913_v33 = vld [vmem:[%s20905_s4] ss:$8 sps:$4 sm:$0xff]  }
 0x1d2   : > { %v3147_v19 = vmul.f32 0.2, %v3052_v38  ;;  %4962 = vmatprep.mubr.bf16.mxu0 %v21004_v49  ;;  %5626 = vmatprep.mubr.bf16.mxu1 %v21004_v49  ;;  %v3209_v25 = vmax.f32 %v17350_v42, %v3145_v30  ;;  %v2402_v50 = vadd.f32 %v2401_v37, %v16867_v9  ;;  %v3056_v35 = vadd.f32 %v3055_v52, %v16877_v18  ;;  %v14919_v52 = vld [vmem:[%s20905_s4 + $0xf0] ss:$8 sps:$4 sm:$0xff]  }
 0x1d3   : > { %21158 = vst [vmem:[#allocation9_spill] sm:$0xff] %v17383_v63  ;;  %10241 = vmatpush1.bf16.msra.mxu1 %v14910_v5  ;;  %6228 = vmatpush1.bf16.msra.mxu0 %v14940_v24  ;;  %v17396_v48 = vpack.c.bf16 %v2556_v51, %v2554_v55  ;;  %v17398_v6 = vpack.c.bf16 %v3210_v31, %v3208_v26  ;;  %v14921_v5 = vld [vmem:[%s20905_s4 + $0xf4] ss:$8 sps:$4 sm:$0xff]   ;;  %v2405_v15 = vpop.f32.mrf.mxu0  ;;  %v3059_v24 = vpop.f32.mrf.mxu1 }
 0x1d4   : > { %v2557_v42 = vmax.f32 %v2398_v14, %v2493_v11  ;;  %v3211_v61 = vmax.f32 %v3052_v38, %v3147_v19  ;;  %10242 = vmatprep.subr.bf16.mxu1 %v14915_v56  ;;  %v2494_v12 = vmul.f32 0.2, %v2402_v50  ;;  %v3148_v47 = vmul.f32 0.2, %v3056_v35  ;;  %6229 = vmatprep.subr.bf16.mxu0 %v14948_v4 }
 0x1d5   : > { %21159 = vst [vmem:[#allocation133_spill] sm:$0xff] %v17398_v6  ;;  %v2404_v30 = vadd.f32 %v2403_v27, %v16880_v46  ;;  %v3058_v8 = vadd.f32 %v3057_v3, %v16887_v34  ;;  %v2406_v55 = vadd.f32 %v2405_v15, %v16867_v9  ;;  %v3060_v39 = vadd.f32 %v3059_v24, %v16877_v18  ;;  %v2407_v26 = vpop.f32.mrf.mxu0  ;;  %v3061_v37 = vpop.f32.mrf.mxu1  ;;  %v21161_v3 = vld [vmem:[#allocation15_spill] sm:$0xff] }
 0x1d6   : > { %v17407_v7 = vpack.c.bf16 %v2557_v42, %v2555_v21  ;;  %v17409_v14 = vpack.c.bf16 %v3211_v61, %v3209_v25  ;;  %v2408_v51 = vadd.f32 %v2407_v26, %v16880_v46  ;;  %v3062_v31 = vadd.f32 %v3061_v37, %v16887_v34  ;;  %v14924_v21 = vld [vmem:[%s20905_s4 + $0xe4] ss:$8 sps:$4 sm:$0xff]  }
 0x1d7   : > { %v2495_v38 = vmul.f32 0.2, %v2404_v30  ;;  %v3149_v56 = vmul.f32 0.2, %v3058_v8  ;;  %10243 = vmatpush1.bf16.msra.mxu1 %v14913_v33  ;;  %6230 = vmatpush1.bf16.msra.mxu0 %v14946_v17  ;;  %v2496_v57 = vmul.f32 0.2, %v2406_v55  ;;  %v2558_v11 = vmax.f32 %v2402_v50, %v2494_v12  ;;  %v2411_v25 = vpop.f32.mrf.mxu0  ;;  %v3065_v27 = vpop.f32.mrf.mxu1 }
 0x1d8   : > { %21160 = vst [vmem:[#allocation134_spill] sm:$0xff] %v17409_v14  ;;  %v3150_v4 = vmul.f32 0.2, %v3060_v39  ;;  %10244 = vmatprep.subr.bf16.mxu1 %v14921_v5  ;;  %v3212_v19 = vmax.f32 %v3056_v35, %v3148_v47  ;;  %v2497_v42 = vmul.f32 0.2, %v2408_v51  ;;  %v2412_v24 = vadd.f32 %v2411_v25, %v16867_v9 }
 0x1d9   : > { %4963 = vmatmul.mubr.bf16.gmra.mxu0 %v21161_v3  ;;  %5627 = vmatmul.mubr.bf16.gmra.mxu1 %v21078_v29  ;;  %v2560_v33 = vmax.f32 %v2406_v55, %v2496_v57  ;;  %v3151_v61 = vmul.f32 0.2, %v3062_v31  ;;  %v2559_v5 = vmax.f32 %v2404_v30, %v2495_v38  ;;  %v3213_v15 = vmax.f32 %v3058_v8, %v3149_v56  ;;  %v2413_v35 = vpop.f32.mrf.mxu0  ;;  %v3067_v12 = vpop.f32.mrf.mxu1  ;;  %v14922_v29 = vld [vmem:[%s20905_s4 + $0xe0] ss:$8 sps:$4 sm:$0xff]   ;;  %v14927_v30 = vld [vmem:[%s20905_s4 + $0xd4] ss:$8 sps:$4 sm:$0xff]  }
 0x1da   : > { %v3214_v17 = vmax.f32 %v3060_v39, %v3150_v4  ;;  %4972 = vmatprep.mubr.bf16.mxu0 %v21004_v49  ;;  %5636 = vmatprep.mubr.bf16.mxu1 %v21004_v49  ;;  %v3066_v50 = vadd.f32 %v3065_v27, %v16877_v18  ;;  %v2561_v39 = vmax.f32 %v2408_v51, %v2497_v42  ;;  %v2498_v8 = vmul.f32 0.2, %v2412_v24  ;;  %v14925_v51 = vld [vmem:[%s20905_s4 + $0xd0] ss:$8 sps:$4 sm:$0xff]  }
 0x1db   : > { %10245 = vmatpush2.bf16.msra.mxu1 %v14919_v52  ;;  %v17428_v47 = vpack.c.bf16 %v2560_v33, %v2558_v11  ;;  %v3215_v26 = vmax.f32 %v3062_v31, %v3151_v61  ;;  %v2414_v56 = vadd.f32 %v2413_v35, %v16880_v46  ;;  %v3068_v37 = vadd.f32 %v3067_v12, %v16887_v34  ;;  %v2415_v52 = vpop.f32.mrf.mxu0  ;;  %v3069_v57 = vpop.f32.mrf.mxu1  ;;  %v14930_v33 = vld [vmem:[%s20905_s4 + $0xc4] ss:$8 sps:$4 sm:$0xff]  }
 0x1dc   : > { %v17430_v55 = vpack.c.bf16 %v3214_v17, %v3212_v19  ;;  %10246 = vmatprep.subr.bf16.mxu1 %v14924_v21  ;;  %v3152_v38 = vmul.f32 0.2, %v3066_v50  ;;  %v2416_v4 = vadd.f32 %v2415_v52, %v16867_v9  ;;  %v3070_v11 = vadd.f32 %v3069_v57, %v16877_v18  ;;  %v21164_v52 = vld [vmem:[#allocation18_spill] sm:$0xff] }
 0x1dd   : > { %v17442_v31 = vpack.c.bf16 %v2561_v39, %v2559_v5  ;;  %v17444_v21 = vpack.c.bf16 %v3215_v26, %v3213_v15  ;;  %v2499_v19 = vmul.f32 0.2, %v2414_v56  ;;  %v3153_v25 = vmul.f32 0.2, %v3068_v37  ;;  %v2417_v27 = vpop.f32.mrf.mxu0  ;;  %v3071_v3 = vpop.f32.mrf.mxu1  ;;  %v14954_v5 = vld [vmem:[%s20905_s4 + $0x174] ss:$8 sps:$4 sm:$0xff]  }
 0x1de   : > { %21162 = vst [vmem:[#allocation15_spill] sm:$0xff] %v17430_v55  ;;  %v2500_v17 = vmul.f32 0.2, %v2416_v4  ;;  %v3154_v42 = vmul.f32 0.2, %v3070_v11  ;;  %v2418_v61 = vadd.f32 %v2417_v27, %v16880_v46  ;;  %v3072_v35 = vadd.f32 %v3071_v3, %v16887_v34  ;;  %10421 = vmatprep.subr.bf16.mxu0 %v14954_v5 }
 0x1df   : > { %21163 = vst [vmem:[#allocation135_spill] sm:$0xff] %v17444_v21  ;;  %10247 = vmatpush2.bf16.msra.mxu1 %v14922_v29  ;;  %v2562_v15 = vmax.f32 %v2412_v24, %v2498_v8  ;;  %v3216_v12 = vmax.f32 %v3066_v50, %v3152_v38  ;;  %v2563_v39 = vmax.f32 %v2414_v56, %v2499_v19  ;;  %v2421_v26 = vpop.f32.mrf.mxu0  ;;  %v3075_v29 = vpop.f32.mrf.mxu1 }
 0x1e0   : > { %10248 = vmatprep.subr.bf16.mxu1 %v14927_v30  ;;  %v2564_v57 = vmax.f32 %v2416_v4, %v2500_v17  ;;  %v3218_v55 = vmax.f32 %v3070_v11, %v3154_v42  ;;  %v2501_v21 = vmul.f32 0.2, %v2418_v61  ;;  %v3155_v27 = vmul.f32 0.2, %v3072_v35 }
 0x1e1   : > { %4973 = vmatmul.mubr.bf16.gmra.mxu0 %v21164_v52  ;;  %5637 = vmatmul.mubr.bf16.gmra.mxu1 %v21084_v59  ;;  %v3217_v30 = vmax.f32 %v3068_v37, %v3153_v25  ;;  %v2422_v3 = vadd.f32 %v2421_v26, %v16867_v9  ;;  %v3076_v24 = vadd.f32 %v3075_v29, %v16877_v18  ;;  %v2423_v50 = vpop.f32.mrf.mxu0  ;;  %v3077_v8 = vpop.f32.mrf.mxu1  ;;  %v14928_v59 = vld [vmem:[%s20905_s4 + $0xc0] ss:$8 sps:$4 sm:$0xff]   ;;  %v14936_v37 = vld [vmem:[%s20905_s4 + $0xb4] ss:$8 sps:$4 sm:$0xff]   ;;  %v14934_v29 = vld [vmem:[%s20905_s4 + $0xb0] ss:$8 sps:$4 sm:$0xff]  }
 0x1e2   : > { %4982 = vmatprep.mubr.bf16.mxu0 %v21004_v49  ;;  %5646 = vmatprep.mubr.bf16.mxu1 %v21004_v49  ;;  %v17463_v38 = vpack.c.bf16 %v2564_v57, %v2562_v15  ;;  %v17465_v56 = vpack.c.bf16 %v3218_v55, %v3216_v12  ;;  %v2565_v4 = vmax.f32 %v2418_v61, %v2501_v21 }
 0x1e3   : > { %10249 = vmatpush2.bf16.msra.mxu1 %v14925_v51  ;;  %v3219_v11 = vmax.f32 %v3072_v35, %v3155_v27  ;;  %v2502_v19 = vmul.f32 0.2, %v2422_v3  ;;  %v3156_v25 = vmul.f32 0.2, %v3076_v24  ;;  %v2424_v51 = vadd.f32 %v2423_v50, %v16880_v46  ;;  %v2425_v42 = vpop.f32.mrf.mxu0  ;;  %v3079_v26 = vpop.f32.mrf.mxu1 }
 0x1e4   : > { %21165 = vst [vmem:[#allocation18_spill] sm:$0xff] %v17465_v56  ;;  %10250 = vmatprep.subr.bf16.mxu1 %v14930_v33  ;;  %v3078_v17 = vadd.f32 %v3077_v8, %v16887_v34  ;;  %v2426_v5 = vadd.f32 %v2425_v42, %v16867_v9  ;;  %v3080_v55 = vadd.f32 %v3079_v26, %v16877_v18 }
 0x1e5   : > { %v17474_v15 = vpack.c.bf16 %v2565_v4, %v2563_v39  ;;  %v17476_v21 = vpack.c.bf16 %v3219_v11, %v3217_v30  ;;  %v2503_v33 = vmul.f32 0.2, %v2424_v51  ;;  %v2427_v35 = vpop.f32.mrf.mxu0  ;;  %v3081_v12 = vpop.f32.mrf.mxu1  ;;  %v14939_v39 = vld [vmem:[%s20905_s4 + $0xa4] ss:$8 sps:$4 sm:$0xff]   ;;  %v2566_v30 = vmax.f32 %v2422_v3, %v2502_v19 }
 0x1e6   : > { %v3157_v61 = vmul.f32 0.2, %v3078_v17  ;;  %v2504_v52 = vmul.f32 0.2, %v2426_v5  ;;  %v3158_v57 = vmul.f32 0.2, %v3080_v55  ;;  %v2428_v27 = vadd.f32 %v2427_v35, %v16880_v46 }
 0x1e7   : > { %21166 = vst [vmem:[#allocation136_spill] sm:$0xff] %v17476_v21  ;;  %10251 = vmatpush2.bf16.msra.mxu1 %v14928_v59  ;;  %v3082_v50 = vadd.f32 %v3081_v12, %v16887_v34  ;;  %v3220_v8 = vmax.f32 %v3076_v24, %v3156_v25  ;;  %v2431_v4 = vpop.f32.mrf.mxu0  ;;  %v3085_v11 = vpop.f32.mrf.mxu1  ;;  %v21167_v59 = vld [vmem:[#allocation21_spill] sm:$0xff] }
 0x1e8   : > { %10252 = vmatprep.subr.bf16.mxu1 %v14936_v37  ;;  %v2568_v42 = vmax.f32 %v2426_v5, %v2504_v52  ;;  %v3222_v26 = vmax.f32 %v3080_v55, %v3158_v57  ;;  %v2505_v56 = vmul.f32 0.2, %v2428_v27  ;;  %v2567_v37 = vmax.f32 %v2424_v51, %v2503_v33  ;;  %v14945_v51 = vld [vmem:[%s20905_s4 + $0x94] ss:$8 sps:$4 sm:$0xff]  }
 0x1e9   : > { %4983 = vmatmul.mubr.bf16.gmra.mxu0 %v21167_v59  ;;  %5647 = vmatmul.mubr.bf16.gmra.mxu1 %v21090_v41  ;;  %v3159_v21 = vmul.f32 0.2, %v3082_v50  ;;  %v3221_v35 = vmax.f32 %v3078_v17, %v3157_v61  ;;  %v2432_v12 = vadd.f32 %v2431_v4, %v16867_v9  ;;  %v3086_v3 = vadd.f32 %v3085_v11, %v16877_v18  ;;  %v2433_v24 = vpop.f32.mrf.mxu0  ;;  %v3087_v19 = vpop.f32.mrf.mxu1  ;;  %v14937_v41 = vld [vmem:[%s20905_s4 + $0xa0] ss:$8 sps:$4 sm:$0xff]   ;;  %v14943_v59 = vld [vmem:[%s20905_s4 + $0x90] ss:$8 sps:$4 sm:$0xff]  }
 0x1ea   : > { %4992 = vmatprep.mubr.bf16.mxu0 %v21004_v49  ;;  %5656 = vmatprep.mubr.bf16.mxu1 %v21004_v49  ;;  %v17495_v25 = vpack.c.bf16 %v2568_v42, %v2566_v30  ;;  %v17497_v5 = vpack.c.bf16 %v3222_v26, %v3220_v8  ;;  %v2569_v55 = vmax.f32 %v2428_v27, %v2505_v56 }
 0x1eb   : > { %10253 = vmatpush2.bf16.msra.mxu1 %v14934_v29  ;;  %v3223_v52 = vmax.f32 %v3082_v50, %v3159_v21  ;;  %v2506_v17 = vmul.f32 0.2, %v2432_v12  ;;  %v3160_v33 = vmul.f32 0.2, %v3086_v3  ;;  %v2434_v61 = vadd.f32 %v2433_v24, %v16880_v46  ;;  %v2435_v57 = vpop.f32.mrf.mxu0  ;;  %v3089_v4 = vpop.f32.mrf.mxu1 }
 0x1ec   : > { %21168 = vst [vmem:[#allocation21_spill] sm:$0xff] %v17497_v5  ;;  %10254 = vmatprep.subr.bf16.mxu1 %v14939_v39  ;;  %v3088_v29 = vadd.f32 %v3087_v19, %v16887_v34  ;;  %v2436_v30 = vadd.f32 %v2435_v57, %v16867_v9  ;;  %v3090_v8 = vadd.f32 %v3089_v4, %v16877_v18 }
 0x1ed   : > { %v17506_v11 = vpack.c.bf16 %v2569_v55, %v2567_v37  ;;  %v17508_v56 = vpack.c.bf16 %v3223_v52, %v3221_v35  ;;  %v2507_v21 = vmul.f32 0.2, %v2434_v61  ;;  %v2437_v50 = vpop.f32.mrf.mxu0  ;;  %v3091_v39 = vpop.f32.mrf.mxu1  ;;  %v14951_v37 = vld [vmem:[%s20905_s4 + $0x84] ss:$8 sps:$4 sm:$0xff]   ;;  %v2570_v35 = vmax.f32 %v2432_v12, %v2506_v17 }
 0x1ee   : > { %v3161_v27 = vmul.f32 0.2, %v3088_v29  ;;  %v2508_v42 = vmul.f32 0.2, %v2436_v30  ;;  %v3162_v26 = vmul.f32 0.2, %v3090_v8  ;;  %v2438_v24 = vadd.f32 %v2437_v50, %v16880_v46 }
 0x1ef   : > { %21169 = vst [vmem:[#allocation137_spill] sm:$0xff] %v17508_v56  ;;  %10255 = vmatpush2.bf16.msra.mxu1 %v14937_v41  ;;  %v3092_v19 = vadd.f32 %v3091_v39, %v16887_v34  ;;  %v3224_v55 = vmax.f32 %v3086_v3, %v3160_v33  ;;  %v2441_v52 = vpop.f32.mrf.mxu0  ;;  %v3095_v57 = vpop.f32.mrf.mxu1  ;;  %v21170_v41 = vld [vmem:[#allocation24_spill] sm:$0xff] }
 0x1f0   : > { %10256 = vmatprep.subr.bf16.mxu1 %v14945_v51  ;;  %v2572_v4 = vmax.f32 %v2436_v30, %v2508_v42  ;;  %v3226_v5 = vmax.f32 %v3090_v8, %v3162_v26  ;;  %v2509_v56 = vmul.f32 0.2, %v2438_v24  ;;  %v2571_v51 = vmax.f32 %v2434_v61, %v2507_v21  ;;  %v3483_v61 = vld [vmem:[%s20904_s3] sm:$0x3]  ;;  %v14957_v21 = vld [vmem:[%s20905_s4 + $0x274] ss:$8 sps:$4 sm:$0xff]  }
 0x1f1   : > { %4993 = vmatmul.mubr.bf16.gmra.mxu0 %v21170_v41  ;;  %5657 = vmatmul.mubr.bf16.gmra.mxu1 %v21098_v16  ;;  %v3163_v6 = vmul.f32 0.2, %v3092_v19  ;;  %v3225_v50 = vmax.f32 %v3088_v29, %v3161_v27  ;;  %v2442_v39 = vadd.f32 %v2441_v52, %v16867_v9  ;;  %v3096_v12 = vadd.f32 %v3095_v57, %v16877_v18  ;;  %v2443_v3 = vpop.f32.mrf.mxu0  ;;  %v3097_v17 = vpop.f32.mrf.mxu1  ;;  %v14949_v16 = vld [vmem:[%s20905_s4 + $0x80] ss:$8 sps:$4 sm:$0xff]  }
 0x1f2   : > { %5002 = vmatprep.mubr.bf16.mxu0 %v21004_v49  ;;  %5666 = vmatprep.mubr.bf16.mxu1 %v21004_v49  ;;  %v17527_v33 = vpack.c.bf16 %v2572_v4, %v2570_v35  ;;  %v17529_v30 = vpack.c.bf16 %v3226_v5, %v3224_v55  ;;  %v2573_v8 = vmax.f32 %v2438_v24, %v2509_v56  ;;  %v4144_v29 = vld [vmem:[%s20904_s3] sm:$0x3] }
 0x1f3   : > { %10257 = vmatpush2.bf16.msra.mxu1 %v14943_v59  ;;  %v3227_v42 = vmax.f32 %v3092_v19, %v3163_v6  ;;  %v2510_v27 = vmul.f32 0.2, %v2442_v39  ;;  %v3164_v59 = vmul.f32 0.2, %v3096_v12  ;;  %v2444_v5 = vadd.f32 %v2443_v3, %v16880_v46  ;;  %v2445_v26 = vpop.f32.mrf.mxu0  ;;  %v3099_v56 = vpop.f32.mrf.mxu1 }
 0x1f4   : > { %21171 = vst [vmem:[#allocation24_spill] sm:$0xff] %v17529_v30  ;;  %10258 = vmatprep.subr.bf16.mxu1 %v14951_v37  ;;  %v2446_v6 = vadd.f32 %v2445_v26, %v16867_v9  ;;  %v3100_v24 = vadd.f32 %v3099_v56, %v16877_v18  ;;  %v17543_v19 = vpack.c.bf16 %v2573_v8, %v2571_v51 }
 0x1f5   : > { %v17545_v35 = vpack.c.bf16 %v3227_v42, %v3225_v50  ;;  %v17548_v37 = vadd.f32 %v3097_v17, %v16887_v34  ;;  %v2447_v55 = vpop.f32.mrf.mxu0  ;;  %v3101_v52 = vpop.f32.mrf.mxu1  ;;  %v17551_v57 = vrot.slane %v3483_v61, %v21094_v40  ;;  %v17554_v41 = vrot.slane %v4144_v29, %v21094_v40  ;;  %v21173_v42 = vld [vmem:[#allocation27_spill] sm:$0xff] }
 0x1f6   : > { %v2511_v4 = vmul.f32 0.2, %v2444_v5  ;;  %v2512_v9 = vmul.f32 0.2, %v2446_v6  ;;  %v3166_v3 = vmul.f32 0.2, %v3100_v24  ;;  %v2448_v18 = vadd.f32 %v2447_v55, %v16880_v46 }
 0x1f7   : > { %21172 = vst [vmem:[#allocation138_spill] sm:$0xff] %v17545_v35  ;;  %10259 = vmatpush2.bf16.msra.mxu1 %v14949_v16  ;;  %v2574_v51 = vmax.f32 %v2442_v39, %v2510_v27  ;;  %v17558_v50 = vadd.f32 %v3101_v52, %v16887_v34  ;;  %v3609_v17 = vpop.f32.mrf.mxu0  ;;  %v4270_v8 = vpop.f32.mrf.mxu1  ;;  %v17563_v26 = vrot.slane %v3483_v61, %v21097_v22  ;;  %v17568_v46 = vmul.f32 0.2, %v17548_v37 }
 0x1f8   : > { %10614 = vmatprep.subr.bf16.mxu1 %v14957_v21  ;;  %v3228_v16 = vmax.f32 %v3096_v12, %v3164_v59  ;;  %v2576_v56 = vmax.f32 %v2446_v6, %v2512_v9  ;;  %v3230_v30 = vmax.f32 %v3100_v24, %v3166_v3  ;;  %v2513_v35 = vmul.f32 0.2, %v2448_v18 }
 0x1f9   : > { %5003 = vmatmul.mubr.bf16.gmra.mxu0 %v21173_v42  ;;  %5667 = vmatmul.mubr.bf16.gmra.mxu1 %v21103_v54  ;;  %v3610_v34 = vadd.f32 %v3609_v17, %v17551_v57  ;;  %v4271_v39 = vadd.f32 %v4270_v8, %v17554_v41  ;;  %v3611_v54 = vpop.f32.mrf.mxu0  ;;  %v17573_v61 = vrot.slane %v4144_v29, %v21097_v22  ;;  %v4272_v12 = vpop.f32.mrf.mxu1  ;;  %v3167_v24 = vmul.f32 0.2, %v17558_v50  ;;  %v17584_v42 = vld [vmem:[%s15674_s12 + $0x198] sm:$0xff] }
 0x1fa   : > { %5012 = vmatprep.mubr.bf16.mxu0 %v21004_v49  ;;  %5676 = vmatprep.mubr.bf16.mxu1 %v21004_v49  ;;  %v2575_v21 = vmax.f32 %v2444_v5, %v2511_v4  ;;  %v17575_v27 = vpack.c.bf16 %v2576_v56, %v2574_v51  ;;  %v17577_v59 = vpack.c.bf16 %v3230_v30, %v3228_v16 }
 0x1fb   : > { %v2577_v6 = vmax.f32 %v2448_v18, %v2513_v35  ;;  %v3768_v55 = vmul.f32 0.2, %v3610_v34  ;;  %v4429_v52 = vmul.f32 0.2, %v4271_v39  ;;  %v3612_v9 = vadd.f32 %v3611_v54, %v17563_v26  ;;  %v3613_v3 = vpop.f32.mrf.mxu0  ;;  %v4274_v17 = vpop.f32.mrf.mxu1 }
 0x1fc   : > { %21174 = vst [vmem:[#allocation27_spill] sm:$0xff] %v17577_v59  ;;  %v3614_v8 = vadd.f32 %v3613_v3, %v17551_v57  ;;  %v4275_v29 = vadd.f32 %v4274_v17, %v17554_v41  ;;  %v3229_v30 = vmax.f32 %v17548_v37, %v17568_v46  ;;  %v4273_v4 = vadd.f32 %v4272_v12, %v17573_v61 }
 0x1fd   : > { %v17586_v5 = vpack.c.bf16 %v2577_v6, %v2575_v21  ;;  %v3769_v35 = vmul.f32 0.2, %v3612_v9  ;;  %v3615_v18 = vpop.f32.mrf.mxu0  ;;  %v4276_v51 = vpop.f32.mrf.mxu1  ;;  %v3231_v17 = vmax.f32 %v17558_v50, %v3167_v24  ;;  %v3832_v59 = vmax.f32 %v3610_v34, %v3768_v55 }
 0x1fe   : > { %v3770_v16 = vmul.f32 0.2, %v3614_v8  ;;  %v4431_v56 = vmul.f32 0.2, %v4275_v29  ;;  %v3616_v54 = vadd.f32 %v3615_v18, %v17563_v26  ;;  %v4277_v3 = vadd.f32 %v4276_v51, %v17573_v61  ;;  %v411_v51 = vld [vmem:[%s15674_s12 + $0x1a0] sm:$0xff] }
 0x1ff   : > { %v4493_v14 = vmax.f32 %v4271_v39, %v4429_v52  ;;  %v3619_v21 = vpop.f32.mrf.mxu0  ;;  %v4280_v6 = vpop.f32.mrf.mxu1  ;;  %v17597_v37 = vmul.f32 0.2, %v17584_v42  ;;  %v3833_v50 = vmax.f32 %v3612_v9, %v3769_v35  ;;  %v4430_v34 = vmul.f32 0.2, %v4273_v4 }
 0x200   : > { %v3834_v46 = vmax.f32 %v3614_v8, %v3770_v16  ;;  %v4495_v12 = vmax.f32 %v4275_v29, %v4431_v56  ;;  %v3771_v45 = vmul.f32 0.2, %v3616_v54  ;;  %v4432_v18 = vmul.f32 0.2, %v4277_v3 }
 0x201   : > { %5013 = vmatmul.mubr.bf16.gmra.mxu0 %v16098_v0  ;;  %5677 = vmatmul.mubr.bf16.gmra.mxu1 %v21109_v23  ;;  %v3620_v39 = vadd.f32 %v3619_v21, %v17551_v57  ;;  %v4281_v0 = vadd.f32 %v4280_v6, %v17554_v41  ;;  %v3621_v23 = vpop.f32.mrf.mxu0  ;;  %v4282_v24 = vpop.f32.mrf.mxu1 }
 0x202   : > { %5022 = vmatprep.mubr.bf16.mxu0 %v21004_v49  ;;  %5686 = vmatprep.mubr.bf16.mxu1 %v21004_v49  ;;  %v17603_v55 = vpack.c.bf16 %v3834_v46, %v3832_v59  ;;  %v17605_v52 = vpack.c.bf16 %v4495_v12, %v4493_v14  ;;  %v3835_v8 = vmax.f32 %v3616_v54, %v3771_v45 }
 0x203   : > { %v4496_v29 = vmax.f32 %v4277_v3, %v4432_v18  ;;  %v3772_v16 = vmul.f32 0.2, %v3620_v39  ;;  %v4433_v56 = vmul.f32 0.2, %v4281_v0  ;;  %v3622_v63 = vadd.f32 %v3621_v23, %v17563_v26  ;;  %v3623_v35 = vpop.f32.mrf.mxu0  ;;  %v4284_v21 = vpop.f32.mrf.mxu1 }
 0x204   : > { %21175 = vst [vmem:[#allocation139_spill] sm:$0xff] %v17605_v52  ;;  %v4283_v9 = vadd.f32 %v4282_v24, %v17573_v61  ;;  %v3624_v6 = vadd.f32 %v3623_v35, %v17551_v57  ;;  %v4285_v53 = vadd.f32 %v4284_v21, %v17554_v41  ;;  %v17615_v59 = vpack.c.bf16 %v3835_v8, %v3833_v50 }
 0x205   : > { %v17617_v14 = vpack.c.bf16 %v3231_v17, %v3229_v30  ;;  %v4494_v45 = vmax.f32 %v4273_v4, %v4430_v34  ;;  %v3773_v54 = vmul.f32 0.2, %v3622_v63  ;;  %v3625_v46 = vpop.f32.mrf.mxu0  ;;  %v4286_v12 = vpop.f32.mrf.mxu1  ;;  %v465_v18 = vmul.f32 0.2, %v411_v51 }
 0x206   : > { %v4434_v3 = vmul.f32 0.2, %v4283_v9  ;;  %v3774_v23 = vmul.f32 0.2, %v3624_v6  ;;  %v4435_v24 = vmul.f32 0.2, %v4285_v53  ;;  %v3626_v52 = vadd.f32 %v3625_v46, %v17563_v26 }
 0x207   : > { %21176 = vst [vmem:[#allocation140_spill] sm:$0xff] %v17617_v14  ;;  %v4287_v35 = vadd.f32 %v4286_v12, %v17573_v61  ;;  %v3836_v36 = vmax.f32 %v3620_v39, %v3772_v16  ;;  %v4497_v21 = vmax.f32 %v4281_v0, %v4433_v56  ;;  %v3629_v1 = vpop.f32.mrf.mxu0  ;;  %v4290_v32 = vpop.f32.mrf.mxu1  ;;  %v466_v30 = vmul.f32 0.2, %v17613_v2 }
 0x208   : > { %v17624_v4 = vpack.c.bf16 %v4496_v29, %v4494_v45  ;;  %v3838_v17 = vmax.f32 %v3624_v6, %v3774_v23  ;;  %v4499_v50 = vmax.f32 %v4285_v53, %v4435_v24  ;;  %v3775_v34 = vmul.f32 0.2, %v3626_v52 }
 0x209   : > { %5023 = vmatmul.mubr.bf16.gmra.mxu0 %v16121_v44  ;;  %5687 = vmatmul.mubr.bf16.gmra.mxu1 %v21114_v43  ;;  %v4436_v8 = vmul.f32 0.2, %v4287_v35  ;;  %v3837_v39 = vmax.f32 %v3622_v63, %v3773_v54  ;;  %v4498_v0 = vmax.f32 %v4283_v9, %v4434_v3  ;;  %v3630_v16 = vadd.f32 %v3629_v1, %v17551_v57  ;;  %v3631_v56 = vpop.f32.mrf.mxu0  ;;  %v4292_v43 = vpop.f32.mrf.mxu1 }
 0x20a   : > { %21177 = vst [vmem:[#allocation141_spill] sm:$0xff] %v17624_v4  ;;  %5032 = vmatprep.mubr.bf16.mxu0 %v21004_v49  ;;  %5696 = vmatprep.mubr.bf16.mxu1 %v21004_v49  ;;  %v4291_v44 = vadd.f32 %v4290_v32, %v17554_v41  ;;  %v17630_v46 = vpack.c.bf16 %v3838_v17, %v3836_v36 }
 0x20b   : > { %v17632_v29 = vpack.c.bf16 %v4499_v50, %v4497_v21  ;;  %v3839_v6 = vmax.f32 %v3626_v52, %v3775_v34  ;;  %v4500_v53 = vmax.f32 %v4287_v35, %v4436_v8  ;;  %v3776_v45 = vmul.f32 0.2, %v3630_v16  ;;  %v3633_v63 = vpop.f32.mrf.mxu0  ;;  %v4294_v9 = vpop.f32.mrf.mxu1 }
 0x20c   : > { %v4437_v12 = vmul.f32 0.2, %v4291_v44  ;;  %v3632_v23 = vadd.f32 %v3631_v56, %v17563_v26  ;;  %v4293_v24 = vadd.f32 %v4292_v43, %v17573_v61  ;;  %v3634_v1 = vadd.f32 %v3633_v63, %v17551_v57  ;;  %v21180_v63 = vld [vmem:[#allocation32_spill] sm:$0xff] }
 0x20d   : > { %21178 = vst [vmem:[#allocation142_spill] sm:$0xff] %v17632_v29  ;;  %v4295_v32 = vadd.f32 %v4294_v9, %v17554_v41  ;;  %v17638_v54 = vpack.c.bf16 %v3839_v6, %v3837_v39  ;;  %v17640_v36 = vpack.c.bf16 %v4500_v53, %v4498_v0  ;;  %v3635_v52 = vpop.f32.mrf.mxu0  ;;  %v4296_v35 = vpop.f32.mrf.mxu1  ;;  %v17644_v17 = vmax.f32 %v17584_v42, %v17597_v37 }
 0x20e   : > { %v3777_v3 = vmul.f32 0.2, %v3632_v23  ;;  %v4438_v21 = vmul.f32 0.2, %v4293_v24  ;;  %v17646_v50 = vmax.f32 %v411_v51, %v465_v18  ;;  %v3778_v34 = vmul.f32 0.2, %v3634_v1 }
 0x20f   : > { %21179 = vst [vmem:[#allocation143_spill] sm:$0xff] %v17640_v36  ;;  %v4439_v8 = vmul.f32 0.2, %v4295_v32  ;;  %v3636_v56 = vadd.f32 %v3635_v52, %v17563_v26  ;;  %v4297_v43 = vadd.f32 %v4296_v35, %v17573_v61  ;;  %v3840_v39 = vmax.f32 %v3630_v16, %v3776_v45  ;;  %v3639_v0 = vpop.f32.mrf.mxu0 }
 0x210   : > { %v4501_v6 = vmax.f32 %v4291_v44, %v4437_v12  ;;  %v4300_v53 = vpop.f32.mrf.mxu1  ;;  %v17653_v9 = vmax.f32 %v17613_v2, %v466_v30  ;;  %v3842_v42 = vmax.f32 %v3634_v1, %v3778_v34  ;;  %v3841_v52 = vmax.f32 %v3632_v23, %v3777_v3 }
 0x211   : > { %5033 = vmatmul.mubr.bf16.gmra.mxu0 %v16145_v62  ;;  %5697 = vmatmul.mubr.bf16.gmra.mxu1 %v21180_v63  ;;  %v4503_v37 = vmax.f32 %v4295_v32, %v4439_v8  ;;  %v3779_v51 = vmul.f32 0.2, %v3636_v56  ;;  %v4440_v18 = vmul.f32 0.2, %v4297_v43  ;;  %v4502_v16 = vmax.f32 %v4293_v24, %v4438_v21  ;;  %v3641_v62 = vpop.f32.mrf.mxu0 }
 0x212   : > { %5042 = vmatprep.mubr.bf16.mxu0 %v21004_v49  ;;  %5706 = vmatprep.mubr.bf16.mxu1 %v21004_v49  ;;  %v3640_v44 = vadd.f32 %v3639_v0, %v17551_v57  ;;  %v4301_v45 = vadd.f32 %v4300_v53, %v17554_v41  ;;  %v4302_v12 = vpop.f32.mrf.mxu1  ;;  %v17659_v35 = vpack.c.bf16 %v3842_v42, %v3840_v39  ;;  %v5438_v42 = vrot.slane %v17644_v17, 1 }
 0x213   : > { %v17661_v2 = vpack.c.bf16 %v4503_v37, %v4501_v6  ;;  %v3843_v30 = vmax.f32 %v3636_v56, %v3779_v51  ;;  %v4504_v1 = vmax.f32 %v4297_v43, %v4440_v18  ;;  %v3642_v8 = vadd.f32 %v3641_v62, %v17563_v26  ;;  %v3643_v23 = vpop.f32.mrf.mxu0 }
 0x214   : > { %21181 = vst [vmem:[#allocation32_spill] sm:$0xff] %v17659_v35  ;;  %v3780_v32 = vmul.f32 0.2, %v3640_v44  ;;  %v4441_v34 = vmul.f32 0.2, %v4301_v45  ;;  %v4303_v63 = vadd.f32 %v4302_v12, %v17573_v61  ;;  %v4304_v24 = vpop.f32.mrf.mxu1  ;;  %v3644_v3 = vadd.f32 %v3643_v23, %v17551_v57 }
 0x215   : > { %21182 = vst [vmem:[#allocation144_spill] sm:$0xff] %v17661_v2  ;;  %v4305_v21 = vadd.f32 %v4304_v24, %v17554_v41  ;;  %v17667_v0 = vpack.c.bf16 %v3843_v30, %v3841_v52  ;;  %v17669_v39 = vpack.c.bf16 %v4504_v1, %v4502_v16  ;;  %v3781_v6 = vmul.f32 0.2, %v3642_v8  ;;  %v3645_v56 = vpop.f32.mrf.mxu0  ;;  %v21184_v52 = vld [vmem:[#allocation33_spill] sm:$0xff]  ;;  %v21185_v16 = vld [vmem:[#allocation34_spill] sm:$0xff] }
 0x216   : > { %v4442_v53 = vmul.f32 0.2, %v4303_v63  ;;  %v4306_v43 = vpop.f32.mrf.mxu1  ;;  %v3782_v37 = vmul.f32 0.2, %v3644_v3  ;;  %v3646_v18 = vadd.f32 %v3645_v56, %v17563_v26  ;;  %v3844_v12 = vmax.f32 %v3640_v44, %v3780_v32 }
 0x217   : > { %21183 = vst [vmem:[#allocation145_spill] sm:$0xff] %v17669_v39  ;;  %v4443_v51 = vmul.f32 0.2, %v4305_v21  ;;  %v4307_v62 = vadd.f32 %v4306_v43, %v17573_v61  ;;  %v4505_v23 = vmax.f32 %v4301_v45, %v4441_v34  ;;  %v3649_v2 = vpop.f32.mrf.mxu0  ;;  %v5439_v30 = vrot.slane %v17646_v50, 1 }
 0x218   : > { %v4310_v24 = vpop.f32.mrf.mxu1  ;;  %v5441_v1 = vrot.slane %v17653_v9, 1  ;;  %v3846_v39 = vmax.f32 %v3644_v3, %v3782_v37  ;;  %v3783_v36 = vmul.f32 0.2, %v3646_v18  ;;  %v3845_v44 = vmax.f32 %v3642_v8, %v3781_v6 }
 0x219   : > { %5043 = vmatmul.mubr.bf16.gmra.mxu0 %v21184_v52  ;;  %5707 = vmatmul.mubr.bf16.gmra.mxu1 %v21185_v16  ;;  %v4507_v29 = vmax.f32 %v4305_v21, %v4443_v51  ;;  %v4444_v4 = vmul.f32 0.2, %v4307_v62  ;;  %v4506_v45 = vmax.f32 %v4303_v63, %v4442_v53  ;;  %v3650_v32 = vadd.f32 %v3649_v2, %v17551_v57  ;;  %v3651_v56 = vpop.f32.mrf.mxu0 }
 0x21a   : > { %5052 = vmatprep.mubr.bf16.mxu0 %v21004_v49  ;;  %5716 = vmatprep.mubr.bf16.mxu1 %v21004_v49  ;;  %v4311_v34 = vadd.f32 %v4310_v24, %v17554_v41  ;;  %v4312_v43 = vpop.f32.mrf.mxu1  ;;  %v17682_v52 = vpack.c.bf16 %v3846_v39, %v3844_v12  ;;  %v3847_v3 = vmax.f32 %v3646_v18, %v3783_v36 }
 0x21b   : > { %v17684_v16 = vpack.c.bf16 %v4507_v29, %v4505_v23  ;;  %v4508_v21 = vmax.f32 %v4307_v62, %v4444_v4  ;;  %v3784_v37 = vmul.f32 0.2, %v3650_v32  ;;  %v3652_v14 = vadd.f32 %v3651_v56, %v17563_v26  ;;  %v3653_v8 = vpop.f32.mrf.mxu0 }
 0x21c   : > { %21186 = vst [vmem:[#allocation33_spill] sm:$0xff] %v17682_v52  ;;  %v4445_v51 = vmul.f32 0.2, %v4311_v34  ;;  %v4313_v35 = vadd.f32 %v4312_v43, %v17573_v61  ;;  %v4314_v63 = vpop.f32.mrf.mxu1  ;;  %v3654_v2 = vadd.f32 %v3653_v8, %v17551_v57  ;;  %v17690_v53 = vpack.c.bf16 %v3847_v3, %v3845_v44  ;;  %v21190_v3 = vld [vmem:[#allocation35_spill] sm:$0xff] }
 0x21d   : > { %21187 = vst [vmem:[#allocation34_spill] sm:$0xff] %v17684_v16  ;;  %v4315_v6 = vadd.f32 %v4314_v63, %v17554_v41  ;;  %v17692_v39 = vpack.c.bf16 %v4508_v21, %v4506_v45  ;;  %v3785_v29 = vmul.f32 0.2, %v3652_v14  ;;  %v3655_v36 = vpop.f32.mrf.mxu0  ;;  %v17695_v18 = vsel %vm1238_vm0, %v5438_v42, %v5439_v30  ;;  %v21191_v45 = vld [vmem:[#allocation36_spill] sm:$0xff] }
 0x21e   : > { %21188 = vst [vmem:[#allocation146_spill] sm:$0xff] %v17690_v53  ;;  %v4446_v12 = vmul.f32 0.2, %v4313_v35  ;;  %v4316_v4 = vpop.f32.mrf.mxu1  ;;  %v3786_v62 = vmul.f32 0.2, %v3654_v2  ;;  %v3656_v24 = vadd.f32 %v3655_v36, %v17563_v26  ;;  %v3848_v43 = vmax.f32 %v3650_v32, %v3784_v37  ;;  %v21215_v53 = vld [vmem:[#allocation51_spill] sm:$0xff] }
 0x21f   : > { %21189 = vst [vmem:[#allocation147_spill] sm:$0xff] %v17692_v39  ;;  %v4447_v23 = vmul.f32 0.2, %v4315_v6  ;;  %v4317_v56 = vadd.f32 %v4316_v4, %v17573_v61  ;;  %v4509_v8 = vmax.f32 %v4311_v34, %v4445_v51  ;;  %v3659_v63 = vpop.f32.mrf.mxu0  ;;  %v17702_v21 = vsel %vm1238_vm0, %v5439_v30, %v5441_v1 }
 0x220   : > { %v4320_v44 = vpop.f32.mrf.mxu1  ;;  %v3850_v16 = vmax.f32 %v3654_v2, %v3786_v62  ;;  %v3787_v39 = vmul.f32 0.2, %v3656_v24  ;;  %v3849_v36 = vmax.f32 %v3652_v14, %v3785_v29  ;;  %v4510_v32 = vmax.f32 %v4313_v35, %v4446_v12 }
 0x221   : > { %5053 = vmatmul.mubr.bf16.gmra.mxu0 %v21190_v3  ;;  %5717 = vmatmul.mubr.bf16.gmra.mxu1 %v21191_v45  ;;  %v4511_v42 = vmax.f32 %v4315_v6, %v4447_v23  ;;  %v4448_v52 = vmul.f32 0.2, %v4317_v56  ;;  %v3660_v34 = vadd.f32 %v3659_v63, %v17551_v57  ;;  %v4321_v37 = vadd.f32 %v4320_v44, %v17554_v41  ;;  %v3661_v51 = vpop.f32.mrf.mxu0 }
 0x222   : > { %5062 = vmatprep.mubr.bf16.mxu0 %v21004_v49  ;;  %5726 = vmatprep.mubr.bf16.mxu1 %v21004_v49  ;;  %v4322_v4 = vpop.f32.mrf.mxu1  ;;  %v17708_v3 = vpack.c.bf16 %v3850_v16, %v3848_v43  ;;  %v3851_v1 = vmax.f32 %v3656_v24, %v3787_v39  ;;  %v3662_v23 = vadd.f32 %v3661_v51, %v17563_v26 }
 0x223   : > { %v17710_v30 = vpack.c.bf16 %v4511_v42, %v4509_v8  ;;  %v4512_v2 = vmax.f32 %v4317_v56, %v4448_v52  ;;  %v3788_v6 = vmul.f32 0.2, %v3660_v34  ;;  %v4449_v62 = vmul.f32 0.2, %v4321_v37  ;;  %v3663_v14 = vpop.f32.mrf.mxu0 }
 0x224   : > { %21192 = vst [vmem:[#allocation35_spill] sm:$0xff] %v17708_v3  ;;  %v4323_v45 = vadd.f32 %v4322_v4, %v17573_v61  ;;  %v4324_v35 = vpop.f32.mrf.mxu1  ;;  %v3664_v29 = vadd.f32 %v3663_v14, %v17551_v57  ;;  %v17716_v63 = vpack.c.bf16 %v3851_v1, %v3849_v36  ;;  %v3789_v43 = vmul.f32 0.2, %v3662_v23  ;;  %v21196_v1 = vld [vmem:[#allocation66_spill] sm:$0xff] }
 0x225   : > { %21193 = vst [vmem:[#allocation36_spill] sm:$0xff] %v17710_v30  ;;  %v4325_v12 = vadd.f32 %v4324_v35, %v17554_v41  ;;  %v17718_v16 = vpack.c.bf16 %v4512_v2, %v4510_v32  ;;  %v3665_v39 = vpop.f32.mrf.mxu0  ;;  %v4781_v24 = vpack.c.bf16 %v17646_v50, %v17644_v17  ;;  %v3852_v4 = vmax.f32 %v3660_v34, %v3788_v6  ;;  %v21197_v32 = vld [vmem:[#allocation123_spill] sm:$0xff] }
 0x226   : > { %21194 = vst [vmem:[#allocation148_spill] sm:$0xff] %v17716_v63  ;;  %v4450_v8 = vmul.f32 0.2, %v4323_v45  ;;  %v4326_v52 = vpop.f32.mrf.mxu1  ;;  %v3790_v56 = vmul.f32 0.2, %v3664_v29  ;;  %v3666_v42 = vadd.f32 %v3665_v39, %v17563_v26  ;;  %v4513_v14 = vmax.f32 %v4321_v37, %v4449_v62 }
 0x227   : > { %21195 = vst [vmem:[#allocation149_spill] sm:$0xff] %v17718_v16  ;;  %v4451_v44 = vmul.f32 0.2, %v4325_v12  ;;  %v4327_v51 = vadd.f32 %v4326_v52, %v17573_v61  ;;  %v3669_v35 = vpop.f32.mrf.mxu0  ;;  %v5445_v2 = vpack.c.bf16 %v17702_v21, %v17695_v18  ;;  %v3853_v39 = vmax.f32 %v3662_v23, %v3789_v43 }
 0x228   : > { %v4330_v36 = vpop.f32.mrf.mxu1  ;;  %v3854_v30 = vmax.f32 %v3664_v29, %v3790_v56  ;;  %v3791_v3 = vmul.f32 0.2, %v3666_v42  ;;  %v4514_v34 = vmax.f32 %v4323_v45, %v4450_v8  ;;  %v3670_v37 = vadd.f32 %v3669_v35, %v17551_v57 }
 0x229   : > { %5063 = vmatmul.mubr.bf16.gmra.mxu0 %v21196_v1  ;;  %5727 = vmatmul.mubr.bf16.gmra.mxu1 %v21197_v32  ;;  %v4515_v16 = vmax.f32 %v4325_v12, %v4451_v44  ;;  %v4452_v63 = vmul.f32 0.2, %v4327_v51  ;;  %v4331_v6 = vadd.f32 %v4330_v36, %v17554_v41  ;;  %v3671_v62 = vpop.f32.mrf.mxu0 }
 0x22a   : > { %5072 = vmatprep.mubr.bf16.mxu0 %v21004_v49  ;;  %5736 = vmatprep.mubr.bf16.mxu1 %v21004_v49  ;;  %v4332_v52 = vpop.f32.mrf.mxu1  ;;  %v17732_v1 = vpack.c.bf16 %v3854_v30, %v3852_v4  ;;  %v3855_v18 = vmax.f32 %v3666_v42, %v3791_v3  ;;  %v3792_v29 = vmul.f32 0.2, %v3670_v37  ;;  %v3672_v56 = vadd.f32 %v3671_v62, %v17563_v26 }
 0x22b   : > { %v17734_v32 = vpack.c.bf16 %v4515_v16, %v4513_v14  ;;  %v4516_v21 = vmax.f32 %v4327_v51, %v4452_v63  ;;  %v4453_v12 = vmul.f32 0.2, %v4331_v6  ;;  %v4333_v44 = vadd.f32 %v4332_v52, %v17573_v61  ;;  %v3673_v23 = vpop.f32.mrf.mxu0 }
 0x22c   : > { %21198 = vst [vmem:[#allocation66_spill] sm:$0xff] %v17732_v1  ;;  %v4334_v45 = vpop.f32.mrf.mxu1  ;;  %v3674_v43 = vadd.f32 %v3673_v23, %v17551_v57  ;;  %v17740_v35 = vpack.c.bf16 %v3855_v18, %v3853_v39  ;;  %v3793_v16 = vmul.f32 0.2, %v3672_v56  ;;  %v3856_v62 = vmax.f32 %v3670_v37, %v3792_v29 }
 0x22d   : > { %21199 = vst [vmem:[#allocation123_spill] sm:$0xff] %v17734_v32  ;;  %v4335_v8 = vadd.f32 %v4334_v45, %v17554_v41  ;;  %v17742_v30 = vpack.c.bf16 %v4516_v21, %v4514_v34  ;;  %v4454_v4 = vmul.f32 0.2, %v4333_v44  ;;  %v3675_v3 = vpop.f32.mrf.mxu0  ;;  %v4517_v52 = vmax.f32 %v4331_v6, %v4453_v12  ;;  %v21202_v45 = vld [vmem:[#allocation43_spill] sm:$0xff] }
 0x22e   : > { %21200 = vst [vmem:[#allocation150_spill] sm:$0xff] %v17740_v35  ;;  %v4336_v63 = vpop.f32.mrf.mxu1  ;;  %v3794_v42 = vmul.f32 0.2, %v3674_v43  ;;  %v3676_v14 = vadd.f32 %v3675_v3, %v17563_v26 }
 0x22f   : > { %21201 = vst [vmem:[#allocation151_spill] sm:$0xff] %v17742_v30  ;;  %v4455_v51 = vmul.f32 0.2, %v4335_v8  ;;  %v4337_v36 = vadd.f32 %v4336_v63, %v17573_v61  ;;  %v3679_v32 = vpop.f32.mrf.mxu0  ;;  %v3857_v30 = vmax.f32 %v3672_v56, %v3793_v16  ;;  %v4518_v1 = vmax.f32 %v4333_v44, %v4454_v4 }
 0x230   : > { %v4340_v23 = vpop.f32.mrf.mxu1  ;;  %v3858_v39 = vmax.f32 %v3674_v43, %v3794_v42  ;;  %v3795_v34 = vmul.f32 0.2, %v3676_v14  ;;  %v3680_v3 = vadd.f32 %v3679_v32, %v17551_v57 }
 0x231   : > { %5073 = vmatmul.mubr.bf16.gmra.mxu0 %v4781_v24  ;;  %5737 = vmatmul.mubr.bf16.gmra.mxu1 %v5445_v2  ;;  %v4519_v18 = vmax.f32 %v4335_v8, %v4455_v51  ;;  %v4456_v21 = vmul.f32 0.2, %v4337_v36  ;;  %v4341_v63 = vadd.f32 %v4340_v23, %v17554_v41  ;;  %v3681_v37 = vpop.f32.mrf.mxu0  ;;  %v14952_v23 = vld [vmem:[%s20905_s4 + $0x170] ss:$8 sps:$4 sm:$0xff]  }
 0x232   : > { %10260 = vmatprep.mubr.bf16.mxu1 %v21202_v45  ;;  %6247 = vmatprep.mubr.bf16.mxu0 %v21004_v49  ;;  %v4342_v6 = vpop.f32.mrf.mxu1  ;;  %v17750_v29 = vpack.c.bf16 %v3858_v39, %v3856_v62  ;;  %v3859_v2 = vmax.f32 %v3676_v14, %v3795_v34  ;;  %v3796_v43 = vmul.f32 0.2, %v3680_v3  ;;  %v3682_v42 = vadd.f32 %v3681_v37, %v17563_v26  ;;  %v14955_v39 = vld [vmem:[%s20905_s4 + $0x270] ss:$8 sps:$4 sm:$0xff]  }
 0x233   : > { %v17752_v24 = vpack.c.bf16 %v4519_v18, %v4517_v52  ;;  %v4520_v12 = vmax.f32 %v4337_v36, %v4456_v21  ;;  %v4457_v8 = vmul.f32 0.2, %v4341_v63  ;;  %v17756_v51 = vadd.f32 %v4342_v6, %v17573_v61  ;;  %v3683_v56 = vpop.f32.mrf.mxu0 }
 0x234   : > { %21203 = vst [vmem:[#allocation43_spill] sm:$0xff] %v17750_v29  ;;  %v4344_v44 = vpop.f32.mrf.mxu1  ;;  %v3684_v32 = vadd.f32 %v3683_v56, %v17551_v57  ;;  %v17760_v4 = vpack.c.bf16 %v3859_v2, %v3857_v30  ;;  %v3797_v52 = vmul.f32 0.2, %v3682_v42  ;;  %v3860_v45 = vmax.f32 %v3680_v3, %v3796_v43  ;;  %v21208_v56 = vld [vmem:[#allocation39_spill] sm:$0xff] }
 0x235   : > { %21204 = vst [vmem:[#allocation152_spill] sm:$0xff] %v17752_v24  ;;  %v4345_v16 = vadd.f32 %v4344_v44, %v17554_v41  ;;  %v17762_v62 = vpack.c.bf16 %v4520_v12, %v4518_v1  ;;  %v3685_v14 = vpop.f32.mrf.mxu0  ;;  %v14960_v1 = vld [vmem:[%s20905_s4 + $0x164] ss:$8 sps:$4 sm:$0xff]   ;;  %v4521_v37 = vmax.f32 %v4341_v63, %v4457_v8 }
 0x236   : > { %21205 = vst [vmem:[#allocation153_spill] sm:$0xff] %v17760_v4  ;;  %v4346_v36 = vpop.f32.mrf.mxu1  ;;  %v3798_v18 = vmul.f32 0.2, %v3684_v32  ;;  %v3686_v21 = vadd.f32 %v3685_v14, %v17563_v26  ;;  %v21207_v12 = vld [vmem:[#allocation11_spill] sm:$0xff]  ;;  %v17783_v14 = vmul.f32 0.2, %v17756_v51 }
 0x237   : > { %21206 = vst [vmem:[#allocation154_spill] sm:$0xff] %v17762_v62  ;;  %v4459_v34 = vmul.f32 0.2, %v4345_v16  ;;  %v17772_v30 = vadd.f32 %v4346_v36, %v17573_v61  ;;  %v3689_v6 = vpop.f32.mrf.mxu0  ;;  %v14963_v44 = vld [vmem:[%s20905_s4 + $0x264] ss:$8 sps:$4 sm:$0xff]   ;;  %v21214_v4 = vld [vmem:[#allocation45_spill] sm:$0xff] }
 0x238   : > { %v4350_v2 = vpop.f32.mrf.mxu1  ;;  %v3862_v36 = vmax.f32 %v3684_v32, %v3798_v18  ;;  %v3799_v62 = vmul.f32 0.2, %v3686_v21  ;;  %v21209_v29 = vld [vmem:[#allocation47_spill] sm:$0xff]  ;;  %v17791_v63 = vadd.f32 %v3689_v6, %v17551_v57 }
 0x239   : > { %6248 = vmatmul.mubr.bf16.vlgmr.msra.gmra.mxu0 %v21207_v12  ;;  %10261 = vmatmul.mubr.bf16.vlgmr.msra.gmra.mxu1 %v21208_v56  ;;  %v4523_v24 = vmax.f32 %v4345_v16, %v4459_v34  ;;  %v17788_v3 = vmul.f32 0.2, %v17772_v30  ;;  %v17794_v43 = vadd.f32 %v4350_v2, %v17554_v41  ;;  %v3691_v8 = vpop.f32.mrf.mxu0  ;;  %v14958_v32 = vld [vmem:[%s20905_s4 + $0x160] ss:$8 sps:$4 sm:$0xff]   ;;  %v3861_v16 = vmax.f32 %v3682_v42, %v3797_v52 }
 0x23a   : > { %10270 = vmatprep.mubr.bf16.mxu1 %v21209_v29  ;;  %6257 = vmatprep.mubr.bf16.mxu0 %v21004_v49  ;;  %v4352_v12 = vpop.f32.mrf.mxu1  ;;  %v14961_v29 = vld [vmem:[%s20905_s4 + $0x260] ss:$8 sps:$4 sm:$0xff]   ;;  %v17802_v18 = vpack.c.bf16 %v3862_v36, %v3860_v45  ;;  %v3863_v6 = vmax.f32 %v3686_v21, %v3799_v62  ;;  %v3800_v2 = vmul.f32 0.2, %v17791_v63  ;;  %v17815_v42 = vadd.f32 %v3691_v8, %v17563_v26 }
 0x23b   : > { %10422 = vmatpush1.bf16.msra.mxu0 %v14952_v23  ;;  %10615 = vmatpush1.bf16.msra.mxu1 %v14955_v39  ;;  %v17804_v34 = vpack.c.bf16 %v4523_v24, %v4521_v37  ;;  %v14966_v23 = vld [vmem:[%s20905_s4 + $0x154] ss:$8 sps:$4 sm:$0xff]   ;;  %v4461_v56 = vmul.f32 0.2, %v17794_v43  ;;  %v17818_v24 = vadd.f32 %v4352_v12, %v17573_v61  ;;  %v3693_v62 = vpop.f32.mrf.mxu0  ;;  %v4522_v21 = vmax.f32 %v17756_v51, %v17783_v14  ;;  %v14964_v37 = vld [vmem:[%s20905_s4 + $0x150] ss:$8 sps:$4 sm:$0xff]  }
 0x23c   : > { %21210 = vst [vmem:[#allocation11_spill] sm:$0xff] %v17802_v18  ;;  %10423 = vmatprep.subr.bf16.mxu0 %v14960_v1  ;;  %v14969_v39 = vld [vmem:[%s20905_s4 + $0x254] ss:$8 sps:$4 sm:$0xff]   ;;  %v4354_v52 = vpop.f32.mrf.mxu1  ;;  %10616 = vmatprep.subr.bf16.mxu1 %v14963_v44  ;;  %v3694_v1 = vadd.f32 %v3693_v62, %v17551_v57  ;;  %v17827_v36 = vpack.c.bf16 %v3863_v6, %v3861_v16  ;;  %v3801_v44 = vmul.f32 0.2, %v17815_v42 }
 0x23d   : > { %21211 = vst [vmem:[#allocation39_spill] sm:$0xff] %v17804_v34  ;;  %v4355_v45 = vadd.f32 %v4354_v52, %v17554_v41  ;;  %v4524_v8 = vmax.f32 %v17772_v30, %v17788_v3  ;;  %v3864_v12 = vmax.f32 %v17791_v63, %v3800_v2  ;;  %v4462_v34 = vmul.f32 0.2, %v17818_v24  ;;  %v3695_v51 = vpop.f32.mrf.mxu0  ;;  %v14967_v62 = vld [vmem:[%s20905_s4 + $0x250] ss:$8 sps:$4 sm:$0xff]  }
 0x23e   : > { %21212 = vst [vmem:[#allocation47_spill] sm:$0xff] %v17827_v36  ;;  %v4356_v14 = vpop.f32.mrf.mxu1  ;;  %v3802_v52 = vmul.f32 0.2, %v3694_v1  ;;  %v3696_v6 = vadd.f32 %v3695_v51, %v17563_v26  ;;  %v14972_v3 = vld [vmem:[%s20905_s4 + $0x144] ss:$8 sps:$4 sm:$0xff]   ;;  %v4525_v63 = vmax.f32 %v17794_v43, %v4461_v56  ;;  %v21213_v36 = vld [vmem:[#allocation12_spill] sm:$0xff] }
 0x23f   : > { %10424 = vmatpush1.bf16.msra.mxu0 %v14958_v32  ;;  %10617 = vmatpush1.bf16.msra.mxu1 %v14961_v29  ;;  %v4463_v16 = vmul.f32 0.2, %v4355_v45  ;;  %v4357_v30 = vadd.f32 %v4356_v14, %v17573_v61  ;;  %v3865_v32 = vmax.f32 %v17815_v42, %v3801_v44  ;;  %v4526_v29 = vmax.f32 %v17818_v24, %v4462_v34  ;;  %v3699_v2 = vpop.f32.mrf.mxu0  ;;  %v14970_v42 = vld [vmem:[%s20905_s4 + $0x140] ss:$8 sps:$4 sm:$0xff]   ;;  %v14981_v44 = vld [vmem:[%s20905_s4 + $0x234] ss:$8 sps:$4 sm:$0xff]  }
 0x240   : > { %10425 = vmatprep.subr.bf16.mxu0 %v14966_v23  ;;  %10618 = vmatprep.subr.bf16.mxu1 %v14969_v39  ;;  %v4360_v18 = vpop.f32.mrf.mxu1  ;;  %v14975_v23 = vld [vmem:[%s20905_s4 + $0x244] ss:$8 sps:$4 sm:$0xff]   ;;  %v3866_v39 = vmax.f32 %v3694_v1, %v3802_v52  ;;  %v3803_v14 = vmul.f32 0.2, %v3696_v6  ;;  %v17853_v43 = vadd.f32 %v3699_v2, %v17551_v57  ;;  %v17864_v24 = vpack.c.bf16 %v4524_v8, %v4522_v21 }
 0x241   : > { %6258 = vmatmul.mubr.bf16.gmra.mxu0 %v21213_v36  ;;  %10271 = vmatmul.mubr.bf16.gmra.mxu1 %v21214_v4  ;;  %v4527_v51 = vmax.f32 %v4355_v45, %v4463_v16  ;;  %v4464_v35 = vmul.f32 0.2, %v4357_v30  ;;  %v17856_v34 = vadd.f32 %v4360_v18, %v17554_v41  ;;  %v3701_v56 = vpop.f32.mrf.mxu0 }
 0x242   : > { %10280 = vmatprep.mubr.bf16.mxu1 %v21215_v53  ;;  %6267 = vmatprep.mubr.bf16.mxu0 %v21004_v49  ;;  %v4362_v4 = vpop.f32.mrf.mxu1  ;;  %v14973_v53 = vld [vmem:[%s20905_s4 + $0x240] ss:$8 sps:$4 sm:$0xff]   ;;  %21216 = vst [vmem:[#allocation12_spill] sm:$0xff] %v17864_v24  ;;  %v17866_v1 = vpack.c.bf16 %v3866_v39, %v3864_v12  ;;  %v3867_v18 = vmax.f32 %v3696_v6, %v3803_v14 }
 0x243   : > { %10426 = vmatpush1.bf16.msra.mxu0 %v14964_v37  ;;  %10619 = vmatpush1.bf16.msra.mxu1 %v14967_v62  ;;  %v17868_v45 = vpack.c.bf16 %v4527_v51, %v4525_v63  ;;  %v4528_v36 = vmax.f32 %v4357_v30, %v4464_v35  ;;  %v14978_v37 = vld [vmem:[%s20905_s4 + $0x134] ss:$8 sps:$4 sm:$0xff]   ;;  %v3804_v62 = vmul.f32 0.2, %v17853_v43  ;;  %v4465_v21 = vmul.f32 0.2, %v17856_v34  ;;  %v3703_v35 = vpop.f32.mrf.mxu0 }
 0x244   : > { %21217 = vst [vmem:[#allocation45_spill] sm:$0xff] %v17866_v1  ;;  %10427 = vmatprep.subr.bf16.mxu0 %v14972_v3  ;;  %v17879_v8 = vadd.f32 %v3701_v56, %v17563_v26  ;;  %v17882_v12 = vadd.f32 %v4362_v4, %v17573_v61  ;;  %v4364_v52 = vpop.f32.mrf.mxu1  ;;  %10620 = vmatprep.subr.bf16.mxu1 %v14975_v23  ;;  %v14976_v30 = vld [vmem:[%s20905_s4 + $0x130] ss:$8 sps:$4 sm:$0xff]  }
 0x245   : > { %21218 = vst [vmem:[#allocation51_spill] sm:$0xff] %v17868_v45  ;;  %v3704_v16 = vadd.f32 %v3703_v35, %v17551_v57  ;;  %v4365_v6 = vadd.f32 %v4364_v52, %v17554_v41  ;;  %v17889_v3 = vpack.c.bf16 %v3867_v18, %v3865_v32  ;;  %v17891_v63 = vpack.c.bf16 %v4528_v36, %v4526_v29  ;;  %v3705_v51 = vpop.f32.mrf.mxu0  ;;  %v14979_v23 = vld [vmem:[%s20905_s4 + $0x230] ss:$8 sps:$4 sm:$0xff]   ;;  %v14984_v29 = vld [vmem:[%s20905_s4 + $0x124] ss:$8 sps:$4 sm:$0xff]  }
 0x246   : > { %v3805_v2 = vmul.f32 0.2, %v17879_v8  ;;  %v4466_v39 = vmul.f32 0.2, %v17882_v12  ;;  %v4366_v14 = vpop.f32.mrf.mxu1  ;;  %v3706_v35 = vadd.f32 %v3705_v51, %v17563_v26  ;;  %v3868_v18 = vmax.f32 %v17853_v43, %v3804_v62  ;;  %v21221_v45 = vld [vmem:[#allocation13_spill] sm:$0xff]  ;;  %v21223_v1 = vld [vmem:[#allocation56_spill] sm:$0xff] }
 0x247   : > { %21219 = vst [vmem:[#allocation155_spill] sm:$0xff] %v17889_v3  ;;  %21220 = vst [vmem:[#allocation156_spill] sm:$0xff] %v17891_v63  ;;  %10428 = vmatpush1.bf16.msra.mxu0 %v14970_v42  ;;  %10621 = vmatpush1.bf16.msra.mxu1 %v14973_v53  ;;  %v3806_v56 = vmul.f32 0.2, %v3704_v16  ;;  %v4467_v4 = vmul.f32 0.2, %v4365_v6  ;;  %v4367_v32 = vadd.f32 %v4366_v14, %v17573_v61  ;;  %v3709_v36 = vpop.f32.mrf.mxu0 }
 0x248   : > { %10429 = vmatprep.subr.bf16.mxu0 %v14978_v37  ;;  %10622 = vmatprep.subr.bf16.mxu1 %v14981_v44  ;;  %v4529_v42 = vmax.f32 %v17856_v34, %v4465_v21  ;;  %v3869_v53 = vmax.f32 %v17879_v8, %v3805_v2  ;;  %v4370_v52 = vpop.f32.mrf.mxu1  ;;  %v21222_v63 = vld [vmem:[#allocation49_spill] sm:$0xff]  ;;  %v14987_v37 = vld [vmem:[%s20905_s4 + $0x224] ss:$8 sps:$4 sm:$0xff]   ;;  %v3807_v14 = vmul.f32 0.2, %v3706_v35  ;;  %v4530_v43 = vmax.f32 %v17882_v12, %v4466_v39 }
 0x249   : > { %6268 = vmatmul.mubr.bf16.gmra.mxu0 %v21221_v45  ;;  %10281 = vmatmul.mubr.bf16.gmra.mxu1 %v21222_v63  ;;  %v3870_v44 = vmax.f32 %v3704_v16, %v3806_v56  ;;  %v4531_v51 = vmax.f32 %v4365_v6, %v4467_v4  ;;  %v4468_v24 = vmul.f32 0.2, %v4367_v32  ;;  %v17915_v34 = vadd.f32 %v3709_v36, %v17551_v57  ;;  %v3711_v62 = vpop.f32.mrf.mxu0  ;;  %v14982_v8 = vld [vmem:[%s20905_s4 + $0x120] ss:$8 sps:$4 sm:$0xff]   ;;  %v14993_v2 = vld [vmem:[%s20905_s4 + $0x214] ss:$8 sps:$4 sm:$0xff]  }
 0x24a   : > { %10290 = vmatprep.mubr.bf16.mxu1 %v21223_v1  ;;  %6277 = vmatprep.mubr.bf16.mxu0 %v21004_v49  ;;  %v17918_v45 = vadd.f32 %v4370_v52, %v17554_v41  ;;  %v4372_v21 = vpop.f32.mrf.mxu1  ;;  %v14985_v1 = vld [vmem:[%s20905_s4 + $0x220] ss:$8 sps:$4 sm:$0xff]   ;;  %v3871_v6 = vmax.f32 %v3706_v35, %v3807_v14  ;;  %v17939_v56 = vadd.f32 %v3711_v62, %v17563_v26 }
 0x24b   : > { %10430 = vmatpush1.bf16.msra.mxu0 %v14976_v30  ;;  %10623 = vmatpush1.bf16.msra.mxu1 %v14979_v23  ;;  %v17926_v16 = vpack.c.bf16 %v3870_v44, %v3868_v18  ;;  %v17928_v12 = vpack.c.bf16 %v4531_v51, %v4529_v42  ;;  %v4532_v63 = vmax.f32 %v4367_v32, %v4468_v24  ;;  %v14990_v30 = vld [vmem:[%s20905_s4 + $0x114] ss:$8 sps:$4 sm:$0xff]   ;;  %v3808_v39 = vmul.f32 0.2, %v17915_v34  ;;  %v3713_v24 = vpop.f32.mrf.mxu0  ;;  %v14988_v18 = vld [vmem:[%s20905_s4 + $0x110] ss:$8 sps:$4 sm:$0xff]  }
 0x24c   : > { %10431 = vmatprep.subr.bf16.mxu0 %v14984_v29  ;;  %v4469_v23 = vmul.f32 0.2, %v17918_v45  ;;  %v17942_v4 = vadd.f32 %v4372_v21, %v17573_v61  ;;  %v4374_v35 = vpop.f32.mrf.mxu1  ;;  %10624 = vmatprep.subr.bf16.mxu1 %v14987_v37  ;;  %v3714_v32 = vadd.f32 %v3713_v24, %v17551_v57  ;;  %v17949_v42 = vpack.c.bf16 %v3871_v6, %v3869_v53  ;;  %v14991_v37 = vld [vmem:[%s20905_s4 + $0x210] ss:$8 sps:$4 sm:$0xff]  }
 0x24d   : > { %21224 = vst [vmem:[#allocation13_spill] sm:$0xff] %v17926_v16  ;;  %21225 = vst [vmem:[#allocation49_spill] sm:$0xff] %v17928_v12  ;;  %v4375_v29 = vadd.f32 %v4374_v35, %v17554_v41  ;;  %v17951_v36 = vpack.c.bf16 %v4532_v63, %v4530_v43  ;;  %v3809_v52 = vmul.f32 0.2, %v17939_v56  ;;  %v3715_v51 = vpop.f32.mrf.mxu0  ;;  %v14996_v43 = vld [vmem:[%s20905_s4 + $0x104] ss:$8 sps:$4 sm:$0xff]   ;;  %v3872_v6 = vmax.f32 %v17915_v34, %v3808_v39 }
 0x24e   : > { %21226 = vst [vmem:[#allocation56_spill] sm:$0xff] %v17949_v42  ;;  %v4470_v44 = vmul.f32 0.2, %v17942_v4  ;;  %v4376_v14 = vpop.f32.mrf.mxu1  ;;  %v3810_v62 = vmul.f32 0.2, %v3714_v32  ;;  %v3716_v24 = vadd.f32 %v3715_v51, %v17563_v26  ;;  %v21228_v12 = vld [vmem:[#allocation14_spill] sm:$0xff] }
 0x24f   : > { %21227 = vst [vmem:[#allocation157_spill] sm:$0xff] %v17951_v36  ;;  %10432 = vmatpush1.bf16.msra.mxu0 %v14982_v8  ;;  %10625 = vmatpush1.bf16.msra.mxu1 %v14985_v1  ;;  %v4471_v21 = vmul.f32 0.2, %v4375_v29  ;;  %v4377_v53 = vadd.f32 %v4376_v14, %v17573_v61  ;;  %v4533_v8 = vmax.f32 %v17918_v45, %v4469_v23  ;;  %v3719_v63 = vpop.f32.mrf.mxu0  ;;  %v21229_v36 = vld [vmem:[#allocation54_spill] sm:$0xff]  ;;  %v21230_v42 = vld [vmem:[#allocation61_spill] sm:$0xff] }
 0x250   : > { %10433 = vmatprep.subr.bf16.mxu0 %v14990_v30  ;;  %10626 = vmatprep.subr.bf16.mxu1 %v14993_v2  ;;  %v3873_v1 = vmax.f32 %v17939_v56, %v3809_v52  ;;  %v4380_v35 = vpop.f32.mrf.mxu1  ;;  %v14999_v30 = vld [vmem:[%s20905_s4 + $0x204] ss:$8 sps:$4 sm:$0xff]   ;;  %v3874_v2 = vmax.f32 %v3714_v32, %v3810_v62  ;;  %v3811_v14 = vmul.f32 0.2, %v3716_v24  ;;  %v4534_v34 = vmax.f32 %v17942_v4, %v4470_v44  ;;  %v14994_v56 = vld [vmem:[%s20905_s4 + $0x100] ss:$8 sps:$4 sm:$0xff]  }
 0x251   : > { %6278 = vmatmul.mubr.bf16.gmra.mxu0 %v21228_v12  ;;  %10291 = vmatmul.mubr.bf16.gmra.mxu1 %v21229_v36  ;;  %v4535_v51 = vmax.f32 %v4375_v29, %v4471_v21  ;;  %v4472_v16 = vmul.f32 0.2, %v4377_v53  ;;  %v17975_v45 = vadd.f32 %v3719_v63, %v17551_v57  ;;  %v17978_v12 = vadd.f32 %v4380_v35, %v17554_v41  ;;  %v3721_v39 = vpop.f32.mrf.mxu0  ;;  %v14997_v32 = vld [vmem:[%s20905_s4 + $0x200] ss:$8 sps:$4 sm:$0xff]   ;;  %v15005_v52 = vld [vmem:[%s20905_s4 + $0x2f4] ss:$8 sps:$4 sm:$0xff]  }
 0x252   : > { %10300 = vmatprep.mubr.bf16.mxu1 %v21230_v42  ;;  %6287 = vmatprep.mubr.bf16.mxu0 %v21004_v49  ;;  %v4382_v23 = vpop.f32.mrf.mxu1  ;;  %v17986_v29 = vpack.c.bf16 %v3874_v2, %v3872_v6  ;;  %v3875_v42 = vmax.f32 %v3716_v24, %v3811_v14  ;;  %v17999_v62 = vadd.f32 %v3721_v39, %v17563_v26  ;;  %v15000_v6 = vld [vmem:[%s20905_s4 + $0x1f0] ss:$8 sps:$4 sm:$0xff]  }
 0x253   : > { %10434 = vmatpush1.bf16.msra.mxu0 %v14988_v18  ;;  %10627 = vmatpush1.bf16.msra.mxu1 %v14991_v37  ;;  %v17988_v4 = vpack.c.bf16 %v4535_v51, %v4533_v8  ;;  %v4536_v36 = vmax.f32 %v4377_v53, %v4472_v16  ;;  %v15002_v18 = vld [vmem:[%s20905_s4 + $0x1f4] ss:$8 sps:$4 sm:$0xff]   ;;  %v3812_v44 = vmul.f32 0.2, %v17975_v45  ;;  %v4473_v37 = vmul.f32 0.2, %v17978_v12  ;;  %v3723_v16 = vpop.f32.mrf.mxu0 }
 0x254   : > { %21231 = vst [vmem:[#allocation14_spill] sm:$0xff] %v17986_v29  ;;  %10435 = vmatprep.subr.bf16.mxu0 %v14996_v43  ;;  %v18002_v21 = vadd.f32 %v4382_v23, %v17573_v61  ;;  %v4384_v24 = vpop.f32.mrf.mxu1  ;;  %10628 = vmatprep.subr.bf16.mxu1 %v14999_v30  ;;  %v3724_v53 = vadd.f32 %v3723_v16, %v17551_v57  ;;  %v3813_v35 = vmul.f32 0.2, %v17999_v62  ;;  %v15003_v30 = vld [vmem:[%s20905_s4 + $0x2f0] ss:$8 sps:$4 sm:$0xff]  }
 0x255   : > { %21232 = vst [vmem:[#allocation54_spill] sm:$0xff] %v17988_v4  ;;  %v4385_v43 = vadd.f32 %v4384_v24, %v17554_v41  ;;  %v18009_v8 = vpack.c.bf16 %v3875_v42, %v3873_v1  ;;  %v18011_v63 = vpack.c.bf16 %v4536_v36, %v4534_v34  ;;  %v3725_v51 = vpop.f32.mrf.mxu0  ;;  %v15008_v34 = vld [vmem:[%s20905_s4 + $0x1e4] ss:$8 sps:$4 sm:$0xff]   ;;  %v3876_v42 = vmax.f32 %v17975_v45, %v3812_v44  ;;  %v21235_v4 = vld [vmem:[#allocation17_spill] sm:$0xff] }
 0x256   : > { %v4474_v2 = vmul.f32 0.2, %v18002_v21  ;;  %v4386_v14 = vpop.f32.mrf.mxu1  ;;  %v3814_v39 = vmul.f32 0.2, %v3724_v53  ;;  %v3726_v16 = vadd.f32 %v3725_v51, %v17563_v26 }
 0x257   : > { %21233 = vst [vmem:[#allocation61_spill] sm:$0xff] %v18009_v8  ;;  %21234 = vst [vmem:[#allocation158_spill] sm:$0xff] %v18011_v63  ;;  %10436 = vmatpush1.bf16.msra.mxu0 %v14994_v56  ;;  %10629 = vmatpush1.bf16.msra.mxu1 %v14997_v32  ;;  %v4475_v23 = vmul.f32 0.2, %v4385_v43  ;;  %v4387_v1 = vadd.f32 %v4386_v14, %v17573_v61  ;;  %v4537_v56 = vmax.f32 %v17978_v12, %v4473_v37  ;;  %v3729_v36 = vpop.f32.mrf.mxu0  ;;  %v21236_v63 = vld [vmem:[#allocation59_spill] sm:$0xff] }
 0x258   : > { %10437 = vmatprep.subr.bf16.mxu0 %v15002_v18  ;;  %10630 = vmatprep.subr.bf16.mxu1 %v15005_v52  ;;  %v3877_v32 = vmax.f32 %v17999_v62, %v3813_v35  ;;  %v4390_v24 = vpop.f32.mrf.mxu1  ;;  %v15011_v18 = vld [vmem:[%s20905_s4 + $0x2e4] ss:$8 sps:$4 sm:$0xff]   ;;  %v3878_v52 = vmax.f32 %v3724_v53, %v3814_v39  ;;  %v3815_v14 = vmul.f32 0.2, %v3726_v16  ;;  %v4538_v45 = vmax.f32 %v18002_v21, %v4474_v2  ;;  %v15006_v62 = vld [vmem:[%s20905_s4 + $0x1e0] ss:$8 sps:$4 sm:$0xff]  }
 0x259   : > { %6288 = vmatmul.mubr.bf16.gmra.mxu0 %v21235_v4  ;;  %10301 = vmatmul.mubr.bf16.gmra.mxu1 %v21236_v63  ;;  %v4539_v51 = vmax.f32 %v4385_v43, %v4475_v23  ;;  %v4476_v29 = vmul.f32 0.2, %v4387_v1  ;;  %v21237_v8 = vld [vmem:[#allocation71_spill] sm:$0xff]  ;;  %v18035_v12 = vadd.f32 %v3729_v36, %v17551_v57  ;;  %v18038_v4 = vadd.f32 %v4390_v24, %v17554_v41  ;;  %v3731_v44 = vpop.f32.mrf.mxu0  ;;  %v15017_v35 = vld [vmem:[%s20905_s4 + $0x2d4] ss:$8 sps:$4 sm:$0xff]  }
 0x25a   : > { %10310 = vmatprep.mubr.bf16.mxu1 %v21237_v8  ;;  %6297 = vmatprep.mubr.bf16.mxu0 %v21004_v49  ;;  %v4392_v37 = vpop.f32.mrf.mxu1  ;;  %v15009_v53 = vld [vmem:[%s20905_s4 + $0x2e0] ss:$8 sps:$4 sm:$0xff]   ;;  %v18046_v43 = vpack.c.bf16 %v3878_v52, %v3876_v42  ;;  %v3879_v8 = vmax.f32 %v3726_v16, %v3815_v14  ;;  %v18059_v39 = vadd.f32 %v3731_v44, %v17563_v26  ;;  %v15012_v42 = vld [vmem:[%s20905_s4 + $0x1d0] ss:$8 sps:$4 sm:$0xff]  }
 0x25b   : > { %10438 = vmatpush2.bf16.msra.mxu0 %v15000_v6  ;;  %10631 = vmatpush2.bf16.msra.mxu1 %v15003_v30  ;;  %v18048_v21 = vpack.c.bf16 %v4539_v51, %v4537_v56  ;;  %v4540_v63 = vmax.f32 %v4387_v1, %v4476_v29  ;;  %v15014_v6 = vld [vmem:[%s20905_s4 + $0x1d4] ss:$8 sps:$4 sm:$0xff]   ;;  %v3816_v2 = vmul.f32 0.2, %v18035_v12  ;;  %v4477_v30 = vmul.f32 0.2, %v18038_v4  ;;  %v3733_v29 = vpop.f32.mrf.mxu0 }
 0x25c   : > { %21238 = vst [vmem:[#allocation17_spill] sm:$0xff] %v18046_v43  ;;  %10439 = vmatprep.subr.bf16.mxu0 %v15008_v34  ;;  %v18062_v23 = vadd.f32 %v4392_v37, %v17573_v61  ;;  %v4394_v16 = vpop.f32.mrf.mxu1  ;;  %10632 = vmatprep.subr.bf16.mxu1 %v15011_v18  ;;  %v3734_v1 = vadd.f32 %v3733_v29, %v17551_v57  ;;  %v3817_v24 = vmul.f32 0.2, %v18059_v39  ;;  %v15015_v18 = vld [vmem:[%s20905_s4 + $0x2d0] ss:$8 sps:$4 sm:$0xff]  }
 0x25d   : > { %21239 = vst [vmem:[#allocation59_spill] sm:$0xff] %v18048_v21  ;;  %v4395_v34 = vadd.f32 %v4394_v16, %v17554_v41  ;;  %v18069_v56 = vpack.c.bf16 %v3879_v8, %v3877_v32  ;;  %v18071_v36 = vpack.c.bf16 %v4540_v63, %v4538_v45  ;;  %v3735_v51 = vpop.f32.mrf.mxu0  ;;  %v15020_v45 = vld [vmem:[%s20905_s4 + $0x1c4] ss:$8 sps:$4 sm:$0xff]   ;;  %v3880_v8 = vmax.f32 %v18035_v12, %v3816_v2  ;;  %v21242_v21 = vld [vmem:[#allocation20_spill] sm:$0xff] }
 0x25e   : > { %v4478_v52 = vmul.f32 0.2, %v18062_v23  ;;  %v4396_v14 = vpop.f32.mrf.mxu1  ;;  %v3818_v44 = vmul.f32 0.2, %v3734_v1  ;;  %v3736_v29 = vadd.f32 %v3735_v51, %v17563_v26 }
 0x25f   : > { %21240 = vst [vmem:[#allocation71_spill] sm:$0xff] %v18069_v56  ;;  %21241 = vst [vmem:[#allocation159_spill] sm:$0xff] %v18071_v36  ;;  %10440 = vmatpush2.bf16.msra.mxu0 %v15006_v62  ;;  %10633 = vmatpush2.bf16.msra.mxu1 %v15009_v53  ;;  %v4479_v37 = vmul.f32 0.2, %v4395_v34  ;;  %v4397_v32 = vadd.f32 %v4396_v14, %v17573_v61  ;;  %v4541_v62 = vmax.f32 %v18038_v4, %v4477_v30  ;;  %v3739_v63 = vpop.f32.mrf.mxu0  ;;  %v21243_v36 = vld [vmem:[#allocation63_spill] sm:$0xff]  ;;  %v21244_v56 = vld [vmem:[#allocation72_spill] sm:$0xff] }
 0x260   : > { %10441 = vmatprep.subr.bf16.mxu0 %v15014_v6  ;;  %10634 = vmatprep.subr.bf16.mxu1 %v15017_v35  ;;  %v3881_v53 = vmax.f32 %v18059_v39, %v3817_v24  ;;  %v4400_v16 = vpop.f32.mrf.mxu1  ;;  %v15023_v6 = vld [vmem:[%s20905_s4 + $0x2c4] ss:$8 sps:$4 sm:$0xff]   ;;  %v3882_v35 = vmax.f32 %v3734_v1, %v3818_v44  ;;  %v3819_v14 = vmul.f32 0.2, %v3736_v29  ;;  %v4542_v12 = vmax.f32 %v18062_v23, %v4478_v52  ;;  %v15018_v39 = vld [vmem:[%s20905_s4 + $0x1c0] ss:$8 sps:$4 sm:$0xff]  }
 0x261   : > { %6298 = vmatmul.mubr.bf16.gmra.mxu0 %v21242_v21  ;;  %10311 = vmatmul.mubr.bf16.gmra.mxu1 %v21243_v36  ;;  %v4543_v51 = vmax.f32 %v4395_v34, %v4479_v37  ;;  %v4480_v43 = vmul.f32 0.2, %v4397_v32  ;;  %v18095_v4 = vadd.f32 %v3739_v63, %v17551_v57  ;;  %v18098_v21 = vadd.f32 %v4400_v16, %v17554_v41  ;;  %v3741_v2 = vpop.f32.mrf.mxu0  ;;  %v15021_v1 = vld [vmem:[%s20905_s4 + $0x2c0] ss:$8 sps:$4 sm:$0xff]   ;;  %v15029_v24 = vld [vmem:[%s20905_s4 + $0x2b4] ss:$8 sps:$4 sm:$0xff]  }
 0x262   : > { %10320 = vmatprep.mubr.bf16.mxu1 %v21244_v56  ;;  %6307 = vmatprep.mubr.bf16.mxu0 %v21004_v49  ;;  %v4402_v30 = vpop.f32.mrf.mxu1  ;;  %v18106_v34 = vpack.c.bf16 %v3882_v35, %v3880_v8  ;;  %v3883_v56 = vmax.f32 %v3736_v29, %v3819_v14  ;;  %v18119_v44 = vadd.f32 %v3741_v2, %v17563_v26  ;;  %v15024_v8 = vld [vmem:[%s20905_s4 + $0x1b0] ss:$8 sps:$4 sm:$0xff]  }
 0x263   : > { %10442 = vmatpush2.bf16.msra.mxu0 %v15012_v42  ;;  %10635 = vmatpush2.bf16.msra.mxu1 %v15015_v18  ;;  %v18108_v23 = vpack.c.bf16 %v4543_v51, %v4541_v62  ;;  %v4544_v36 = vmax.f32 %v4397_v32, %v4480_v43  ;;  %v15026_v42 = vld [vmem:[%s20905_s4 + $0x1b4] ss:$8 sps:$4 sm:$0xff]   ;;  %v3820_v52 = vmul.f32 0.2, %v18095_v4  ;;  %v4481_v18 = vmul.f32 0.2, %v18098_v21  ;;  %v3743_v43 = vpop.f32.mrf.mxu0 }
 0x264   : > { %21245 = vst [vmem:[#allocation20_spill] sm:$0xff] %v18106_v34  ;;  %10443 = vmatprep.subr.bf16.mxu0 %v15020_v45  ;;  %v18122_v37 = vadd.f32 %v4402_v30, %v17573_v61  ;;  %v4404_v29 = vpop.f32.mrf.mxu1  ;;  %10636 = vmatprep.subr.bf16.mxu1 %v15023_v6  ;;  %v3744_v32 = vadd.f32 %v3743_v43, %v17551_v57  ;;  %v3821_v16 = vmul.f32 0.2, %v18119_v44  ;;  %v15027_v6 = vld [vmem:[%s20905_s4 + $0x2b0] ss:$8 sps:$4 sm:$0xff]  }
 0x265   : > { %21246 = vst [vmem:[#allocation63_spill] sm:$0xff] %v18108_v23  ;;  %v4405_v45 = vadd.f32 %v4404_v29, %v17554_v41  ;;  %v18129_v62 = vpack.c.bf16 %v3883_v56, %v3881_v53  ;;  %v18131_v63 = vpack.c.bf16 %v4544_v36, %v4542_v12  ;;  %v3745_v51 = vpop.f32.mrf.mxu0  ;;  %v15032_v12 = vld [vmem:[%s20905_s4 + $0x1a4] ss:$8 sps:$4 sm:$0xff]   ;;  %v3884_v56 = vmax.f32 %v18095_v4, %v3820_v52 }
 0x266   : > { %v4482_v35 = vmul.f32 0.2, %v18122_v37  ;;  %v4406_v14 = vpop.f32.mrf.mxu1  ;;  %v3822_v2 = vmul.f32 0.2, %v3744_v32  ;;  %v3746_v43 = vadd.f32 %v3745_v51, %v17563_v26  ;;  %v21249_v23 = vld [vmem:[#allocation23_spill] sm:$0xff] }
 0x267   : > { %21247 = vst [vmem:[#allocation72_spill] sm:$0xff] %v18129_v62  ;;  %21248 = vst [vmem:[#allocation160_spill] sm:$0xff] %v18131_v63  ;;  %10444 = vmatpush2.bf16.msra.mxu0 %v15018_v39  ;;  %10637 = vmatpush2.bf16.msra.mxu1 %v15021_v1  ;;  %v4483_v30 = vmul.f32 0.2, %v4405_v45  ;;  %v4407_v53 = vadd.f32 %v4406_v14, %v17573_v61  ;;  %v4545_v39 = vmax.f32 %v18098_v21, %v4481_v18  ;;  %v3749_v36 = vpop.f32.mrf.mxu0  ;;  %v21250_v63 = vld [vmem:[#allocation67_spill] sm:$0xff]  ;;  %v21251_v62 = vld [vmem:[#allocation73_spill] sm:$0xff] }
 0x268   : > { %10445 = vmatprep.subr.bf16.mxu0 %v15026_v42  ;;  %10638 = vmatprep.subr.bf16.mxu1 %v15029_v24  ;;  %v3885_v1 = vmax.f32 %v18119_v44, %v3821_v16  ;;  %v4410_v29 = vpop.f32.mrf.mxu1  ;;  %v15035_v42 = vld [vmem:[%s20905_s4 + $0x2a4] ss:$8 sps:$4 sm:$0xff]   ;;  %v3886_v24 = vmax.f32 %v3744_v32, %v3822_v2  ;;  %v3823_v14 = vmul.f32 0.2, %v3746_v43  ;;  %v4546_v4 = vmax.f32 %v18122_v37, %v4482_v35  ;;  %v15030_v44 = vld [vmem:[%s20905_s4 + $0x1a0] ss:$8 sps:$4 sm:$0xff]  }
 0x269   : > { %6308 = vmatmul.mubr.bf16.gmra.mxu0 %v21249_v23  ;;  %10321 = vmatmul.mubr.bf16.gmra.mxu1 %v21250_v63  ;;  %v4547_v51 = vmax.f32 %v4405_v45, %v4483_v30  ;;  %v4484_v34 = vmul.f32 0.2, %v4407_v53  ;;  %v18155_v21 = vadd.f32 %v3749_v36, %v17551_v57  ;;  %v18158_v23 = vadd.f32 %v4410_v29, %v17554_v41  ;;  %v3751_v52 = vpop.f32.mrf.mxu0  ;;  %v15033_v32 = vld [vmem:[%s20905_s4 + $0x2a0] ss:$8 sps:$4 sm:$0xff]   ;;  %v15041_v16 = vld [vmem:[%s20905_s4 + $0x294] ss:$8 sps:$4 sm:$0xff]  }
 0x26a   : > { %10330 = vmatprep.mubr.bf16.mxu1 %v21251_v62  ;;  %6317 = vmatprep.mubr.bf16.mxu0 %v21004_v49  ;;  %v4412_v18 = vpop.f32.mrf.mxu1  ;;  %v18166_v45 = vpack.c.bf16 %v3886_v24, %v3884_v56  ;;  %v3887_v62 = vmax.f32 %v3746_v43, %v3823_v14  ;;  %v18179_v2 = vadd.f32 %v3751_v52, %v17563_v26  ;;  %v15036_v56 = vld [vmem:[%s20905_s4 + $0x190] ss:$8 sps:$4 sm:$0xff]  }
 0x26b   : > { %10446 = vmatpush2.bf16.msra.mxu0 %v15024_v8  ;;  %10639 = vmatpush2.bf16.msra.mxu1 %v15027_v6  ;;  %v18168_v37 = vpack.c.bf16 %v4547_v51, %v4545_v39  ;;  %v4548_v63 = vmax.f32 %v4407_v53, %v4484_v34  ;;  %v15038_v8 = vld [vmem:[%s20905_s4 + $0x194] ss:$8 sps:$4 sm:$0xff]   ;;  %v3824_v35 = vmul.f32 0.2, %v18155_v21  ;;  %v4485_v6 = vmul.f32 0.2, %v18158_v23  ;;  %v3753_v34 = vpop.f32.mrf.mxu0 }
 0x26c   : > { %21252 = vst [vmem:[#allocation23_spill] sm:$0xff] %v18166_v45  ;;  %10447 = vmatprep.subr.bf16.mxu0 %v15032_v12  ;;  %v18182_v30 = vadd.f32 %v4412_v18, %v17573_v61  ;;  %v4414_v43 = vpop.f32.mrf.mxu1  ;;  %10640 = vmatprep.subr.bf16.mxu1 %v15035_v42  ;;  %v3754_v53 = vadd.f32 %v3753_v34, %v17551_v57  ;;  %v3825_v29 = vmul.f32 0.2, %v18179_v2  ;;  %v15039_v42 = vld [vmem:[%s20905_s4 + $0x290] ss:$8 sps:$4 sm:$0xff]  }
 0x26d   : > { %21253 = vst [vmem:[#allocation67_spill] sm:$0xff] %v18168_v37  ;;  %v4415_v12 = vadd.f32 %v4414_v43, %v17554_v41  ;;  %v18189_v39 = vpack.c.bf16 %v3887_v62, %v3885_v1  ;;  %v18191_v36 = vpack.c.bf16 %v4548_v63, %v4546_v4  ;;  %v3755_v51 = vpop.f32.mrf.mxu0  ;;  %v15044_v4 = vld [vmem:[%s20905_s4 + $0x184] ss:$8 sps:$4 sm:$0xff]   ;;  %v3888_v62 = vmax.f32 %v18155_v21, %v3824_v35 }
 0x26e   : > { %v4486_v24 = vmul.f32 0.2, %v18182_v30  ;;  %v4416_v14 = vpop.f32.mrf.mxu1  ;;  %v3826_v52 = vmul.f32 0.2, %v3754_v53  ;;  %v3756_v34 = vadd.f32 %v3755_v51, %v17563_v26  ;;  %v21256_v37 = vld [vmem:[#allocation26_spill] sm:$0xff] }
 0x26f   : > { %21254 = vst [vmem:[#allocation73_spill] sm:$0xff] %v18189_v39  ;;  %21255 = vst [vmem:[#allocation161_spill] sm:$0xff] %v18191_v36  ;;  %10448 = vmatpush2.bf16.msra.mxu0 %v15030_v44  ;;  %10641 = vmatpush2.bf16.msra.mxu1 %v15033_v32  ;;  %v4487_v18 = vmul.f32 0.2, %v4415_v12  ;;  %v4417_v1 = vadd.f32 %v4416_v14, %v17573_v61  ;;  %v4549_v44 = vmax.f32 %v18158_v23, %v4485_v6  ;;  %v3759_v63 = vpop.f32.mrf.mxu0  ;;  %v21257_v36 = vld [vmem:[#allocation69_spill] sm:$0xff]  ;;  %v21258_v39 = vld [vmem:[#allocation76_spill] sm:$0xff] }
 0x270   : > { %10449 = vmatprep.subr.bf16.mxu0 %v15038_v8  ;;  %10642 = vmatprep.subr.bf16.mxu1 %v15041_v16  ;;  %v3889_v32 = vmax.f32 %v18179_v2, %v3825_v29  ;;  %v4420_v43 = vpop.f32.mrf.mxu1  ;;  %v15047_v8 = vld [vmem:[%s20905_s4 + $0x284] ss:$8 sps:$4 sm:$0xff]   ;;  %v3890_v16 = vmax.f32 %v3754_v53, %v3826_v52  ;;  %v3827_v14 = vmul.f32 0.2, %v3756_v34  ;;  %v4550_v21 = vmax.f32 %v18182_v30, %v4486_v24  ;;  %v4798_v2 = vld [vmem:[%s20904_s3] sm:$0x3] }
 0x271   : > { %6318 = vmatmul.mubr.bf16.gmra.mxu0 %v21256_v37  ;;  %10331 = vmatmul.mubr.bf16.gmra.mxu1 %v21257_v36  ;;  %v4551_v51 = vmax.f32 %v4415_v12, %v4487_v18  ;;  %v4488_v45 = vmul.f32 0.2, %v4417_v1  ;;  %v3760_v23 = vadd.f32 %v3759_v63, %v17551_v57  ;;  %v4421_v37 = vadd.f32 %v4420_v43, %v17554_v41  ;;  %v3761_v35 = vpop.f32.mrf.mxu0  ;;  %v15042_v53 = vld [vmem:[%s20905_s4 + $0x180] ss:$8 sps:$4 sm:$0xff]  }
 0x272   : > { %10340 = vmatprep.mubr.bf16.mxu1 %v21258_v39  ;;  %6327 = vmatprep.mubr.bf16.mxu0 %v21004_v49  ;;  %v4422_v6 = vpop.f32.mrf.mxu1  ;;  %v15045_v30 = vld [vmem:[%s20905_s4 + $0x280] ss:$8 sps:$4 sm:$0xff]   ;;  %v18225_v12 = vpack.c.bf16 %v3890_v16, %v3888_v62  ;;  %v3891_v36 = vmax.f32 %v3756_v34, %v3827_v14  ;;  %v3762_v62 = vadd.f32 %v3761_v35, %v17563_v26 }
 0x273   : > { %10450 = vmatpush2.bf16.msra.mxu0 %v15036_v56  ;;  %10643 = vmatpush2.bf16.msra.mxu1 %v15039_v42  ;;  %v18227_v39 = vpack.c.bf16 %v4551_v51, %v4549_v44  ;;  %v4552_v29 = vmax.f32 %v4417_v1, %v4488_v45  ;;  %v5462_v24 = vld [vmem:[%s20904_s3] sm:$0x3]  ;;  %v15050_v56 = vld [vmem:[%s20905_s4 + $0x374] ss:$8 sps:$4 sm:$0xff]   ;;  %v3828_v52 = vmul.f32 0.2, %v3760_v23  ;;  %v3763_v44 = vpop.f32.mrf.mxu0  ;;  %v18246_v43 = vadd.f32 %v4422_v6, %v17573_v61 }
 0x274   : > { %21259 = vst [vmem:[#allocation26_spill] sm:$0xff] %v18225_v12  ;;  %10451 = vmatprep.subr.bf16.mxu0 %v15044_v4  ;;  %v15053_v42 = vld [vmem:[%s20905_s4 + $0x474] ss:$8 sps:$4 sm:$0xff]   ;;  %v4489_v18 = vmul.f32 0.2, %v4421_v37  ;;  %v4424_v34 = vpop.f32.mrf.mxu1  ;;  %10644 = vmatprep.subr.bf16.mxu1 %v15047_v8  ;;  %v3764_v45 = vadd.f32 %v3763_v44, %v17551_v57  ;;  %v18241_v4 = vpack.c.bf16 %v3891_v36, %v3889_v32 }
 0x275   : > { %21260 = vst [vmem:[#allocation69_spill] sm:$0xff] %v18227_v39  ;;  %v4425_v1 = vadd.f32 %v4424_v34, %v17554_v41  ;;  %v18243_v63 = vpack.c.bf16 %v4552_v29, %v4550_v21  ;;  %v3765_v16 = vpop.f32.mrf.mxu0  ;;  %v18249_v14 = vrot.slane %v4798_v2, %v21094_v40  ;;  %v18252_v35 = vrot.slane %v5462_v24, %v21094_v40  ;;  %v21263_v44 = vld [vmem:[#allocation29_spill] sm:$0xff]  ;;  %v21264_v34 = vld [vmem:[#allocation74_spill] sm:$0xff] }
 0x276   : > { %21261 = vst [vmem:[#allocation76_spill] sm:$0xff] %v18241_v4  ;;  %v4426_v51 = vpop.f32.mrf.mxu1  ;;  %v3829_v57 = vmul.f32 0.2, %v3762_v62  ;;  %v3830_v8 = vmul.f32 0.2, %v3764_v45  ;;  %v3766_v32 = vadd.f32 %v3765_v16, %v17563_v26  ;;  %v3892_v21 = vmax.f32 %v3760_v23, %v3828_v52  ;;  %v21265_v26 = vld [vmem:[#allocation82_spill] sm:$0xff] }
 0x277   : > { %21262 = vst [vmem:[#allocation162_spill] sm:$0xff] %v18243_v63  ;;  %10452 = vmatpush2.bf16.msra.mxu0 %v15042_v53  ;;  %10645 = vmatpush2.bf16.msra.mxu1 %v15045_v30  ;;  %v4491_v41 = vmul.f32 0.2, %v4425_v1  ;;  %v18256_v6 = vadd.f32 %v4426_v51, %v17573_v61  ;;  %v4924_v36 = vpop.f32.mrf.mxu0  ;;  %v18261_v53 = vrot.slane %v4798_v2, %v21097_v22  ;;  %v4490_v61 = vmul.f32 0.2, %v18246_v43  ;;  %v21271_v4 = vld [vmem:[#allocation87_spill] sm:$0xff] }
 0x278   : > { %10807 = vmatprep.subr.bf16.mxu0 %v15050_v56  ;;  %11000 = vmatprep.subr.bf16.mxu1 %v15053_v42  ;;  %v5588_v29 = vpop.f32.mrf.mxu1  ;;  %v4553_v30 = vmax.f32 %v4421_v37, %v4489_v18  ;;  %v3894_v39 = vmax.f32 %v3764_v45, %v3830_v8  ;;  %v3831_v12 = vmul.f32 0.2, %v3766_v32  ;;  %v4925_v23 = vadd.f32 %v4924_v36, %v18249_v14 }
 0x279   : > { %6328 = vmatmul.mubr.bf16.gmra.mxu0 %v21263_v44  ;;  %10341 = vmatmul.mubr.bf16.gmra.mxu1 %v21264_v34  ;;  %v4555_v63 = vmax.f32 %v4425_v1, %v4491_v41  ;;  %v5589_v56 = vadd.f32 %v5588_v29, %v18252_v35  ;;  %v4926_v42 = vpop.f32.mrf.mxu0  ;;  %v18269_v52 = vrot.slane %v5462_v24, %v21097_v22  ;;  %v4492_v1 = vmul.f32 0.2, %v18256_v6 }
 0x27a   : > { %10350 = vmatprep.mubr.bf16.mxu1 %v21265_v26  ;;  %6337 = vmatprep.mubr.bf16.mxu0 %v21004_v49  ;;  %v5590_v2 = vpop.f32.mrf.mxu1  ;;  %v3893_v16 = vmax.f32 %v3762_v62, %v3829_v57  ;;  %v18271_v37 = vpack.c.bf16 %v3894_v39, %v3892_v21  ;;  %v3895_v45 = vmax.f32 %v3766_v32, %v3831_v12  ;;  %v5083_v51 = vmul.f32 0.2, %v4925_v23 }
 0x27b   : > { %v18273_v18 = vpack.c.bf16 %v4555_v63, %v4553_v30  ;;  %v5747_v8 = vmul.f32 0.2, %v5589_v56  ;;  %v4927_v41 = vadd.f32 %v4926_v42, %v18261_v53  ;;  %v4928_v36 = vpop.f32.mrf.mxu0  ;;  %v4554_v39 = vmax.f32 %v18246_v43, %v4490_v61  ;;  %v21270_v43 = vld [vmem:[#allocation80_spill] sm:$0xff] }
 0x27c   : > { %21266 = vst [vmem:[#allocation29_spill] sm:$0xff] %v18271_v37  ;;  %v5592_v44 = vpop.f32.mrf.mxu1  ;;  %v4929_v29 = vadd.f32 %v4928_v36, %v18249_v14  ;;  %v18279_v34 = vpack.c.bf16 %v3895_v45, %v3893_v16  ;;  %v5591_v63 = vadd.f32 %v5590_v2, %v18269_v52  ;;  %v4556_v42 = vmax.f32 %v18256_v6, %v4492_v1  ;;  %v21269_v45 = vld [vmem:[#allocation41_spill] sm:$0xff] }
 0x27d   : > { %21267 = vst [vmem:[#allocation74_spill] sm:$0xff] %v18273_v18  ;;  %v5593_v24 = vadd.f32 %v5592_v44, %v18252_v35  ;;  %v5084_v62 = vmul.f32 0.2, %v4927_v41  ;;  %v4930_v12 = vpop.f32.mrf.mxu0  ;;  %v5147_v36 = vmax.f32 %v4925_v23, %v5083_v51  ;;  %v5811_v18 = vmax.f32 %v5589_v56, %v5747_v8 }
 0x27e   : > { %21268 = vst [vmem:[#allocation82_spill] sm:$0xff] %v18279_v34  ;;  %v5594_v57 = vpop.f32.mrf.mxu1  ;;  %v5085_v32 = vmul.f32 0.2, %v4929_v29  ;;  %v4931_v30 = vadd.f32 %v4930_v12, %v18261_v53 }
 0x27f   : > { %v5749_v21 = vmul.f32 0.2, %v5593_v24  ;;  %v5595_v26 = vadd.f32 %v5594_v57, %v18269_v52  ;;  %v4934_v44 = vpop.f32.mrf.mxu0  ;;  %v5148_v12 = vmax.f32 %v4927_v41, %v5084_v62  ;;  %v5748_v57 = vmul.f32 0.2, %v5591_v63 }
 0x280   : > { %v5598_v16 = vpop.f32.mrf.mxu1  ;;  %v5149_v61 = vmax.f32 %v4929_v29, %v5085_v32  ;;  %v5086_v37 = vmul.f32 0.2, %v4931_v30  ;;  %v4935_v6 = vadd.f32 %v4934_v44, %v18249_v14 }
 0x281   : > { %6338 = vmatmul.mubr.bf16.gmra.mxu0 %v21269_v45  ;;  %10351 = vmatmul.mubr.bf16.gmra.mxu1 %v21270_v43  ;;  %v5813_v2 = vmax.f32 %v5593_v24, %v5749_v21  ;;  %v5750_v34 = vmul.f32 0.2, %v5595_v26  ;;  %v5599_v23 = vadd.f32 %v5598_v16, %v18252_v35  ;;  %v4936_v56 = vpop.f32.mrf.mxu0 }
 0x282   : > { %10360 = vmatprep.mubr.bf16.mxu1 %v21271_v4  ;;  %6347 = vmatprep.mubr.bf16.mxu0 %v21004_v49  ;;  %v5600_v1 = vpop.f32.mrf.mxu1  ;;  %v18292_v51 = vpack.c.bf16 %v5149_v61, %v5147_v36  ;;  %v5150_v29 = vmax.f32 %v4931_v30, %v5086_v37  ;;  %v5087_v32 = vmul.f32 0.2, %v4935_v6  ;;  %v4937_v4 = vadd.f32 %v4936_v56, %v18261_v53 }
 0x283   : > { %v18294_v8 = vpack.c.bf16 %v5813_v2, %v5811_v18  ;;  %v5814_v24 = vmax.f32 %v5595_v26, %v5750_v34  ;;  %v5751_v21 = vmul.f32 0.2, %v5599_v23  ;;  %v5601_v45 = vadd.f32 %v5600_v1, %v18269_v52  ;;  %v4938_v41 = vpop.f32.mrf.mxu0 }
 0x284   : > { %21272 = vst [vmem:[#allocation41_spill] sm:$0xff] %v18292_v51  ;;  %v5602_v62 = vpop.f32.mrf.mxu1  ;;  %v4939_v44 = vadd.f32 %v4938_v41, %v18249_v14  ;;  %v18300_v43 = vpack.c.bf16 %v5150_v29, %v5148_v12  ;;  %v18302_v36 = vpack.c.bf16 %v4556_v42, %v4554_v39  ;;  %v5812_v18 = vmax.f32 %v5591_v63, %v5748_v57  ;;  %v21276_v12 = vld [vmem:[#allocation85_spill] sm:$0xff] }
 0x285   : > { %21273 = vst [vmem:[#allocation80_spill] sm:$0xff] %v18294_v8  ;;  %v5603_v16 = vadd.f32 %v5602_v62, %v18252_v35  ;;  %v5088_v61 = vmul.f32 0.2, %v4937_v4  ;;  %v5752_v37 = vmul.f32 0.2, %v5601_v45  ;;  %v4940_v34 = vpop.f32.mrf.mxu0  ;;  %v5151_v8 = vmax.f32 %v4935_v6, %v5087_v32  ;;  %v21275_v62 = vld [vmem:[#allocation42_spill] sm:$0xff] }
 0x286   : > { %21274 = vst [vmem:[#allocation87_spill] sm:$0xff] %v18302_v36  ;;  %v5604_v30 = vpop.f32.mrf.mxu1  ;;  %v5089_v26 = vmul.f32 0.2, %v4939_v44  ;;  %v4941_v56 = vadd.f32 %v4940_v34, %v18261_v53  ;;  %v5815_v51 = vmax.f32 %v5599_v23, %v5751_v21  ;;  %v18308_v39 = vpack.c.bf16 %v5814_v24, %v5812_v18  ;;  %v21278_v36 = vld [vmem:[#allocation90_spill] sm:$0xff] }
 0x287   : > { %v5753_v2 = vmul.f32 0.2, %v5603_v16  ;;  %v5605_v1 = vadd.f32 %v5604_v30, %v18269_v52  ;;  %v4944_v41 = vpop.f32.mrf.mxu0  ;;  %v5152_v34 = vmax.f32 %v4937_v4, %v5088_v61  ;;  %v5816_v30 = vmax.f32 %v5601_v45, %v5752_v37 }
 0x288   : > { %v5608_v3 = vpop.f32.mrf.mxu1  ;;  %21277 = vst [vmem:[#allocation42_spill] sm:$0xff] %v18308_v39  ;;  %v5153_v63 = vmax.f32 %v4939_v44, %v5089_v26  ;;  %v5090_v57 = vmul.f32 0.2, %v4941_v56  ;;  %v4945_v6 = vadd.f32 %v4944_v41, %v18249_v14 }
 0x289   : > { %6348 = vmatmul.mubr.bf16.gmra.mxu0 %v21275_v62  ;;  %10361 = vmatmul.mubr.bf16.gmra.mxu1 %v21276_v12  ;;  %v5817_v42 = vmax.f32 %v5603_v16, %v5753_v2  ;;  %v5754_v29 = vmul.f32 0.2, %v5605_v1  ;;  %v5609_v23 = vadd.f32 %v5608_v3, %v18252_v35  ;;  %v4946_v32 = vpop.f32.mrf.mxu0 }
 0x28a   : > { %10370 = vmatprep.mubr.bf16.mxu1 %v21278_v36  ;;  %6357 = vmatprep.mubr.bf16.mxu0 %v21004_v49  ;;  %v5610_v21 = vpop.f32.mrf.mxu1  ;;  %v18314_v62 = vpack.c.bf16 %v5153_v63, %v5151_v8  ;;  %v5154_v44 = vmax.f32 %v4941_v56, %v5090_v57  ;;  %v5091_v18 = vmul.f32 0.2, %v4945_v6  ;;  %v4947_v36 = vadd.f32 %v4946_v32, %v18261_v53 }
 0x28b   : > { %v18316_v24 = vpack.c.bf16 %v5817_v42, %v5815_v51  ;;  %v5818_v16 = vmax.f32 %v5605_v1, %v5754_v29  ;;  %v5755_v26 = vmul.f32 0.2, %v5609_v23  ;;  %v5611_v2 = vadd.f32 %v5610_v21, %v18269_v52  ;;  %v4948_v4 = vpop.f32.mrf.mxu0 }
 0x28c   : > { %21279 = vst [vmem:[#allocation85_spill] sm:$0xff] %v18314_v62  ;;  %v5612_v45 = vpop.f32.mrf.mxu1  ;;  %v4949_v61 = vadd.f32 %v4948_v4, %v18249_v14  ;;  %v18322_v37 = vpack.c.bf16 %v5154_v44, %v5152_v34  ;;  %v5092_v51 = vmul.f32 0.2, %v4947_v36  ;;  %v5155_v29 = vmax.f32 %v4945_v6, %v5091_v18  ;;  %v21284_v34 = vld [vmem:[#allocation10_spill] sm:$0xff]  ;;  %v21292_v62 = vld [vmem:[#allocation96_spill] sm:$0xff] }
 0x28d   : > { %21280 = vst [vmem:[#allocation90_spill] sm:$0xff] %v18316_v24  ;;  %v5613_v3 = vadd.f32 %v5612_v45, %v18252_v35  ;;  %v18324_v8 = vpack.c.bf16 %v5818_v16, %v5816_v30  ;;  %v5756_v41 = vmul.f32 0.2, %v5611_v2  ;;  %v4950_v56 = vpop.f32.mrf.mxu0  ;;  %v5819_v32 = vmax.f32 %v5609_v23, %v5755_v26  ;;  %v21283_v24 = vld [vmem:[#allocation53_spill] sm:$0xff] }
 0x28e   : > { %21281 = vst [vmem:[#allocation163_spill] sm:$0xff] %v18322_v37  ;;  %v5614_v1 = vpop.f32.mrf.mxu1  ;;  %v5093_v12 = vmul.f32 0.2, %v4949_v61  ;;  %v4951_v42 = vadd.f32 %v4950_v56, %v18261_v53  ;;  %v5156_v39 = vmax.f32 %v4947_v36, %v5092_v51 }
 0x28f   : > { %21282 = vst [vmem:[#allocation164_spill] sm:$0xff] %v18324_v8  ;;  %v5757_v63 = vmul.f32 0.2, %v5613_v3  ;;  %v5615_v57 = vadd.f32 %v5614_v1, %v18269_v52  ;;  %v21285_v8 = vld [vmem:[#allocation93_spill] sm:$0xff]  ;;  %v5820_v56 = vmax.f32 %v5611_v2, %v5756_v41 }
 0x290   : > { %v5157_v30 = vmax.f32 %v4949_v61, %v5093_v12  ;;  %v5094_v16 = vmul.f32 0.2, %v4951_v42 }
 0x291   : > { %v4954_v21 = vpop.f32.mrf.mxu0  ;;  %v5618_v4 = vpop.f32.mrf.mxu1  ;;  %6358 = vmatmul.mubr.bf16.gmra.mxu0 %v21283_v24  ;;  %10371 = vmatmul.mubr.bf16.gmra.mxu1 %v21284_v34  ;;  %v5821_v44 = vmax.f32 %v5613_v3, %v5757_v63  ;;  %v5758_v45 = vmul.f32 0.2, %v5615_v57 }
 0x292   : > { %10380 = vmatprep.mubr.bf16.mxu1 %v21285_v8  ;;  %6367 = vmatprep.mubr.bf16.mxu0 %v21004_v49  ;;  %v4955_v1 = vadd.f32 %v4954_v21, %v18249_v14  ;;  %v5619_v6 = vadd.f32 %v5618_v4, %v18252_v35  ;;  %v18334_v26 = vpack.c.bf16 %v5157_v30, %v5155_v29  ;;  %v6099_v30 = vrot.slane %v17644_v17, 2 }
 0x293   : > { %v4956_v23 = vpop.f32.mrf.mxu0  ;;  %v5620_v18 = vpop.f32.mrf.mxu1  ;;  %v18336_v24 = vpack.c.bf16 %v5821_v44, %v5819_v32  ;;  %v5158_v61 = vmax.f32 %v4951_v42, %v5094_v16  ;;  %v5822_v3 = vmax.f32 %v5615_v57, %v5758_v45 }
 0x294   : > { %21286 = vst [vmem:[#allocation53_spill] sm:$0xff] %v18334_v26  ;;  %v5095_v12 = vmul.f32 0.2, %v4955_v1  ;;  %v5759_v63 = vmul.f32 0.2, %v5619_v6  ;;  %v4957_v8 = vadd.f32 %v4956_v23, %v18261_v53  ;;  %v5621_v34 = vadd.f32 %v5620_v18, %v18269_v52 }
 0x295   : > { %21287 = vst [vmem:[#allocation10_spill] sm:$0xff] %v18336_v24  ;;  %v4958_v36 = vpop.f32.mrf.mxu0  ;;  %v5622_v2 = vpop.f32.mrf.mxu1  ;;  %v18342_v21 = vpack.c.bf16 %v5158_v61, %v5156_v39  ;;  %v18344_v29 = vpack.c.bf16 %v5822_v3, %v5820_v56  ;;  %v21290_v39 = vld [vmem:[#allocation58_spill] sm:$0xff]  ;;  %v21291_v56 = vld [vmem:[#allocation16_spill] sm:$0xff]  ;;  %v6100_v61 = vrot.slane %v17646_v50, 2  ;;  %v6102_v3 = vrot.slane %v17653_v9, 2 }
 0x296   : > { %v4959_v51 = vadd.f32 %v4958_v36, %v18249_v14  ;;  %v5623_v41 = vadd.f32 %v5622_v2, %v18252_v35  ;;  %v5096_v32 = vmul.f32 0.2, %v4957_v8  ;;  %v5760_v4 = vmul.f32 0.2, %v5621_v34 }
 0x297   : > { %21288 = vst [vmem:[#allocation93_spill] sm:$0xff] %v18342_v21  ;;  %21289 = vst [vmem:[#allocation165_spill] sm:$0xff] %v18344_v29  ;;  %v4960_v42 = vpop.f32.mrf.mxu0  ;;  %v5624_v57 = vpop.f32.mrf.mxu1  ;;  %v5159_v18 = vmax.f32 %v4955_v1, %v5095_v12  ;;  %v5823_v36 = vmax.f32 %v5619_v6, %v5759_v63 }
 0x298   : > { %v5097_v44 = vmul.f32 0.2, %v4959_v51  ;;  %v5761_v16 = vmul.f32 0.2, %v5623_v41  ;;  %v4961_v45 = vadd.f32 %v4960_v42, %v18261_v53  ;;  %v5625_v23 = vadd.f32 %v5624_v57, %v18269_v52 }
 0x299   : > { %v4964_v24 = vpop.f32.mrf.mxu0  ;;  %v5628_v2 = vpop.f32.mrf.mxu1  ;;  %6368 = vmatmul.mubr.bf16.gmra.mxu0 %v21290_v39  ;;  %10381 = vmatmul.mubr.bf16.gmra.mxu1 %v21291_v56  ;;  %v5160_v1 = vmax.f32 %v4957_v8, %v5096_v32  ;;  %v5824_v6 = vmax.f32 %v5621_v34, %v5760_v4 }
 0x29a   : > { %v5161_v29 = vmax.f32 %v4959_v51, %v5097_v44  ;;  %v5825_v17 = vmax.f32 %v5623_v41, %v5761_v16  ;;  %v5098_v26 = vmul.f32 0.2, %v4961_v45  ;;  %v5762_v21 = vmul.f32 0.2, %v5625_v23  ;;  %10390 = vmatprep.mubr.bf16.mxu1 %v21292_v62  ;;  %6377 = vmatprep.mubr.bf16.mxu0 %v21004_v49 }
 0x29b   : > { %v4965_v12 = vadd.f32 %v4964_v24, %v18249_v14  ;;  %v5629_v63 = vadd.f32 %v5628_v2, %v18252_v35  ;;  %v4966_v42 = vpop.f32.mrf.mxu0  ;;  %v5630_v57 = vpop.f32.mrf.mxu1 }
 0x29c   : > { %v18357_v39 = vpack.c.bf16 %v5161_v29, %v5159_v18  ;;  %v18359_v50 = vpack.c.bf16 %v5825_v17, %v5823_v36  ;;  %v5162_v9 = vmax.f32 %v4961_v45, %v5098_v26  ;;  %v5826_v51 = vmax.f32 %v5625_v23, %v5762_v21 }
 0x29d   : > { %v5099_v41 = vmul.f32 0.2, %v4965_v12  ;;  %v5763_v44 = vmul.f32 0.2, %v5629_v63  ;;  %v4967_v62 = vadd.f32 %v4966_v42, %v18261_v53  ;;  %v5631_v16 = vadd.f32 %v5630_v57, %v18269_v52  ;;  %v4968_v8 = vpop.f32.mrf.mxu0  ;;  %v5632_v34 = vpop.f32.mrf.mxu1 }
 0x29e   : > { %21293 = vst [vmem:[#allocation58_spill] sm:$0xff] %v18357_v39  ;;  %21294 = vst [vmem:[#allocation16_spill] sm:$0xff] %v18359_v50  ;;  %v4969_v24 = vadd.f32 %v4968_v8, %v18249_v14  ;;  %v5633_v32 = vadd.f32 %v5632_v34, %v18252_v35  ;;  %v18365_v4 = vpack.c.bf16 %v5162_v9, %v5160_v1  ;;  %v21297_v9 = vld [vmem:[#allocation65_spill] sm:$0xff]  ;;  %v21299_v39 = vld [vmem:[#allocation99_spill] sm:$0xff] }
 0x29f   : > { %v18367_v29 = vpack.c.bf16 %v5826_v51, %v5824_v6  ;;  %v5100_v18 = vmul.f32 0.2, %v4967_v62  ;;  %v5764_v36 = vmul.f32 0.2, %v5631_v16  ;;  %v4970_v26 = vpop.f32.mrf.mxu0  ;;  %v5634_v21 = vpop.f32.mrf.mxu1  ;;  %v18370_v45 = vsel %vm2020_vm1, %v6099_v30, %v6100_v61  ;;  %v21298_v6 = vld [vmem:[#allocation19_spill] sm:$0xff] }
 0x2a0   : > { %21295 = vst [vmem:[#allocation96_spill] sm:$0xff] %v18365_v4  ;;  %v5101_v23 = vmul.f32 0.2, %v4969_v24  ;;  %v5765_v2 = vmul.f32 0.2, %v5633_v32  ;;  %v4971_v56 = vadd.f32 %v4970_v26, %v18261_v53  ;;  %v5635_v17 = vadd.f32 %v5634_v21, %v18269_v52  ;;  %v21420_v4 = vld [vmem:[#allocation107_spill] sm:$0xff] }
 0x2a1   : > { %21296 = vst [vmem:[#allocation166_spill] sm:$0xff] %v18367_v29  ;;  %v5163_v42 = vmax.f32 %v4965_v12, %v5099_v41  ;;  %v5827_v57 = vmax.f32 %v5629_v63, %v5763_v44  ;;  %v4974_v8 = vpop.f32.mrf.mxu0  ;;  %v5638_v1 = vpop.f32.mrf.mxu1  ;;  %6378 = vmatmul.mubr.bf16.gmra.mxu0 %v21297_v9  ;;  %10391 = vmatmul.mubr.bf16.gmra.mxu1 %v21298_v6 }
 0x2a2   : > { %v18377_v51 = vsel %vm2020_vm1, %v6100_v61, %v6102_v3  ;;  %v5165_v34 = vmax.f32 %v4969_v24, %v5101_v23  ;;  %v5829_v30 = vmax.f32 %v5633_v32, %v5765_v2  ;;  %v5102_v50 = vmul.f32 0.2, %v4971_v56  ;;  %10400 = vmatprep.mubr.bf16.mxu1 %v21299_v39  ;;  %6387 = vmatprep.mubr.bf16.mxu0 %v21004_v49 }
 0x2a3   : > { %v5766_v29 = vmul.f32 0.2, %v5635_v17  ;;  %v5164_v26 = vmax.f32 %v4967_v62, %v5100_v18  ;;  %v5828_v12 = vmax.f32 %v5631_v16, %v5764_v36  ;;  %v4975_v63 = vadd.f32 %v4974_v8, %v18249_v14  ;;  %v4976_v44 = vpop.f32.mrf.mxu0  ;;  %v5640_v21 = vpop.f32.mrf.mxu1 }
 0x2a4   : > { %v5639_v41 = vadd.f32 %v5638_v1, %v18252_v35  ;;  %v18383_v9 = vpack.c.bf16 %v5165_v34, %v5163_v42  ;;  %v18385_v61 = vpack.c.bf16 %v5829_v30, %v5827_v57  ;;  %v5166_v3 = vmax.f32 %v4971_v56, %v5102_v50 }
 0x2a5   : > { %v5830_v24 = vmax.f32 %v5635_v17, %v5766_v29  ;;  %v5103_v32 = vmul.f32 0.2, %v4975_v63  ;;  %v4977_v39 = vadd.f32 %v4976_v44, %v18261_v53  ;;  %v5641_v2 = vadd.f32 %v5640_v21, %v18269_v52  ;;  %v4978_v62 = vpop.f32.mrf.mxu0  ;;  %v5642_v16 = vpop.f32.mrf.mxu1 }
 0x2a6   : > { %21300 = vst [vmem:[#allocation65_spill] sm:$0xff] %v18383_v9  ;;  %21301 = vst [vmem:[#allocation19_spill] sm:$0xff] %v18385_v61  ;;  %v5767_v23 = vmul.f32 0.2, %v5639_v41  ;;  %v4979_v18 = vadd.f32 %v4978_v62, %v18249_v14  ;;  %v5643_v36 = vadd.f32 %v5642_v16, %v18252_v35  ;;  %v18391_v8 = vpack.c.bf16 %v5166_v3, %v5164_v26  ;;  %v21304_v61 = vld [vmem:[#allocation124_spill] sm:$0xff]  ;;  %v21305_v26 = vld [vmem:[#allocation22_spill] sm:$0xff] }
 0x2a7   : > { %v18393_v42 = vpack.c.bf16 %v5830_v24, %v5828_v12  ;;  %v5104_v57 = vmul.f32 0.2, %v4977_v39  ;;  %v5768_v1 = vmul.f32 0.2, %v5641_v2  ;;  %v4980_v50 = vpop.f32.mrf.mxu0  ;;  %v5644_v29 = vpop.f32.mrf.mxu1  ;;  %v5167_v30 = vmax.f32 %v4975_v63, %v5103_v32  ;;  %v21306_v9 = vld [vmem:[#allocation102_spill] sm:$0xff] }
 0x2a8   : > { %21302 = vst [vmem:[#allocation99_spill] sm:$0xff] %v18391_v8  ;;  %v5105_v56 = vmul.f32 0.2, %v4979_v18  ;;  %v5769_v17 = vmul.f32 0.2, %v5643_v36  ;;  %v4981_v6 = vadd.f32 %v4980_v50, %v18261_v53  ;;  %v5645_v34 = vadd.f32 %v5644_v29, %v18269_v52 }
 0x2a9   : > { %21303 = vst [vmem:[#allocation167_spill] sm:$0xff] %v18393_v42  ;;  %v5831_v44 = vmax.f32 %v5639_v41, %v5767_v23  ;;  %v4984_v21 = vpop.f32.mrf.mxu0  ;;  %v5648_v62 = vpop.f32.mrf.mxu1  ;;  %6388 = vmatmul.mubr.bf16.gmra.mxu0 %v21304_v61  ;;  %10401 = vmatmul.mubr.bf16.gmra.mxu1 %v21305_v26  ;;  %v6106_v12 = vpack.c.bf16 %v18377_v51, %v18370_v45 }
 0x2aa   : > { %v5169_v3 = vmax.f32 %v4979_v18, %v5105_v56  ;;  %v5833_v24 = vmax.f32 %v5643_v36, %v5769_v17  ;;  %v5106_v16 = vmul.f32 0.2, %v4981_v6  ;;  %v5770_v42 = vmul.f32 0.2, %v5645_v34  ;;  %10410 = vmatprep.mubr.bf16.mxu1 %v21306_v9  ;;  %6397 = vmatprep.mubr.bf16.mxu0 %v21004_v49 }
 0x2ab   : > { %v5168_v50 = vmax.f32 %v4977_v39, %v5104_v57  ;;  %v5832_v63 = vmax.f32 %v5641_v2, %v5768_v1  ;;  %v4985_v41 = vadd.f32 %v4984_v21, %v18249_v14  ;;  %v5649_v32 = vadd.f32 %v5648_v62, %v18252_v35  ;;  %v4986_v61 = vpop.f32.mrf.mxu0  ;;  %v5650_v23 = vpop.f32.mrf.mxu1 }
 0x2ac   : > { %v18405_v29 = vpack.c.bf16 %v5169_v3, %v5167_v30  ;;  %v18407_v26 = vpack.c.bf16 %v5833_v24, %v5831_v44  ;;  %v5170_v45 = vmax.f32 %v4981_v6, %v5106_v16  ;;  %v5834_v51 = vmax.f32 %v5645_v34, %v5770_v42 }
 0x2ad   : > { %v5107_v18 = vmul.f32 0.2, %v4985_v41  ;;  %v5771_v36 = vmul.f32 0.2, %v5649_v32  ;;  %v4987_v9 = vadd.f32 %v4986_v61, %v18261_v53  ;;  %v5651_v49 = vadd.f32 %v5650_v23, %v18269_v52  ;;  %v4988_v39 = vpop.f32.mrf.mxu0  ;;  %v5652_v2 = vpop.f32.mrf.mxu1 }
 0x2ae   : > { %21307 = vst [vmem:[#allocation124_spill] sm:$0xff] %v18405_v29  ;;  %21308 = vst [vmem:[#allocation22_spill] sm:$0xff] %v18407_v26  ;;  %v4989_v57 = vadd.f32 %v4988_v39, %v18249_v14  ;;  %v5653_v1 = vadd.f32 %v5652_v2, %v18252_v35  ;;  %v18413_v56 = vpack.c.bf16 %v5170_v45, %v5168_v50  ;;  %v21311_v39 = vld [vmem:[#allocation25_spill] sm:$0xff]  ;;  %v21312_v2 = vld [vmem:[#allocation44_spill] sm:$0xff] }
 0x2af   : > { %v18415_v17 = vpack.c.bf16 %v5834_v51, %v5832_v63  ;;  %v5108_v30 = vmul.f32 0.2, %v4987_v9  ;;  %v5772_v44 = vmul.f32 0.2, %v5651_v49  ;;  %v4990_v6 = vpop.f32.mrf.mxu0  ;;  %v5654_v42 = vpop.f32.mrf.mxu1  ;;  %v5171_v24 = vmax.f32 %v4985_v41, %v5107_v18  ;;  %v21313_v26 = vld [vmem:[#allocation105_spill] sm:$0xff] }
 0x2b0   : > { %21309 = vst [vmem:[#allocation102_spill] sm:$0xff] %v18413_v56  ;;  %v5109_v34 = vmul.f32 0.2, %v4989_v57  ;;  %v5773_v21 = vmul.f32 0.2, %v5653_v1  ;;  %v4991_v62 = vadd.f32 %v4990_v6, %v18261_v53  ;;  %v5655_v3 = vadd.f32 %v5654_v42, %v18269_v52  ;;  %v21321_v56 = vld [vmem:[#allocation108_spill] sm:$0xff] }
 0x2b1   : > { %21310 = vst [vmem:[#allocation168_spill] sm:$0xff] %v18415_v17  ;;  %v5835_v16 = vmax.f32 %v5649_v32, %v5771_v36  ;;  %v4994_v61 = vpop.f32.mrf.mxu0  ;;  %v5658_v23 = vpop.f32.mrf.mxu1  ;;  %6398 = vmatmul.mubr.bf16.gmra.mxu0 %v6106_v12  ;;  %10411 = vmatmul.mubr.bf16.gmra.mxu1 %v21311_v39  ;;  %v5172_v17 = vmax.f32 %v4987_v9, %v5108_v30 }
 0x2b2   : > { %v5173_v50 = vmax.f32 %v4989_v57, %v5109_v34  ;;  %v5837_v63 = vmax.f32 %v5653_v1, %v5773_v21  ;;  %v5110_v45 = vmul.f32 0.2, %v4991_v62  ;;  %v5774_v51 = vmul.f32 0.2, %v5655_v3  ;;  %10453 = vmatprep.mubr.bf16.mxu0 %v21312_v2  ;;  %10646 = vmatprep.mubr.bf16.mxu1 %v21313_v26 }
 0x2b3   : > { %v5836_v29 = vmax.f32 %v5651_v49, %v5772_v44  ;;  %v4995_v6 = vadd.f32 %v4994_v61, %v18249_v14  ;;  %v5659_v41 = vadd.f32 %v5658_v23, %v18252_v35  ;;  %v4996_v32 = vpop.f32.mrf.mxu0  ;;  %v5660_v18 = vpop.f32.mrf.mxu1 }
 0x2b4   : > { %v18424_v36 = vpack.c.bf16 %v5173_v50, %v5171_v24  ;;  %v18426_v12 = vpack.c.bf16 %v5837_v63, %v5835_v16  ;;  %v5174_v57 = vmax.f32 %v4991_v62, %v5110_v45  ;;  %v5838_v1 = vmax.f32 %v5655_v3, %v5774_v51  ;;  %v15048_v24 = vld [vmem:[%s20905_s4 + $0x370] ss:$8 sps:$4 sm:$0xff]  }
 0x2b5   : > { %v5111_v42 = vmul.f32 0.2, %v4995_v6  ;;  %v5775_v34 = vmul.f32 0.2, %v5659_v41  ;;  %v4997_v21 = vadd.f32 %v4996_v32, %v18261_v53  ;;  %v5661_v26 = vadd.f32 %v5660_v18, %v18269_v52  ;;  %v4998_v9 = vpop.f32.mrf.mxu0  ;;  %v5662_v49 = vpop.f32.mrf.mxu1  ;;  %v15051_v50 = vld [vmem:[%s20905_s4 + $0x470] ss:$8 sps:$4 sm:$0xff]  }
 0x2b6   : > { %21314 = vst [vmem:[#allocation25_spill] sm:$0xff] %v18424_v36  ;;  %21315 = vst [vmem:[#allocation44_spill] sm:$0xff] %v18426_v12  ;;  %v4999_v30 = vadd.f32 %v4998_v9, %v18249_v14  ;;  %v5663_v44 = vadd.f32 %v5662_v49, %v18252_v35  ;;  %v18435_v16 = vpack.c.bf16 %v5174_v57, %v5172_v17  ;;  %v15056_v17 = vld [vmem:[%s20905_s4 + $0x364] ss:$8 sps:$4 sm:$0xff]   ;;  %v21318_v9 = vld [vmem:[#allocation40_spill] sm:$0xff] }
 0x2b7   : > { %v18437_v62 = vpack.c.bf16 %v5838_v1, %v5836_v29  ;;  %v5112_v3 = vmul.f32 0.2, %v4997_v21  ;;  %v5776_v61 = vmul.f32 0.2, %v5661_v26  ;;  %v5000_v23 = vpop.f32.mrf.mxu0  ;;  %v5664_v39 = vpop.f32.mrf.mxu1  ;;  %v5175_v29 = vmax.f32 %v4995_v6, %v5111_v42  ;;  %v21319_v49 = vld [vmem:[#allocation103_spill] sm:$0xff] }
 0x2b8   : > { %21316 = vst [vmem:[#allocation105_spill] sm:$0xff] %v18435_v16  ;;  %v5113_v63 = vmul.f32 0.2, %v4999_v30  ;;  %v5777_v45 = vmul.f32 0.2, %v5663_v44  ;;  %v5001_v51 = vadd.f32 %v5000_v23, %v18261_v53  ;;  %v5665_v2 = vadd.f32 %v5664_v39, %v18269_v52  ;;  %v21320_v16 = vld [vmem:[#allocation48_spill] sm:$0xff] }
 0x2b9   : > { %21317 = vst [vmem:[#allocation169_spill] sm:$0xff] %v18437_v62  ;;  %v5839_v32 = vmax.f32 %v5659_v41, %v5775_v34  ;;  %v5176_v18 = vmax.f32 %v4997_v21, %v5112_v3  ;;  %v5004_v57 = vpop.f32.mrf.mxu0  ;;  %v5668_v1 = vpop.f32.mrf.mxu1  ;;  %10454 = vmatmul.mubr.bf16.vlgmr.msra.gmra.mxu0 %v21318_v9  ;;  %10647 = vmatmul.mubr.bf16.vlgmr.msra.gmra.mxu1 %v21319_v49  ;;  %v15059_v12 = vld [vmem:[%s20905_s4 + $0x464] ss:$8 sps:$4 sm:$0xff]  }
 0x2ba   : > { %v5177_v23 = vmax.f32 %v4999_v30, %v5113_v63  ;;  %v5841_v62 = vmax.f32 %v5663_v44, %v5777_v45  ;;  %v5114_v39 = vmul.f32 0.2, %v5001_v51  ;;  %v5778_v36 = vmul.f32 0.2, %v5665_v2  ;;  %10463 = vmatprep.mubr.bf16.mxu0 %v21320_v16  ;;  %10656 = vmatprep.mubr.bf16.mxu1 %v21321_v56  ;;  %v15054_v30 = vld [vmem:[%s20905_s4 + $0x360] ss:$8 sps:$4 sm:$0xff]  }
 0x2bb   : > { %v5840_v6 = vmax.f32 %v5661_v26, %v5776_v61  ;;  %v18455_v41 = vadd.f32 %v5004_v57, %v18249_v14  ;;  %v18458_v42 = vadd.f32 %v5668_v1, %v18252_v35  ;;  %v5006_v34 = vpop.f32.mrf.mxu0  ;;  %v5670_v21 = vpop.f32.mrf.mxu1  ;;  %10808 = vmatpush1.bf16.msra.mxu0 %v15048_v24  ;;  %11001 = vmatpush1.bf16.msra.mxu1 %v15051_v50  ;;  %v15057_v44 = vld [vmem:[%s20905_s4 + $0x460] ss:$8 sps:$4 sm:$0xff]   ;;  %v15062_v24 = vld [vmem:[%s20905_s4 + $0x354] ss:$8 sps:$4 sm:$0xff]  }
 0x2bc   : > { %v18466_v56 = vpack.c.bf16 %v5177_v23, %v5175_v29  ;;  %v18468_v26 = vpack.c.bf16 %v5841_v62, %v5839_v32  ;;  %v5178_v16 = vmax.f32 %v5001_v51, %v5114_v39  ;;  %v5842_v3 = vmax.f32 %v5665_v2, %v5778_v36  ;;  %10809 = vmatprep.subr.bf16.mxu0 %v15056_v17  ;;  %v15065_v61 = vld [vmem:[%s20905_s4 + $0x454] ss:$8 sps:$4 sm:$0xff]   ;;  %v15060_v29 = vld [vmem:[%s20905_s4 + $0x350] ss:$8 sps:$4 sm:$0xff]  }
 0x2bd   : > { %v5115_v50 = vmul.f32 0.2, %v18455_v41  ;;  %v5779_v63 = vmul.f32 0.2, %v18458_v42  ;;  %v18479_v45 = vadd.f32 %v5006_v34, %v18261_v53  ;;  %v18482_v62 = vadd.f32 %v5670_v21, %v18269_v52  ;;  %v5008_v36 = vpop.f32.mrf.mxu0  ;;  %v5672_v51 = vpop.f32.mrf.mxu1  ;;  %11002 = vmatprep.subr.bf16.mxu1 %v15059_v12  ;;  %v15063_v12 = vld [vmem:[%s20905_s4 + $0x450] ss:$8 sps:$4 sm:$0xff]  }
 0x2be   : > { %21322 = vst [vmem:[#allocation40_spill] sm:$0xff] %v18466_v56  ;;  %21323 = vst [vmem:[#allocation103_spill] sm:$0xff] %v18468_v26  ;;  %v5009_v2 = vadd.f32 %v5008_v36, %v18249_v14  ;;  %v5673_v17 = vadd.f32 %v5672_v51, %v18252_v35  ;;  %v18489_v32 = vpack.c.bf16 %v5178_v16, %v5176_v18  ;;  %v21326_v51 = vld [vmem:[#allocation46_spill] sm:$0xff]  ;;  %v21328_v56 = vld [vmem:[#allocation52_spill] sm:$0xff] }
 0x2bf   : > { %v18491_v57 = vpack.c.bf16 %v5842_v3, %v5840_v6  ;;  %v5116_v1 = vmul.f32 0.2, %v18479_v45  ;;  %v5780_v9 = vmul.f32 0.2, %v18482_v62  ;;  %v5010_v49 = vpop.f32.mrf.mxu0  ;;  %v5674_v23 = vpop.f32.mrf.mxu1  ;;  %10810 = vmatpush1.bf16.msra.mxu0 %v15054_v30  ;;  %11003 = vmatpush1.bf16.msra.mxu1 %v15057_v44  ;;  %v15068_v6 = vld [vmem:[%s20905_s4 + $0x344] ss:$8 sps:$4 sm:$0xff]   ;;  %v5179_v16 = vmax.f32 %v18455_v41, %v5115_v50 }
 0x2c0   : > { %21324 = vst [vmem:[#allocation48_spill] sm:$0xff] %v18489_v32  ;;  %v5117_v39 = vmul.f32 0.2, %v5009_v2  ;;  %v5781_v34 = vmul.f32 0.2, %v5673_v17  ;;  %v5011_v21 = vadd.f32 %v5010_v49, %v18261_v53  ;;  %v5675_v18 = vadd.f32 %v5674_v23, %v18269_v52  ;;  %10811 = vmatprep.subr.bf16.mxu0 %v15062_v24  ;;  %11004 = vmatprep.subr.bf16.mxu1 %v15065_v61  ;;  %v21327_v26 = vld [vmem:[#allocation30_spill] sm:$0xff] }
 0x2c1   : > { %21325 = vst [vmem:[#allocation108_spill] sm:$0xff] %v18491_v57  ;;  %v5843_v30 = vmax.f32 %v18458_v42, %v5779_v63  ;;  %v5180_v44 = vmax.f32 %v18479_v45, %v5116_v1  ;;  %v5014_v3 = vpop.f32.mrf.mxu0  ;;  %v5678_v36 = vpop.f32.mrf.mxu1  ;;  %10464 = vmatmul.mubr.bf16.gmra.mxu0 %v21326_v51  ;;  %10657 = vmatmul.mubr.bf16.gmra.mxu1 %v21327_v26  ;;  %v15071_v24 = vld [vmem:[%s20905_s4 + $0x444] ss:$8 sps:$4 sm:$0xff]  }
 0x2c2   : > { %v5181_v61 = vmax.f32 %v5009_v2, %v5117_v39  ;;  %v5845_v49 = vmax.f32 %v5673_v17, %v5781_v34  ;;  %v5118_v23 = vmul.f32 0.2, %v5011_v21  ;;  %v5782_v57 = vmul.f32 0.2, %v5675_v18  ;;  %10473 = vmatprep.mubr.bf16.mxu0 %v21328_v56  ;;  %v21329_v41 = vld [vmem:[#allocation111_spill] sm:$0xff] }
 0x2c3   : > { %10666 = vmatprep.mubr.bf16.mxu1 %v21329_v41  ;;  %v5844_v42 = vmax.f32 %v18482_v62, %v5780_v9  ;;  %v18515_v50 = vadd.f32 %v5014_v3, %v18249_v14  ;;  %v18518_v63 = vadd.f32 %v5678_v36, %v18252_v35  ;;  %v5016_v26 = vpop.f32.mrf.mxu0  ;;  %v5680_v45 = vpop.f32.mrf.mxu1  ;;  %10812 = vmatpush1.bf16.msra.mxu0 %v15060_v29  ;;  %v15066_v2 = vld [vmem:[%s20905_s4 + $0x340] ss:$8 sps:$4 sm:$0xff]   ;;  %v15074_v29 = vld [vmem:[%s20905_s4 + $0x334] ss:$8 sps:$4 sm:$0xff]   ;;  %v15072_v3 = vld [vmem:[%s20905_s4 + $0x330] ss:$8 sps:$4 sm:$0xff]  }
 0x2c4   : > { %11005 = vmatpush1.bf16.msra.mxu1 %v15063_v12  ;;  %v15069_v56 = vld [vmem:[%s20905_s4 + $0x440] ss:$8 sps:$4 sm:$0xff]   ;;  %v18526_v17 = vpack.c.bf16 %v5181_v61, %v5179_v16  ;;  %v18528_v62 = vpack.c.bf16 %v5845_v49, %v5843_v30  ;;  %v5182_v1 = vmax.f32 %v5011_v21, %v5118_v23  ;;  %v5846_v9 = vmax.f32 %v5675_v18, %v5782_v57  ;;  %v15077_v12 = vld [vmem:[%s20905_s4 + $0x434] ss:$8 sps:$4 sm:$0xff]  }
 0x2c5   : > { %10813 = vmatprep.subr.bf16.mxu0 %v15068_v6  ;;  %v5119_v39 = vmul.f32 0.2, %v18515_v50  ;;  %v5783_v34 = vmul.f32 0.2, %v18518_v63  ;;  %v18539_v16 = vadd.f32 %v5016_v26, %v18261_v53  ;;  %v18542_v30 = vadd.f32 %v5680_v45, %v18269_v52  ;;  %v5018_v57 = vpop.f32.mrf.mxu0  ;;  %v5682_v21 = vpop.f32.mrf.mxu1  ;;  %11006 = vmatprep.subr.bf16.mxu1 %v15071_v24  ;;  %v15075_v24 = vld [vmem:[%s20905_s4 + $0x430] ss:$8 sps:$4 sm:$0xff]  }
 0x2c6   : > { %21330 = vst [vmem:[#allocation46_spill] sm:$0xff] %v18526_v17  ;;  %21331 = vst [vmem:[#allocation30_spill] sm:$0xff] %v18528_v62  ;;  %v5019_v18 = vadd.f32 %v5018_v57, %v18249_v14  ;;  %v5683_v6 = vadd.f32 %v5682_v21, %v18252_v35  ;;  %v18549_v36 = vpack.c.bf16 %v5182_v1, %v5180_v44  ;;  %v21334_v62 = vld [vmem:[#allocation50_spill] sm:$0xff] }
 0x2c7   : > { %v18551_v51 = vpack.c.bf16 %v5846_v9, %v5844_v42  ;;  %v5120_v61 = vmul.f32 0.2, %v18539_v16  ;;  %v5784_v49 = vmul.f32 0.2, %v18542_v30  ;;  %v5020_v23 = vpop.f32.mrf.mxu0  ;;  %v5684_v41 = vpop.f32.mrf.mxu1  ;;  %10814 = vmatpush1.bf16.msra.mxu0 %v15066_v2  ;;  %v15080_v42 = vld [vmem:[%s20905_s4 + $0x324] ss:$8 sps:$4 sm:$0xff]   ;;  %v5183_v1 = vmax.f32 %v18515_v50, %v5119_v39 }
 0x2c8   : > { %21332 = vst [vmem:[#allocation52_spill] sm:$0xff] %v18549_v36  ;;  %11007 = vmatpush1.bf16.msra.mxu1 %v15069_v56  ;;  %v5121_v26 = vmul.f32 0.2, %v5019_v18  ;;  %v5785_v45 = vmul.f32 0.2, %v5683_v6  ;;  %v5021_v57 = vadd.f32 %v5020_v23, %v18261_v53  ;;  %v5685_v44 = vadd.f32 %v5684_v41, %v18269_v52  ;;  %10815 = vmatprep.subr.bf16.mxu0 %v15074_v29  ;;  %v21336_v36 = vld [vmem:[#allocation57_spill] sm:$0xff] }
 0x2c9   : > { %21333 = vst [vmem:[#allocation111_spill] sm:$0xff] %v18551_v51  ;;  %11008 = vmatprep.subr.bf16.mxu1 %v15077_v12  ;;  %v5847_v2 = vmax.f32 %v18518_v63, %v5783_v34  ;;  %v5184_v56 = vmax.f32 %v18539_v16, %v5120_v61  ;;  %v5024_v9 = vpop.f32.mrf.mxu0  ;;  %v5688_v21 = vpop.f32.mrf.mxu1  ;;  %10474 = vmatmul.mubr.bf16.gmra.mxu0 %v21334_v62  ;;  %v21335_v51 = vld [vmem:[#allocation31_spill] sm:$0xff] }
 0x2ca   : > { %10667 = vmatmul.mubr.bf16.gmra.mxu1 %v21335_v51  ;;  %v15083_v29 = vld [vmem:[%s20905_s4 + $0x424] ss:$8 sps:$4 sm:$0xff]   ;;  %v5185_v12 = vmax.f32 %v5019_v18, %v5121_v26  ;;  %v5849_v23 = vmax.f32 %v5683_v6, %v5785_v45  ;;  %v5122_v41 = vmul.f32 0.2, %v5021_v57  ;;  %v5786_v17 = vmul.f32 0.2, %v5685_v44  ;;  %10483 = vmatprep.mubr.bf16.mxu0 %v21336_v36 }
 0x2cb   : > { %v21337_v50 = vld [vmem:[#allocation115_spill] sm:$0xff]  ;;  %v5848_v63 = vmax.f32 %v18542_v30, %v5784_v49  ;;  %v18575_v39 = vadd.f32 %v5024_v9, %v18249_v14  ;;  %v18578_v62 = vadd.f32 %v5688_v21, %v18252_v35  ;;  %v5026_v34 = vpop.f32.mrf.mxu0  ;;  %v5690_v16 = vpop.f32.mrf.mxu1  ;;  %10816 = vmatpush1.bf16.msra.mxu0 %v15072_v3  ;;  %v15086_v3 = vld [vmem:[%s20905_s4 + $0x314] ss:$8 sps:$4 sm:$0xff]  }
 0x2cc   : > { %10676 = vmatprep.mubr.bf16.mxu1 %v21337_v50  ;;  %11009 = vmatpush1.bf16.msra.mxu1 %v15075_v24  ;;  %v15078_v18 = vld [vmem:[%s20905_s4 + $0x320] ss:$8 sps:$4 sm:$0xff]   ;;  %v18586_v36 = vpack.c.bf16 %v5185_v12, %v5183_v1  ;;  %v18588_v30 = vpack.c.bf16 %v5849_v23, %v5847_v2  ;;  %v5186_v51 = vmax.f32 %v5021_v57, %v5122_v41  ;;  %v15089_v49 = vld [vmem:[%s20905_s4 + $0x414] ss:$8 sps:$4 sm:$0xff]   ;;  %v15084_v2 = vld [vmem:[%s20905_s4 + $0x310] ss:$8 sps:$4 sm:$0xff]  }
 0x2cd   : > { %v15081_v6 = vld [vmem:[%s20905_s4 + $0x420] ss:$8 sps:$4 sm:$0xff]   ;;  %v5850_v61 = vmax.f32 %v5685_v44, %v5786_v17  ;;  %10817 = vmatprep.subr.bf16.mxu0 %v15080_v42  ;;  %v5123_v24 = vmul.f32 0.2, %v18575_v39  ;;  %v5787_v26 = vmul.f32 0.2, %v18578_v62  ;;  %v18599_v45 = vadd.f32 %v5026_v34, %v18261_v53  ;;  %v5028_v17 = vpop.f32.mrf.mxu0  ;;  %v5692_v57 = vpop.f32.mrf.mxu1  ;;  %11010 = vmatprep.subr.bf16.mxu1 %v15083_v29 }
 0x2ce   : > { %21338 = vst [vmem:[#allocation50_spill] sm:$0xff] %v18586_v36  ;;  %21339 = vst [vmem:[#allocation31_spill] sm:$0xff] %v18588_v30  ;;  %v18602_v1 = vadd.f32 %v5690_v16, %v18269_v52  ;;  %v5029_v44 = vadd.f32 %v5028_v17, %v18249_v14  ;;  %v5693_v42 = vadd.f32 %v5692_v57, %v18252_v35  ;;  %v15087_v29 = vld [vmem:[%s20905_s4 + $0x410] ss:$8 sps:$4 sm:$0xff]   ;;  %v21342_v30 = vld [vmem:[#allocation55_spill] sm:$0xff] }
 0x2cf   : > { %v18609_v9 = vpack.c.bf16 %v5186_v51, %v5184_v56  ;;  %v18611_v21 = vpack.c.bf16 %v5850_v61, %v5848_v63  ;;  %v5124_v12 = vmul.f32 0.2, %v18599_v45  ;;  %v5030_v41 = vpop.f32.mrf.mxu0  ;;  %v5694_v50 = vpop.f32.mrf.mxu1  ;;  %10818 = vmatpush1.bf16.msra.mxu0 %v15078_v18  ;;  %v15092_v63 = vld [vmem:[%s20905_s4 + $0x304] ss:$8 sps:$4 sm:$0xff]   ;;  %v5187_v51 = vmax.f32 %v18575_v39, %v5123_v24 }
 0x2d0   : > { %v5788_v23 = vmul.f32 0.2, %v18602_v1  ;;  %11011 = vmatpush1.bf16.msra.mxu1 %v15081_v6  ;;  %v5125_v34 = vmul.f32 0.2, %v5029_v44  ;;  %v5789_v16 = vmul.f32 0.2, %v5693_v42  ;;  %v5031_v17 = vadd.f32 %v5030_v41, %v18261_v53  ;;  %10819 = vmatprep.subr.bf16.mxu0 %v15086_v3 }
 0x2d1   : > { %21340 = vst [vmem:[#allocation57_spill] sm:$0xff] %v18609_v9  ;;  %21341 = vst [vmem:[#allocation115_spill] sm:$0xff] %v18611_v21  ;;  %v5695_v56 = vadd.f32 %v5694_v50, %v18269_v52  ;;  %11012 = vmatprep.subr.bf16.mxu1 %v15089_v49  ;;  %v5851_v18 = vmax.f32 %v18578_v62, %v5787_v26  ;;  %v5188_v6 = vmax.f32 %v18599_v45, %v5124_v12  ;;  %v5034_v61 = vpop.f32.mrf.mxu0  ;;  %v5698_v57 = vpop.f32.mrf.mxu1  ;;  %v21343_v21 = vld [vmem:[#allocation113_spill] sm:$0xff]  ;;  %v15095_v3 = vld [vmem:[%s20905_s4 + $0x404] ss:$8 sps:$4 sm:$0xff]  }
 0x2d2   : > { %10484 = vmatmul.mubr.bf16.gmra.mxu0 %v21342_v30  ;;  %10677 = vmatmul.mubr.bf16.gmra.mxu1 %v21343_v21  ;;  %v5189_v49 = vmax.f32 %v5029_v44, %v5125_v34  ;;  %v5853_v41 = vmax.f32 %v5693_v42, %v5789_v16  ;;  %v5126_v50 = vmul.f32 0.2, %v5031_v17  ;;  %v21344_v9 = vld [vmem:[#allocation62_spill] sm:$0xff]  ;;  %v21345_v39 = vld [vmem:[#allocation119_spill] sm:$0xff]  ;;  %v5852_v62 = vmax.f32 %v18602_v1, %v5788_v23  ;;  %v15101_v23 = vld [vmem:[%s20905_s4 + $0x4f4] ss:$8 sps:$4 sm:$0xff]  }
 0x2d3   : > { %v5790_v36 = vmul.f32 0.2, %v5695_v56  ;;  %10493 = vmatprep.mubr.bf16.mxu0 %v21344_v9  ;;  %10686 = vmatprep.mubr.bf16.mxu1 %v21345_v39  ;;  %v18635_v24 = vadd.f32 %v5034_v61, %v18249_v14  ;;  %v18638_v30 = vadd.f32 %v5698_v57, %v18252_v35  ;;  %v5036_v26 = vpop.f32.mrf.mxu0  ;;  %v5700_v45 = vpop.f32.mrf.mxu1  ;;  %v15090_v44 = vld [vmem:[%s20905_s4 + $0x300] ss:$8 sps:$4 sm:$0xff]  }
 0x2d4   : > { %10820 = vmatpush1.bf16.msra.mxu0 %v15084_v2  ;;  %11013 = vmatpush1.bf16.msra.mxu1 %v15087_v29  ;;  %v15093_v42 = vld [vmem:[%s20905_s4 + $0x400] ss:$8 sps:$4 sm:$0xff]   ;;  %v18646_v9 = vpack.c.bf16 %v5189_v49, %v5187_v51  ;;  %v18648_v1 = vpack.c.bf16 %v5853_v41, %v5851_v18  ;;  %v5190_v21 = vmax.f32 %v5031_v17, %v5126_v50  ;;  %v15098_v2 = vld [vmem:[%s20905_s4 + $0x3f4] ss:$8 sps:$4 sm:$0xff]   ;;  %v15096_v18 = vld [vmem:[%s20905_s4 + $0x3f0] ss:$8 sps:$4 sm:$0xff]  }
 0x2d5   : > { %v5854_v12 = vmax.f32 %v5695_v56, %v5790_v36  ;;  %10821 = vmatprep.subr.bf16.mxu0 %v15092_v63  ;;  %v5127_v29 = vmul.f32 0.2, %v18635_v24  ;;  %v5791_v34 = vmul.f32 0.2, %v18638_v30  ;;  %v18659_v16 = vadd.f32 %v5036_v26, %v18261_v53  ;;  %v5038_v36 = vpop.f32.mrf.mxu0  ;;  %v5702_v17 = vpop.f32.mrf.mxu1  ;;  %11014 = vmatprep.subr.bf16.mxu1 %v15095_v3  ;;  %v15099_v3 = vld [vmem:[%s20905_s4 + $0x4f0] ss:$8 sps:$4 sm:$0xff]  }
 0x2d6   : > { %21346 = vst [vmem:[#allocation55_spill] sm:$0xff] %v18646_v9  ;;  %21347 = vst [vmem:[#allocation113_spill] sm:$0xff] %v18648_v1  ;;  %v18662_v51 = vadd.f32 %v5700_v45, %v18269_v52  ;;  %v5039_v56 = vadd.f32 %v5038_v36, %v18249_v14  ;;  %v5703_v63 = vadd.f32 %v5702_v17, %v18252_v35  ;;  %v21350_v1 = vld [vmem:[#allocation60_spill] sm:$0xff] }
 0x2d7   : > { %v18669_v61 = vpack.c.bf16 %v5190_v21, %v5188_v6  ;;  %v18671_v57 = vpack.c.bf16 %v5854_v12, %v5852_v62  ;;  %v5128_v49 = vmul.f32 0.2, %v18659_v16  ;;  %v5040_v50 = vpop.f32.mrf.mxu0  ;;  %v5704_v39 = vpop.f32.mrf.mxu1  ;;  %v15104_v62 = vld [vmem:[%s20905_s4 + $0x3e4] ss:$8 sps:$4 sm:$0xff]   ;;  %v5191_v21 = vmax.f32 %v18635_v24, %v5127_v29  ;;  %v21353_v24 = vld [vmem:[#allocation128_spill] sm:$0xff] }
 0x2d8   : > { %v5792_v41 = vmul.f32 0.2, %v18662_v51  ;;  %10822 = vmatpush1.bf16.msra.mxu0 %v15090_v44  ;;  %11015 = vmatpush1.bf16.msra.mxu1 %v15093_v42  ;;  %v5129_v26 = vmul.f32 0.2, %v5039_v56  ;;  %v5793_v45 = vmul.f32 0.2, %v5703_v63  ;;  %v5041_v36 = vadd.f32 %v5040_v50, %v18261_v53 }
 0x2d9   : > { %21348 = vst [vmem:[#allocation62_spill] sm:$0xff] %v18669_v61  ;;  %21349 = vst [vmem:[#allocation119_spill] sm:$0xff] %v18671_v57  ;;  %v5705_v6 = vadd.f32 %v5704_v39, %v18269_v52  ;;  %10823 = vmatprep.subr.bf16.mxu0 %v15098_v2  ;;  %11016 = vmatprep.subr.bf16.mxu1 %v15101_v23  ;;  %v5855_v44 = vmax.f32 %v18638_v30, %v5791_v34  ;;  %v5044_v12 = vpop.f32.mrf.mxu0  ;;  %v5708_v17 = vpop.f32.mrf.mxu1  ;;  %v21351_v57 = vld [vmem:[#allocation117_spill] sm:$0xff]  ;;  %v15107_v2 = vld [vmem:[%s20905_s4 + $0x4e4] ss:$8 sps:$4 sm:$0xff]  }
 0x2da   : > { %v5192_v42 = vmax.f32 %v18659_v16, %v5128_v49  ;;  %10494 = vmatmul.mubr.bf16.gmra.mxu0 %v21350_v1  ;;  %10687 = vmatmul.mubr.bf16.gmra.mxu1 %v21351_v57  ;;  %v5193_v23 = vmax.f32 %v5039_v56, %v5129_v26  ;;  %v5857_v50 = vmax.f32 %v5703_v63, %v5793_v45  ;;  %v5130_v39 = vmul.f32 0.2, %v5041_v36  ;;  %v21352_v61 = vld [vmem:[#allocation77_spill] sm:$0xff]  ;;  %v15102_v56 = vld [vmem:[%s20905_s4 + $0x3e0] ss:$8 sps:$4 sm:$0xff]  }
 0x2db   : > { %v5794_v9 = vmul.f32 0.2, %v5705_v6  ;;  %10503 = vmatprep.mubr.bf16.mxu0 %v21352_v61  ;;  %10696 = vmatprep.mubr.bf16.mxu1 %v21353_v24  ;;  %v5856_v30 = vmax.f32 %v18662_v51, %v5792_v41  ;;  %v18695_v29 = vadd.f32 %v5044_v12, %v18249_v14  ;;  %v18698_v1 = vadd.f32 %v5708_v17, %v18252_v35  ;;  %v5046_v34 = vpop.f32.mrf.mxu0  ;;  %v5710_v16 = vpop.f32.mrf.mxu1  ;;  %v15105_v63 = vld [vmem:[%s20905_s4 + $0x4e0] ss:$8 sps:$4 sm:$0xff]   ;;  %v15113_v41 = vld [vmem:[%s20905_s4 + $0x4d4] ss:$8 sps:$4 sm:$0xff]  }
 0x2dc   : > { %10824 = vmatpush2.bf16.msra.mxu0 %v15096_v18  ;;  %11017 = vmatpush2.bf16.msra.mxu1 %v15099_v3  ;;  %v18706_v61 = vpack.c.bf16 %v5193_v23, %v5191_v21  ;;  %v18708_v51 = vpack.c.bf16 %v5857_v50, %v5855_v44  ;;  %v5194_v57 = vmax.f32 %v5041_v36, %v5130_v39  ;;  %v15110_v18 = vld [vmem:[%s20905_s4 + $0x3d4] ss:$8 sps:$4 sm:$0xff]   ;;  %v15108_v44 = vld [vmem:[%s20905_s4 + $0x3d0] ss:$8 sps:$4 sm:$0xff]  }
 0x2dd   : > { %v5858_v49 = vmax.f32 %v5705_v6, %v5794_v9  ;;  %10825 = vmatprep.subr.bf16.mxu0 %v15104_v62  ;;  %v5131_v3 = vmul.f32 0.2, %v18695_v29  ;;  %v5795_v26 = vmul.f32 0.2, %v18698_v1  ;;  %v18719_v45 = vadd.f32 %v5046_v34, %v18261_v53  ;;  %v5048_v9 = vpop.f32.mrf.mxu0  ;;  %v5712_v36 = vpop.f32.mrf.mxu1  ;;  %11018 = vmatprep.subr.bf16.mxu1 %v15107_v2  ;;  %v15111_v2 = vld [vmem:[%s20905_s4 + $0x4d0] ss:$8 sps:$4 sm:$0xff]  }
 0x2de   : > { %21354 = vst [vmem:[#allocation60_spill] sm:$0xff] %v18706_v61  ;;  %21355 = vst [vmem:[#allocation117_spill] sm:$0xff] %v18708_v51  ;;  %v18722_v21 = vadd.f32 %v5710_v16, %v18269_v52  ;;  %v5049_v6 = vadd.f32 %v5048_v9, %v18249_v14  ;;  %v5713_v62 = vadd.f32 %v5712_v36, %v18252_v35  ;;  %v21358_v51 = vld [vmem:[#allocation64_spill] sm:$0xff] }
 0x2df   : > { %v18729_v12 = vpack.c.bf16 %v5194_v57, %v5192_v42  ;;  %v18731_v17 = vpack.c.bf16 %v5858_v49, %v5856_v30  ;;  %v5132_v23 = vmul.f32 0.2, %v18719_v45  ;;  %v5050_v39 = vpop.f32.mrf.mxu0  ;;  %v5714_v24 = vpop.f32.mrf.mxu1  ;;  %v15116_v30 = vld [vmem:[%s20905_s4 + $0x3c4] ss:$8 sps:$4 sm:$0xff]   ;;  %v5195_v57 = vmax.f32 %v18695_v29, %v5131_v3 }
 0x2e0   : > { %v5796_v50 = vmul.f32 0.2, %v18722_v21  ;;  %10826 = vmatpush2.bf16.msra.mxu0 %v15102_v56  ;;  %11019 = vmatpush2.bf16.msra.mxu1 %v15105_v63  ;;  %v5133_v34 = vmul.f32 0.2, %v5049_v6  ;;  %v5797_v16 = vmul.f32 0.2, %v5713_v62  ;;  %v5051_v9 = vadd.f32 %v5050_v39, %v18261_v53 }
 0x2e1   : > { %21356 = vst [vmem:[#allocation77_spill] sm:$0xff] %v18729_v12  ;;  %21357 = vst [vmem:[#allocation128_spill] sm:$0xff] %v18731_v17  ;;  %v5715_v42 = vadd.f32 %v5714_v24, %v18269_v52  ;;  %10827 = vmatprep.subr.bf16.mxu0 %v15110_v18  ;;  %11020 = vmatprep.subr.bf16.mxu1 %v15113_v41  ;;  %v5859_v56 = vmax.f32 %v18698_v1, %v5795_v26  ;;  %v5054_v49 = vpop.f32.mrf.mxu0  ;;  %v5718_v36 = vpop.f32.mrf.mxu1  ;;  %v21359_v17 = vld [vmem:[#allocation121_spill] sm:$0xff]  ;;  %v15119_v18 = vld [vmem:[%s20905_s4 + $0x4c4] ss:$8 sps:$4 sm:$0xff]  }
 0x2e2   : > { %v5196_v63 = vmax.f32 %v18719_v45, %v5132_v23  ;;  %10504 = vmatmul.mubr.bf16.gmra.mxu0 %v21358_v51  ;;  %10697 = vmatmul.mubr.bf16.gmra.mxu1 %v21359_v17  ;;  %v5197_v41 = vmax.f32 %v5049_v6, %v5133_v34  ;;  %v5861_v39 = vmax.f32 %v5713_v62, %v5797_v16  ;;  %v5134_v24 = vmul.f32 0.2, %v5051_v9  ;;  %v21360_v12 = vld [vmem:[#allocation78_spill] sm:$0xff]  ;;  %v15125_v17 = vld [vmem:[%s20905_s4 + $0x4b4] ss:$8 sps:$4 sm:$0xff]  }
 0x2e3   : > { %v5798_v61 = vmul.f32 0.2, %v5715_v42  ;;  %10513 = vmatprep.mubr.bf16.mxu0 %v21360_v12  ;;  %10706 = vmatprep.mubr.bf16.mxu1 %v17222_v10  ;;  %v5860_v29 = vmax.f32 %v18722_v21, %v5796_v50  ;;  %v18755_v1 = vadd.f32 %v5054_v49, %v18249_v14  ;;  %v18758_v51 = vadd.f32 %v5718_v36, %v18252_v35  ;;  %v5056_v3 = vpop.f32.mrf.mxu0  ;;  %v5720_v26 = vpop.f32.mrf.mxu1  ;;  %v15114_v45 = vld [vmem:[%s20905_s4 + $0x3c0] ss:$8 sps:$4 sm:$0xff]  }
 0x2e4   : > { %10828 = vmatpush2.bf16.msra.mxu0 %v15108_v44  ;;  %11021 = vmatpush2.bf16.msra.mxu1 %v15111_v2  ;;  %v15117_v10 = vld [vmem:[%s20905_s4 + $0x4c0] ss:$8 sps:$4 sm:$0xff]   ;;  %v18766_v6 = vpack.c.bf16 %v5197_v41, %v5195_v57  ;;  %v18768_v21 = vpack.c.bf16 %v5861_v39, %v5859_v56  ;;  %v5198_v62 = vmax.f32 %v5051_v9, %v5134_v24  ;;  %v15122_v44 = vld [vmem:[%s20905_s4 + $0x3b4] ss:$8 sps:$4 sm:$0xff]  }
 0x2e5   : > { %v5862_v12 = vmax.f32 %v5715_v42, %v5798_v61  ;;  %10829 = vmatprep.subr.bf16.mxu0 %v15116_v30  ;;  %v5135_v23 = vmul.f32 0.2, %v18755_v1  ;;  %v5799_v50 = vmul.f32 0.2, %v18758_v51  ;;  %v18779_v2 = vadd.f32 %v5056_v3, %v18261_v53  ;;  %v5058_v61 = vpop.f32.mrf.mxu0  ;;  %v5722_v16 = vpop.f32.mrf.mxu1  ;;  %11022 = vmatprep.subr.bf16.mxu1 %v15119_v18  ;;  %v15120_v30 = vld [vmem:[%s20905_s4 + $0x3b0] ss:$8 sps:$4 sm:$0xff]  }
 0x2e6   : > { %21361 = vst [vmem:[#allocation64_spill] sm:$0xff] %v18766_v6  ;;  %21362 = vst [vmem:[#allocation121_spill] sm:$0xff] %v18768_v21  ;;  %v18782_v34 = vadd.f32 %v5720_v26, %v18269_v52  ;;  %v5059_v9 = vadd.f32 %v5058_v61, %v18249_v14  ;;  %v5723_v42 = vadd.f32 %v5722_v16, %v18252_v35  ;;  %v15123_v18 = vld [vmem:[%s20905_s4 + $0x4b0] ss:$8 sps:$4 sm:$0xff]   ;;  %v21367_v6 = vld [vmem:[#allocation79_spill] sm:$0xff] }
 0x2e7   : > { %v18789_v57 = vpack.c.bf16 %v5198_v62, %v5196_v63  ;;  %v18791_v56 = vpack.c.bf16 %v5862_v12, %v5860_v29  ;;  %v5136_v49 = vmul.f32 0.2, %v18779_v2  ;;  %v5060_v41 = vpop.f32.mrf.mxu0  ;;  %v5724_v39 = vpop.f32.mrf.mxu1  ;;  %v15128_v29 = vld [vmem:[%s20905_s4 + $0x3a4] ss:$8 sps:$4 sm:$0xff]   ;;  %v5199_v62 = vmax.f32 %v18755_v1, %v5135_v23  ;;  %v21365_v16 = vld [vmem:[#allocation68_spill] sm:$0xff]  ;;  %v21366_v21 = vld [vmem:[#allocation125_spill] sm:$0xff] }
 0x2e8   : > { %v5800_v36 = vmul.f32 0.2, %v18782_v34  ;;  %10830 = vmatpush2.bf16.msra.mxu0 %v15114_v45  ;;  %11023 = vmatpush2.bf16.msra.mxu1 %v15117_v10  ;;  %v5137_v24 = vmul.f32 0.2, %v5059_v9  ;;  %v5801_v3 = vmul.f32 0.2, %v5723_v42  ;;  %v5061_v26 = vadd.f32 %v5060_v41, %v18261_v53 }
 0x2e9   : > { %21363 = vst [vmem:[#allocation78_spill] sm:$0xff] %v18789_v57  ;;  %21364 = vst [vmem:[#allocation170_spill] sm:$0xff] %v18791_v56  ;;  %v5725_v63 = vadd.f32 %v5724_v39, %v18269_v52  ;;  %10831 = vmatprep.subr.bf16.mxu0 %v15122_v44  ;;  %11024 = vmatprep.subr.bf16.mxu1 %v15125_v17  ;;  %v5863_v45 = vmax.f32 %v18758_v51, %v5799_v50  ;;  %v5064_v12 = vpop.f32.mrf.mxu0  ;;  %v5728_v61 = vpop.f32.mrf.mxu1  ;;  %v15131_v44 = vld [vmem:[%s20905_s4 + $0x4a4] ss:$8 sps:$4 sm:$0xff]  }
 0x2ea   : > { %v5200_v10 = vmax.f32 %v18779_v2, %v5136_v49  ;;  %10514 = vmatmul.mubr.bf16.gmra.mxu0 %v21365_v16  ;;  %10707 = vmatmul.mubr.bf16.gmra.mxu1 %v21366_v21  ;;  %v5201_v17 = vmax.f32 %v5059_v9, %v5137_v24  ;;  %v5865_v41 = vmax.f32 %v5723_v42, %v5801_v3  ;;  %v5138_v39 = vmul.f32 0.2, %v5061_v26  ;;  %v15126_v2 = vld [vmem:[%s20905_s4 + $0x3a0] ss:$8 sps:$4 sm:$0xff]   ;;  %v15137_v49 = vld [vmem:[%s20905_s4 + $0x494] ss:$8 sps:$4 sm:$0xff]  }
 0x2eb   : > { %v5802_v56 = vmul.f32 0.2, %v5725_v63  ;;  %10523 = vmatprep.mubr.bf16.mxu0 %v21367_v6  ;;  %10716 = vmatprep.mubr.bf16.mxu1 %v17242_v60  ;;  %v5864_v1 = vmax.f32 %v18782_v34, %v5800_v36  ;;  %v18815_v51 = vadd.f32 %v5064_v12, %v18249_v14  ;;  %v18818_v23 = vadd.f32 %v5728_v61, %v18252_v35  ;;  %v5066_v21 = vpop.f32.mrf.mxu0  ;;  %v5730_v50 = vpop.f32.mrf.mxu1  ;;  %v15129_v60 = vld [vmem:[%s20905_s4 + $0x4a0] ss:$8 sps:$4 sm:$0xff]  }
 0x2ec   : > { %10832 = vmatpush2.bf16.msra.mxu0 %v15120_v30  ;;  %11025 = vmatpush2.bf16.msra.mxu1 %v15123_v18  ;;  %v18826_v6 = vpack.c.bf16 %v5201_v17, %v5199_v62  ;;  %v18828_v34 = vpack.c.bf16 %v5865_v41, %v5863_v45  ;;  %v5202_v9 = vmax.f32 %v5061_v26, %v5138_v39  ;;  %v15134_v30 = vld [vmem:[%s20905_s4 + $0x394] ss:$8 sps:$4 sm:$0xff]   ;;  %v15132_v62 = vld [vmem:[%s20905_s4 + $0x390] ss:$8 sps:$4 sm:$0xff]  }
 0x2ed   : > { %v5866_v42 = vmax.f32 %v5725_v63, %v5802_v56  ;;  %10833 = vmatprep.subr.bf16.mxu0 %v15128_v29  ;;  %v5139_v36 = vmul.f32 0.2, %v18815_v51  ;;  %v5803_v18 = vmul.f32 0.2, %v18818_v23  ;;  %v18839_v24 = vadd.f32 %v5066_v21, %v18261_v53  ;;  %v5068_v56 = vpop.f32.mrf.mxu0  ;;  %v5732_v26 = vpop.f32.mrf.mxu1  ;;  %11026 = vmatprep.subr.bf16.mxu1 %v15131_v44  ;;  %v15135_v44 = vld [vmem:[%s20905_s4 + $0x490] ss:$8 sps:$4 sm:$0xff]  }
 0x2ee   : > { %21368 = vst [vmem:[#allocation68_spill] sm:$0xff] %v18826_v6  ;;  %21369 = vst [vmem:[#allocation125_spill] sm:$0xff] %v18828_v34  ;;  %v18842_v3 = vadd.f32 %v5730_v50, %v18269_v52  ;;  %v5069_v63 = vadd.f32 %v5068_v56, %v18249_v14  ;;  %v5733_v29 = vadd.f32 %v5732_v26, %v18252_v35  ;;  %v21372_v26 = vld [vmem:[#allocation70_spill] sm:$0xff]  ;;  %v21374_v6 = vld [vmem:[#allocation83_spill] sm:$0xff] }
 0x2ef   : > { %v18849_v45 = vpack.c.bf16 %v5202_v9, %v5200_v10  ;;  %v18851_v12 = vpack.c.bf16 %v5866_v42, %v5864_v1  ;;  %v5140_v61 = vmul.f32 0.2, %v18839_v24  ;;  %v5070_v17 = vpop.f32.mrf.mxu0  ;;  %v5734_v41 = vpop.f32.mrf.mxu1  ;;  %v15140_v1 = vld [vmem:[%s20905_s4 + $0x384] ss:$8 sps:$4 sm:$0xff]   ;;  %v5203_v9 = vmax.f32 %v18815_v51, %v5139_v36 }
 0x2f0   : > { %v5804_v16 = vmul.f32 0.2, %v18842_v3  ;;  %10834 = vmatpush2.bf16.msra.mxu0 %v15126_v2  ;;  %11027 = vmatpush2.bf16.msra.mxu1 %v15129_v60  ;;  %v5141_v39 = vmul.f32 0.2, %v5069_v63  ;;  %v5805_v21 = vmul.f32 0.2, %v5733_v29  ;;  %v5071_v50 = vadd.f32 %v5070_v17, %v18261_v53 }
 0x2f1   : > { %21370 = vst [vmem:[#allocation79_spill] sm:$0xff] %v18849_v45  ;;  %21371 = vst [vmem:[#allocation171_spill] sm:$0xff] %v18851_v12  ;;  %v5735_v10 = vadd.f32 %v5734_v41, %v18269_v52  ;;  %10835 = vmatprep.subr.bf16.mxu0 %v15134_v30  ;;  %11028 = vmatprep.subr.bf16.mxu1 %v15137_v49  ;;  %v5867_v2 = vmax.f32 %v18818_v23, %v5803_v18  ;;  %v5074_v42 = vpop.f32.mrf.mxu0  ;;  %v5738_v56 = vpop.f32.mrf.mxu1  ;;  %v21373_v34 = vld [vmem:[#allocation6_spill] sm:$0xff] }
 0x2f2   : > { %v5204_v60 = vmax.f32 %v18839_v24, %v5140_v61  ;;  %10524 = vmatmul.mubr.bf16.gmra.mxu0 %v21372_v26  ;;  %10717 = vmatmul.mubr.bf16.gmra.mxu1 %v21373_v34  ;;  %v15143_v30 = vld [vmem:[%s20905_s4 + $0x484] ss:$8 sps:$4 sm:$0xff]   ;;  %v5205_v49 = vmax.f32 %v5069_v63, %v5141_v39  ;;  %v5869_v17 = vmax.f32 %v5733_v29, %v5805_v21  ;;  %v5142_v41 = vmul.f32 0.2, %v5071_v50  ;;  %v15138_v24 = vld [vmem:[%s20905_s4 + $0x380] ss:$8 sps:$4 sm:$0xff]  }
 0x2f3   : > { %v5806_v12 = vmul.f32 0.2, %v5735_v10  ;;  %10533 = vmatprep.mubr.bf16.mxu0 %v21374_v6  ;;  %10726 = vmatprep.mubr.bf16.mxu1 %v17264_v28  ;;  %v5868_v51 = vmax.f32 %v18842_v3, %v5804_v16  ;;  %v5075_v23 = vadd.f32 %v5074_v42, %v18249_v14  ;;  %v5739_v36 = vadd.f32 %v5738_v56, %v18252_v35  ;;  %v5076_v18 = vpop.f32.mrf.mxu0  ;;  %v5740_v34 = vpop.f32.mrf.mxu1  ;;  %v15141_v6 = vld [vmem:[%s20905_s4 + $0x480] ss:$8 sps:$4 sm:$0xff]   ;;  %v15149_v16 = vld [vmem:[%s20905_s4 + $0x674] ss:$8 sps:$4 sm:$0xff]  }
 0x2f4   : > { %10836 = vmatpush2.bf16.msra.mxu0 %v15132_v62  ;;  %11029 = vmatpush2.bf16.msra.mxu1 %v15135_v44  ;;  %v18882_v63 = vpack.c.bf16 %v5205_v49, %v5203_v9  ;;  %v18884_v28 = vpack.c.bf16 %v5869_v17, %v5867_v2  ;;  %v5206_v3 = vmax.f32 %v5071_v50, %v5142_v41  ;;  %v6123_v61 = vld [vmem:[%s20904_s3] sm:$0x3]  ;;  %v15146_v62 = vld [vmem:[%s20905_s4 + $0x574] ss:$8 sps:$4 sm:$0xff]  }
 0x2f5   : > { %v5870_v29 = vmax.f32 %v5735_v10, %v5806_v12  ;;  %10837 = vmatprep.subr.bf16.mxu0 %v15140_v1  ;;  %v5143_v44 = vmul.f32 0.2, %v5075_v23  ;;  %v5807_v39 = vmul.f32 0.2, %v5739_v36  ;;  %v5077_v21 = vadd.f32 %v5076_v18, %v18261_v53  ;;  %v5078_v12 = vpop.f32.mrf.mxu0  ;;  %v5742_v10 = vpop.f32.mrf.mxu1  ;;  %11030 = vmatprep.subr.bf16.mxu1 %v15143_v30 }
 0x2f6   : > { %21375 = vst [vmem:[#allocation70_spill] sm:$0xff] %v18882_v63  ;;  %21376 = vst [vmem:[#allocation6_spill] sm:$0xff] %v18884_v28  ;;  %v5741_v50 = vadd.f32 %v5740_v34, %v18269_v52  ;;  %v5079_v9 = vadd.f32 %v5078_v12, %v18249_v14  ;;  %v5743_v1 = vadd.f32 %v5742_v10, %v18252_v35  ;;  %v21394_v28 = vld [vmem:[#allocation94_spill] sm:$0xff] }
 0x2f7   : > { %v18899_v2 = vpack.c.bf16 %v5206_v3, %v5204_v60  ;;  %v18901_v42 = vpack.c.bf16 %v5870_v29, %v5868_v51  ;;  %v5144_v56 = vmul.f32 0.2, %v5077_v21  ;;  %v5080_v49 = vpop.f32.mrf.mxu0  ;;  %v5744_v17 = vpop.f32.mrf.mxu1  ;;  %v18904_v41 = vrot.slane %v6123_v61, %v21094_v40  ;;  %v21379_v29 = vld [vmem:[#allocation75_spill] sm:$0xff] }
 0x2f8   : > { %v5808_v26 = vmul.f32 0.2, %v5741_v50  ;;  %10838 = vmatpush2.bf16.msra.mxu0 %v15138_v24  ;;  %11031 = vmatpush2.bf16.msra.mxu1 %v15141_v6  ;;  %v5145_v18 = vmul.f32 0.2, %v5079_v9  ;;  %v5809_v34 = vmul.f32 0.2, %v5743_v1  ;;  %v5081_v30 = vadd.f32 %v5080_v49, %v18261_v53 }
 0x2f9   : > { %21377 = vst [vmem:[#allocation83_spill] sm:$0xff] %v18899_v2  ;;  %21378 = vst [vmem:[#allocation172_spill] sm:$0xff] %v18901_v42  ;;  %v5745_v14 = vadd.f32 %v5744_v17, %v18269_v52  ;;  %11193 = vmatprep.subr.bf16.mxu0 %v15146_v62  ;;  %11386 = vmatprep.subr.bf16.mxu1 %v15149_v16  ;;  %v5207_v35 = vmax.f32 %v5075_v23, %v5143_v44  ;;  %v6249_v51 = vpop.f32.mrf.mxu0  ;;  %v18908_v3 = vpop.f32.mrf.mxu1  ;;  %v21380_v49 = vld [vmem:[#allocation84_spill] sm:$0xff] }
 0x2fa   : > { %v5871_v60 = vmax.f32 %v5739_v36, %v5807_v39  ;;  %10534 = vmatmul.mubr.bf16.gmra.mxu0 %v21379_v29  ;;  %10727 = vmatmul.mubr.bf16.gmra.mxu1 %v17245_v20  ;;  %v18913_v24 = vrot.slane %v6123_v61, %v21097_v22  ;;  %v5209_v6 = vmax.f32 %v5079_v9, %v5145_v18  ;;  %v5146_v10 = vmul.f32 0.2, %v5081_v30 }
 0x2fb   : > { %v5873_v12 = vmax.f32 %v5743_v1, %v5809_v34  ;;  %v5810_v53 = vmul.f32 0.2, %v5745_v14  ;;  %10543 = vmatprep.mubr.bf16.mxu0 %v21380_v49  ;;  %10736 = vmatprep.mubr.bf16.mxu1 %v17357_v58  ;;  %v5208_v52 = vmax.f32 %v5077_v21, %v5144_v56  ;;  %v5872_v23 = vmax.f32 %v5741_v50, %v5808_v26  ;;  %v6251_v62 = vpop.f32.mrf.mxu0  ;;  %v18918_v16 = vpop.f32.mrf.mxu1 }
 0x2fc   : > { %v6250_v36 = vadd.f32 %v6249_v51, %v18904_v41  ;;  %v18920_v44 = vpack.c.bf16 %v5209_v6, %v5207_v35  ;;  %v5210_v61 = vmax.f32 %v5081_v30, %v5146_v10  ;;  %v6252_v9 = vadd.f32 %v6251_v62, %v18913_v24  ;;  %v21385_v51 = vld [vmem:[#allocation81_spill] sm:$0xff] }
 0x2fd   : > { %v18922_v20 = vpack.c.bf16 %v5873_v12, %v5871_v60  ;;  %v5874_v39 = vmax.f32 %v5745_v14, %v5810_v53  ;;  %v6253_v1 = vpop.f32.mrf.mxu0  ;;  %v18925_v17 = vpop.f32.mrf.mxu1  ;;  %v21386_v53 = vld [vmem:[#allocation88_spill] sm:$0xff] }
 0x2fe   : > { %21381 = vst [vmem:[#allocation75_spill] sm:$0xff] %v18920_v44  ;;  %v6408_v18 = vmul.f32 0.2, %v6250_v36  ;;  %v6254_v58 = vadd.f32 %v6253_v1, %v18904_v41  ;;  %v18928_v21 = vpack.c.bf16 %v5210_v61, %v5208_v52  ;;  %v6409_v30 = vmul.f32 0.2, %v6252_v9 }
 0x2ff   : > { %21382 = vst [vmem:[#allocation84_spill] sm:$0xff] %v18922_v20  ;;  %v18930_v50 = vpack.c.bf16 %v5874_v39, %v5872_v23  ;;  %v6255_v56 = vpop.f32.mrf.mxu0  ;;  %v18932_v26 = vpop.f32.mrf.mxu1 }
 0x300   : > { %21383 = vst [vmem:[#allocation173_spill] sm:$0xff] %v18928_v21  ;;  %v6410_v34 = vmul.f32 0.2, %v6254_v58  ;;  %v6256_v35 = vadd.f32 %v6255_v56, %v18913_v24  ;;  %v6472_v29 = vmax.f32 %v6250_v36, %v6408_v18  ;;  %v6473_v61 = vmax.f32 %v6252_v9, %v6409_v30  ;;  %v21389_v9 = vld [vmem:[#allocation86_spill] sm:$0xff] }
 0x301   : > { %21384 = vst [vmem:[#allocation174_spill] sm:$0xff] %v18930_v50  ;;  %v6259_v14 = vpop.f32.mrf.mxu0  ;;  %v18935_v60 = vpop.f32.mrf.mxu1 }
 0x302   : > { %10544 = vmatmul.mubr.bf16.gmra.mxu0 %v21385_v51  ;;  %10737 = vmatmul.mubr.bf16.gmra.mxu1 %v17333_v13  ;;  %v6474_v6 = vmax.f32 %v6254_v58, %v6410_v34  ;;  %v6411_v12 = vmul.f32 0.2, %v6256_v35  ;;  %v6260_v10 = vadd.f32 %v6259_v14, %v18904_v41 }
 0x303   : > { %10553 = vmatprep.mubr.bf16.mxu0 %v21386_v53  ;;  %10746 = vmatprep.mubr.bf16.mxu1 %v17407_v7  ;;  %v6261_v49 = vpop.f32.mrf.mxu0  ;;  %v18942_v52 = vpop.f32.mrf.mxu1 }
 0x304   : > { %v18944_v23 = vpack.c.bf16 %v6474_v6, %v6472_v29  ;;  %v6475_v62 = vmax.f32 %v6256_v35, %v6411_v12  ;;  %v6262_v39 = vadd.f32 %v6261_v49, %v18913_v24  ;;  %v6412_v36 = vmul.f32 0.2, %v6260_v10  ;;  %v21390_v49 = vld [vmem:[#allocation91_spill] sm:$0xff] }
 0x305   : > { %v6263_v1 = vpop.f32.mrf.mxu0  ;;  %v18947_v13 = vpop.f32.mrf.mxu1 }
 0x306   : > { %21387 = vst [vmem:[#allocation81_spill] sm:$0xff] %v18944_v23  ;;  %v6264_v18 = vadd.f32 %v6263_v1, %v18904_v41  ;;  %v18952_v34 = vpack.c.bf16 %v6475_v62, %v6473_v61  ;;  %v6413_v51 = vmul.f32 0.2, %v6262_v39  ;;  %v6476_v30 = vmax.f32 %v6260_v10, %v6412_v36 }
 0x307   : > { %v6265_v58 = vpop.f32.mrf.mxu0  ;;  %v18950_v56 = vpop.f32.mrf.mxu1 }
 0x308   : > { %21388 = vst [vmem:[#allocation88_spill] sm:$0xff] %v18952_v34  ;;  %v6414_v7 = vmul.f32 0.2, %v6264_v18  ;;  %v6266_v14 = vadd.f32 %v6265_v58, %v18913_v24  ;;  %v6477_v20 = vmax.f32 %v6262_v39, %v6413_v51  ;;  %v21393_v39 = vld [vmem:[#allocation89_spill] sm:$0xff] }
 0x309   : > { %v6269_v29 = vpop.f32.mrf.mxu0  ;;  %v18955_v35 = vpop.f32.mrf.mxu1 }
 0x30a   : > { %10554 = vmatmul.mubr.bf16.gmra.mxu0 %v21389_v9  ;;  %10747 = vmatmul.mubr.bf16.gmra.mxu1 %v17396_v48  ;;  %v6478_v6 = vmax.f32 %v6264_v18, %v6414_v7  ;;  %v6415_v12 = vmul.f32 0.2, %v6266_v14  ;;  %v6270_v53 = vadd.f32 %v6269_v29, %v18904_v41 }
 0x30b   : > { %10563 = vmatprep.mubr.bf16.mxu0 %v21390_v49  ;;  %10756 = vmatprep.mubr.bf16.mxu1 %v17442_v31  ;;  %v6271_v62 = vpop.f32.mrf.mxu0  ;;  %v18962_v61 = vpop.f32.mrf.mxu1 }
 0x30c   : > { %v18964_v1 = vpack.c.bf16 %v6478_v6, %v6476_v30  ;;  %v6479_v58 = vmax.f32 %v6266_v14, %v6415_v12  ;;  %v6272_v9 = vadd.f32 %v6271_v62, %v18913_v24  ;;  %v6416_v10 = vmul.f32 0.2, %v6270_v53 }
 0x30d   : > { %v6273_v50 = vpop.f32.mrf.mxu0  ;;  %v18967_v48 = vpop.f32.mrf.mxu1 }
 0x30e   : > { %21391 = vst [vmem:[#allocation86_spill] sm:$0xff] %v18964_v1  ;;  %v6274_v36 = vadd.f32 %v6273_v50, %v18904_v41  ;;  %v18972_v29 = vpack.c.bf16 %v6479_v58, %v6477_v20  ;;  %v6417_v30 = vmul.f32 0.2, %v6272_v9  ;;  %v6480_v51 = vmax.f32 %v6270_v53, %v6416_v10 }
 0x30f   : > { %v6275_v18 = vpop.f32.mrf.mxu0  ;;  %v18970_v7 = vpop.f32.mrf.mxu1 }
 0x310   : > { %21392 = vst [vmem:[#allocation91_spill] sm:$0xff] %v18972_v29  ;;  %v6418_v31 = vmul.f32 0.2, %v6274_v36  ;;  %v6276_v49 = vadd.f32 %v6275_v18, %v18913_v24  ;;  %v6481_v1 = vmax.f32 %v6272_v9, %v6417_v30  ;;  %v21397_v9 = vld [vmem:[#allocation92_spill] sm:$0xff] }
 0x311   : > { %v6279_v6 = vpop.f32.mrf.mxu0  ;;  %v18975_v14 = vpop.f32.mrf.mxu1 }
 0x312   : > { %10564 = vmatmul.mubr.bf16.gmra.mxu0 %v21393_v39  ;;  %10757 = vmatmul.mubr.bf16.gmra.mxu1 %v17428_v47  ;;  %v6482_v12 = vmax.f32 %v6274_v36, %v6418_v31  ;;  %v6419_v62 = vmul.f32 0.2, %v6276_v49  ;;  %v6280_v50 = vadd.f32 %v6279_v6, %v18904_v41 }
 0x313   : > { %10573 = vmatprep.mubr.bf16.mxu0 %v21394_v28  ;;  %10766 = vmatprep.mubr.bf16.mxu1 %v17474_v15  ;;  %v6281_v20 = vpop.f32.mrf.mxu0  ;;  %v18982_v58 = vpop.f32.mrf.mxu1 }
 0x314   : > { %v18984_v18 = vpack.c.bf16 %v6482_v12, %v6480_v51  ;;  %v6483_v42 = vmax.f32 %v6276_v49, %v6419_v62  ;;  %v6282_v39 = vadd.f32 %v6281_v20, %v18913_v24  ;;  %v6420_v53 = vmul.f32 0.2, %v6280_v50 }
 0x315   : > { %v6283_v29 = vpop.f32.mrf.mxu0  ;;  %v18987_v47 = vpop.f32.mrf.mxu1 }
 0x316   : > { %21395 = vst [vmem:[#allocation89_spill] sm:$0xff] %v18984_v18  ;;  %v6284_v10 = vadd.f32 %v6283_v29, %v18904_v41  ;;  %v18992_v28 = vpack.c.bf16 %v6483_v42, %v6481_v1  ;;  %v6421_v51 = vmul.f32 0.2, %v6282_v39  ;;  %v6484_v30 = vmax.f32 %v6280_v50, %v6420_v53  ;;  %v21398_v18 = vld [vmem:[#allocation97_spill] sm:$0xff] }
 0x317   : > { %v6285_v36 = vpop.f32.mrf.mxu0  ;;  %v18990_v31 = vpop.f32.mrf.mxu1 }
 0x318   : > { %21396 = vst [vmem:[#allocation94_spill] sm:$0xff] %v18992_v28  ;;  %v6422_v15 = vmul.f32 0.2, %v6284_v10  ;;  %v6286_v6 = vadd.f32 %v6285_v36, %v18913_v24  ;;  %v6485_v23 = vmax.f32 %v6282_v39, %v6421_v51  ;;  %v21401_v39 = vld [vmem:[#allocation95_spill] sm:$0xff] }
 0x319   : > { %v6289_v12 = vpop.f32.mrf.mxu0  ;;  %v18995_v49 = vpop.f32.mrf.mxu1 }
 0x31a   : > { %10574 = vmatmul.mubr.bf16.gmra.mxu0 %v21397_v9  ;;  %10767 = vmatmul.mubr.bf16.gmra.mxu1 %v17463_v38  ;;  %v6486_v62 = vmax.f32 %v6284_v10, %v6422_v15  ;;  %v6423_v20 = vmul.f32 0.2, %v6286_v6  ;;  %v6290_v29 = vadd.f32 %v6289_v12, %v18904_v41 }
 0x31b   : > { %10583 = vmatprep.mubr.bf16.mxu0 %v21398_v18  ;;  %10776 = vmatprep.mubr.bf16.mxu1 %v17506_v11  ;;  %v6291_v42 = vpop.f32.mrf.mxu0  ;;  %v19002_v1 = vpop.f32.mrf.mxu1 }
 0x31c   : > { %v19004_v36 = vpack.c.bf16 %v6486_v62, %v6484_v30  ;;  %v6487_v28 = vmax.f32 %v6286_v6, %v6423_v20  ;;  %v6292_v9 = vadd.f32 %v6291_v42, %v18913_v24  ;;  %v6424_v50 = vmul.f32 0.2, %v6290_v29 }
 0x31d   : > { %v6293_v34 = vpop.f32.mrf.mxu0  ;;  %v19007_v38 = vpop.f32.mrf.mxu1 }
 0x31e   : > { %21399 = vst [vmem:[#allocation92_spill] sm:$0xff] %v19004_v36  ;;  %v6294_v53 = vadd.f32 %v6293_v34, %v18904_v41  ;;  %v19012_v18 = vpack.c.bf16 %v6487_v28, %v6485_v23  ;;  %v6425_v30 = vmul.f32 0.2, %v6292_v9  ;;  %v6488_v51 = vmax.f32 %v6290_v29, %v6424_v50  ;;  %v21402_v36 = vld [vmem:[#allocation100_spill] sm:$0xff] }
 0x31f   : > { %v6295_v10 = vpop.f32.mrf.mxu0  ;;  %v19010_v15 = vpop.f32.mrf.mxu1 }
 0x320   : > { %21400 = vst [vmem:[#allocation97_spill] sm:$0xff] %v19012_v18  ;;  %v6426_v11 = vmul.f32 0.2, %v6294_v53  ;;  %v6296_v12 = vadd.f32 %v6295_v10, %v18913_v24  ;;  %v6489_v44 = vmax.f32 %v6292_v9, %v6425_v30  ;;  %v21405_v9 = vld [vmem:[#allocation98_spill] sm:$0xff] }
 0x321   : > { %v6299_v62 = vpop.f32.mrf.mxu0  ;;  %v19015_v6 = vpop.f32.mrf.mxu1 }
 0x322   : > { %10584 = vmatmul.mubr.bf16.gmra.mxu0 %v21401_v39  ;;  %10777 = vmatmul.mubr.bf16.gmra.mxu1 %v17495_v25  ;;  %v6490_v20 = vmax.f32 %v6294_v53, %v6426_v11  ;;  %v6427_v42 = vmul.f32 0.2, %v6296_v12  ;;  %v6300_v34 = vadd.f32 %v6299_v62, %v18904_v41 }
 0x323   : > { %10593 = vmatprep.mubr.bf16.mxu0 %v21402_v36  ;;  %10786 = vmatprep.mubr.bf16.mxu1 %v17543_v19  ;;  %v6301_v23 = vpop.f32.mrf.mxu0  ;;  %v19022_v28 = vpop.f32.mrf.mxu1 }
 0x324   : > { %v19024_v10 = vpack.c.bf16 %v6490_v20, %v6488_v51  ;;  %v6491_v18 = vmax.f32 %v6296_v12, %v6427_v42  ;;  %v6302_v39 = vadd.f32 %v6301_v23, %v18913_v24  ;;  %v6428_v29 = vmul.f32 0.2, %v6300_v34 }
 0x325   : > { %v6303_v21 = vpop.f32.mrf.mxu0  ;;  %v19027_v25 = vpop.f32.mrf.mxu1 }
 0x326   : > { %21403 = vst [vmem:[#allocation95_spill] sm:$0xff] %v19024_v10  ;;  %v6304_v50 = vadd.f32 %v6303_v21, %v18904_v41  ;;  %v19032_v36 = vpack.c.bf16 %v6491_v18, %v6489_v44  ;;  %v6429_v51 = vmul.f32 0.2, %v6302_v39  ;;  %v6492_v30 = vmax.f32 %v6300_v34, %v6428_v29  ;;  %v21406_v10 = vld [vmem:[#allocation28_spill] sm:$0xff] }
 0x327   : > { %v6305_v53 = vpop.f32.mrf.mxu0  ;;  %v19030_v11 = vpop.f32.mrf.mxu1 }
 0x328   : > { %21404 = vst [vmem:[#allocation100_spill] sm:$0xff] %v19032_v36  ;;  %v6430_v19 = vmul.f32 0.2, %v6304_v50  ;;  %v6306_v62 = vadd.f32 %v6305_v53, %v18913_v24  ;;  %v6493_v63 = vmax.f32 %v6302_v39, %v6429_v51  ;;  %v21409_v39 = vld [vmem:[#allocation101_spill] sm:$0xff] }
 0x329   : > { %v6309_v20 = vpop.f32.mrf.mxu0  ;;  %v19035_v12 = vpop.f32.mrf.mxu1 }
 0x32a   : > { %10594 = vmatmul.mubr.bf16.gmra.mxu0 %v21405_v9  ;;  %10787 = vmatmul.mubr.bf16.gmra.mxu1 %v17527_v33  ;;  %v6494_v42 = vmax.f32 %v6304_v50, %v6430_v19  ;;  %v6431_v23 = vmul.f32 0.2, %v6306_v62  ;;  %v6310_v21 = vadd.f32 %v6309_v20, %v18904_v41 }
 0x32b   : > { %10603 = vmatprep.mubr.bf16.mxu0 %v21406_v10  ;;  %10796 = vmatprep.mubr.bf16.mxu1 %v17586_v5  ;;  %v6311_v44 = vpop.f32.mrf.mxu0  ;;  %v19042_v18 = vpop.f32.mrf.mxu1 }
 0x32c   : > { %v19044_v53 = vpack.c.bf16 %v6494_v42, %v6492_v30  ;;  %v6495_v36 = vmax.f32 %v6306_v62, %v6431_v23  ;;  %v6312_v9 = vadd.f32 %v6311_v44, %v18913_v24  ;;  %v6432_v34 = vmul.f32 0.2, %v6310_v21 }
 0x32d   : > { %v6313_v2 = vpop.f32.mrf.mxu0  ;;  %v19047_v33 = vpop.f32.mrf.mxu1 }
 0x32e   : > { %21407 = vst [vmem:[#allocation98_spill] sm:$0xff] %v19044_v53  ;;  %v6314_v29 = vadd.f32 %v6313_v2, %v18904_v41  ;;  %v19052_v10 = vpack.c.bf16 %v6495_v36, %v6493_v63  ;;  %v6433_v30 = vmul.f32 0.2, %v6312_v9  ;;  %v6496_v51 = vmax.f32 %v6310_v21, %v6432_v34  ;;  %v21410_v53 = vld [vmem:[#allocation106_spill] sm:$0xff] }
 0x32f   : > { %v6315_v50 = vpop.f32.mrf.mxu0  ;;  %v19050_v19 = vpop.f32.mrf.mxu1 }
 0x330   : > { %21408 = vst [vmem:[#allocation28_spill] sm:$0xff] %v19052_v10  ;;  %v6434_v5 = vmul.f32 0.2, %v6314_v29  ;;  %v6316_v20 = vadd.f32 %v6315_v50, %v18913_v24  ;;  %v6497_v45 = vmax.f32 %v6312_v9, %v6433_v30 }
 0x331   : > { %v6319_v42 = vpop.f32.mrf.mxu0  ;;  %v19055_v62 = vpop.f32.mrf.mxu1 }
 0x332   : > { %10604 = vmatmul.mubr.bf16.gmra.mxu0 %v21409_v39  ;;  %10797 = vmatmul.mubr.bf16.gmra.mxu1 %v17575_v27  ;;  %v6498_v23 = vmax.f32 %v6314_v29, %v6434_v5  ;;  %v6435_v44 = vmul.f32 0.2, %v6316_v20  ;;  %v6320_v2 = vadd.f32 %v6319_v42, %v18904_v41  ;;  %v15155_v42 = vld [vmem:[%s20905_s4 + $0x664] ss:$8 sps:$4 sm:$0xff]  }
 0x333   : > { %10839 = vmatprep.mubr.bf16.mxu0 %v21410_v53  ;;  %11032 = vmatprep.mubr.bf16.mxu1 %v17615_v59  ;;  %v6321_v63 = vpop.f32.mrf.mxu0  ;;  %v19062_v36 = vpop.f32.mrf.mxu1  ;;  %v15144_v59 = vld [vmem:[%s20905_s4 + $0x570] ss:$8 sps:$4 sm:$0xff]  }
 0x334   : > { %v19064_v50 = vpack.c.bf16 %v6498_v23, %v6496_v51  ;;  %v6499_v10 = vmax.f32 %v6316_v20, %v6435_v44  ;;  %v6322_v39 = vadd.f32 %v6321_v63, %v18913_v24  ;;  %v6436_v21 = vmul.f32 0.2, %v6320_v2  ;;  %v15147_v53 = vld [vmem:[%s20905_s4 + $0x670] ss:$8 sps:$4 sm:$0xff]  }
 0x335   : > { %v6323_v57 = vpop.f32.mrf.mxu0  ;;  %v19067_v27 = vpop.f32.mrf.mxu1  ;;  %v21413_v63 = vld [vmem:[#allocation104_spill] sm:$0xff] }
 0x336   : > { %21411 = vst [vmem:[#allocation101_spill] sm:$0xff] %v19064_v50  ;;  %v6324_v34 = vadd.f32 %v6323_v57, %v18904_v41  ;;  %v19078_v9 = vpack.c.bf16 %v6499_v10, %v6497_v45  ;;  %v15152_v57 = vld [vmem:[%s20905_s4 + $0x564] ss:$8 sps:$4 sm:$0xff]   ;;  %v6437_v51 = vmul.f32 0.2, %v6322_v39  ;;  %v6500_v45 = vmax.f32 %v6320_v2, %v6436_v21 }
 0x337   : > { %v6325_v29 = vpop.f32.mrf.mxu0  ;;  %v19070_v5 = vpop.f32.mrf.mxu1 }
 0x338   : > { %21412 = vst [vmem:[#allocation106_spill] sm:$0xff] %v19078_v9  ;;  %v6438_v20 = vmul.f32 0.2, %v6324_v34  ;;  %v6326_v30 = vadd.f32 %v6325_v29, %v18913_v24  ;;  %v21414_v9 = vld [vmem:[#allocation109_spill] sm:$0xff] }
 0x339   : > { %v6329_v23 = vpop.f32.mrf.mxu0  ;;  %v19087_v44 = vpop.f32.mrf.mxu1 }
 0x33a   : > { %10840 = vmatmul.mubr.bf16.vlgmr.msra.gmra.mxu0 %v21413_v63  ;;  %11033 = vmatmul.mubr.bf16.vlgmr.msra.gmra.mxu1 %v17603_v55  ;;  %v6502_v10 = vmax.f32 %v6324_v34, %v6438_v20  ;;  %v6439_v50 = vmul.f32 0.2, %v6326_v30  ;;  %v6330_v29 = vadd.f32 %v6329_v23, %v18904_v41  ;;  %v15150_v63 = vld [vmem:[%s20905_s4 + $0x560] ss:$8 sps:$4 sm:$0xff]   ;;  %v15161_v34 = vld [vmem:[%s20905_s4 + $0x654] ss:$8 sps:$4 sm:$0xff]  }
 0x33b   : > { %10849 = vmatprep.mubr.bf16.mxu0 %v21414_v9  ;;  %11042 = vmatprep.mubr.bf16.mxu1 %v17638_v54  ;;  %v6331_v32 = vpop.f32.mrf.mxu0  ;;  %v19094_v8 = vpop.f32.mrf.mxu1  ;;  %v15153_v55 = vld [vmem:[%s20905_s4 + $0x660] ss:$8 sps:$4 sm:$0xff]   ;;  %v15158_v54 = vld [vmem:[%s20905_s4 + $0x554] ss:$8 sps:$4 sm:$0xff]  }
 0x33c   : > { %11194 = vmatpush1.bf16.msra.mxu0 %v15144_v59  ;;  %11387 = vmatpush1.bf16.msra.mxu1 %v15147_v53  ;;  %v19102_v2 = vpack.c.bf16 %v6502_v10, %v6500_v45  ;;  %v6503_v21 = vmax.f32 %v6326_v30, %v6439_v50  ;;  %v6501_v59 = vmax.f32 %v6322_v39, %v6437_v51  ;;  %v6440_v23 = vmul.f32 0.2, %v6330_v29  ;;  %v15159_v39 = vld [vmem:[%s20905_s4 + $0x650] ss:$8 sps:$4 sm:$0xff]   ;;  %v15164_v10 = vld [vmem:[%s20905_s4 + $0x544] ss:$8 sps:$4 sm:$0xff]  }
 0x33d   : > { %11195 = vmatprep.subr.bf16.mxu0 %v15152_v57  ;;  %11388 = vmatprep.subr.bf16.mxu1 %v15155_v42  ;;  %v6332_v53 = vadd.f32 %v6331_v32, %v18913_v24  ;;  %v6333_v9 = vpop.f32.mrf.mxu0  ;;  %v19111_v20 = vpop.f32.mrf.mxu1  ;;  %v15156_v57 = vld [vmem:[%s20905_s4 + $0x550] ss:$8 sps:$4 sm:$0xff]  }
 0x33e   : > { %21415 = vst [vmem:[#allocation104_spill] sm:$0xff] %v19102_v2  ;;  %21416 = vst [vmem:[#allocation109_spill] sm:$0xff] %v19111_v20  ;;  %v6334_v45 = vadd.f32 %v6333_v9, %v18904_v41  ;;  %v19122_v32 = vpack.c.bf16 %v6503_v21, %v6501_v59  ;;  %v6504_v21 = vmax.f32 %v6330_v29, %v6440_v23 }
 0x33f   : > { %v6335_v50 = vpop.f32.mrf.mxu0  ;;  %v19114_v30 = vpop.f32.mrf.mxu1 }
 0x340   : > { %21417 = vst [vmem:[#allocation175_spill] sm:$0xff] %v19114_v30  ;;  %11196 = vmatpush1.bf16.msra.mxu0 %v15150_v63  ;;  %11389 = vmatpush1.bf16.msra.mxu1 %v15153_v55  ;;  %21418 = vst [vmem:[#allocation176_spill] sm:$0xff] %v19122_v32  ;;  %v6442_v42 = vmul.f32 0.2, %v6334_v45  ;;  %v6336_v51 = vadd.f32 %v6335_v50, %v18913_v24  ;;  %v15167_v63 = vld [vmem:[%s20905_s4 + $0x644] ss:$8 sps:$4 sm:$0xff]  }
 0x341   : > { %11197 = vmatprep.subr.bf16.mxu0 %v15158_v54  ;;  %11390 = vmatprep.subr.bf16.mxu1 %v15161_v34  ;;  %v6441_v55 = vmul.f32 0.2, %v6332_v53  ;;  %v6339_v9 = vpop.f32.mrf.mxu0  ;;  %v19131_v2 = vpop.f32.mrf.mxu1  ;;  %v21421_v50 = vld [vmem:[#allocation112_spill] sm:$0xff] }
 0x342   : > { %21419 = vst [vmem:[#allocation177_spill] sm:$0xff] %v19131_v2  ;;  %10850 = vmatmul.mubr.bf16.gmra.mxu0 %v21420_v4  ;;  %11043 = vmatmul.mubr.bf16.gmra.mxu1 %v17630_v46  ;;  %v6506_v59 = vmax.f32 %v6334_v45, %v6442_v42  ;;  %v6443_v54 = vmul.f32 0.2, %v6336_v51  ;;  %v6340_v34 = vadd.f32 %v6339_v9, %v18904_v41  ;;  %v15162_v4 = vld [vmem:[%s20905_s4 + $0x540] ss:$8 sps:$4 sm:$0xff]  }
 0x343   : > { %10859 = vmatprep.mubr.bf16.mxu0 %v21421_v50  ;;  %11052 = vmatprep.mubr.bf16.mxu1 %v17667_v0  ;;  %v6341_v32 = vpop.f32.mrf.mxu0  ;;  %v19138_v30 = vpop.f32.mrf.mxu1  ;;  %v15165_v46 = vld [vmem:[%s20905_s4 + $0x640] ss:$8 sps:$4 sm:$0xff]   ;;  %v15170_v0 = vld [vmem:[%s20905_s4 + $0x534] ss:$8 sps:$4 sm:$0xff]  }
 0x344   : > { %21422 = vst [vmem:[#allocation107_spill] sm:$0xff] %v19138_v30  ;;  %11198 = vmatpush1.bf16.msra.mxu0 %v15156_v57  ;;  %11391 = vmatpush1.bf16.msra.mxu1 %v15159_v39  ;;  %v19146_v29 = vpack.c.bf16 %v6506_v59, %v6504_v21  ;;  %v6507_v23 = vmax.f32 %v6336_v51, %v6443_v54  ;;  %v15173_v45 = vld [vmem:[%s20905_s4 + $0x634] ss:$8 sps:$4 sm:$0xff]   ;;  %v6444_v50 = vmul.f32 0.2, %v6340_v34 }
 0x345   : > { %11199 = vmatprep.subr.bf16.mxu0 %v15164_v10  ;;  %11392 = vmatprep.subr.bf16.mxu1 %v15167_v63  ;;  %v6505_v57 = vmax.f32 %v6332_v53, %v6441_v55  ;;  %v6342_v39 = vadd.f32 %v6341_v32, %v18913_v24  ;;  %v6343_v42 = vpop.f32.mrf.mxu0  ;;  %v19155_v9 = vpop.f32.mrf.mxu1  ;;  %v15168_v63 = vld [vmem:[%s20905_s4 + $0x530] ss:$8 sps:$4 sm:$0xff]   ;;  %v15176_v54 = vld [vmem:[%s20905_s4 + $0x524] ss:$8 sps:$4 sm:$0xff]  }
 0x346   : > { %21423 = vst [vmem:[#allocation112_spill] sm:$0xff] %v19146_v29  ;;  %21424 = vst [vmem:[#allocation178_spill] sm:$0xff] %v19155_v9  ;;  %v6344_v21 = vadd.f32 %v6343_v42, %v18904_v41  ;;  %v15171_v53 = vld [vmem:[%s20905_s4 + $0x630] ss:$8 sps:$4 sm:$0xff]   ;;  %v21431_v9 = vld [vmem:[#allocation146_spill] sm:$0xff] }
 0x347   : > { %v6345_v51 = vpop.f32.mrf.mxu0  ;;  %v19158_v10 = vpop.f32.mrf.mxu1  ;;  %v19166_v32 = vpack.c.bf16 %v6507_v23, %v6505_v57  ;;  %v21429_v23 = vld [vmem:[#allocation32_spill] sm:$0xff]  ;;  %v6508_v57 = vmax.f32 %v6340_v34, %v6444_v50  ;;  %v15177_v34 = vld [vmem:[%s20905_s4 + $0x620] ss:$8 sps:$4 sm:$0xff]  }
 0x348   : > { %21425 = vst [vmem:[#allocation179_spill] sm:$0xff] %v19158_v10  ;;  %11200 = vmatpush1.bf16.msra.mxu0 %v15162_v4  ;;  %11393 = vmatpush1.bf16.msra.mxu1 %v15165_v46  ;;  %v6446_v55 = vmul.f32 0.2, %v6344_v21  ;;  %v6346_v59 = vadd.f32 %v6345_v51, %v18913_v24  ;;  %v15179_v4 = vld [vmem:[%s20905_s4 + $0x624] ss:$8 sps:$4 sm:$0xff]  }
 0x349   : > { %21426 = vst [vmem:[#allocation180_spill] sm:$0xff] %v19166_v32  ;;  %11201 = vmatprep.subr.bf16.mxu0 %v15170_v0  ;;  %11394 = vmatprep.subr.bf16.mxu1 %v15173_v45  ;;  %v6445_v46 = vmul.f32 0.2, %v6342_v39  ;;  %v6349_v42 = vpop.f32.mrf.mxu0  ;;  %v19175_v29 = vpop.f32.mrf.mxu1  ;;  %v21428_v10 = vld [vmem:[#allocation110_spill] sm:$0xff]  ;;  %v21430_v32 = vld [vmem:[#allocation116_spill] sm:$0xff] }
 0x34a   : > { %21427 = vst [vmem:[#allocation181_spill] sm:$0xff] %v19175_v29  ;;  %10860 = vmatmul.mubr.bf16.gmra.mxu0 %v21428_v10  ;;  %11053 = vmatmul.mubr.bf16.gmra.mxu1 %v21429_v23  ;;  %v6510_v51 = vmax.f32 %v6344_v21, %v6446_v55  ;;  %v6447_v0 = vmul.f32 0.2, %v6346_v59  ;;  %v6350_v45 = vadd.f32 %v6349_v42, %v18904_v41  ;;  %v15174_v10 = vld [vmem:[%s20905_s4 + $0x520] ss:$8 sps:$4 sm:$0xff]  }
 0x34b   : > { %10869 = vmatprep.mubr.bf16.mxu0 %v21430_v32  ;;  %11062 = vmatprep.mubr.bf16.mxu1 %v21431_v9  ;;  %v6351_v30 = vpop.f32.mrf.mxu0  ;;  %v19182_v2 = vpop.f32.mrf.mxu1  ;;  %v15182_v9 = vld [vmem:[%s20905_s4 + $0x514] ss:$8 sps:$4 sm:$0xff]  }
 0x34c   : > { %21432 = vst [vmem:[#allocation110_spill] sm:$0xff] %v19182_v2  ;;  %11202 = vmatpush1.bf16.msra.mxu0 %v15168_v63  ;;  %11395 = vmatpush1.bf16.msra.mxu1 %v15171_v53  ;;  %v19190_v50 = vpack.c.bf16 %v6510_v51, %v6508_v57  ;;  %v6511_v21 = vmax.f32 %v6346_v59, %v6447_v0  ;;  %v15185_v63 = vld [vmem:[%s20905_s4 + $0x614] ss:$8 sps:$4 sm:$0xff]   ;;  %v6448_v23 = vmul.f32 0.2, %v6350_v45 }
 0x34d   : > { %11203 = vmatprep.subr.bf16.mxu0 %v15176_v54  ;;  %11396 = vmatprep.subr.bf16.mxu1 %v15179_v4  ;;  %v6509_v53 = vmax.f32 %v6342_v39, %v6445_v46  ;;  %v6352_v32 = vadd.f32 %v6351_v30, %v18913_v24  ;;  %v6353_v55 = vpop.f32.mrf.mxu0  ;;  %v19199_v42 = vpop.f32.mrf.mxu1  ;;  %v15180_v4 = vld [vmem:[%s20905_s4 + $0x510] ss:$8 sps:$4 sm:$0xff]   ;;  %v15188_v0 = vld [vmem:[%s20905_s4 + $0x504] ss:$8 sps:$4 sm:$0xff]  }
 0x34e   : > { %21433 = vst [vmem:[#allocation32_spill] sm:$0xff] %v19190_v50  ;;  %21434 = vst [vmem:[#allocation116_spill] sm:$0xff] %v19199_v42  ;;  %v6354_v57 = vadd.f32 %v6353_v55, %v18904_v41  ;;  %v15183_v39 = vld [vmem:[%s20905_s4 + $0x610] ss:$8 sps:$4 sm:$0xff]  }
 0x34f   : > { %v6355_v59 = vpop.f32.mrf.mxu0  ;;  %v19202_v54 = vpop.f32.mrf.mxu1  ;;  %v19210_v30 = vpack.c.bf16 %v6511_v21, %v6509_v53  ;;  %v21439_v21 = vld [vmem:[#allocation33_spill] sm:$0xff]  ;;  %v6512_v53 = vmax.f32 %v6350_v45, %v6448_v23  ;;  %v21441_v42 = vld [vmem:[#allocation148_spill] sm:$0xff]  ;;  %v15189_v45 = vld [vmem:[%s20905_s4 + $0x600] ss:$8 sps:$4 sm:$0xff]  }
 0x350   : > { %21435 = vst [vmem:[#allocation146_spill] sm:$0xff] %v19202_v54  ;;  %11204 = vmatpush1.bf16.msra.mxu0 %v15174_v10  ;;  %11397 = vmatpush1.bf16.msra.mxu1 %v15177_v34  ;;  %v6450_v46 = vmul.f32 0.2, %v6354_v57  ;;  %v6356_v51 = vadd.f32 %v6355_v59, %v18913_v24  ;;  %v15191_v10 = vld [vmem:[%s20905_s4 + $0x604] ss:$8 sps:$4 sm:$0xff]  }
 0x351   : > { %21436 = vst [vmem:[#allocation182_spill] sm:$0xff] %v19210_v30  ;;  %11205 = vmatprep.subr.bf16.mxu0 %v15182_v9  ;;  %11398 = vmatprep.subr.bf16.mxu1 %v15185_v63  ;;  %v6449_v34 = vmul.f32 0.2, %v6352_v32  ;;  %v6359_v55 = vpop.f32.mrf.mxu0  ;;  %v19219_v50 = vpop.f32.mrf.mxu1  ;;  %v21438_v54 = vld [vmem:[#allocation114_spill] sm:$0xff]  ;;  %v21440_v30 = vld [vmem:[#allocation120_spill] sm:$0xff] }
 0x352   : > { %21437 = vst [vmem:[#allocation183_spill] sm:$0xff] %v19219_v50  ;;  %10870 = vmatmul.mubr.bf16.gmra.mxu0 %v21438_v54  ;;  %11063 = vmatmul.mubr.bf16.gmra.mxu1 %v21439_v21  ;;  %v6514_v59 = vmax.f32 %v6354_v57, %v6450_v46  ;;  %v6451_v9 = vmul.f32 0.2, %v6356_v51  ;;  %v6360_v63 = vadd.f32 %v6359_v55, %v18904_v41  ;;  %v15186_v54 = vld [vmem:[%s20905_s4 + $0x500] ss:$8 sps:$4 sm:$0xff]  }
 0x353   : > { %10879 = vmatprep.mubr.bf16.mxu0 %v21440_v30  ;;  %11072 = vmatprep.mubr.bf16.mxu1 %v21441_v42  ;;  %v6361_v2 = vpop.f32.mrf.mxu0  ;;  %v19226_v29 = vpop.f32.mrf.mxu1  ;;  %v15194_v42 = vld [vmem:[%s20905_s4 + $0x5f4] ss:$8 sps:$4 sm:$0xff]  }
 0x354   : > { %21442 = vst [vmem:[#allocation114_spill] sm:$0xff] %v19226_v29  ;;  %11206 = vmatpush1.bf16.msra.mxu0 %v15180_v4  ;;  %11399 = vmatpush1.bf16.msra.mxu1 %v15183_v39  ;;  %v19234_v23 = vpack.c.bf16 %v6514_v59, %v6512_v53  ;;  %v6515_v57 = vmax.f32 %v6356_v51, %v6451_v9  ;;  %v15197_v4 = vld [vmem:[%s20905_s4 + $0x6f4] ss:$8 sps:$4 sm:$0xff]   ;;  %v6452_v21 = vmul.f32 0.2, %v6360_v63 }
 0x355   : > { %11207 = vmatprep.subr.bf16.mxu0 %v15188_v0  ;;  %11400 = vmatprep.subr.bf16.mxu1 %v15191_v10  ;;  %v6513_v39 = vmax.f32 %v6352_v32, %v6449_v34  ;;  %v6362_v30 = vadd.f32 %v6361_v2, %v18913_v24  ;;  %v6363_v46 = vpop.f32.mrf.mxu0  ;;  %v19243_v55 = vpop.f32.mrf.mxu1  ;;  %v15192_v10 = vld [vmem:[%s20905_s4 + $0x5f0] ss:$8 sps:$4 sm:$0xff]   ;;  %v15200_v9 = vld [vmem:[%s20905_s4 + $0x5e4] ss:$8 sps:$4 sm:$0xff]  }
 0x356   : > { %21443 = vst [vmem:[#allocation33_spill] sm:$0xff] %v19234_v23  ;;  %21444 = vst [vmem:[#allocation120_spill] sm:$0xff] %v19243_v55  ;;  %v6364_v53 = vadd.f32 %v6363_v46, %v18904_v41  ;;  %v15195_v32 = vld [vmem:[%s20905_s4 + $0x6f0] ss:$8 sps:$4 sm:$0xff]   ;;  %v21451_v55 = vld [vmem:[#allocation150_spill] sm:$0xff] }
 0x357   : > { %v6365_v51 = vpop.f32.mrf.mxu0  ;;  %v19246_v0 = vpop.f32.mrf.mxu1  ;;  %v19254_v2 = vpack.c.bf16 %v6515_v57, %v6513_v39  ;;  %v21449_v57 = vld [vmem:[#allocation35_spill] sm:$0xff]  ;;  %v6516_v39 = vmax.f32 %v6360_v63, %v6452_v21 }
 0x358   : > { %21445 = vst [vmem:[#allocation148_spill] sm:$0xff] %v19246_v0  ;;  %11208 = vmatpush1.bf16.msra.mxu0 %v15186_v54  ;;  %11401 = vmatpush1.bf16.msra.mxu1 %v15189_v45  ;;  %v6454_v34 = vmul.f32 0.2, %v6364_v53  ;;  %v6366_v59 = vadd.f32 %v6365_v51, %v18913_v24  ;;  %v15203_v54 = vld [vmem:[%s20905_s4 + $0x6e4] ss:$8 sps:$4 sm:$0xff]  }
 0x359   : > { %21446 = vst [vmem:[#allocation184_spill] sm:$0xff] %v19254_v2  ;;  %11209 = vmatprep.subr.bf16.mxu0 %v15194_v42  ;;  %11402 = vmatprep.subr.bf16.mxu1 %v15197_v4  ;;  %v6453_v45 = vmul.f32 0.2, %v6362_v30  ;;  %v6369_v46 = vpop.f32.mrf.mxu0  ;;  %v19263_v23 = vpop.f32.mrf.mxu1  ;;  %v21448_v0 = vld [vmem:[#allocation118_spill] sm:$0xff]  ;;  %v21450_v2 = vld [vmem:[#allocation129_spill] sm:$0xff] }
 0x35a   : > { %21447 = vst [vmem:[#allocation185_spill] sm:$0xff] %v19263_v23  ;;  %10880 = vmatmul.mubr.bf16.gmra.mxu0 %v21448_v0  ;;  %11073 = vmatmul.mubr.bf16.gmra.mxu1 %v21449_v57  ;;  %v6518_v51 = vmax.f32 %v6364_v53, %v6454_v34  ;;  %v6455_v42 = vmul.f32 0.2, %v6366_v59  ;;  %v6370_v4 = vadd.f32 %v6369_v46, %v18904_v41  ;;  %v15198_v0 = vld [vmem:[%s20905_s4 + $0x5e0] ss:$8 sps:$4 sm:$0xff]  }
 0x35b   : > { %10889 = vmatprep.mubr.bf16.mxu0 %v21450_v2  ;;  %11082 = vmatprep.mubr.bf16.mxu1 %v21451_v55  ;;  %v6371_v29 = vpop.f32.mrf.mxu0  ;;  %v19270_v50 = vpop.f32.mrf.mxu1  ;;  %v15201_v63 = vld [vmem:[%s20905_s4 + $0x6e0] ss:$8 sps:$4 sm:$0xff]   ;;  %v15206_v55 = vld [vmem:[%s20905_s4 + $0x5d4] ss:$8 sps:$4 sm:$0xff]  }
 0x35c   : > { %21452 = vst [vmem:[#allocation118_spill] sm:$0xff] %v19270_v50  ;;  %11210 = vmatpush2.bf16.msra.mxu0 %v15192_v10  ;;  %11403 = vmatpush2.bf16.msra.mxu1 %v15195_v32  ;;  %v19278_v21 = vpack.c.bf16 %v6518_v51, %v6516_v39  ;;  %v6519_v53 = vmax.f32 %v6366_v59, %v6455_v42  ;;  %v15209_v10 = vld [vmem:[%s20905_s4 + $0x6d4] ss:$8 sps:$4 sm:$0xff]   ;;  %v6456_v57 = vmul.f32 0.2, %v6370_v4 }
 0x35d   : > { %11211 = vmatprep.subr.bf16.mxu0 %v15200_v9  ;;  %11404 = vmatprep.subr.bf16.mxu1 %v15203_v54  ;;  %v6517_v32 = vmax.f32 %v6362_v30, %v6453_v45  ;;  %v6372_v2 = vadd.f32 %v6371_v29, %v18913_v24  ;;  %v6373_v34 = vpop.f32.mrf.mxu0  ;;  %v19287_v46 = vpop.f32.mrf.mxu1  ;;  %v15204_v54 = vld [vmem:[%s20905_s4 + $0x5d0] ss:$8 sps:$4 sm:$0xff]   ;;  %v15212_v42 = vld [vmem:[%s20905_s4 + $0x5c4] ss:$8 sps:$4 sm:$0xff]  }
 0x35e   : > { %21453 = vst [vmem:[#allocation35_spill] sm:$0xff] %v19278_v21  ;;  %21454 = vst [vmem:[#allocation129_spill] sm:$0xff] %v19287_v46  ;;  %v6374_v39 = vadd.f32 %v6373_v34, %v18904_v41  ;;  %v15207_v30 = vld [vmem:[%s20905_s4 + $0x6d0] ss:$8 sps:$4 sm:$0xff]  }
 0x35f   : > { %v6375_v59 = vpop.f32.mrf.mxu0  ;;  %v19290_v9 = vpop.f32.mrf.mxu1  ;;  %v19298_v29 = vpack.c.bf16 %v6519_v53, %v6517_v32  ;;  %v21459_v53 = vld [vmem:[#allocation66_spill] sm:$0xff]  ;;  %v6520_v32 = vmax.f32 %v6370_v4, %v6456_v57  ;;  %v21461_v46 = vld [vmem:[#allocation153_spill] sm:$0xff] }
 0x360   : > { %21455 = vst [vmem:[#allocation150_spill] sm:$0xff] %v19290_v9  ;;  %11212 = vmatpush2.bf16.msra.mxu0 %v15198_v0  ;;  %11405 = vmatpush2.bf16.msra.mxu1 %v15201_v63  ;;  %v6458_v45 = vmul.f32 0.2, %v6374_v39  ;;  %v6376_v51 = vadd.f32 %v6375_v59, %v18913_v24  ;;  %v15215_v0 = vld [vmem:[%s20905_s4 + $0x6c4] ss:$8 sps:$4 sm:$0xff]  }
 0x361   : > { %21456 = vst [vmem:[#allocation186_spill] sm:$0xff] %v19298_v29  ;;  %11213 = vmatprep.subr.bf16.mxu0 %v15206_v55  ;;  %11406 = vmatprep.subr.bf16.mxu1 %v15209_v10  ;;  %v6457_v63 = vmul.f32 0.2, %v6372_v2  ;;  %v6379_v34 = vpop.f32.mrf.mxu0  ;;  %v19307_v21 = vpop.f32.mrf.mxu1  ;;  %v21458_v9 = vld [vmem:[#allocation122_spill] sm:$0xff]  ;;  %v21460_v29 = vld [vmem:[#allocation8_spill] sm:$0xff] }
 0x362   : > { %21457 = vst [vmem:[#allocation187_spill] sm:$0xff] %v19307_v21  ;;  %10890 = vmatmul.mubr.bf16.gmra.mxu0 %v21458_v9  ;;  %11083 = vmatmul.mubr.bf16.gmra.mxu1 %v21459_v53  ;;  %v6522_v59 = vmax.f32 %v6374_v39, %v6458_v45  ;;  %v6459_v55 = vmul.f32 0.2, %v6376_v51  ;;  %v6380_v10 = vadd.f32 %v6379_v34, %v18904_v41  ;;  %v15210_v9 = vld [vmem:[%s20905_s4 + $0x5c0] ss:$8 sps:$4 sm:$0xff]  }
 0x363   : > { %10899 = vmatprep.mubr.bf16.mxu0 %v21460_v29  ;;  %11092 = vmatprep.mubr.bf16.mxu1 %v21461_v46  ;;  %v6381_v50 = vpop.f32.mrf.mxu0  ;;  %v19314_v23 = vpop.f32.mrf.mxu1  ;;  %v15213_v4 = vld [vmem:[%s20905_s4 + $0x6c0] ss:$8 sps:$4 sm:$0xff]   ;;  %v15218_v46 = vld [vmem:[%s20905_s4 + $0x5b4] ss:$8 sps:$4 sm:$0xff]  }
 0x364   : > { %21462 = vst [vmem:[#allocation122_spill] sm:$0xff] %v19314_v23  ;;  %11214 = vmatpush2.bf16.msra.mxu0 %v15204_v54  ;;  %11407 = vmatpush2.bf16.msra.mxu1 %v15207_v30  ;;  %v19322_v57 = vpack.c.bf16 %v6522_v59, %v6520_v32  ;;  %v6523_v39 = vmax.f32 %v6376_v51, %v6459_v55  ;;  %v15221_v54 = vld [vmem:[%s20905_s4 + $0x6b4] ss:$8 sps:$4 sm:$0xff]   ;;  %v6460_v53 = vmul.f32 0.2, %v6380_v10 }
 0x365   : > { %11215 = vmatprep.subr.bf16.mxu0 %v15212_v42  ;;  %11408 = vmatprep.subr.bf16.mxu1 %v15215_v0  ;;  %v6521_v30 = vmax.f32 %v6372_v2, %v6457_v63  ;;  %v6382_v29 = vadd.f32 %v6381_v50, %v18913_v24  ;;  %v6383_v45 = vpop.f32.mrf.mxu0  ;;  %v19331_v34 = vpop.f32.mrf.mxu1  ;;  %v15216_v0 = vld [vmem:[%s20905_s4 + $0x5b0] ss:$8 sps:$4 sm:$0xff]   ;;  %v15224_v55 = vld [vmem:[%s20905_s4 + $0x5a4] ss:$8 sps:$4 sm:$0xff]  }
 0x366   : > { %21463 = vst [vmem:[#allocation66_spill] sm:$0xff] %v19322_v57  ;;  %21464 = vst [vmem:[#allocation8_spill] sm:$0xff] %v19331_v34  ;;  %v6384_v32 = vadd.f32 %v6383_v45, %v18904_v41  ;;  %v15219_v2 = vld [vmem:[%s20905_s4 + $0x6b0] ss:$8 sps:$4 sm:$0xff]   ;;  %v21471_v34 = vld [vmem:[#allocation47_spill] sm:$0xff] }
 0x367   : > { %v6385_v51 = vpop.f32.mrf.mxu0  ;;  %v19334_v42 = vpop.f32.mrf.mxu1  ;;  %v19342_v50 = vpack.c.bf16 %v6523_v39, %v6521_v30  ;;  %v21469_v39 = vld [vmem:[#allocation43_spill] sm:$0xff]  ;;  %v6524_v30 = vmax.f32 %v6380_v10, %v6460_v53 }
 0x368   : > { %21465 = vst [vmem:[#allocation153_spill] sm:$0xff] %v19334_v42  ;;  %11216 = vmatpush2.bf16.msra.mxu0 %v15210_v9  ;;  %11409 = vmatpush2.bf16.msra.mxu1 %v15213_v4  ;;  %v6462_v63 = vmul.f32 0.2, %v6384_v32  ;;  %v6386_v59 = vadd.f32 %v6385_v51, %v18913_v24  ;;  %v15227_v9 = vld [vmem:[%s20905_s4 + $0x6a4] ss:$8 sps:$4 sm:$0xff]  }
 0x369   : > { %21466 = vst [vmem:[#allocation188_spill] sm:$0xff] %v19342_v50  ;;  %11217 = vmatprep.subr.bf16.mxu0 %v15218_v46  ;;  %11410 = vmatprep.subr.bf16.mxu1 %v15221_v54  ;;  %v6461_v4 = vmul.f32 0.2, %v6382_v29  ;;  %v6389_v45 = vpop.f32.mrf.mxu0  ;;  %v19351_v57 = vpop.f32.mrf.mxu1  ;;  %v21468_v42 = vld [vmem:[#allocation126_spill] sm:$0xff] }
 0x36a   : > { %21467 = vst [vmem:[#allocation189_spill] sm:$0xff] %v19351_v57  ;;  %10900 = vmatmul.mubr.bf16.gmra.mxu0 %v21468_v42  ;;  %11093 = vmatmul.mubr.bf16.gmra.mxu1 %v21469_v39  ;;  %v6526_v51 = vmax.f32 %v6384_v32, %v6462_v63  ;;  %v6463_v46 = vmul.f32 0.2, %v6386_v59  ;;  %v6390_v54 = vadd.f32 %v6389_v45, %v18904_v41  ;;  %v21470_v50 = vld [vmem:[#allocation130_spill] sm:$0xff] }
 0x36b   : > { %10909 = vmatprep.mubr.bf16.mxu0 %v21470_v50  ;;  %11102 = vmatprep.mubr.bf16.mxu1 %v21471_v34  ;;  %v6391_v23 = vpop.f32.mrf.mxu0  ;;  %v19358_v21 = vpop.f32.mrf.mxu1  ;;  %v15222_v42 = vld [vmem:[%s20905_s4 + $0x5a0] ss:$8 sps:$4 sm:$0xff]   ;;  %v15230_v34 = vld [vmem:[%s20905_s4 + $0x594] ss:$8 sps:$4 sm:$0xff]  }
 0x36c   : > { %21472 = vst [vmem:[#allocation126_spill] sm:$0xff] %v19358_v21  ;;  %11218 = vmatpush2.bf16.msra.mxu0 %v15216_v0  ;;  %11411 = vmatpush2.bf16.msra.mxu1 %v15219_v2  ;;  %v15225_v10 = vld [vmem:[%s20905_s4 + $0x6a0] ss:$8 sps:$4 sm:$0xff]   ;;  %v19366_v53 = vpack.c.bf16 %v6526_v51, %v6524_v30  ;;  %v6527_v32 = vmax.f32 %v6386_v59, %v6463_v46  ;;  %v15233_v0 = vld [vmem:[%s20905_s4 + $0x694] ss:$8 sps:$4 sm:$0xff]  }
 0x36d   : > { %11219 = vmatprep.subr.bf16.mxu0 %v15224_v55  ;;  %11412 = vmatprep.subr.bf16.mxu1 %v15227_v9  ;;  %v6525_v2 = vmax.f32 %v6382_v29, %v6461_v4  ;;  %v6392_v50 = vadd.f32 %v6391_v23, %v18913_v24  ;;  %v6393_v63 = vpop.f32.mrf.mxu0  ;;  %v19375_v45 = vpop.f32.mrf.mxu1  ;;  %v6464_v39 = vmul.f32 0.2, %v6390_v54  ;;  %v7336_v59 = vld [vmem:[%s20906_s5] sm:$0x3]  ;;  %v15228_v29 = vld [vmem:[%s20905_s4 + $0x590] ss:$8 sps:$4 sm:$0xff]  }
 0x36e   : > { %21473 = vst [vmem:[#allocation43_spill] sm:$0xff] %v19366_v53  ;;  %21474 = vst [vmem:[#allocation130_spill] sm:$0xff] %v19375_v45  ;;  %v6394_v30 = vadd.f32 %v6393_v63, %v18904_v41  ;;  %v15231_v23 = vld [vmem:[%s20905_s4 + $0x690] ss:$8 sps:$4 sm:$0xff]   ;;  %v21477_v45 = vld [vmem:[#allocation127_spill] sm:$0xff]  ;;  %v19406_v57 = vrot.slane %v7336_v59, %v21094_v40 }
 0x36f   : > { %v6395_v55 = vpop.f32.mrf.mxu0  ;;  %v19381_v9 = vpop.f32.mrf.mxu1  ;;  %v19389_v4 = vpack.c.bf16 %v6527_v32, %v6525_v2  ;;  %v6465_v63 = vmul.f32 0.2, %v6392_v50  ;;  %v21478_v32 = vld [vmem:[#allocation11_spill] sm:$0xff]  ;;  %v6528_v2 = vmax.f32 %v6390_v54, %v6464_v39  ;;  %v21484_v40 = vld [vmem:[#allocation45_spill] sm:$0xff] }
 0x370   : > { %21475 = vst [vmem:[#allocation47_spill] sm:$0xff] %v19381_v9  ;;  %11220 = vmatpush2.bf16.msra.mxu0 %v15222_v42  ;;  %11413 = vmatpush2.bf16.msra.mxu1 %v15225_v10  ;;  %v6466_v51 = vmul.f32 0.2, %v6394_v30  ;;  %v6396_v46 = vadd.f32 %v6395_v55, %v18913_v24  ;;  %v15236_v42 = vld [vmem:[%s20905_s4 + $0x584] ss:$8 sps:$4 sm:$0xff]  }
 0x371   : > { %21476 = vst [vmem:[#allocation190_spill] sm:$0xff] %v19389_v4  ;;  %11221 = vmatprep.subr.bf16.mxu0 %v15230_v34  ;;  %11414 = vmatprep.subr.bf16.mxu1 %v15233_v0  ;;  %v15239_v10 = vld [vmem:[%s20905_s4 + $0x684] ss:$8 sps:$4 sm:$0xff]   ;;  %v6399_v53 = vpop.f32.mrf.mxu0  ;;  %v19398_v9 = vpop.f32.mrf.mxu1  ;;  %v21479_v4 = vld [vmem:[#allocation132_spill] sm:$0xff]  ;;  %v15234_v54 = vld [vmem:[%s20905_s4 + $0x580] ss:$8 sps:$4 sm:$0xff]  }
 0x372   : > { %10910 = vmatmul.mubr.bf16.gmra.mxu0 %v21477_v45  ;;  %11103 = vmatmul.mubr.bf16.gmra.mxu1 %v21478_v32  ;;  %v6530_v55 = vmax.f32 %v6394_v30, %v6466_v51  ;;  %v6467_v34 = vmul.f32 0.2, %v6396_v46  ;;  %v6400_v0 = vadd.f32 %v6399_v53, %v18904_v41  ;;  %v21480_v21 = vld [vmem:[#allocation155_spill] sm:$0xff]  ;;  %v15242_v30 = vld [vmem:[%s20905_s4 + $0x774] ss:$8 sps:$4 sm:$0xff]  }
 0x373   : > { %10919 = vmatprep.mubr.bf16.mxu0 %v21479_v4  ;;  %11112 = vmatprep.mubr.bf16.mxu1 %v21480_v21  ;;  %v6401_v20 = vpop.f32.mrf.mxu0  ;;  %v19408_v37 = vpop.f32.mrf.mxu1  ;;  %v15237_v53 = vld [vmem:[%s20905_s4 + $0x680] ss:$8 sps:$4 sm:$0xff]   ;;  %v6529_v4 = vmax.f32 %v6392_v50, %v6465_v63 }
 0x374   : > { %11222 = vmatpush2.bf16.msra.mxu0 %v15228_v29  ;;  %11415 = vmatpush2.bf16.msra.mxu1 %v15231_v23  ;;  %v19416_v45 = vpack.c.bf16 %v6530_v55, %v6528_v2  ;;  %v6531_v39 = vmax.f32 %v6396_v46, %v6467_v34  ;;  %v6402_v21 = vadd.f32 %v6401_v20, %v18913_v24  ;;  %v15245_v29 = vld [vmem:[%s20905_s4 + $0x874] ss:$8 sps:$4 sm:$0xff]   ;;  %v6468_v46 = vmul.f32 0.2, %v6400_v0 }
 0x375   : > { %11223 = vmatprep.subr.bf16.mxu0 %v15236_v42  ;;  %11416 = vmatprep.subr.bf16.mxu1 %v15239_v10  ;;  %v19426_v23 = vrot.slane %v7336_v59, %v21097_v22  ;;  %v6403_v51 = vpop.f32.mrf.mxu0  ;;  %v19428_v32 = vpop.f32.mrf.mxu1  ;;  %v10263_v34 = vadd.f32 %v18908_v3, %v19406_v57  ;;  %v21483_v22 = vld [vmem:[#allocation7_spill] sm:$0xff]  ;;  %v21486_v3 = vld [vmem:[#allocation56_spill] sm:$0xff] }
 0x376   : > { %21481 = vst [vmem:[#allocation127_spill] sm:$0xff] %v19416_v45  ;;  %v6404_v20 = vadd.f32 %v6403_v51, %v18904_v41  ;;  %v6469_v42 = vmul.f32 0.2, %v6402_v21  ;;  %v19433_v55 = vpack.c.bf16 %v6531_v39, %v6529_v4  ;;  %v21485_v45 = vld [vmem:[#allocation9_spill] sm:$0xff] }
 0x377   : > { %v6405_v10 = vpop.f32.mrf.mxu0  ;;  %v19431_v2 = vpop.f32.mrf.mxu1  ;;  %v10265_v63 = vadd.f32 %v18918_v16, %v19426_v23 }
 0x378   : > { %11224 = vmatpush2.bf16.msra.mxu0 %v15234_v54  ;;  %11417 = vmatpush2.bf16.msra.mxu1 %v15237_v53  ;;  %21482 = vst [vmem:[#allocation11_spill] sm:$0xff] %v19433_v55  ;;  %v6470_v59 = vmul.f32 0.2, %v6404_v20  ;;  %v6406_v50 = vadd.f32 %v6405_v10, %v18913_v24  ;;  %v6532_v54 = vmax.f32 %v6400_v0, %v6468_v46 }
 0x379   : > { %11579 = vmatprep.subr.bf16.mxu0 %v15242_v30  ;;  %11772 = vmatprep.subr.bf16.mxu1 %v15245_v29  ;;  %v10455_v41 = vpop.f32.mrf.mxu0  ;;  %v10648_v51 = vpop.f32.mrf.mxu1  ;;  %v10267_v24 = vadd.f32 %v18925_v17, %v19406_v57  ;;  %v6533_v30 = vmax.f32 %v6402_v21, %v6469_v42  ;;  %v10273_v42 = vadd.f32 %v18935_v60, %v19406_v57 }
 0x37a   : > { %10920 = vmatmul.mubr.bf16.gmra.mxu0 %v21483_v22  ;;  %11113 = vmatmul.mubr.bf16.gmra.mxu1 %v21484_v40  ;;  %v6534_v53 = vmax.f32 %v6404_v20, %v6470_v59  ;;  %v6471_v39 = vmul.f32 0.2, %v6406_v50  ;;  %v10456_v4 = vadd.f32 %v10455_v41, %v10263_v34  ;;  %v10269_v20 = vadd.f32 %v18932_v26, %v19426_v23 }
 0x37b   : > { %10929 = vmatprep.mubr.bf16.mxu0 %v21485_v45  ;;  %11122 = vmatprep.mubr.bf16.mxu1 %v21486_v3  ;;  %v10457_v29 = vpop.f32.mrf.mxu0  ;;  %v10650_v16 = vpop.f32.mrf.mxu1  ;;  %v10275_v26 = vadd.f32 %v18942_v52, %v19426_v23  ;;  %v21492_v3 = vld [vmem:[#allocation61_spill] sm:$0xff]  ;;  %v10279_v52 = vadd.f32 %v18950_v56, %v19426_v23  ;;  %v10285_v56 = vadd.f32 %v18962_v61, %v19426_v23 }
 0x37c   : > { %v19446_v10 = vpack.c.bf16 %v6534_v53, %v6532_v54  ;;  %v6535_v55 = vmax.f32 %v6406_v50, %v6471_v39  ;;  %v19448_v22 = vadd.f32 %v10648_v51, %v10456_v4  ;;  %v10458_v40 = vadd.f32 %v10457_v29, %v10265_v63  ;;  %v21489_v54 = vld [vmem:[#allocation131_spill] sm:$0xff]  ;;  %v21490_v53 = vld [vmem:[#allocation13_spill] sm:$0xff]  ;;  %v21491_v4 = vld [vmem:[#allocation134_spill] sm:$0xff] }
 0x37d   : > { %v10459_v0 = vpop.f32.mrf.mxu0  ;;  %v10652_v46 = vpop.f32.mrf.mxu1  ;;  %v10289_v61 = vadd.f32 %v18970_v7, %v19426_v23  ;;  %v10295_v7 = vadd.f32 %v18982_v58, %v19426_v23  ;;  %v10299_v58 = vadd.f32 %v18990_v31, %v19426_v23  ;;  %v10305_v31 = vadd.f32 %v19002_v1, %v19426_v23 }
 0x37e   : > { %21487 = vst [vmem:[#allocation132_spill] sm:$0xff] %v19446_v10  ;;  %v19452_v45 = vadd.f32 %v10650_v16, %v10458_v40  ;;  %v10460_v34 = vadd.f32 %v10459_v0, %v10267_v24  ;;  %v19454_v59 = vpack.c.bf16 %v6535_v55, %v6533_v30  ;;  %v10277_v30 = vadd.f32 %v18947_v13, %v19406_v57 }
 0x37f   : > { %v10461_v17 = vpop.f32.mrf.mxu0  ;;  %v10654_v21 = vpop.f32.mrf.mxu1  ;;  %v10309_v1 = vadd.f32 %v19010_v15, %v19426_v23  ;;  %v10315_v15 = vadd.f32 %v19022_v28, %v19426_v23  ;;  %v10319_v28 = vadd.f32 %v19030_v11, %v19426_v23  ;;  %v10325_v11 = vadd.f32 %v19042_v18, %v19426_v23 }
 0x380   : > { %21488 = vst [vmem:[#allocation155_spill] sm:$0xff] %v19454_v59  ;;  %v19458_v41 = vadd.f32 %v10652_v46, %v10460_v34  ;;  %v10462_v50 = vadd.f32 %v10461_v17, %v10269_v20  ;;  %v10329_v18 = vadd.f32 %v19050_v19, %v19426_v23  ;;  %v10335_v19 = vadd.f32 %v19062_v36, %v19426_v23 }
 0x381   : > { %v10465_v51 = vpop.f32.mrf.mxu0  ;;  %v10658_v63 = vpop.f32.mrf.mxu1  ;;  %v10339_v36 = vadd.f32 %v19070_v5, %v19426_v23  ;;  %v15248_v5 = vld [vmem:[%s20905_s4 + $0x764] ss:$8 sps:$4 sm:$0xff]  }
 0x382   : > { %10930 = vmatmul.mubr.bf16.gmra.mxu0 %v21489_v54  ;;  %11123 = vmatmul.mubr.bf16.gmra.mxu1 %v21490_v53  ;;  %v19464_v39 = vadd.f32 %v10654_v21, %v10462_v50  ;;  %v10466_v55 = vadd.f32 %v10465_v51, %v10273_v42  ;;  %v10283_v21 = vadd.f32 %v18955_v35, %v19406_v57  ;;  %v21494_v54 = vld [vmem:[#allocation14_spill] sm:$0xff] }
 0x383   : > { %10939 = vmatprep.mubr.bf16.mxu0 %v21491_v4  ;;  %11132 = vmatprep.mubr.bf16.mxu1 %v21492_v3  ;;  %v10467_v60 = vpop.f32.mrf.mxu0  ;;  %v10660_v24 = vpop.f32.mrf.mxu1  ;;  %v21496_v4 = vld [vmem:[#allocation71_spill] sm:$0xff] }
 0x384   : > { %v19470_v29 = vadd.f32 %v10658_v63, %v10466_v55  ;;  %v10468_v16 = vadd.f32 %v10467_v60, %v10275_v26  ;;  %v21493_v63 = vld [vmem:[#allocation133_spill] sm:$0xff]  ;;  %v21495_v55 = vld [vmem:[#allocation135_spill] sm:$0xff]  ;;  %v10287_v60 = vadd.f32 %v18967_v48, %v19406_v57 }
 0x385   : > { %v10469_v40 = vpop.f32.mrf.mxu0  ;;  %v10662_v0 = vpop.f32.mrf.mxu1 }
 0x386   : > { %v19474_v46 = vadd.f32 %v10660_v24, %v10468_v16  ;;  %v10470_v20 = vadd.f32 %v10469_v40, %v10277_v30 }
 0x387   : > { %v10471_v34 = vpop.f32.mrf.mxu0  ;;  %v10664_v17 = vpop.f32.mrf.mxu1 }
 0x388   : > { %v19478_v42 = vadd.f32 %v10662_v0, %v10470_v20  ;;  %v10472_v50 = vadd.f32 %v10471_v34, %v10279_v52 }
 0x389   : > { %v10475_v13 = vpop.f32.mrf.mxu0 }
 0x38a   : > { %v10668_v51 = vpop.f32.mrf.mxu1  ;;  %10940 = vmatmul.mubr.bf16.gmra.mxu0 %v21493_v63  ;;  %11133 = vmatmul.mubr.bf16.gmra.mxu1 %v21494_v54  ;;  %v19484_v53 = vadd.f32 %v10664_v17, %v10472_v50  ;;  %v10476_v26 = vadd.f32 %v10475_v13, %v10283_v21  ;;  %v10293_v17 = vadd.f32 %v18975_v14, %v19406_v57  ;;  %v21498_v63 = vld [vmem:[#allocation17_spill] sm:$0xff] }
 0x38b   : > { %10949 = vmatprep.mubr.bf16.mxu0 %v21495_v55  ;;  %11142 = vmatprep.mubr.bf16.mxu1 %v21496_v4  ;;  %v10477_v35 = vpop.f32.mrf.mxu0  ;;  %v21500_v55 = vld [vmem:[#allocation72_spill] sm:$0xff] }
 0x38c   : > { %v10670_v3 = vpop.f32.mrf.mxu1  ;;  %v19490_v24 = vadd.f32 %v10668_v51, %v10476_v26  ;;  %v10478_v30 = vadd.f32 %v10477_v35, %v10285_v56  ;;  %v21497_v51 = vld [vmem:[#allocation15_spill] sm:$0xff]  ;;  %v21499_v26 = vld [vmem:[#allocation136_spill] sm:$0xff]  ;;  %v10297_v35 = vadd.f32 %v18987_v47, %v19406_v57 }
 0x38d   : > { %v10479_v16 = vpop.f32.mrf.mxu0 }
 0x38e   : > { %v10672_v40 = vpop.f32.mrf.mxu1  ;;  %v19494_v0 = vadd.f32 %v10670_v3, %v10478_v30  ;;  %v10480_v52 = vadd.f32 %v10479_v16, %v10287_v60 }
 0x38f   : > { %v10481_v20 = vpop.f32.mrf.mxu0 }
 0x390   : > { %v10674_v34 = vpop.f32.mrf.mxu1  ;;  %v19498_v21 = vadd.f32 %v10672_v40, %v10480_v52  ;;  %v10482_v50 = vadd.f32 %v10481_v20, %v10289_v61 }
 0x392   : > { %v10485_v48 = vpop.f32.mrf.mxu0  ;;  %v10678_v13 = vpop.f32.mrf.mxu1  ;;  %10950 = vmatmul.mubr.bf16.gmra.mxu0 %v21497_v51  ;;  %11143 = vmatmul.mubr.bf16.gmra.mxu1 %v21498_v63  ;;  %v19504_v54 = vadd.f32 %v10674_v34, %v10482_v50  ;;  %v10303_v34 = vadd.f32 %v18995_v49, %v19406_v57  ;;  %v21502_v51 = vld [vmem:[#allocation20_spill] sm:$0xff] }
 0x393   : > { %v10486_v56 = vadd.f32 %v10485_v48, %v10293_v17  ;;  %10959 = vmatprep.mubr.bf16.mxu0 %v21499_v26  ;;  %11152 = vmatprep.mubr.bf16.mxu1 %v21500_v55  ;;  %v21504_v26 = vld [vmem:[#allocation73_spill] sm:$0xff] }
 0x394   : > { %v10487_v14 = vpop.f32.mrf.mxu0  ;;  %v10680_v4 = vpop.f32.mrf.mxu1 }
 0x395   : > { %v19510_v3 = vadd.f32 %v10678_v13, %v10486_v56  ;;  %v10488_v60 = vadd.f32 %v10487_v14, %v10295_v7  ;;  %v21501_v13 = vld [vmem:[#allocation18_spill] sm:$0xff]  ;;  %v21503_v56 = vld [vmem:[#allocation137_spill] sm:$0xff]  ;;  %v10307_v14 = vadd.f32 %v19007_v38, %v19406_v57 }
 0x396   : > { %v10489_v30 = vpop.f32.mrf.mxu0  ;;  %v10682_v16 = vpop.f32.mrf.mxu1 }
 0x397   : > { %v19514_v40 = vadd.f32 %v10680_v4, %v10488_v60  ;;  %v10490_v61 = vadd.f32 %v10489_v30, %v10297_v35 }
 0x398   : > { %v10491_v52 = vpop.f32.mrf.mxu0  ;;  %v10684_v20 = vpop.f32.mrf.mxu1 }
 0x399   : > { %v19518_v17 = vadd.f32 %v10682_v16, %v10490_v61  ;;  %v10492_v50 = vadd.f32 %v10491_v52, %v10299_v58 }
 0x39a   : > { %v10495_v47 = vpop.f32.mrf.mxu0  ;;  %v10688_v48 = vpop.f32.mrf.mxu1  ;;  %10960 = vmatmul.mubr.bf16.gmra.mxu0 %v21501_v13  ;;  %11153 = vmatmul.mubr.bf16.gmra.mxu1 %v21502_v51  ;;  %v21506_v13 = vld [vmem:[#allocation23_spill] sm:$0xff] }
 0x39b   : > { %v19524_v63 = vadd.f32 %v10684_v20, %v10492_v50  ;;  %v10496_v7 = vadd.f32 %v10495_v47, %v10303_v34  ;;  %10969 = vmatprep.mubr.bf16.mxu0 %v21503_v56  ;;  %11162 = vmatprep.mubr.bf16.mxu1 %v21504_v26  ;;  %v10313_v20 = vadd.f32 %v19015_v6, %v19406_v57  ;;  %v21508_v56 = vld [vmem:[#allocation76_spill] sm:$0xff] }
 0x39c   : > { %v10497_v49 = vpop.f32.mrf.mxu0  ;;  %v10690_v55 = vpop.f32.mrf.mxu1 }
 0x39d   : > { %v19530_v4 = vadd.f32 %v10688_v48, %v10496_v7  ;;  %v10498_v35 = vadd.f32 %v10497_v49, %v10305_v31  ;;  %v21505_v48 = vld [vmem:[#allocation21_spill] sm:$0xff]  ;;  %v21507_v7 = vld [vmem:[#allocation138_spill] sm:$0xff]  ;;  %v10317_v49 = vadd.f32 %v19027_v25, %v19406_v57 }
 0x39e   : > { %v10499_v60 = vpop.f32.mrf.mxu0  ;;  %v10692_v30 = vpop.f32.mrf.mxu1 }
 0x39f   : > { %v19534_v16 = vadd.f32 %v10690_v55, %v10498_v35  ;;  %v10500_v58 = vadd.f32 %v10499_v60, %v10307_v14 }
 0x3a0   : > { %v10501_v61 = vpop.f32.mrf.mxu0  ;;  %v10694_v52 = vpop.f32.mrf.mxu1 }
 0x3a1   : > { %v19538_v34 = vadd.f32 %v10692_v30, %v10500_v58  ;;  %v10502_v50 = vadd.f32 %v10501_v61, %v10309_v1 }
 0x3a2   : > { %v10505_v38 = vpop.f32.mrf.mxu0  ;;  %v10698_v47 = vpop.f32.mrf.mxu1  ;;  %10970 = vmatmul.mubr.bf16.gmra.mxu0 %v21505_v48  ;;  %11163 = vmatmul.mubr.bf16.gmra.mxu1 %v21506_v13  ;;  %v21510_v48 = vld [vmem:[#allocation26_spill] sm:$0xff] }
 0x3a3   : > { %v19544_v51 = vadd.f32 %v10694_v52, %v10502_v50  ;;  %v10506_v31 = vadd.f32 %v10505_v38, %v10313_v20  ;;  %10979 = vmatprep.mubr.bf16.mxu0 %v21507_v7  ;;  %11172 = vmatprep.mubr.bf16.mxu1 %v21508_v56  ;;  %v10323_v52 = vadd.f32 %v19035_v12, %v19406_v57  ;;  %v21512_v7 = vld [vmem:[#allocation82_spill] sm:$0xff] }
 0x3a4   : > { %v10507_v6 = vpop.f32.mrf.mxu0  ;;  %v10700_v26 = vpop.f32.mrf.mxu1 }
 0x3a5   : > { %v19550_v55 = vadd.f32 %v10698_v47, %v10506_v31  ;;  %v10508_v14 = vadd.f32 %v10507_v6, %v10315_v15  ;;  %v21509_v47 = vld [vmem:[#allocation24_spill] sm:$0xff]  ;;  %v10327_v6 = vadd.f32 %v19047_v33, %v19406_v57 }
 0x3a6   : > { %v10509_v35 = vpop.f32.mrf.mxu0  ;;  %v10702_v60 = vpop.f32.mrf.mxu1  ;;  %v21511_v31 = vld [vmem:[#allocation140_spill] sm:$0xff] }
 0x3a7   : > { %v19554_v30 = vadd.f32 %v10700_v26, %v10508_v14  ;;  %v10510_v1 = vadd.f32 %v10509_v35, %v10317_v49 }
 0x3a8   : > { %v10511_v58 = vpop.f32.mrf.mxu0  ;;  %v10704_v61 = vpop.f32.mrf.mxu1 }
 0x3a9   : > { %v19558_v20 = vadd.f32 %v10702_v60, %v10510_v1  ;;  %v10512_v50 = vadd.f32 %v10511_v58, %v10319_v28 }
 0x3aa   : > { %v10515_v25 = vpop.f32.mrf.mxu0  ;;  %v10708_v38 = vpop.f32.mrf.mxu1  ;;  %10980 = vmatmul.mubr.bf16.gmra.mxu0 %v21509_v47  ;;  %11173 = vmatmul.mubr.bf16.gmra.mxu1 %v21510_v48  ;;  %v21514_v47 = vld [vmem:[#allocation29_spill] sm:$0xff] }
 0x3ab   : > { %v19564_v13 = vadd.f32 %v10704_v61, %v10512_v50  ;;  %v10516_v15 = vadd.f32 %v10515_v25, %v10323_v52  ;;  %10989 = vmatprep.mubr.bf16.mxu0 %v21511_v31  ;;  %11182 = vmatprep.mubr.bf16.mxu1 %v21512_v7  ;;  %v10333_v61 = vadd.f32 %v19055_v62, %v19406_v57 }
 0x3ac   : > { %v10517_v12 = vpop.f32.mrf.mxu0  ;;  %v10710_v56 = vpop.f32.mrf.mxu1  ;;  %v10337_v7 = vadd.f32 %v19067_v27, %v19406_v57  ;;  %v15243_v27 = vld [vmem:[%s20905_s4 + $0x870] ss:$8 sps:$4 sm:$0xff]  }
 0x3ad   : > { %v19570_v26 = vadd.f32 %v10708_v38, %v10516_v15  ;;  %v10518_v49 = vadd.f32 %v10517_v12, %v10325_v11  ;;  %v21513_v38 = vld [vmem:[#allocation27_spill] sm:$0xff]  ;;  %v21515_v15 = vld [vmem:[#allocation141_spill] sm:$0xff] }
 0x3ae   : > { %v10519_v14 = vpop.f32.mrf.mxu0  ;;  %v10712_v35 = vpop.f32.mrf.mxu1 }
 0x3af   : > { %v19574_v60 = vadd.f32 %v10710_v56, %v10518_v49  ;;  %v10520_v28 = vadd.f32 %v10519_v14, %v10327_v6 }
 0x3b0   : > { %v10521_v1 = vpop.f32.mrf.mxu0  ;;  %v10714_v58 = vpop.f32.mrf.mxu1 }
 0x3b1   : > { %v19578_v52 = vadd.f32 %v10712_v35, %v10520_v28  ;;  %v10522_v50 = vadd.f32 %v10521_v1, %v10329_v18  ;;  %v10343_v1 = vadd.f32 %v19087_v44, %v19406_v57  ;;  %v10345_v44 = vadd.f32 %v19094_v8, %v19426_v23  ;;  %v21520_v8 = vld [vmem:[#allocation109_spill] sm:$0xff] }
 0x3b2   : > { %v10525_v33 = vpop.f32.mrf.mxu0  ;;  %v10718_v25 = vpop.f32.mrf.mxu1  ;;  %10990 = vmatmul.mubr.bf16.gmra.mxu0 %v21513_v38  ;;  %11183 = vmatmul.mubr.bf16.gmra.mxu1 %v21514_v47  ;;  %v21516_v38 = vld [vmem:[#allocation139_spill] sm:$0xff]  ;;  %v21517_v47 = vld [vmem:[#allocation41_spill] sm:$0xff] }
 0x3b3   : > { %v19584_v48 = vadd.f32 %v10714_v58, %v10522_v50  ;;  %v10526_v11 = vadd.f32 %v10525_v33, %v10333_v61  ;;  %11225 = vmatprep.mubr.bf16.mxu0 %v21515_v15  ;;  %11418 = vmatprep.mubr.bf16.mxu1 %v18300_v43  ;;  %v15240_v43 = vld [vmem:[%s20905_s4 + $0x770] ss:$8 sps:$4 sm:$0xff]   ;;  %v15251_v50 = vld [vmem:[%s20905_s4 + $0x864] ss:$8 sps:$4 sm:$0xff]  }
 0x3b4   : > { %v10527_v62 = vpop.f32.mrf.mxu0  ;;  %v10720_v31 = vpop.f32.mrf.mxu1  ;;  %v21518_v15 = vld [vmem:[#allocation143_spill] sm:$0xff] }
 0x3b5   : > { %v19590_v12 = vadd.f32 %v10718_v25, %v10526_v11  ;;  %v10528_v56 = vadd.f32 %v10527_v62, %v10335_v19  ;;  %v21519_v62 = vld [vmem:[#allocation163_spill] sm:$0xff] }
 0x3b6   : > { %v10529_v6 = vpop.f32.mrf.mxu0  ;;  %v10722_v49 = vpop.f32.mrf.mxu1 }
 0x3b7   : > { %v19594_v14 = vadd.f32 %v10720_v31, %v10528_v56  ;;  %v10530_v35 = vadd.f32 %v10529_v6, %v10337_v7  ;;  %v15246_v56 = vld [vmem:[%s20905_s4 + $0x760] ss:$8 sps:$4 sm:$0xff]  }
 0x3b8   : > { %v10531_v18 = vpop.f32.mrf.mxu0  ;;  %v10724_v28 = vpop.f32.mrf.mxu1  ;;  %v15249_v6 = vld [vmem:[%s20905_s4 + $0x860] ss:$8 sps:$4 sm:$0xff]  }
 0x3b9   : > { %v19604_v58 = vadd.f32 %v10722_v49, %v10530_v35  ;;  %v10532_v61 = vadd.f32 %v10531_v18, %v10339_v36  ;;  %v10347_v49 = vadd.f32 %v21520_v8, %v19406_v57  ;;  %v15254_v18 = vld [vmem:[%s20905_s4 + $0x754] ss:$8 sps:$4 sm:$0xff]   ;;  %v21523_v8 = vld [vmem:[#allocation142_spill] sm:$0xff] }
 0x3ba   : > { %v10535_v33 = vpop.f32.mrf.mxu0  ;;  %v10728_v25 = vpop.f32.mrf.mxu1  ;;  %11226 = vmatmul.mubr.bf16.vlgmr.msra.gmra.mxu0 %v21516_v38  ;;  %11419 = vmatmul.mubr.bf16.vlgmr.msra.gmra.mxu1 %v21517_v47 }
 0x3bb   : > { %v19616_v19 = vadd.f32 %v10724_v28, %v10532_v61  ;;  %v10536_v11 = vadd.f32 %v10535_v33, %v10343_v1  ;;  %11235 = vmatprep.mubr.bf16.mxu0 %v21518_v15  ;;  %11428 = vmatprep.mubr.bf16.mxu1 %v21519_v62  ;;  %v15257_v28 = vld [vmem:[%s20905_s4 + $0x854] ss:$8 sps:$4 sm:$0xff]   ;;  %v21521_v1 = vld [vmem:[#allocation175_spill] sm:$0xff] }
 0x3bc   : > { %v10537_v31 = vpop.f32.mrf.mxu0  ;;  %v10730_v7 = vpop.f32.mrf.mxu1  ;;  %11580 = vmatpush1.bf16.msra.mxu0 %v15240_v43  ;;  %11773 = vmatpush1.bf16.msra.mxu1 %v15243_v27  ;;  %v10349_v61 = vadd.f32 %v21521_v1, %v19426_v23  ;;  %v21527_v1 = vld [vmem:[#allocation93_spill] sm:$0xff] }
 0x3bd   : > { %v19628_v36 = vadd.f32 %v10728_v25, %v10536_v11  ;;  %v10538_v35 = vadd.f32 %v10537_v31, %v10345_v44  ;;  %11581 = vmatprep.subr.bf16.mxu0 %v15248_v5  ;;  %11774 = vmatprep.subr.bf16.mxu1 %v15251_v50  ;;  %v15252_v5 = vld [vmem:[%s20905_s4 + $0x750] ss:$8 sps:$4 sm:$0xff]   ;;  %v15260_v31 = vld [vmem:[%s20905_s4 + $0x744] ss:$8 sps:$4 sm:$0xff]  }
 0x3be   : > { %v10539_v43 = vpop.f32.mrf.mxu0  ;;  %v10732_v27 = vpop.f32.mrf.mxu1  ;;  %v15255_v50 = vld [vmem:[%s20905_s4 + $0x850] ss:$8 sps:$4 sm:$0xff]  }
 0x3bf   : > { %v19638_v33 = vadd.f32 %v10730_v7, %v10538_v35  ;;  %v10540_v25 = vadd.f32 %v10539_v43, %v10347_v49  ;;  %v21522_v44 = vld [vmem:[#allocation177_spill] sm:$0xff]  ;;  %v15263_v7 = vld [vmem:[%s20905_s4 + $0x844] ss:$8 sps:$4 sm:$0xff]  }
 0x3c0   : > { %v10541_v38 = vpop.f32.mrf.mxu0  ;;  %v10734_v47 = vpop.f32.mrf.mxu1  ;;  %11582 = vmatpush1.bf16.msra.mxu0 %v15246_v56  ;;  %11775 = vmatpush1.bf16.msra.mxu1 %v15249_v6  ;;  %v10353_v11 = vadd.f32 %v21522_v44, %v19406_v57  ;;  %v21524_v49 = vld [vmem:[#allocation85_spill] sm:$0xff]  ;;  %v21525_v35 = vld [vmem:[#allocation107_spill] sm:$0xff] }
 0x3c1   : > { %v19648_v15 = vadd.f32 %v10732_v27, %v10540_v25  ;;  %v10542_v62 = vadd.f32 %v10541_v38, %v10349_v61  ;;  %11583 = vmatprep.subr.bf16.mxu0 %v15254_v18  ;;  %11776 = vmatprep.subr.bf16.mxu1 %v15257_v28  ;;  %v10355_v43 = vadd.f32 %v21525_v35, %v19426_v23  ;;  %v21526_v28 = vld [vmem:[#allocation145_spill] sm:$0xff]  ;;  %v15258_v38 = vld [vmem:[%s20905_s4 + $0x740] ss:$8 sps:$4 sm:$0xff]  }
 0x3c2   : > { %v10545_v56 = vpop.f32.mrf.mxu0  ;;  %v10738_v6 = vpop.f32.mrf.mxu1  ;;  %11236 = vmatmul.mubr.bf16.gmra.mxu0 %v21523_v8  ;;  %11429 = vmatmul.mubr.bf16.gmra.mxu1 %v21524_v49  ;;  %v15261_v44 = vld [vmem:[%s20905_s4 + $0x840] ss:$8 sps:$4 sm:$0xff]  }
 0x3c3   : > { %v19660_v27 = vadd.f32 %v10734_v47, %v10542_v62  ;;  %v10546_v18 = vadd.f32 %v10545_v56, %v10353_v11  ;;  %11245 = vmatprep.mubr.bf16.mxu0 %v21526_v28  ;;  %11438 = vmatprep.mubr.bf16.mxu1 %v21527_v1  ;;  %v21528_v47 = vld [vmem:[#allocation178_spill] sm:$0xff]  ;;  %v21529_v35 = vld [vmem:[#allocation179_spill] sm:$0xff] }
 0x3c4   : > { %v10547_v61 = vpop.f32.mrf.mxu0  ;;  %v10740_v25 = vpop.f32.mrf.mxu1  ;;  %11584 = vmatpush1.bf16.msra.mxu0 %v15252_v5  ;;  %11777 = vmatpush1.bf16.msra.mxu1 %v15255_v50  ;;  %v10357_v62 = vadd.f32 %v21528_v47, %v19406_v57  ;;  %v15266_v5 = vld [vmem:[%s20905_s4 + $0x734] ss:$8 sps:$4 sm:$0xff]   ;;  %v10359_v28 = vadd.f32 %v21529_v35, %v19426_v23 }
 0x3c5   : > { %v19672_v11 = vadd.f32 %v10738_v6, %v10546_v18  ;;  %v10548_v56 = vadd.f32 %v10547_v61, %v10355_v43  ;;  %11585 = vmatprep.subr.bf16.mxu0 %v15260_v31  ;;  %11778 = vmatprep.subr.bf16.mxu1 %v15263_v7  ;;  %v15269_v50 = vld [vmem:[%s20905_s4 + $0x834] ss:$8 sps:$4 sm:$0xff]   ;;  %v15264_v31 = vld [vmem:[%s20905_s4 + $0x730] ss:$8 sps:$4 sm:$0xff]  }
 0x3c6   : > { %v10549_v8 = vpop.f32.mrf.mxu0  ;;  %v10742_v49 = vpop.f32.mrf.mxu1  ;;  %v15267_v7 = vld [vmem:[%s20905_s4 + $0x830] ss:$8 sps:$4 sm:$0xff]  }
 0x3c7   : > { %v19682_v1 = vadd.f32 %v10740_v25, %v10548_v56  ;;  %v10550_v6 = vadd.f32 %v10549_v8, %v10357_v62  ;;  %v21530_v61 = vld [vmem:[#allocation181_spill] sm:$0xff]  ;;  %v21532_v8 = vld [vmem:[#allocation144_spill] sm:$0xff] }
 0x3c8   : > { %v10551_v18 = vpop.f32.mrf.mxu0  ;;  %v10744_v43 = vpop.f32.mrf.mxu1  ;;  %11586 = vmatpush1.bf16.msra.mxu0 %v15258_v38  ;;  %11779 = vmatpush1.bf16.msra.mxu1 %v15261_v44  ;;  %v10363_v47 = vadd.f32 %v21530_v61, %v19406_v57  ;;  %v15272_v38 = vld [vmem:[%s20905_s4 + $0x724] ss:$8 sps:$4 sm:$0xff]   ;;  %v21533_v35 = vld [vmem:[#allocation53_spill] sm:$0xff] }
 0x3c9   : > { %v19692_v10 = vadd.f32 %v10742_v49, %v10550_v6  ;;  %v10552_v25 = vadd.f32 %v10551_v18, %v10359_v28  ;;  %11587 = vmatprep.subr.bf16.mxu0 %v15266_v5  ;;  %11780 = vmatprep.subr.bf16.mxu1 %v15269_v50  ;;  %v15275_v44 = vld [vmem:[%s20905_s4 + $0x824] ss:$8 sps:$4 sm:$0xff]   ;;  %v21537_v18 = vld [vmem:[#allocation96_spill] sm:$0xff] }
 0x3ca   : > { %v10555_v62 = vpop.f32.mrf.mxu0  ;;  %v10748_v56 = vpop.f32.mrf.mxu1  ;;  %11246 = vmatmul.mubr.bf16.gmra.mxu0 %v21532_v8  ;;  %11439 = vmatmul.mubr.bf16.gmra.mxu1 %v21533_v35  ;;  %v21534_v49 = vld [vmem:[#allocation110_spill] sm:$0xff]  ;;  %v21536_v50 = vld [vmem:[#allocation147_spill] sm:$0xff] }
 0x3cb   : > { %21531 = vst [vmem:[#allocation7_spill] sm:$0xff] %v19692_v10  ;;  %v10365_v6 = vadd.f32 %v21534_v49, %v19426_v23  ;;  %v19704_v28 = vadd.f32 %v10744_v43, %v10552_v25  ;;  %v10556_v5 = vadd.f32 %v10555_v62, %v10363_v47  ;;  %11255 = vmatprep.mubr.bf16.mxu0 %v21536_v50  ;;  %v15270_v8 = vld [vmem:[%s20905_s4 + $0x720] ss:$8 sps:$4 sm:$0xff]   ;;  %v21538_v43 = vld [vmem:[#allocation116_spill] sm:$0xff] }
 0x3cc   : > { %11448 = vmatprep.mubr.bf16.mxu1 %v21537_v18  ;;  %v10557_v61 = vpop.f32.mrf.mxu0  ;;  %v10750_v59 = vpop.f32.mrf.mxu1  ;;  %11588 = vmatpush1.bf16.msra.mxu0 %v15264_v31  ;;  %v15273_v35 = vld [vmem:[%s20905_s4 + $0x820] ss:$8 sps:$4 sm:$0xff]   ;;  %v10367_v25 = vadd.f32 %v21538_v43, %v19406_v57  ;;  %v15278_v31 = vld [vmem:[%s20905_s4 + $0x714] ss:$8 sps:$4 sm:$0xff]  }
 0x3cd   : > { %21535 = vst [vmem:[#allocation45_spill] sm:$0xff] %v19704_v28  ;;  %11781 = vmatpush1.bf16.msra.mxu1 %v15267_v7  ;;  %v19716_v47 = vadd.f32 %v10748_v56, %v10556_v5  ;;  %v10558_v62 = vadd.f32 %v10557_v61, %v10365_v6  ;;  %11589 = vmatprep.subr.bf16.mxu0 %v15272_v38  ;;  %v15281_v7 = vld [vmem:[%s20905_s4 + $0x814] ss:$8 sps:$4 sm:$0xff]   ;;  %v21540_v18 = vld [vmem:[#allocation146_spill] sm:$0xff]  ;;  %v15276_v38 = vld [vmem:[%s20905_s4 + $0x710] ss:$8 sps:$4 sm:$0xff]  }
 0x3ce   : > { %11782 = vmatprep.subr.bf16.mxu1 %v15275_v44  ;;  %v10559_v49 = vpop.f32.mrf.mxu0  ;;  %v10752_v50 = vpop.f32.mrf.mxu1  ;;  %v10369_v28 = vadd.f32 %v21540_v18, %v19426_v23  ;;  %v15279_v44 = vld [vmem:[%s20905_s4 + $0x810] ss:$8 sps:$4 sm:$0xff]   ;;  %v21542_v61 = vld [vmem:[#allocation183_spill] sm:$0xff]  ;;  %v21545_v18 = vld [vmem:[#allocation58_spill] sm:$0xff] }
 0x3cf   : > { %21539 = vst [vmem:[#allocation9_spill] sm:$0xff] %v19716_v47  ;;  %v19726_v10 = vadd.f32 %v10750_v59, %v10558_v62  ;;  %v10560_v56 = vadd.f32 %v10559_v49, %v10367_v25  ;;  %v10373_v43 = vadd.f32 %v21542_v61, %v19406_v57  ;;  %v21544_v49 = vld [vmem:[#allocation34_spill] sm:$0xff] }
 0x3d0   : > { %v10561_v5 = vpop.f32.mrf.mxu0  ;;  %v10754_v6 = vpop.f32.mrf.mxu1  ;;  %11590 = vmatpush1.bf16.msra.mxu0 %v15270_v8  ;;  %v15284_v8 = vld [vmem:[%s20905_s4 + $0x704] ss:$8 sps:$4 sm:$0xff]  }
 0x3d1   : > { %21541 = vst [vmem:[#allocation56_spill] sm:$0xff] %v19726_v10  ;;  %11783 = vmatpush1.bf16.msra.mxu1 %v15273_v35  ;;  %v19736_v47 = vadd.f32 %v10752_v50, %v10560_v56  ;;  %v10562_v59 = vadd.f32 %v10561_v5, %v10369_v28  ;;  %11591 = vmatprep.subr.bf16.mxu0 %v15278_v31  ;;  %v15287_v35 = vld [vmem:[%s20905_s4 + $0x804] ss:$8 sps:$4 sm:$0xff]  }
 0x3d2   : > { %11784 = vmatprep.subr.bf16.mxu1 %v15281_v7  ;;  %v10565_v25 = vpop.f32.mrf.mxu0  ;;  %v10758_v62 = vpop.f32.mrf.mxu1  ;;  %11256 = vmatmul.mubr.bf16.gmra.mxu0 %v21544_v49  ;;  %v21546_v50 = vld [vmem:[#allocation114_spill] sm:$0xff]  ;;  %v21548_v7 = vld [vmem:[#allocation149_spill] sm:$0xff]  ;;  %v21549_v5 = vld [vmem:[#allocation99_spill] sm:$0xff] }
 0x3d3   : > { %21543 = vst [vmem:[#allocation131_spill] sm:$0xff] %v19736_v47  ;;  %11449 = vmatmul.mubr.bf16.gmra.mxu1 %v21545_v18  ;;  %v10375_v56 = vadd.f32 %v21546_v50, %v19426_v23  ;;  %v19748_v28 = vadd.f32 %v10754_v6, %v10562_v59  ;;  %v10566_v31 = vadd.f32 %v10565_v25, %v10373_v43  ;;  %v15282_v49 = vld [vmem:[%s20905_s4 + $0x700] ss:$8 sps:$4 sm:$0xff]   ;;  %v21550_v6 = vld [vmem:[#allocation120_spill] sm:$0xff] }
 0x3d4   : > { %11265 = vmatprep.mubr.bf16.mxu0 %v21548_v7  ;;  %11458 = vmatprep.mubr.bf16.mxu1 %v21549_v5  ;;  %v10567_v61 = vpop.f32.mrf.mxu0  ;;  %v10760_v47 = vpop.f32.mrf.mxu1  ;;  %v15285_v18 = vld [vmem:[%s20905_s4 + $0x800] ss:$8 sps:$4 sm:$0xff]   ;;  %v10377_v59 = vadd.f32 %v21550_v6, %v19406_v57  ;;  %v21552_v5 = vld [vmem:[#allocation148_spill] sm:$0xff] }
 0x3d5   : > { %21547 = vst [vmem:[#allocation13_spill] sm:$0xff] %v19748_v28  ;;  %11592 = vmatpush1.bf16.msra.mxu0 %v15276_v38  ;;  %11785 = vmatpush1.bf16.msra.mxu1 %v15279_v44  ;;  %v19760_v43 = vadd.f32 %v10758_v62, %v10566_v31  ;;  %v10568_v25 = vadd.f32 %v10567_v61, %v10375_v56  ;;  %v15290_v38 = vld [vmem:[%s20905_s4 + $0x7f4] ss:$8 sps:$4 sm:$0xff]  }
 0x3d6   : > { %11593 = vmatprep.subr.bf16.mxu0 %v15284_v8  ;;  %11786 = vmatprep.subr.bf16.mxu1 %v15287_v35  ;;  %v15293_v44 = vld [vmem:[%s20905_s4 + $0x8f4] ss:$8 sps:$4 sm:$0xff]   ;;  %v10569_v50 = vpop.f32.mrf.mxu0  ;;  %v10762_v7 = vpop.f32.mrf.mxu1  ;;  %v10379_v28 = vadd.f32 %v21552_v5, %v19426_v23  ;;  %v15288_v8 = vld [vmem:[%s20905_s4 + $0x7f0] ss:$8 sps:$4 sm:$0xff]  }
 0x3d7   : > { %21551 = vst [vmem:[#allocation134_spill] sm:$0xff] %v19760_v43  ;;  %v19770_v10 = vadd.f32 %v10760_v47, %v10568_v25  ;;  %v10570_v62 = vadd.f32 %v10569_v50, %v10377_v59  ;;  %v15291_v35 = vld [vmem:[%s20905_s4 + $0x8f0] ss:$8 sps:$4 sm:$0xff]  }
 0x3d8   : > { %v10571_v31 = vpop.f32.mrf.mxu0  ;;  %v10764_v56 = vpop.f32.mrf.mxu1  ;;  %v21554_v61 = vld [vmem:[#allocation185_spill] sm:$0xff]  ;;  %v21556_v50 = vld [vmem:[#allocation36_spill] sm:$0xff] }
 0x3d9   : > { %21553 = vst [vmem:[#allocation61_spill] sm:$0xff] %v19770_v10  ;;  %11594 = vmatpush1.bf16.msra.mxu0 %v15282_v49  ;;  %11787 = vmatpush1.bf16.msra.mxu1 %v15285_v18  ;;  %v10383_v6 = vadd.f32 %v21554_v61, %v19406_v57  ;;  %v19780_v43 = vadd.f32 %v10762_v7, %v10570_v62  ;;  %v15296_v49 = vld [vmem:[%s20905_s4 + $0x7e4] ss:$8 sps:$4 sm:$0xff]   ;;  %v21557_v5 = vld [vmem:[#allocation65_spill] sm:$0xff] }
 0x3da   : > { %v10572_v47 = vadd.f32 %v10571_v31, %v10379_v28  ;;  %11595 = vmatprep.subr.bf16.mxu0 %v15290_v38  ;;  %11788 = vmatprep.subr.bf16.mxu1 %v15293_v44  ;;  %v15299_v18 = vld [vmem:[%s20905_s4 + $0x8e4] ss:$8 sps:$4 sm:$0xff]   ;;  %v10575_v59 = vpop.f32.mrf.mxu0  ;;  %v10768_v25 = vpop.f32.mrf.mxu1 }
 0x3db   : > { %21555 = vst [vmem:[#allocation133_spill] sm:$0xff] %v19780_v43  ;;  %11266 = vmatmul.mubr.bf16.gmra.mxu0 %v21556_v50  ;;  %11459 = vmatmul.mubr.bf16.gmra.mxu1 %v21557_v5  ;;  %v21558_v7 = vld [vmem:[#allocation118_spill] sm:$0xff]  ;;  %v10576_v38 = vadd.f32 %v10575_v59, %v10383_v6  ;;  %v21560_v44 = vld [vmem:[#allocation151_spill] sm:$0xff] }
 0x3dc   : > { %v10385_v62 = vadd.f32 %v21558_v7, %v19426_v23  ;;  %v19792_v28 = vadd.f32 %v10764_v56, %v10572_v47  ;;  %11275 = vmatprep.mubr.bf16.mxu0 %v21560_v44  ;;  %v21561_v31 = vld [vmem:[#allocation102_spill] sm:$0xff]  ;;  %v10577_v61 = vpop.f32.mrf.mxu0  ;;  %v10770_v43 = vpop.f32.mrf.mxu1  ;;  %v21562_v56 = vld [vmem:[#allocation129_spill] sm:$0xff] }
 0x3dd   : > { %11468 = vmatprep.mubr.bf16.mxu1 %v21561_v31  ;;  %11596 = vmatpush2.bf16.msra.mxu0 %v15288_v8  ;;  %v15294_v50 = vld [vmem:[%s20905_s4 + $0x7e0] ss:$8 sps:$4 sm:$0xff]   ;;  %v10387_v47 = vadd.f32 %v21562_v56, %v19406_v57  ;;  %v19804_v6 = vadd.f32 %v10768_v25, %v10576_v38  ;;  %v15302_v8 = vld [vmem:[%s20905_s4 + $0x7d4] ss:$8 sps:$4 sm:$0xff]  }
 0x3de   : > { %21559 = vst [vmem:[#allocation14_spill] sm:$0xff] %v19792_v28  ;;  %11789 = vmatpush2.bf16.msra.mxu1 %v15291_v35  ;;  %v15297_v5 = vld [vmem:[%s20905_s4 + $0x8e0] ss:$8 sps:$4 sm:$0xff]   ;;  %v10578_v59 = vadd.f32 %v10577_v61, %v10385_v62  ;;  %11597 = vmatprep.subr.bf16.mxu0 %v15296_v49  ;;  %v15305_v35 = vld [vmem:[%s20905_s4 + $0x8d4] ss:$8 sps:$4 sm:$0xff]   ;;  %v10579_v7 = vpop.f32.mrf.mxu0  ;;  %v10772_v44 = vpop.f32.mrf.mxu1 }
 0x3df   : > { %21563 = vst [vmem:[#allocation135_spill] sm:$0xff] %v19804_v6  ;;  %11790 = vmatprep.subr.bf16.mxu1 %v15299_v18  ;;  %v21564_v31 = vld [vmem:[#allocation150_spill] sm:$0xff]  ;;  %v10580_v25 = vadd.f32 %v10579_v7, %v10387_v47  ;;  %v15300_v49 = vld [vmem:[%s20905_s4 + $0x7d0] ss:$8 sps:$4 sm:$0xff]   ;;  %v21566_v61 = vld [vmem:[#allocation187_spill] sm:$0xff] }
 0x3e0   : > { %v10389_v28 = vadd.f32 %v21564_v31, %v19426_v23  ;;  %v19814_v10 = vadd.f32 %v10770_v43, %v10578_v59  ;;  %v10581_v38 = vpop.f32.mrf.mxu0  ;;  %v10774_v62 = vpop.f32.mrf.mxu1  ;;  %v15303_v18 = vld [vmem:[%s20905_s4 + $0x8d0] ss:$8 sps:$4 sm:$0xff]   ;;  %v10393_v56 = vadd.f32 %v21566_v61, %v19406_v57  ;;  %v21568_v7 = vld [vmem:[#allocation123_spill] sm:$0xff] }
 0x3e1   : > { %11598 = vmatpush2.bf16.msra.mxu0 %v15294_v50  ;;  %v19824_v6 = vadd.f32 %v10772_v44, %v10580_v25  ;;  %v15308_v50 = vld [vmem:[%s20905_s4 + $0x7c4] ss:$8 sps:$4 sm:$0xff]   ;;  %v21569_v31 = vld [vmem:[#allocation124_spill] sm:$0xff] }
 0x3e2   : > { %21565 = vst [vmem:[#allocation71_spill] sm:$0xff] %v19814_v10  ;;  %11791 = vmatpush2.bf16.msra.mxu1 %v15297_v5  ;;  %v10582_v43 = vadd.f32 %v10581_v38, %v10389_v28  ;;  %11599 = vmatprep.subr.bf16.mxu0 %v15302_v8  ;;  %v15311_v5 = vld [vmem:[%s20905_s4 + $0x8c4] ss:$8 sps:$4 sm:$0xff]   ;;  %v10585_v47 = vpop.f32.mrf.mxu0  ;;  %v10778_v59 = vpop.f32.mrf.mxu1  ;;  %v21573_v38 = vld [vmem:[#allocation105_spill] sm:$0xff] }
 0x3e3   : > { %21567 = vst [vmem:[#allocation15_spill] sm:$0xff] %v19824_v6  ;;  %11792 = vmatprep.subr.bf16.mxu1 %v15305_v35  ;;  %11276 = vmatmul.mubr.bf16.gmra.mxu0 %v21568_v7  ;;  %v21570_v44 = vld [vmem:[#allocation122_spill] sm:$0xff]  ;;  %v10586_v8 = vadd.f32 %v10585_v47, %v10393_v56 }
 0x3e4   : > { %11469 = vmatmul.mubr.bf16.gmra.mxu1 %v21569_v31  ;;  %v10395_v25 = vadd.f32 %v21570_v44, %v19426_v23  ;;  %v19836_v28 = vadd.f32 %v10774_v62, %v10582_v43  ;;  %v21572_v35 = vld [vmem:[#allocation154_spill] sm:$0xff]  ;;  %v10587_v61 = vpop.f32.mrf.mxu0  ;;  %v10780_v6 = vpop.f32.mrf.mxu1  ;;  %v21574_v62 = vld [vmem:[#allocation8_spill] sm:$0xff] }
 0x3e5   : > { %11285 = vmatprep.mubr.bf16.mxu0 %v21572_v35  ;;  %11478 = vmatprep.mubr.bf16.mxu1 %v21573_v38  ;;  %v15306_v7 = vld [vmem:[%s20905_s4 + $0x7c0] ss:$8 sps:$4 sm:$0xff]   ;;  %v10397_v43 = vadd.f32 %v21574_v62, %v19406_v57  ;;  %v19848_v56 = vadd.f32 %v10778_v59, %v10586_v8  ;;  %v21576_v38 = vld [vmem:[#allocation153_spill] sm:$0xff] }
 0x3e6   : > { %21571 = vst [vmem:[#allocation17_spill] sm:$0xff] %v19836_v28  ;;  %11600 = vmatpush2.bf16.msra.mxu0 %v15300_v49  ;;  %11793 = vmatpush2.bf16.msra.mxu1 %v15303_v18  ;;  %v15309_v31 = vld [vmem:[%s20905_s4 + $0x8c0] ss:$8 sps:$4 sm:$0xff]   ;;  %v10588_v47 = vadd.f32 %v10587_v61, %v10395_v25  ;;  %v15314_v49 = vld [vmem:[%s20905_s4 + $0x7b4] ss:$8 sps:$4 sm:$0xff]   ;;  %v10589_v44 = vpop.f32.mrf.mxu0  ;;  %v10782_v35 = vpop.f32.mrf.mxu1  ;;  %v10399_v28 = vadd.f32 %v21576_v38, %v19426_v23 }
 0x3e7   : > { %21575 = vst [vmem:[#allocation136_spill] sm:$0xff] %v19848_v56  ;;  %11601 = vmatprep.subr.bf16.mxu0 %v15308_v50  ;;  %11794 = vmatprep.subr.bf16.mxu1 %v15311_v5  ;;  %v15317_v18 = vld [vmem:[%s20905_s4 + $0x8b4] ss:$8 sps:$4 sm:$0xff]   ;;  %v10590_v59 = vadd.f32 %v10589_v44, %v10397_v43  ;;  %v15312_v50 = vld [vmem:[%s20905_s4 + $0x7b0] ss:$8 sps:$4 sm:$0xff]  }
 0x3e8   : > { %v19858_v10 = vadd.f32 %v10780_v6, %v10588_v47  ;;  %v10591_v8 = vpop.f32.mrf.mxu0  ;;  %v10784_v25 = vpop.f32.mrf.mxu1  ;;  %v15315_v5 = vld [vmem:[%s20905_s4 + $0x8b0] ss:$8 sps:$4 sm:$0xff]  }
 0x3e9   : > { %v21578_v61 = vld [vmem:[#allocation189_spill] sm:$0xff]  ;;  %v19868_v56 = vadd.f32 %v10782_v35, %v10590_v59  ;;  %v10592_v6 = vadd.f32 %v10591_v8, %v10399_v28  ;;  %v21580_v44 = vld [vmem:[#allocation152_spill] sm:$0xff]  ;;  %v21582_v35 = vld [vmem:[#allocation126_spill] sm:$0xff] }
 0x3ea   : > { %21577 = vst [vmem:[#allocation72_spill] sm:$0xff] %v19858_v10  ;;  %11602 = vmatpush2.bf16.msra.mxu0 %v15306_v7  ;;  %11795 = vmatpush2.bf16.msra.mxu1 %v15309_v31  ;;  %v10403_v62 = vadd.f32 %v21578_v61, %v19406_v57  ;;  %v15320_v7 = vld [vmem:[%s20905_s4 + $0x7a4] ss:$8 sps:$4 sm:$0xff]   ;;  %v10595_v43 = vpop.f32.mrf.mxu0  ;;  %v10788_v47 = vpop.f32.mrf.mxu1  ;;  %v21581_v38 = vld [vmem:[#allocation25_spill] sm:$0xff]  ;;  %v10405_v59 = vadd.f32 %v21582_v35, %v19426_v23  ;;  %v21585_v8 = vld [vmem:[#allocation48_spill] sm:$0xff] }
 0x3eb   : > { %21579 = vst [vmem:[#allocation18_spill] sm:$0xff] %v19868_v56  ;;  %11603 = vmatprep.subr.bf16.mxu0 %v15314_v49  ;;  %11796 = vmatprep.subr.bf16.mxu1 %v15317_v18  ;;  %v15323_v31 = vld [vmem:[%s20905_s4 + $0x8a4] ss:$8 sps:$4 sm:$0xff]   ;;  %v19880_v28 = vadd.f32 %v10784_v25, %v10592_v6  ;;  %v21584_v18 = vld [vmem:[#allocation12_spill] sm:$0xff] }
 0x3ec   : > { %11286 = vmatmul.mubr.bf16.gmra.mxu0 %v21580_v44  ;;  %11479 = vmatmul.mubr.bf16.gmra.mxu1 %v21581_v38  ;;  %v10596_v49 = vadd.f32 %v10595_v43, %v10403_v62  ;;  %v10597_v61 = vpop.f32.mrf.mxu0  ;;  %v10790_v56 = vpop.f32.mrf.mxu1  ;;  %v15318_v44 = vld [vmem:[%s20905_s4 + $0x7a0] ss:$8 sps:$4 sm:$0xff]  }
 0x3ed   : > { %21583 = vst [vmem:[#allocation20_spill] sm:$0xff] %v19880_v28  ;;  %11295 = vmatprep.mubr.bf16.mxu0 %v21584_v18  ;;  %11488 = vmatprep.mubr.bf16.mxu1 %v21585_v8  ;;  %v15321_v38 = vld [vmem:[%s20905_s4 + $0x8a0] ss:$8 sps:$4 sm:$0xff]   ;;  %v10598_v43 = vadd.f32 %v10597_v61, %v10405_v59  ;;  %v10413_v61 = vadd.f32 %v19398_v9, %v19406_v57 }
 0x3ee   : > { %11604 = vmatpush2.bf16.msra.mxu0 %v15312_v50  ;;  %11797 = vmatpush2.bf16.msra.mxu1 %v15315_v5  ;;  %v21586_v25 = vld [vmem:[#allocation130_spill] sm:$0xff]  ;;  %v19892_v62 = vadd.f32 %v10788_v47, %v10596_v49  ;;  %v15326_v50 = vld [vmem:[%s20905_s4 + $0x794] ss:$8 sps:$4 sm:$0xff]   ;;  %v10599_v35 = vpop.f32.mrf.mxu0  ;;  %v10792_v18 = vpop.f32.mrf.mxu1  ;;  %v21587_v8 = vld [vmem:[#allocation47_spill] sm:$0xff]  ;;  %v10415_v9 = vadd.f32 %v19408_v37, %v19426_v23  ;;  %v10417_v37 = vadd.f32 %v19428_v32, %v19406_v57 }
 0x3ef   : > { %v10407_v6 = vadd.f32 %v21586_v25, %v19406_v57  ;;  %11605 = vmatprep.subr.bf16.mxu0 %v15320_v7  ;;  %11798 = vmatprep.subr.bf16.mxu1 %v15323_v31  ;;  %v15329_v5 = vld [vmem:[%s20905_s4 + $0x894] ss:$8 sps:$4 sm:$0xff]   ;;  %v10409_v28 = vadd.f32 %v21587_v8, %v19426_v23  ;;  %v19902_v10 = vadd.f32 %v10790_v56, %v10598_v43  ;;  %v15324_v7 = vld [vmem:[%s20905_s4 + $0x790] ss:$8 sps:$4 sm:$0xff]  }
 0x3f0   : > { %v10601_v49 = vpop.f32.mrf.mxu0  ;;  %v10794_v59 = vpop.f32.mrf.mxu1  ;;  %v15327_v31 = vld [vmem:[%s20905_s4 + $0x890] ss:$8 sps:$4 sm:$0xff]  }
 0x3f1   : > { %v10600_v47 = vadd.f32 %v10599_v35, %v10407_v6  ;;  %v10602_v56 = vadd.f32 %v10601_v49, %v10409_v28  ;;  %v21589_v35 = vld [vmem:[#allocation39_spill] sm:$0xff]  ;;  %v21590_v8 = vld [vmem:[#allocation40_spill] sm:$0xff] }
 0x3f2   : > { %11606 = vmatpush2.bf16.msra.mxu0 %v15318_v44  ;;  %11799 = vmatpush2.bf16.msra.mxu1 %v15321_v38  ;;  %v15332_v44 = vld [vmem:[%s20905_s4 + $0x784] ss:$8 sps:$4 sm:$0xff]   ;;  %v10605_v6 = vpop.f32.mrf.mxu0  ;;  %v10798_v43 = vpop.f32.mrf.mxu1 }
 0x3f3   : > { %v19912_v25 = vadd.f32 %v10792_v18, %v10600_v47  ;;  %11607 = vmatprep.subr.bf16.mxu0 %v15326_v50  ;;  %11800 = vmatprep.subr.bf16.mxu1 %v15329_v5  ;;  %v15335_v38 = vld [vmem:[%s20905_s4 + $0x884] ss:$8 sps:$4 sm:$0xff]   ;;  %v19924_v28 = vadd.f32 %v10794_v59, %v10602_v56  ;;  %v10606_v50 = vadd.f32 %v10605_v6, %v10413_v61  ;;  %v21592_v5 = vld [vmem:[#allocation156_spill] sm:$0xff] }
 0x3f4   : > { %11296 = vmatmul.mubr.bf16.gmra.mxu0 %v21589_v35  ;;  %11489 = vmatmul.mubr.bf16.gmra.mxu1 %v21590_v8  ;;  %v21593_v18 = vld [vmem:[#allocation52_spill] sm:$0xff]  ;;  %v10607_v47 = vpop.f32.mrf.mxu0  ;;  %v10800_v49 = vpop.f32.mrf.mxu1  ;;  %v15330_v35 = vld [vmem:[%s20905_s4 + $0x780] ss:$8 sps:$4 sm:$0xff]  }
 0x3f5   : > { %21588 = vst [vmem:[#allocation137_spill] sm:$0xff] %v19912_v25  ;;  %21591 = vst [vmem:[#allocation73_spill] sm:$0xff] %v19924_v28  ;;  %11305 = vmatprep.mubr.bf16.mxu0 %v21592_v5  ;;  %11498 = vmatprep.mubr.bf16.mxu1 %v21593_v18  ;;  %v15333_v8 = vld [vmem:[%s20905_s4 + $0x880] ss:$8 sps:$4 sm:$0xff]   ;;  %v19936_v59 = vadd.f32 %v10798_v43, %v10606_v50  ;;  %v10608_v61 = vadd.f32 %v10607_v47, %v10415_v9  ;;  %v21597_v50 = vld [vmem:[#allocation57_spill] sm:$0xff] }
 0x3f6   : > { %11608 = vmatpush2.bf16.msra.mxu0 %v15324_v7  ;;  %11801 = vmatpush2.bf16.msra.mxu1 %v15327_v31  ;;  %v10609_v56 = vpop.f32.mrf.mxu0  ;;  %v10802_v6 = vpop.f32.mrf.mxu1  ;;  %v10419_v7 = vadd.f32 %v19431_v2, %v19426_v23  ;;  %v21594_v9 = vld [vmem:[#allocation51_spill] sm:$0xff]  ;;  %v21596_v2 = vld [vmem:[#allocation157_spill] sm:$0xff] }
 0x3f7   : > { %11609 = vmatprep.subr.bf16.mxu0 %v15332_v44  ;;  %11802 = vmatprep.subr.bf16.mxu1 %v15335_v38  ;;  %v19940_v31 = vadd.f32 %v10800_v49, %v10608_v61  ;;  %v10610_v5 = vadd.f32 %v10609_v56, %v10417_v37  ;;  %v21595_v44 = vld [vmem:[#allocation46_spill] sm:$0xff] }
 0x3f8   : > { %v10611_v18 = vpop.f32.mrf.mxu0  ;;  %v10804_v28 = vpop.f32.mrf.mxu1 }
 0x3f9   : > { %v19942_v25 = vadd.f32 %v10802_v6, %v10610_v5  ;;  %v10612_v57 = vadd.f32 %v10611_v18, %v10419_v7 }
 0x3fa   : > { %11610 = vmatpush2.bf16.msra.mxu0 %v15330_v35  ;;  %11803 = vmatpush2.bf16.msra.mxu1 %v15333_v8  ;;  %v10841_v32 = vpop.f32.mrf.mxu0  ;;  %v11034_v43 = vpop.f32.mrf.mxu1 }
 0x3fb   : > { %v19946_v38 = vadd.f32 %v10804_v28, %v10612_v57  ;;  %v10842_v23 = vadd.f32 %v10841_v32, %v19448_v22  ;;  %v21598_v32 = vld [vmem:[#allocation49_spill] sm:$0xff] }
 0x3fc   : > { %11306 = vmatmul.mubr.bf16.gmra.mxu0 %v21594_v9  ;;  %11499 = vmatmul.mubr.bf16.gmra.mxu1 %v21595_v44  ;;  %v10843_v47 = vpop.f32.mrf.mxu0  ;;  %v11036_v49 = vpop.f32.mrf.mxu1  ;;  %v21600_v44 = vld [vmem:[#allocation158_spill] sm:$0xff] }
 0x3fd   : > { %11315 = vmatprep.mubr.bf16.mxu0 %v21596_v2  ;;  %11508 = vmatprep.mubr.bf16.mxu1 %v21597_v50  ;;  %v19951_v35 = vadd.f32 %v11034_v43, %v10842_v23  ;;  %v10844_v8 = vadd.f32 %v10843_v47, %v19452_v45  ;;  %v21599_v43 = vld [vmem:[#allocation50_spill] sm:$0xff] }
 0x3fe   : > { %v10845_v37 = vpop.f32.mrf.mxu0  ;;  %v11038_v61 = vpop.f32.mrf.mxu1  ;;  %v21601_v23 = vld [vmem:[#allocation62_spill] sm:$0xff] }
 0x3ff   : > { %v19954_v56 = vadd.f32 %v11036_v49, %v10844_v8  ;;  %v10846_v6 = vadd.f32 %v10845_v37, %v19458_v41 }
 0x400   : > { %v10847_v28 = vpop.f32.mrf.mxu0  ;;  %v11040_v7 = vpop.f32.mrf.mxu1 }
 0x401   : > { %v19957_v5 = vadd.f32 %v11038_v61, %v10846_v6  ;;  %v10848_v22 = vadd.f32 %v10847_v28, %v19464_v39 }
 0x402   : > { %v10851_v18 = vpop.f32.mrf.mxu0  ;;  %v11044_v57 = vpop.f32.mrf.mxu1 }
 0x403   : > { %v19962_v9 = vadd.f32 %v11040_v7, %v10848_v22  ;;  %v10852_v45 = vadd.f32 %v10851_v18, %v19470_v29  ;;  %v21602_v18 = vld [vmem:[#allocation54_spill] sm:$0xff] }
 0x404   : > { %11316 = vmatmul.mubr.bf16.gmra.mxu0 %v21598_v32  ;;  %11509 = vmatmul.mubr.bf16.gmra.mxu1 %v21599_v43  ;;  %v10853_v41 = vpop.f32.mrf.mxu0  ;;  %v11046_v2 = vpop.f32.mrf.mxu1  ;;  %v21604_v43 = vld [vmem:[#allocation159_spill] sm:$0xff] }
 0x405   : > { %11325 = vmatprep.mubr.bf16.mxu0 %v21600_v44  ;;  %11518 = vmatprep.mubr.bf16.mxu1 %v21601_v23  ;;  %v19967_v50 = vadd.f32 %v11044_v57, %v10852_v45  ;;  %v10854_v39 = vadd.f32 %v10853_v41, %v19474_v46  ;;  %v21603_v57 = vld [vmem:[#allocation55_spill] sm:$0xff]  ;;  %v21605_v45 = vld [vmem:[#allocation77_spill] sm:$0xff] }
 0x406   : > { %v10855_v47 = vpop.f32.mrf.mxu0  ;;  %v11048_v49 = vpop.f32.mrf.mxu1 }
 0x407   : > { %v19970_v8 = vadd.f32 %v11046_v2, %v10854_v39  ;;  %v10856_v37 = vadd.f32 %v10855_v47, %v19478_v42 }
 0x408   : > { %v10857_v61 = vpop.f32.mrf.mxu0  ;;  %v11050_v6 = vpop.f32.mrf.mxu1 }
 0x409   : > { %v19973_v28 = vadd.f32 %v11048_v49, %v10856_v37  ;;  %v10858_v29 = vadd.f32 %v10857_v61, %v19484_v53 }
 0x40a   : > { %v10861_v7 = vpop.f32.mrf.mxu0  ;;  %v11054_v22 = vpop.f32.mrf.mxu1 }
 0x40b   : > { %v19978_v32 = vadd.f32 %v11050_v6, %v10858_v29  ;;  %v10862_v46 = vadd.f32 %v10861_v7, %v19490_v24  ;;  %v21606_v7 = vld [vmem:[#allocation59_spill] sm:$0xff] }
 0x40c   : > { %11326 = vmatmul.mubr.bf16.gmra.mxu0 %v21602_v18  ;;  %11519 = vmatmul.mubr.bf16.gmra.mxu1 %v21603_v57  ;;  %v10863_v42 = vpop.f32.mrf.mxu0  ;;  %v11056_v44 = vpop.f32.mrf.mxu1  ;;  %v21608_v57 = vld [vmem:[#allocation160_spill] sm:$0xff] }
 0x40d   : > { %11335 = vmatprep.mubr.bf16.mxu0 %v21604_v43  ;;  %11528 = vmatprep.mubr.bf16.mxu1 %v21605_v45  ;;  %v19983_v23 = vadd.f32 %v11054_v22, %v10862_v46  ;;  %v10864_v53 = vadd.f32 %v10863_v42, %v19494_v0  ;;  %v21607_v22 = vld [vmem:[#allocation60_spill] sm:$0xff]  ;;  %v21609_v46 = vld [vmem:[#allocation78_spill] sm:$0xff] }
 0x40e   : > { %v10865_v41 = vpop.f32.mrf.mxu0  ;;  %v11058_v2 = vpop.f32.mrf.mxu1 }
 0x40f   : > { %v19986_v39 = vadd.f32 %v11056_v44, %v10864_v53  ;;  %v10866_v47 = vadd.f32 %v10865_v41, %v19498_v21 }
 0x410   : > { %v10867_v49 = vpop.f32.mrf.mxu0  ;;  %v11060_v37 = vpop.f32.mrf.mxu1 }
 0x411   : > { %v19989_v61 = vadd.f32 %v11058_v2, %v10866_v47  ;;  %v10868_v24 = vadd.f32 %v10867_v49, %v19504_v54 }
 0x412   : > { %v10871_v6 = vpop.f32.mrf.mxu0  ;;  %v11064_v29 = vpop.f32.mrf.mxu1 }
 0x413   : > { %v19994_v18 = vadd.f32 %v11060_v37, %v10868_v24  ;;  %v10872_v0 = vadd.f32 %v10871_v6, %v19510_v3  ;;  %v21610_v6 = vld [vmem:[#allocation63_spill] sm:$0xff] }
 0x414   : > { %11336 = vmatmul.mubr.bf16.gmra.mxu0 %v21606_v7  ;;  %11529 = vmatmul.mubr.bf16.gmra.mxu1 %v21607_v22  ;;  %v10873_v21 = vpop.f32.mrf.mxu0  ;;  %v11066_v43 = vpop.f32.mrf.mxu1  ;;  %v21612_v22 = vld [vmem:[#allocation161_spill] sm:$0xff] }
 0x415   : > { %11345 = vmatprep.mubr.bf16.mxu0 %v21608_v57  ;;  %11538 = vmatprep.mubr.bf16.mxu1 %v21609_v46  ;;  %v19999_v45 = vadd.f32 %v11064_v29, %v10872_v0  ;;  %v10874_v54 = vadd.f32 %v10873_v21, %v19514_v40  ;;  %v21611_v29 = vld [vmem:[#allocation64_spill] sm:$0xff]  ;;  %v21613_v0 = vld [vmem:[#allocation79_spill] sm:$0xff] }
 0x416   : > { %v10875_v42 = vpop.f32.mrf.mxu0  ;;  %v11068_v44 = vpop.f32.mrf.mxu1 }
 0x417   : > { %v20002_v53 = vadd.f32 %v11066_v43, %v10874_v54  ;;  %v10876_v41 = vadd.f32 %v10875_v42, %v19518_v17 }
 0x418   : > { %v10877_v2 = vpop.f32.mrf.mxu0  ;;  %v11070_v47 = vpop.f32.mrf.mxu1 }
 0x419   : > { %v20005_v49 = vadd.f32 %v11068_v44, %v10876_v41  ;;  %v10878_v3 = vadd.f32 %v10877_v2, %v19524_v63 }
 0x41a   : > { %v10881_v37 = vpop.f32.mrf.mxu0  ;;  %v11074_v24 = vpop.f32.mrf.mxu1 }
 0x41b   : > { %v20010_v7 = vadd.f32 %v11070_v47, %v10878_v3  ;;  %v10882_v40 = vadd.f32 %v10881_v37, %v19530_v4  ;;  %v21614_v37 = vld [vmem:[#allocation67_spill] sm:$0xff] }
 0x41c   : > { %11346 = vmatmul.mubr.bf16.gmra.mxu0 %v21610_v6  ;;  %11539 = vmatmul.mubr.bf16.gmra.mxu1 %v21611_v29  ;;  %v10883_v17 = vpop.f32.mrf.mxu0  ;;  %v11076_v57 = vpop.f32.mrf.mxu1  ;;  %v21617_v29 = vld [vmem:[#allocation162_spill] sm:$0xff] }
 0x41d   : > { %11355 = vmatprep.mubr.bf16.mxu0 %v21612_v22  ;;  %11548 = vmatprep.mubr.bf16.mxu1 %v21613_v0  ;;  %v20015_v46 = vadd.f32 %v11074_v24, %v10882_v40  ;;  %v10884_v63 = vadd.f32 %v10883_v17, %v19534_v16  ;;  %v21615_v24 = vld [vmem:[#allocation68_spill] sm:$0xff]  ;;  %v21618_v40 = vld [vmem:[#allocation83_spill] sm:$0xff] }
 0x41e   : > { %v10885_v21 = vpop.f32.mrf.mxu0  ;;  %v11078_v43 = vpop.f32.mrf.mxu1 }
 0x41f   : > { %v20018_v54 = vadd.f32 %v11076_v57, %v10884_v63  ;;  %v10886_v42 = vadd.f32 %v10885_v21, %v19538_v34 }
 0x420   : > { %v10887_v44 = vpop.f32.mrf.mxu0  ;;  %v11080_v41 = vpop.f32.mrf.mxu1 }
 0x421   : > { %v20021_v2 = vadd.f32 %v11078_v43, %v10886_v42  ;;  %v10888_v4 = vadd.f32 %v10887_v44, %v19544_v51 }
 0x422   : > { %v10891_v47 = vpop.f32.mrf.mxu0  ;;  %v11084_v3 = vpop.f32.mrf.mxu1 }
 0x423   : > { %v20026_v6 = vadd.f32 %v11080_v41, %v10888_v4  ;;  %v10892_v16 = vadd.f32 %v10891_v47, %v19550_v55  ;;  %v21619_v47 = vld [vmem:[#allocation69_spill] sm:$0xff] }
 0x424   : > { %11356 = vmatmul.mubr.bf16.gmra.mxu0 %v21614_v37  ;;  %11549 = vmatmul.mubr.bf16.gmra.mxu1 %v21615_v24  ;;  %v10893_v34 = vpop.f32.mrf.mxu0  ;;  %v11086_v22 = vpop.f32.mrf.mxu1  ;;  %v21622_v24 = vld [vmem:[#allocation87_spill] sm:$0xff] }
 0x425   : > { %21616 = vst [vmem:[#allocation21_spill] sm:$0xff] %v20026_v6  ;;  %11365 = vmatprep.mubr.bf16.mxu0 %v21617_v29  ;;  %11558 = vmatprep.mubr.bf16.mxu1 %v21618_v40  ;;  %v20031_v0 = vadd.f32 %v11084_v3, %v10892_v16  ;;  %v10894_v51 = vadd.f32 %v10893_v34, %v19554_v30  ;;  %v21620_v3 = vld [vmem:[#allocation70_spill] sm:$0xff]  ;;  %v21623_v16 = vld [vmem:[#allocation173_spill] sm:$0xff]  ;;  %v21661_v6 = vld [vmem:[#allocation19_spill] sm:$0xff] }
 0x426   : > { %v10895_v17 = vpop.f32.mrf.mxu0  ;;  %v11088_v57 = vpop.f32.mrf.mxu1 }
 0x427   : > { %v20034_v63 = vadd.f32 %v11086_v22, %v10894_v51  ;;  %v10896_v21 = vadd.f32 %v10895_v17, %v19558_v20 }
 0x428   : > { %v10897_v43 = vpop.f32.mrf.mxu0  ;;  %v11090_v42 = vpop.f32.mrf.mxu1 }
 0x429   : > { %v20037_v44 = vadd.f32 %v11088_v57, %v10896_v21  ;;  %v10898_v55 = vadd.f32 %v10897_v43, %v19564_v13 }
 0x42a   : > { %v10901_v41 = vpop.f32.mrf.mxu0  ;;  %v11094_v4 = vpop.f32.mrf.mxu1 }
 0x42b   : > { %v20042_v37 = vadd.f32 %v11090_v42, %v10898_v55  ;;  %v10902_v30 = vadd.f32 %v10901_v41, %v19570_v26  ;;  %v21624_v41 = vld [vmem:[#allocation74_spill] sm:$0xff] }
 0x42c   : > { %11366 = vmatmul.mubr.bf16.gmra.mxu0 %v21619_v47  ;;  %11559 = vmatmul.mubr.bf16.gmra.mxu1 %v21620_v3  ;;  %v10903_v20 = vpop.f32.mrf.mxu0  ;;  %v11096_v29 = vpop.f32.mrf.mxu1  ;;  %v21627_v3 = vld [vmem:[#allocation42_spill] sm:$0xff] }
 0x42d   : > { %21621 = vst [vmem:[#allocation23_spill] sm:$0xff] %v20042_v37  ;;  %11375 = vmatprep.mubr.bf16.mxu0 %v21622_v24  ;;  %11568 = vmatprep.mubr.bf16.mxu1 %v21623_v16  ;;  %v20047_v40 = vadd.f32 %v11094_v4, %v10902_v30  ;;  %v10904_v13 = vadd.f32 %v10903_v20, %v19574_v60  ;;  %v21625_v4 = vld [vmem:[#allocation75_spill] sm:$0xff]  ;;  %v21628_v30 = vld [vmem:[#allocation88_spill] sm:$0xff] }
 0x42e   : > { %v10905_v34 = vpop.f32.mrf.mxu0  ;;  %v11098_v22 = vpop.f32.mrf.mxu1 }
 0x42f   : > { %v20050_v51 = vadd.f32 %v11096_v29, %v10904_v13  ;;  %v10906_v17 = vadd.f32 %v10905_v34, %v19578_v52 }
 0x430   : > { %v10907_v57 = vpop.f32.mrf.mxu0  ;;  %v11100_v21 = vpop.f32.mrf.mxu1 }
 0x431   : > { %v20053_v43 = vadd.f32 %v11098_v22, %v10906_v17  ;;  %v10908_v26 = vadd.f32 %v10907_v57, %v19584_v48 }
 0x432   : > { %v10911_v42 = vpop.f32.mrf.mxu0  ;;  %v11104_v55 = vpop.f32.mrf.mxu1 }
 0x433   : > { %v20058_v47 = vadd.f32 %v11100_v21, %v10908_v26  ;;  %v10912_v60 = vadd.f32 %v10911_v42, %v19590_v12  ;;  %v21629_v42 = vld [vmem:[#allocation80_spill] sm:$0xff] }
 0x434   : > { %11376 = vmatmul.mubr.bf16.gmra.mxu0 %v21624_v41  ;;  %11569 = vmatmul.mubr.bf16.gmra.mxu1 %v21625_v4  ;;  %v10913_v52 = vpop.f32.mrf.mxu0  ;;  %v11106_v24 = vpop.f32.mrf.mxu1  ;;  %v21632_v4 = vld [vmem:[#allocation164_spill] sm:$0xff] }
 0x435   : > { %21626 = vst [vmem:[#allocation138_spill] sm:$0xff] %v20058_v47  ;;  %11611 = vmatprep.mubr.bf16.mxu0 %v21627_v3  ;;  %11804 = vmatprep.mubr.bf16.mxu1 %v21628_v30  ;;  %v20063_v16 = vadd.f32 %v11104_v55, %v10912_v60  ;;  %v10914_v48 = vadd.f32 %v10913_v52, %v19594_v14  ;;  %v21630_v55 = vld [vmem:[#allocation81_spill] sm:$0xff]  ;;  %v21633_v60 = vld [vmem:[#allocation91_spill] sm:$0xff] }
 0x436   : > { %v10915_v20 = vpop.f32.mrf.mxu0  ;;  %v11108_v29 = vpop.f32.mrf.mxu1 }
 0x437   : > { %v20066_v13 = vadd.f32 %v11106_v24, %v10914_v48  ;;  %v10916_v34 = vadd.f32 %v10915_v20, %v19604_v58 }
 0x438   : > { %v10917_v22 = vpop.f32.mrf.mxu0  ;;  %v11110_v17 = vpop.f32.mrf.mxu1 }
 0x439   : > { %v20069_v57 = vadd.f32 %v11108_v29, %v10916_v34  ;;  %v10918_v12 = vadd.f32 %v10917_v22, %v19616_v19 }
 0x43a   : > { %v10921_v21 = vpop.f32.mrf.mxu0  ;;  %v11114_v26 = vpop.f32.mrf.mxu1 }
 0x43b   : > { %v20074_v41 = vadd.f32 %v11110_v17, %v10918_v12  ;;  %v10922_v14 = vadd.f32 %v10921_v21, %v19628_v36  ;;  %v21634_v21 = vld [vmem:[#allocation90_spill] sm:$0xff] }
 0x43c   : > { %11612 = vmatmul.mubr.bf16.vlgmr.msra.gmra.mxu0 %v21629_v42  ;;  %11805 = vmatmul.mubr.bf16.vlgmr.msra.gmra.mxu1 %v21630_v55  ;;  %v10923_v58 = vpop.f32.mrf.mxu0  ;;  %v11116_v3 = vpop.f32.mrf.mxu1  ;;  %v21637_v55 = vld [vmem:[#allocation165_spill] sm:$0xff] }
 0x43d   : > { %21631 = vst [vmem:[#allocation76_spill] sm:$0xff] %v20074_v41  ;;  %11621 = vmatprep.mubr.bf16.mxu0 %v21632_v4  ;;  %11814 = vmatprep.mubr.bf16.mxu1 %v21633_v60  ;;  %v20079_v30 = vadd.f32 %v11114_v26, %v10922_v14  ;;  %v10924_v19 = vadd.f32 %v10923_v58, %v19638_v33  ;;  %v21635_v26 = vld [vmem:[#allocation86_spill] sm:$0xff] }
 0x43e   : > { %v10925_v52 = vpop.f32.mrf.mxu0  ;;  %v11118_v24 = vpop.f32.mrf.mxu1  ;;  %v21638_v14 = vld [vmem:[#allocation94_spill] sm:$0xff] }
 0x43f   : > { %v20082_v48 = vadd.f32 %v11116_v3, %v10924_v19  ;;  %v10926_v20 = vadd.f32 %v10925_v52, %v19648_v15  ;;  %v21639_v52 = vld [vmem:[#allocation7_spill] sm:$0xff] }
 0x440   : > { %v10927_v29 = vpop.f32.mrf.mxu0  ;;  %v11120_v34 = vpop.f32.mrf.mxu1 }
 0x441   : > { %v20085_v22 = vadd.f32 %v11118_v24, %v10926_v20  ;;  %v10928_v36 = vadd.f32 %v10927_v29, %v19660_v27 }
 0x442   : > { %v10931_v17 = vpop.f32.mrf.mxu0  ;;  %v11124_v12 = vpop.f32.mrf.mxu1 }
 0x443   : > { %v20090_v42 = vadd.f32 %v11120_v34, %v10928_v36  ;;  %v10932_v33 = vadd.f32 %v10931_v17, %v19672_v11  ;;  %v21640_v11 = vld [vmem:[#allocation45_spill] sm:$0xff] }
 0x444   : > { %11622 = vmatmul.mubr.bf16.gmra.mxu0 %v21634_v21  ;;  %11815 = vmatmul.mubr.bf16.gmra.mxu1 %v21635_v26  ;;  %v10933_v15 = vpop.f32.mrf.mxu0  ;;  %v11126_v4 = vpop.f32.mrf.mxu1  ;;  %v21641_v26 = vld [vmem:[#allocation10_spill] sm:$0xff] }
 0x445   : > { %21636 = vst [vmem:[#allocation24_spill] sm:$0xff] %v20090_v42  ;;  %11631 = vmatprep.mubr.bf16.mxu0 %v21637_v55  ;;  %11824 = vmatprep.mubr.bf16.mxu1 %v21638_v14  ;;  %v20095_v60 = vadd.f32 %v11124_v12, %v10932_v33  ;;  %v10934_v27 = vadd.f32 %v10933_v15, %v19682_v1  ;;  %v21642_v12 = vld [vmem:[#allocation89_spill] sm:$0xff]  ;;  %v21645_v14 = vld [vmem:[#allocation166_spill] sm:$0xff]  ;;  %v21650_v42 = vld [vmem:[#allocation16_spill] sm:$0xff] }
 0x446   : > { %v10935_v58 = vpop.f32.mrf.mxu0  ;;  %v11128_v3 = vpop.f32.mrf.mxu1  ;;  %v21644_v1 = vld [vmem:[#allocation9_spill] sm:$0xff] }
 0x447   : > { %v20098_v19 = vadd.f32 %v11126_v4, %v10934_v27  ;;  %v10936_v24 = vadd.f32 %v10935_v58, %v21639_v52  ;;  %v21646_v15 = vld [vmem:[#allocation97_spill] sm:$0xff] }
 0x448   : > { %v10937_v20 = vpop.f32.mrf.mxu0  ;;  %v11130_v29 = vpop.f32.mrf.mxu1 }
 0x449   : > { %v20101_v34 = vadd.f32 %v11128_v3, %v10936_v24  ;;  %v10938_v36 = vadd.f32 %v10937_v20, %v21640_v11  ;;  %v21647_v3 = vld [vmem:[#allocation56_spill] sm:$0xff] }
 0x44a   : > { %v10941_v17 = vpop.f32.mrf.mxu0  ;;  %v11134_v21 = vpop.f32.mrf.mxu1 }
 0x44b   : > { %v20106_v33 = vadd.f32 %v11130_v29, %v10938_v36  ;;  %v10942_v55 = vadd.f32 %v10941_v17, %v21644_v1  ;;  %v21649_v17 = vld [vmem:[#allocation13_spill] sm:$0xff] }
 0x44c   : > { %11632 = vmatmul.mubr.bf16.gmra.mxu0 %v21641_v26  ;;  %11825 = vmatmul.mubr.bf16.gmra.mxu1 %v21642_v12  ;;  %v10943_v4 = vpop.f32.mrf.mxu0  ;;  %v11136_v27 = vpop.f32.mrf.mxu1  ;;  %v21648_v26 = vld [vmem:[#allocation131_spill] sm:$0xff] }
 0x44d   : > { %21643 = vst [vmem:[#allocation26_spill] sm:$0xff] %v20106_v33  ;;  %11641 = vmatprep.mubr.bf16.mxu0 %v21645_v14  ;;  %11834 = vmatprep.mubr.bf16.mxu1 %v21646_v15  ;;  %v20111_v58 = vadd.f32 %v11134_v21, %v10942_v55  ;;  %v10944_v52 = vadd.f32 %v10943_v4, %v21647_v3  ;;  %v21651_v21 = vld [vmem:[#allocation92_spill] sm:$0xff]  ;;  %v21652_v4 = vld [vmem:[#allocation134_spill] sm:$0xff] }
 0x44e   : > { %v10945_v24 = vpop.f32.mrf.mxu0  ;;  %v11138_v20 = vpop.f32.mrf.mxu1 }
 0x44f   : > { %v20114_v11 = vadd.f32 %v11136_v27, %v10944_v52  ;;  %v10946_v12 = vadd.f32 %v10945_v24, %v21648_v26  ;;  %v21653_v27 = vld [vmem:[#allocation167_spill] sm:$0xff]  ;;  %v21654_v52 = vld [vmem:[#allocation100_spill] sm:$0xff] }
 0x450   : > { %v10947_v29 = vpop.f32.mrf.mxu0  ;;  %v11140_v36 = vpop.f32.mrf.mxu1 }
 0x451   : > { %v20117_v33 = vadd.f32 %v11138_v20, %v10946_v12  ;;  %v10948_v1 = vadd.f32 %v10947_v29, %v21649_v17  ;;  %v21656_v12 = vld [vmem:[#allocation61_spill] sm:$0xff] }
 0x452   : > { %v10951_v14 = vpop.f32.mrf.mxu0  ;;  %v11144_v15 = vpop.f32.mrf.mxu1 }
 0x453   : > { %v20122_v55 = vadd.f32 %v11140_v36, %v10948_v1  ;;  %v10952_v3 = vadd.f32 %v10951_v14, %v21652_v4  ;;  %v21660_v14 = vld [vmem:[#allocation14_spill] sm:$0xff] }
 0x454   : > { %11642 = vmatmul.mubr.bf16.gmra.mxu0 %v21650_v42  ;;  %11835 = vmatmul.mubr.bf16.gmra.mxu1 %v21651_v21  ;;  %v10953_v24 = vpop.f32.mrf.mxu0  ;;  %v11146_v26 = vpop.f32.mrf.mxu1  ;;  %v21658_v42 = vld [vmem:[#allocation133_spill] sm:$0xff] }
 0x455   : > { %11651 = vmatprep.mubr.bf16.mxu0 %v21653_v27  ;;  %11844 = vmatprep.mubr.bf16.mxu1 %v21654_v52  ;;  %v20127_v20 = vadd.f32 %v11144_v15, %v10952_v3  ;;  %v10954_v29 = vadd.f32 %v10953_v24, %v21656_v12  ;;  %v21662_v15 = vld [vmem:[#allocation95_spill] sm:$0xff] }
 0x456   : > { %v10955_v17 = vpop.f32.mrf.mxu0  ;;  %v11148_v41 = vpop.f32.mrf.mxu1  ;;  %v21664_v24 = vld [vmem:[#allocation135_spill] sm:$0xff] }
 0x457   : > { %21655 = vst [vmem:[#allocation140_spill] sm:$0xff] %v20127_v20  ;;  %v20130_v47 = vadd.f32 %v11146_v26, %v10954_v29  ;;  %v10956_v21 = vadd.f32 %v10955_v17, %v21658_v42  ;;  %v21665_v26 = vld [vmem:[#allocation168_spill] sm:$0xff]  ;;  %v21673_v20 = vld [vmem:[#allocation22_spill] sm:$0xff] }
 0x458   : > { %v10957_v36 = vpop.f32.mrf.mxu0  ;;  %v11150_v1 = vpop.f32.mrf.mxu1  ;;  %v21666_v29 = vld [vmem:[#allocation28_spill] sm:$0xff] }
 0x459   : > { %21657 = vst [vmem:[#allocation82_spill] sm:$0xff] %v20130_v47  ;;  %v20133_v37 = vadd.f32 %v11148_v41, %v10956_v21  ;;  %v10958_v4 = vadd.f32 %v10957_v36, %v21660_v14  ;;  %v21668_v21 = vld [vmem:[#allocation71_spill] sm:$0xff] }
 0x45a   : > { %v10961_v27 = vpop.f32.mrf.mxu0  ;;  %v11154_v52 = vpop.f32.mrf.mxu1 }
 0x45b   : > { %21659 = vst [vmem:[#allocation27_spill] sm:$0xff] %v20133_v37  ;;  %v20138_v3 = vadd.f32 %v11150_v1, %v10958_v4  ;;  %v10962_v12 = vadd.f32 %v10961_v27, %v21664_v24  ;;  %v21672_v27 = vld [vmem:[#allocation17_spill] sm:$0xff] }
 0x45c   : > { %11652 = vmatmul.mubr.bf16.gmra.mxu0 %v21661_v6  ;;  %11845 = vmatmul.mubr.bf16.gmra.mxu1 %v21662_v15  ;;  %v10963_v17 = vpop.f32.mrf.mxu0  ;;  %v11156_v42 = vpop.f32.mrf.mxu1  ;;  %v21670_v6 = vld [vmem:[#allocation15_spill] sm:$0xff] }
 0x45d   : > { %21663 = vst [vmem:[#allocation29_spill] sm:$0xff] %v20138_v3  ;;  %11661 = vmatprep.mubr.bf16.mxu0 %v21665_v26  ;;  %11854 = vmatprep.mubr.bf16.mxu1 %v21666_v29  ;;  %v20143_v41 = vadd.f32 %v11154_v52, %v10962_v12  ;;  %v10964_v36 = vadd.f32 %v10963_v17, %v21668_v21  ;;  %v21674_v52 = vld [vmem:[#allocation98_spill] sm:$0xff]  ;;  %v21676_v17 = vld [vmem:[#allocation136_spill] sm:$0xff] }
 0x45e   : > { %v10965_v14 = vpop.f32.mrf.mxu0  ;;  %v11158_v37 = vpop.f32.mrf.mxu1 }
 0x45f   : > { %21667 = vst [vmem:[#allocation141_spill] sm:$0xff] %v20143_v41  ;;  %v20146_v47 = vadd.f32 %v11156_v42, %v10964_v36  ;;  %v10966_v15 = vadd.f32 %v10965_v14, %v21670_v6  ;;  %v21677_v42 = vld [vmem:[#allocation169_spill] sm:$0xff]  ;;  %v21678_v36 = vld [vmem:[#allocation106_spill] sm:$0xff]  ;;  %v21683_v41 = vld [vmem:[#allocation44_spill] sm:$0xff] }
 0x460   : > { %v10967_v1 = vpop.f32.mrf.mxu0  ;;  %v11160_v4 = vpop.f32.mrf.mxu1 }
 0x461   : > { %21669 = vst [vmem:[#allocation139_spill] sm:$0xff] %v20146_v47  ;;  %v20149_v3 = vadd.f32 %v11158_v37, %v10966_v15  ;;  %v10968_v24 = vadd.f32 %v10967_v1, %v21672_v27  ;;  %v21679_v15 = vld [vmem:[#allocation72_spill] sm:$0xff] }
 0x462   : > { %v10971_v26 = vpop.f32.mrf.mxu0  ;;  %v11164_v29 = vpop.f32.mrf.mxu1 }
 0x463   : > { %21671 = vst [vmem:[#allocation41_spill] sm:$0xff] %v20149_v3  ;;  %v20154_v12 = vadd.f32 %v11160_v4, %v10968_v24  ;;  %v10972_v21 = vadd.f32 %v10971_v26, %v21676_v17  ;;  %v21682_v26 = vld [vmem:[#allocation20_spill] sm:$0xff] }
 0x464   : > { %11662 = vmatmul.mubr.bf16.gmra.mxu0 %v21673_v20  ;;  %11855 = vmatmul.mubr.bf16.gmra.mxu1 %v21674_v52  ;;  %v10973_v14 = vpop.f32.mrf.mxu0  ;;  %v11166_v6 = vpop.f32.mrf.mxu1  ;;  %v21680_v20 = vld [vmem:[#allocation18_spill] sm:$0xff] }
 0x465   : > { %21675 = vst [vmem:[#allocation143_spill] sm:$0xff] %v20154_v12  ;;  %11671 = vmatprep.mubr.bf16.mxu0 %v21677_v42  ;;  %11864 = vmatprep.mubr.bf16.mxu1 %v21678_v36  ;;  %v20159_v37 = vadd.f32 %v11164_v29, %v10972_v21  ;;  %v10974_v1 = vadd.f32 %v10973_v14, %v21679_v15  ;;  %v21684_v29 = vld [vmem:[#allocation101_spill] sm:$0xff]  ;;  %v21687_v15 = vld [vmem:[#allocation176_spill] sm:$0xff] }
 0x466   : > { %v10975_v27 = vpop.f32.mrf.mxu0  ;;  %v11168_v3 = vpop.f32.mrf.mxu1 }
 0x467   : > { %v20162_v47 = vadd.f32 %v11166_v6, %v10974_v1  ;;  %v10976_v52 = vadd.f32 %v10975_v27, %v21680_v20  ;;  %v21686_v6 = vld [vmem:[#allocation108_spill] sm:$0xff] }
 0x468   : > { %v10977_v4 = vpop.f32.mrf.mxu0  ;;  %v11170_v24 = vpop.f32.mrf.mxu1 }
 0x469   : > { %v20165_v12 = vadd.f32 %v11168_v3, %v10976_v52  ;;  %v10978_v17 = vadd.f32 %v10977_v4, %v21682_v26 }
 0x46a   : > { %v10981_v42 = vpop.f32.mrf.mxu0  ;;  %v11174_v36 = vpop.f32.mrf.mxu1 }
 0x46b   : > { %21681 = vst [vmem:[#allocation163_spill] sm:$0xff] %v20165_v12  ;;  %v20170_v21 = vadd.f32 %v11170_v24, %v10978_v17  ;;  %v10982_v14 = vadd.f32 %v10981_v42, %v19892_v62  ;;  %v21689_v62 = vld [vmem:[#allocation73_spill] sm:$0xff]  ;;  %v21690_v12 = vld [vmem:[#allocation103_spill] sm:$0xff] }
 0x46c   : > { %11672 = vmatmul.mubr.bf16.gmra.mxu0 %v21683_v41  ;;  %11865 = vmatmul.mubr.bf16.gmra.mxu1 %v21684_v29  ;;  %v10983_v1 = vpop.f32.mrf.mxu0  ;;  %v11176_v27 = vpop.f32.mrf.mxu1  ;;  %v21688_v41 = vld [vmem:[#allocation137_spill] sm:$0xff] }
 0x46d   : > { %21685 = vst [vmem:[#allocation109_spill] sm:$0xff] %v20170_v21  ;;  %11681 = vmatprep.mubr.bf16.mxu0 %v21686_v6  ;;  %11874 = vmatprep.mubr.bf16.mxu1 %v21687_v15  ;;  %v20175_v3 = vadd.f32 %v11174_v36, %v10982_v14  ;;  %v10984_v20 = vadd.f32 %v10983_v1, %v19902_v10  ;;  %v21691_v36 = vld [vmem:[#allocation104_spill] sm:$0xff]  ;;  %v21692_v1 = vld [vmem:[#allocation111_spill] sm:$0xff] }
 0x46e   : > { %v10985_v52 = vpop.f32.mrf.mxu0  ;;  %v11178_v4 = vpop.f32.mrf.mxu1 }
 0x46f   : > { %v20178_v26 = vadd.f32 %v11176_v27, %v10984_v20  ;;  %v10986_v29 = vadd.f32 %v10985_v52, %v21688_v41  ;;  %v21693_v27 = vld [vmem:[#allocation180_spill] sm:$0xff] }
 0x470   : > { %v10987_v24 = vpop.f32.mrf.mxu0  ;;  %v11180_v17 = vpop.f32.mrf.mxu1 }
 0x471   : > { %v20181_v21 = vadd.f32 %v11178_v4, %v10986_v29  ;;  %v10988_v42 = vadd.f32 %v10987_v24, %v21689_v62 }
 0x472   : > { %v10991_v6 = vpop.f32.mrf.mxu0  ;;  %v11184_v15 = vpop.f32.mrf.mxu1 }
 0x473   : > { %v20186_v14 = vadd.f32 %v11180_v17, %v10988_v42  ;;  %v10992_v10 = vadd.f32 %v10991_v6, %v19936_v59 }
 0x474   : > { %11682 = vmatmul.mubr.bf16.gmra.mxu0 %v21690_v12  ;;  %11875 = vmatmul.mubr.bf16.gmra.mxu1 %v21691_v36  ;;  %v10993_v20 = vpop.f32.mrf.mxu0  ;;  %v11186_v52 = vpop.f32.mrf.mxu1 }
 0x475   : > { %11691 = vmatprep.mubr.bf16.mxu0 %v21692_v1  ;;  %11884 = vmatprep.mubr.bf16.mxu1 %v21693_v27  ;;  %v20191_v4 = vadd.f32 %v11184_v15, %v10992_v10  ;;  %v10994_v41 = vadd.f32 %v10993_v20, %v19940_v31  ;;  %v21694_v27 = vld [vmem:[#allocation30_spill] sm:$0xff]  ;;  %v21695_v15 = vld [vmem:[#allocation112_spill] sm:$0xff]  ;;  %v21696_v20 = vld [vmem:[#allocation115_spill] sm:$0xff] }
 0x476   : > { %v10995_v29 = vpop.f32.mrf.mxu0  ;;  %v11188_v24 = vpop.f32.mrf.mxu1 }
 0x477   : > { %v20194_v62 = vadd.f32 %v11186_v52, %v10994_v41  ;;  %v10996_v12 = vadd.f32 %v10995_v29, %v19942_v25  ;;  %v21697_v52 = vld [vmem:[#allocation182_spill] sm:$0xff] }
 0x478   : > { %v10997_v17 = vpop.f32.mrf.mxu0  ;;  %v11190_v42 = vpop.f32.mrf.mxu1 }
 0x479   : > { %v20197_v36 = vadd.f32 %v11188_v24, %v10996_v12  ;;  %v10998_v59 = vadd.f32 %v10997_v17, %v19946_v38 }
 0x47a   : > { %v11227_v6 = vpop.f32.mrf.mxu0  ;;  %v11420_v1 = vpop.f32.mrf.mxu1 }
 0x47b   : > { %v20202_v10 = vadd.f32 %v11190_v42, %v10998_v59  ;;  %v11228_v31 = vadd.f32 %v11227_v6, %v19951_v35 }
 0x47c   : > { %11692 = vmatmul.mubr.bf16.gmra.mxu0 %v21694_v27  ;;  %11885 = vmatmul.mubr.bf16.gmra.mxu1 %v21695_v15  ;;  %v11229_v25 = vpop.f32.mrf.mxu0  ;;  %v11422_v41 = vpop.f32.mrf.mxu1 }
 0x47d   : > { %11701 = vmatprep.mubr.bf16.mxu0 %v21696_v20  ;;  %11894 = vmatprep.mubr.bf16.mxu1 %v21697_v52  ;;  %v20207_v29 = vadd.f32 %v11420_v1, %v11228_v31  ;;  %v11230_v38 = vadd.f32 %v11229_v25, %v19954_v56  ;;  %v21698_v52 = vld [vmem:[#allocation31_spill] sm:$0xff]  ;;  %v21699_v1 = vld [vmem:[#allocation32_spill] sm:$0xff] }
 0x47e   : > { %v11231_v24 = vpop.f32.mrf.mxu0  ;;  %v11424_v12 = vpop.f32.mrf.mxu1  ;;  %v21700_v25 = vld [vmem:[#allocation119_spill] sm:$0xff] }
 0x47f   : > { %v20210_v17 = vadd.f32 %v11422_v41, %v11230_v38  ;;  %v11232_v27 = vadd.f32 %v11231_v24, %v19957_v5  ;;  %v21701_v41 = vld [vmem:[#allocation184_spill] sm:$0xff] }
 0x480   : > { %v11233_v42 = vpop.f32.mrf.mxu0  ;;  %v11426_v59 = vpop.f32.mrf.mxu1 }
 0x481   : > { %v20213_v15 = vadd.f32 %v11424_v12, %v11232_v27  ;;  %v11234_v35 = vadd.f32 %v11233_v42, %v19962_v9 }
 0x482   : > { %v11237_v6 = vpop.f32.mrf.mxu0  ;;  %v11430_v20 = vpop.f32.mrf.mxu1 }
 0x483   : > { %v20218_v31 = vadd.f32 %v11426_v59, %v11234_v35  ;;  %v11238_v56 = vadd.f32 %v11237_v6, %v19967_v50 }
 0x484   : > { %11702 = vmatmul.mubr.bf16.gmra.mxu0 %v21698_v52  ;;  %11895 = vmatmul.mubr.bf16.gmra.mxu1 %v21699_v1  ;;  %v11239_v5 = vpop.f32.mrf.mxu0  ;;  %v11432_v38 = vpop.f32.mrf.mxu1 }
 0x485   : > { %11711 = vmatprep.mubr.bf16.mxu0 %v21700_v25  ;;  %11904 = vmatprep.mubr.bf16.mxu1 %v21701_v41  ;;  %v20223_v24 = vadd.f32 %v11430_v20, %v11238_v56  ;;  %v11240_v9 = vadd.f32 %v11239_v5, %v19970_v8  ;;  %v21702_v41 = vld [vmem:[#allocation113_spill] sm:$0xff]  ;;  %v21704_v5 = vld [vmem:[#allocation128_spill] sm:$0xff] }
 0x486   : > { %v11241_v12 = vpop.f32.mrf.mxu0  ;;  %v11434_v27 = vpop.f32.mrf.mxu1  ;;  %v21703_v20 = vld [vmem:[#allocation33_spill] sm:$0xff] }
 0x487   : > { %v20226_v42 = vadd.f32 %v11432_v38, %v11240_v9  ;;  %v11242_v52 = vadd.f32 %v11241_v12, %v19973_v28  ;;  %v21705_v38 = vld [vmem:[#allocation186_spill] sm:$0xff] }
 0x488   : > { %v11243_v59 = vpop.f32.mrf.mxu0  ;;  %v11436_v35 = vpop.f32.mrf.mxu1 }
 0x489   : > { %v20229_v1 = vadd.f32 %v11434_v27, %v11242_v52  ;;  %v11244_v50 = vadd.f32 %v11243_v59, %v19978_v32 }
 0x48a   : > { %v11247_v6 = vpop.f32.mrf.mxu0  ;;  %v11440_v25 = vpop.f32.mrf.mxu1 }
 0x48b   : > { %v20234_v56 = vadd.f32 %v11436_v35, %v11244_v50  ;;  %v11248_v8 = vadd.f32 %v11247_v6, %v19983_v23 }
 0x48c   : > { %11712 = vmatmul.mubr.bf16.gmra.mxu0 %v21702_v41  ;;  %11905 = vmatmul.mubr.bf16.gmra.mxu1 %v21703_v20  ;;  %v11249_v28 = vpop.f32.mrf.mxu0  ;;  %v11442_v9 = vpop.f32.mrf.mxu1 }
 0x48d   : > { %11721 = vmatprep.mubr.bf16.mxu0 %v21704_v5  ;;  %11914 = vmatprep.mubr.bf16.mxu1 %v21705_v38  ;;  %v20239_v12 = vadd.f32 %v11440_v25, %v11248_v8  ;;  %v11250_v32 = vadd.f32 %v11249_v28, %v19986_v39  ;;  %v21706_v38 = vld [vmem:[#allocation117_spill] sm:$0xff]  ;;  %v21707_v25 = vld [vmem:[#allocation35_spill] sm:$0xff]  ;;  %v21708_v28 = vld [vmem:[#allocation170_spill] sm:$0xff] }
 0x48e   : > { %v11251_v27 = vpop.f32.mrf.mxu0  ;;  %v11444_v52 = vpop.f32.mrf.mxu1 }
 0x48f   : > { %v20242_v59 = vadd.f32 %v11442_v9, %v11250_v32  ;;  %v11252_v41 = vadd.f32 %v11251_v27, %v19989_v61  ;;  %v21709_v9 = vld [vmem:[#allocation188_spill] sm:$0xff] }
 0x490   : > { %v11253_v35 = vpop.f32.mrf.mxu0  ;;  %v11446_v50 = vpop.f32.mrf.mxu1 }
 0x491   : > { %v20245_v20 = vadd.f32 %v11444_v52, %v11252_v41  ;;  %v11254_v23 = vadd.f32 %v11253_v35, %v19994_v18 }
 0x492   : > { %v11257_v6 = vpop.f32.mrf.mxu0 }
 0x493   : > { %v11450_v5 = vpop.f32.mrf.mxu1  ;;  %v20250_v8 = vadd.f32 %v11446_v50, %v11254_v23  ;;  %v11258_v39 = vadd.f32 %v11257_v6, %v19999_v45 }
 0x494   : > { %11722 = vmatmul.mubr.bf16.gmra.mxu0 %v21706_v38  ;;  %11915 = vmatmul.mubr.bf16.gmra.mxu1 %v21707_v25  ;;  %v11259_v61 = vpop.f32.mrf.mxu0 }
 0x495   : > { %11731 = vmatprep.mubr.bf16.mxu0 %v21708_v28  ;;  %11924 = vmatprep.mubr.bf16.mxu1 %v21709_v9  ;;  %v11452_v32 = vpop.f32.mrf.mxu1  ;;  %v20255_v27 = vadd.f32 %v11450_v5, %v11258_v39  ;;  %v11260_v18 = vadd.f32 %v11259_v61, %v20002_v53  ;;  %v21710_v9 = vld [vmem:[#allocation121_spill] sm:$0xff]  ;;  %v21711_v5 = vld [vmem:[#allocation66_spill] sm:$0xff]  ;;  %v21712_v61 = vld [vmem:[#allocation171_spill] sm:$0xff] }
 0x496   : > { %v11261_v52 = vpop.f32.mrf.mxu0 }
 0x497   : > { %v11454_v41 = vpop.f32.mrf.mxu1  ;;  %v20258_v35 = vadd.f32 %v11452_v32, %v11260_v18  ;;  %v11262_v38 = vadd.f32 %v11261_v52, %v20005_v49  ;;  %v21713_v32 = vld [vmem:[#allocation190_spill] sm:$0xff] }
 0x498   : > { %v11263_v50 = vpop.f32.mrf.mxu0 }
 0x499   : > { %v11456_v23 = vpop.f32.mrf.mxu1  ;;  %v20261_v25 = vadd.f32 %v11454_v41, %v11262_v38  ;;  %v11264_v45 = vadd.f32 %v11263_v50, %v20010_v7 }
 0x49b   : > { %v11267_v6 = vpop.f32.mrf.mxu0  ;;  %v11460_v28 = vpop.f32.mrf.mxu1  ;;  %v20266_v39 = vadd.f32 %v11456_v23, %v11264_v45 }
 0x49c   : > { %11732 = vmatmul.mubr.bf16.gmra.mxu0 %v21710_v9  ;;  %11925 = vmatmul.mubr.bf16.gmra.mxu1 %v21711_v5  ;;  %v11268_v53 = vadd.f32 %v11267_v6, %v20015_v46 }
 0x49d   : > { %11741 = vmatprep.mubr.bf16.mxu0 %v21712_v61  ;;  %11934 = vmatprep.mubr.bf16.mxu1 %v21713_v32  ;;  %v11269_v49 = vpop.f32.mrf.mxu0  ;;  %v11462_v18 = vpop.f32.mrf.mxu1  ;;  %v21715_v61 = vld [vmem:[#allocation125_spill] sm:$0xff]  ;;  %v21718_v32 = vld [vmem:[#allocation11_spill] sm:$0xff] }
 0x49e   : > { %v20271_v52 = vadd.f32 %v11460_v28, %v11268_v53  ;;  %v11270_v7 = vadd.f32 %v11269_v49, %v20018_v54  ;;  %v21716_v28 = vld [vmem:[#allocation43_spill] sm:$0xff]  ;;  %v21717_v53 = vld [vmem:[#allocation172_spill] sm:$0xff] }
 0x49f   : > { %v11271_v41 = vpop.f32.mrf.mxu0  ;;  %v11464_v38 = vpop.f32.mrf.mxu1 }
 0x4a0   : > { %v20274_v50 = vadd.f32 %v11462_v18, %v11270_v7  ;;  %v11272_v9 = vadd.f32 %v11271_v41, %v20021_v2 }
 0x4a1   : > { %v20277_v23 = vpop.f32.mrf.mxu0  ;;  %v20279_v45 = vpop.f32.mrf.mxu1 }
 0x4a2   : > { %v20281_v46 = vadd.f32 %v11464_v38, %v11272_v9 }
 0x4a3   : > { %v11277_v6 = vpop.f32.mrf.mxu0 }
 0x4a4   : > { %21714 = vst [vmem:[#allocation175_spill] sm:$0xff] %v20281_v46  ;;  %v11470_v5 = vpop.f32.mrf.mxu1  ;;  %11742 = vmatmul.mubr.bf16.gmra.mxu0 %v21715_v61  ;;  %11935 = vmatmul.mubr.bf16.gmra.mxu1 %v21716_v28  ;;  %v11278_v54 = vadd.f32 %v11277_v6, %v20031_v0 }
 0x4a5   : > { %11751 = vmatprep.mubr.bf16.mxu0 %v21717_v53  ;;  %11944 = vmatprep.mubr.bf16.mxu1 %v21718_v32  ;;  %v11279_v49 = vpop.f32.mrf.mxu0  ;;  %v21721_v32 = vld [vmem:[#allocation6_spill] sm:$0xff] }
 0x4a6   : > { %v11472_v2 = vpop.f32.mrf.mxu1  ;;  %v20288_v18 = vadd.f32 %v11470_v5, %v11278_v54  ;;  %v11280_v7 = vadd.f32 %v11279_v49, %v20034_v63  ;;  %v21722_v5 = vld [vmem:[#allocation127_spill] sm:$0xff]  ;;  %v21723_v54 = vld [vmem:[#allocation174_spill] sm:$0xff] }
 0x4a7   : > { %v11281_v41 = vpop.f32.mrf.mxu0  ;;  %v21724_v49 = vld [vmem:[#allocation155_spill] sm:$0xff] }
 0x4a8   : > { %v11474_v38 = vpop.f32.mrf.mxu1  ;;  %v20291_v9 = vadd.f32 %v11472_v2, %v11280_v7  ;;  %v11282_v61 = vadd.f32 %v11281_v41, %v20037_v44 }
 0x4a9   : > { %v20294_v46 = vpop.f32.mrf.mxu0 }
 0x4aa   : > { %v20296_v28 = vpop.f32.mrf.mxu1  ;;  %v20298_v0 = vadd.f32 %v11474_v38, %v11282_v61 }
 0x4ab   : > { %21719 = vst [vmem:[#allocation177_spill] sm:$0xff] %v20296_v28 }
 0x4ac   : > { %21720 = vst [vmem:[#allocation142_spill] sm:$0xff] %v20298_v0  ;;  %v11287_v6 = vpop.f32.mrf.mxu0  ;;  %v11480_v53 = vpop.f32.mrf.mxu1  ;;  %11752 = vmatmul.mubr.bf16.gmra.mxu0 %v21721_v32  ;;  %11945 = vmatmul.mubr.bf16.gmra.mxu1 %v21722_v5 }
 0x4ad   : > { %v11288_v63 = vadd.f32 %v11287_v6, %v20047_v40  ;;  %11761 = vmatprep.mubr.bf16.mxu0 %v21723_v54  ;;  %11954 = vmatprep.mubr.bf16.mxu1 %v21724_v49  ;;  %v21727_v49 = vld [vmem:[#allocation84_spill] sm:$0xff] }
 0x4ae   : > { %v11289_v2 = vpop.f32.mrf.mxu0  ;;  %v11482_v44 = vpop.f32.mrf.mxu1 }
 0x4af   : > { %v20305_v7 = vadd.f32 %v11480_v53, %v11288_v63  ;;  %v11290_v41 = vadd.f32 %v11289_v2, %v20050_v51  ;;  %v21728_v53 = vld [vmem:[#allocation132_spill] sm:$0xff] }
 0x4b0   : > { %v11291_v38 = vpop.f32.mrf.mxu0  ;;  %v11484_v61 = vpop.f32.mrf.mxu1 }
 0x4b1   : > { %v20308_v0 = vadd.f32 %v11482_v44, %v11290_v41  ;;  %v11292_v32 = vadd.f32 %v11291_v38, %v20053_v43 }
 0x4b2   : > { %v20311_v28 = vpop.f32.mrf.mxu0  ;;  %v20313_v5 = vpop.f32.mrf.mxu1 }
 0x4b3   : > { %21725 = vst [vmem:[#allocation85_spill] sm:$0xff] %v20308_v0  ;;  %v20315_v40 = vadd.f32 %v11484_v61, %v11292_v32 }
 0x4b4   : > { %v11297_v6 = vpop.f32.mrf.mxu0  ;;  %v11490_v54 = vpop.f32.mrf.mxu1  ;;  %11762 = vmatmul.mubr.bf16.gmra.mxu0 %v21727_v49  ;;  %11955 = vmatmul.mubr.bf16.gmra.mxu1 %v21728_v53 }
 0x4b5   : > { %21726 = vst [vmem:[#allocation107_spill] sm:$0xff] %v20315_v40  ;;  %v11298_v51 = vadd.f32 %v11297_v6, %v20063_v16 }
 0x4b6   : > { %v11299_v63 = vpop.f32.mrf.mxu0  ;;  %v11492_v2 = vpop.f32.mrf.mxu1 }
 0x4b7   : > { %v20320_v44 = vadd.f32 %v11490_v54, %v11298_v51  ;;  %v11300_v43 = vadd.f32 %v11299_v63, %v20066_v13 }
 0x4b8   : > { %v11301_v41 = vpop.f32.mrf.mxu0  ;;  %v11494_v38 = vpop.f32.mrf.mxu1 }
 0x4b9   : > { %21729 = vst [vmem:[#allocation145_spill] sm:$0xff] %v20320_v44  ;;  %v20323_v0 = vadd.f32 %v11492_v2, %v11300_v43  ;;  %v11302_v61 = vadd.f32 %v11301_v41, %v20069_v57 }
 0x4ba   : > { %v20326_v32 = vpop.f32.mrf.mxu0  ;;  %v20328_v40 = vpop.f32.mrf.mxu1 }
 0x4bb   : > { %v20330_v49 = vadd.f32 %v11494_v38, %v11302_v61 }
 0x4bc   : > { %v11307_v53 = vpop.f32.mrf.mxu0  ;;  %v11500_v16 = vpop.f32.mrf.mxu1 }
 0x4bd   : > { %21730 = vst [vmem:[#allocation93_spill] sm:$0xff] %v20330_v49  ;;  %v11308_v6 = vadd.f32 %v11307_v53, %v20079_v30 }
 0x4be   : > { %v11309_v54 = vpop.f32.mrf.mxu0  ;;  %v11502_v51 = vpop.f32.mrf.mxu1 }
 0x4bf   : > { %v20333_v44 = vadd.f32 %v11500_v16, %v11308_v6  ;;  %v11310_v13 = vadd.f32 %v11309_v54, %v20082_v48 }
 0x4c0   : > { %v11311_v63 = vpop.f32.mrf.mxu0  ;;  %v11504_v2 = vpop.f32.mrf.mxu1 }
 0x4c1   : > { %21731 = vst [vmem:[#allocation178_spill] sm:$0xff] %v20333_v44  ;;  %v20336_v43 = vadd.f32 %v11502_v51, %v11310_v13  ;;  %v11312_v57 = vadd.f32 %v11311_v63, %v20085_v22 }
 0x4c2   : > { %v20339_v41 = vpop.f32.mrf.mxu0  ;;  %v20341_v38 = vpop.f32.mrf.mxu1 }
 0x4c3   : > { %v20343_v61 = vadd.f32 %v11504_v2, %v11312_v57 }
 0x4c4   : > { %v11317_v49 = vpop.f32.mrf.mxu0  ;;  %v11510_v30 = vpop.f32.mrf.mxu1 }
 0x4c5   : > { %21732 = vst [vmem:[#allocation179_spill] sm:$0xff] %v20343_v61  ;;  %v11318_v53 = vadd.f32 %v11317_v49, %v20095_v60 }
 0x4c6   : > { %v11319_v16 = vpop.f32.mrf.mxu0  ;;  %v11512_v6 = vpop.f32.mrf.mxu1 }
 0x4c7   : > { %v20346_v44 = vadd.f32 %v11510_v30, %v11318_v53  ;;  %v11320_v48 = vadd.f32 %v11319_v16, %v20098_v19 }
 0x4c8   : > { %v11321_v54 = vpop.f32.mrf.mxu0  ;;  %v11514_v51 = vpop.f32.mrf.mxu1 }
 0x4c9   : > { %21733 = vst [vmem:[#allocation181_spill] sm:$0xff] %v20346_v44  ;;  %v20349_v13 = vadd.f32 %v11512_v6, %v11320_v48  ;;  %v11322_v22 = vadd.f32 %v11321_v54, %v20101_v34 }
 0x4ca   : > { %v20352_v63 = vpop.f32.mrf.mxu0  ;;  %v20354_v2 = vpop.f32.mrf.mxu1 }
 0x4cb   : > { %21734 = vst [vmem:[#allocation144_spill] sm:$0xff] %v20354_v2  ;;  %v20356_v57 = vadd.f32 %v11514_v51, %v11322_v22 }
 0x4cc   : > { %v11327_v61 = vpop.f32.mrf.mxu0  ;;  %v11520_v60 = vpop.f32.mrf.mxu1 }
 0x4cd   : > { %21735 = vst [vmem:[#allocation53_spill] sm:$0xff] %v20356_v57  ;;  %v11328_v49 = vadd.f32 %v11327_v61, %v20111_v58 }
 0x4ce   : > { %v11329_v30 = vpop.f32.mrf.mxu0  ;;  %v11522_v53 = vpop.f32.mrf.mxu1 }
 0x4cf   : > { %v20359_v44 = vadd.f32 %v11520_v60, %v11328_v49  ;;  %v11330_v19 = vadd.f32 %v11329_v30, %v20114_v11  ;;  %v21740_v60 = vld [vmem:[#allocation140_spill] sm:$0xff] }
 0x4d0   : > { %v11331_v16 = vpop.f32.mrf.mxu0  ;;  %v11524_v6 = vpop.f32.mrf.mxu1 }
 0x4d1   : > { %21736 = vst [vmem:[#allocation110_spill] sm:$0xff] %v20359_v44  ;;  %v20362_v48 = vadd.f32 %v11522_v53, %v11330_v19  ;;  %v11332_v34 = vadd.f32 %v11331_v16, %v20117_v33  ;;  %v21742_v53 = vld [vmem:[#allocation82_spill] sm:$0xff] }
 0x4d2   : > { %v11333_v54 = vpop.f32.mrf.mxu0  ;;  %v11526_v2 = vpop.f32.mrf.mxu1 }
 0x4d3   : > { %21737 = vst [vmem:[#allocation147_spill] sm:$0xff] %v20362_v48  ;;  %v20365_v51 = vadd.f32 %v11524_v6, %v11332_v34  ;;  %v11334_v22 = vadd.f32 %v11333_v54, %v20122_v55  ;;  %v21744_v6 = vld [vmem:[#allocation27_spill] sm:$0xff] }
 0x4d4   : > { %v11337_v57 = vpop.f32.mrf.mxu0  ;;  %v11530_v58 = vpop.f32.mrf.mxu1 }
 0x4d5   : > { %21738 = vst [vmem:[#allocation96_spill] sm:$0xff] %v20365_v51  ;;  %v20368_v61 = vadd.f32 %v11526_v2, %v11334_v22  ;;  %v11338_v49 = vadd.f32 %v11337_v57, %v21740_v60  ;;  %v21746_v2 = vld [vmem:[#allocation29_spill] sm:$0xff] }
 0x4d6   : > { %v11339_v44 = vpop.f32.mrf.mxu0  ;;  %v11532_v11 = vpop.f32.mrf.mxu1 }
 0x4d7   : > { %21739 = vst [vmem:[#allocation116_spill] sm:$0xff] %v20368_v61  ;;  %v20371_v30 = vadd.f32 %v11530_v58, %v11338_v49  ;;  %v11340_v19 = vadd.f32 %v11339_v44, %v21742_v53  ;;  %v21748_v58 = vld [vmem:[#allocation141_spill] sm:$0xff] }
 0x4d8   : > { %v11341_v48 = vpop.f32.mrf.mxu0  ;;  %v11534_v33 = vpop.f32.mrf.mxu1 }
 0x4d9   : > { %21741 = vst [vmem:[#allocation146_spill] sm:$0xff] %v20371_v30  ;;  %v20374_v16 = vadd.f32 %v11532_v11, %v11340_v19  ;;  %v11342_v34 = vadd.f32 %v11341_v48, %v21744_v6  ;;  %v21749_v11 = vld [vmem:[#allocation139_spill] sm:$0xff] }
 0x4da   : > { %v11343_v51 = vpop.f32.mrf.mxu0  ;;  %v11536_v55 = vpop.f32.mrf.mxu1 }
 0x4db   : > { %21743 = vst [vmem:[#allocation183_spill] sm:$0xff] %v20374_v16  ;;  %v20377_v54 = vadd.f32 %v11534_v33, %v11342_v34  ;;  %v11344_v22 = vadd.f32 %v11343_v51, %v21746_v2  ;;  %v21750_v33 = vld [vmem:[#allocation41_spill] sm:$0xff] }
 0x4dc   : > { %v11347_v61 = vpop.f32.mrf.mxu0  ;;  %v11540_v57 = vpop.f32.mrf.mxu1 }
 0x4dd   : > { %21745 = vst [vmem:[#allocation34_spill] sm:$0xff] %v20377_v54  ;;  %v20380_v60 = vadd.f32 %v11536_v55, %v11344_v22  ;;  %v11348_v49 = vadd.f32 %v11347_v61, %v21748_v58  ;;  %v21752_v55 = vld [vmem:[#allocation143_spill] sm:$0xff] }
 0x4de   : > { %v11349_v30 = vpop.f32.mrf.mxu0  ;;  %v11542_v44 = vpop.f32.mrf.mxu1 }
 0x4df   : > { %21747 = vst [vmem:[#allocation58_spill] sm:$0xff] %v20380_v60  ;;  %v20383_v53 = vadd.f32 %v11540_v57, %v11348_v49  ;;  %v11350_v19 = vadd.f32 %v11349_v30, %v21749_v11 }
 0x4e0   : > { %v11351_v16 = vpop.f32.mrf.mxu0  ;;  %v11544_v48 = vpop.f32.mrf.mxu1 }
 0x4e1   : > { %v20386_v6 = vadd.f32 %v11542_v44, %v11350_v19  ;;  %v11352_v34 = vadd.f32 %v11351_v16, %v21750_v33 }
 0x4e2   : > { %v11353_v54 = vpop.f32.mrf.mxu0  ;;  %v11546_v51 = vpop.f32.mrf.mxu1 }
 0x4e3   : > { %v20389_v2 = vadd.f32 %v11544_v48, %v11352_v34  ;;  %v11354_v22 = vadd.f32 %v11353_v54, %v21752_v55  ;;  %v21754_v48 = vld [vmem:[#allocation163_spill] sm:$0xff] }
 0x4e4   : > { %v11357_v60 = vpop.f32.mrf.mxu0  ;;  %v11550_v61 = vpop.f32.mrf.mxu1 }
 0x4e5   : > { %21751 = vst [vmem:[#allocation114_spill] sm:$0xff] %v20389_v2  ;;  %v20392_v58 = vadd.f32 %v11546_v51, %v11354_v22  ;;  %v11358_v57 = vadd.f32 %v11357_v60, %v20159_v37  ;;  %v21755_v51 = vld [vmem:[#allocation109_spill] sm:$0xff] }
 0x4e6   : > { %v11359_v49 = vpop.f32.mrf.mxu0  ;;  %v11552_v30 = vpop.f32.mrf.mxu1 }
 0x4e7   : > { %21753 = vst [vmem:[#allocation149_spill] sm:$0xff] %v20392_v58  ;;  %v20395_v11 = vadd.f32 %v11550_v61, %v11358_v57  ;;  %v11360_v44 = vadd.f32 %v11359_v49, %v20162_v47 }
 0x4e8   : > { %v11361_v19 = vpop.f32.mrf.mxu0  ;;  %v11554_v16 = vpop.f32.mrf.mxu1 }
 0x4e9   : > { %v20398_v33 = vadd.f32 %v11552_v30, %v11360_v44  ;;  %v11362_v34 = vadd.f32 %v11361_v19, %v21754_v48 }
 0x4ea   : > { %v11363_v2 = vpop.f32.mrf.mxu0  ;;  %v11556_v54 = vpop.f32.mrf.mxu1 }
 0x4eb   : > { %v20401_v55 = vadd.f32 %v11554_v16, %v11362_v34  ;;  %v11364_v22 = vadd.f32 %v11363_v2, %v21755_v51 }
 0x4ec   : > { %v11367_v58 = vpop.f32.mrf.mxu0  ;;  %v11560_v37 = vpop.f32.mrf.mxu1 }
 0x4ed   : > { %v20404_v60 = vadd.f32 %v11556_v54, %v11364_v22  ;;  %v11368_v61 = vadd.f32 %v11367_v58, %v20175_v3 }
 0x4ee   : > { %v11369_v57 = vpop.f32.mrf.mxu0  ;;  %v11562_v47 = vpop.f32.mrf.mxu1 }
 0x4ef   : > { %v20407_v49 = vadd.f32 %v11560_v37, %v11368_v61  ;;  %v11370_v30 = vadd.f32 %v11369_v57, %v20178_v26 }
 0x4f0   : > { %v11371_v44 = vpop.f32.mrf.mxu0  ;;  %v11564_v19 = vpop.f32.mrf.mxu1 }
 0x4f1   : > { %v20410_v48 = vadd.f32 %v11562_v47, %v11370_v30  ;;  %v11372_v16 = vadd.f32 %v11371_v44, %v20181_v21 }
 0x4f2   : > { %v11373_v34 = vpop.f32.mrf.mxu0  ;;  %v11566_v2 = vpop.f32.mrf.mxu1 }
 0x4f3   : > { %v20413_v51 = vadd.f32 %v11564_v19, %v11372_v16  ;;  %v11374_v54 = vadd.f32 %v11373_v34, %v20186_v14 }
 0x4f4   : > { %v11377_v22 = vpop.f32.mrf.mxu0  ;;  %v11570_v3 = vpop.f32.mrf.mxu1 }
 0x4f5   : > { %21756 = vst [vmem:[#allocation99_spill] sm:$0xff] %v20413_v51  ;;  %v20416_v58 = vadd.f32 %v11566_v2, %v11374_v54  ;;  %v11378_v37 = vadd.f32 %v11377_v22, %v20191_v4 }
 0x4f6   : > { %v11379_v61 = vpop.f32.mrf.mxu0  ;;  %v11572_v26 = vpop.f32.mrf.mxu1 }
 0x4f7   : > { %21757 = vst [vmem:[#allocation120_spill] sm:$0xff] %v20416_v58  ;;  %v20419_v57 = vadd.f32 %v11570_v3, %v11378_v37  ;;  %v11380_v47 = vadd.f32 %v11379_v61, %v20194_v62 }
 0x4f8   : > { %v11381_v30 = vpop.f32.mrf.mxu0  ;;  %v11574_v21 = vpop.f32.mrf.mxu1 }
 0x4f9   : > { %21758 = vst [vmem:[#allocation148_spill] sm:$0xff] %v20419_v57  ;;  %v20422_v44 = vadd.f32 %v11572_v26, %v11380_v47  ;;  %v11382_v19 = vadd.f32 %v11381_v30, %v20197_v36 }
 0x4fa   : > { %v11383_v16 = vpop.f32.mrf.mxu0  ;;  %v11576_v14 = vpop.f32.mrf.mxu1 }
 0x4fb   : > { %21759 = vst [vmem:[#allocation185_spill] sm:$0xff] %v20422_v44  ;;  %v20425_v34 = vadd.f32 %v11574_v21, %v11382_v19  ;;  %v11384_v2 = vadd.f32 %v11383_v16, %v20202_v10 }
 0x4fc   : > { %v11613_v54 = vpop.f32.mrf.mxu0  ;;  %v11806_v4 = vpop.f32.mrf.mxu1 }
 0x4fd   : > { %21760 = vst [vmem:[#allocation36_spill] sm:$0xff] %v20425_v34  ;;  %v20428_v22 = vadd.f32 %v11576_v14, %v11384_v2  ;;  %v11614_v3 = vadd.f32 %v11613_v54, %v20207_v29 }
 0x4fe   : > { %v11615_v37 = vpop.f32.mrf.mxu0  ;;  %v11808_v62 = vpop.f32.mrf.mxu1 }
 0x4ff   : > { %21761 = vst [vmem:[#allocation65_spill] sm:$0xff] %v20428_v22  ;;  %v11807_v61 = vadd.f32 %v11806_v4, %v11614_v3  ;;  %v11616_v26 = vadd.f32 %v11615_v37, %v20210_v17 }
 0x500   : > { %v11617_v47 = vpop.f32.mrf.mxu0  ;;  %v11810_v44 = vpop.f32.mrf.mxu1 }
 0x501   : > { %v11809_v36 = vadd.f32 %v11808_v62, %v11616_v26  ;;  %v11618_v30 = vadd.f32 %v11617_v47, %v20213_v15  ;;  %v11965_v21 = vmul.f32 0.2, %v11807_v61 }
 0x502   : > { %v11619_v19 = vpop.f32.mrf.mxu0  ;;  %v11812_v34 = vpop.f32.mrf.mxu1 }
 0x503   : > { %v11811_v10 = vadd.f32 %v11810_v44, %v11618_v30  ;;  %v11620_v16 = vadd.f32 %v11619_v19, %v20218_v31  ;;  %v11966_v22 = vmul.f32 0.2, %v11809_v36  ;;  %v12029_v3 = vmax.f32 %v11807_v61, %v11965_v21 }
 0x504   : > { %v11623_v14 = vpop.f32.mrf.mxu0  ;;  %v11816_v2 = vpop.f32.mrf.mxu1 }
 0x505   : > { %v11967_v29 = vmul.f32 0.2, %v11811_v10  ;;  %v11813_v54 = vadd.f32 %v11812_v34, %v11620_v16  ;;  %v11624_v4 = vadd.f32 %v11623_v14, %v20223_v24  ;;  %v12030_v44 = vmax.f32 %v11809_v36, %v11966_v22 }
 0x506   : > { %v11625_v17 = vpop.f32.mrf.mxu0  ;;  %v11818_v37 = vpop.f32.mrf.mxu1 }
 0x507   : > { %v12031_v57 = vmax.f32 %v11811_v10, %v11967_v29  ;;  %v11968_v62 = vmul.f32 0.2, %v11813_v54  ;;  %v11817_v26 = vadd.f32 %v11816_v2, %v11624_v4  ;;  %v11626_v15 = vadd.f32 %v11625_v17, %v20226_v42 }
 0x508   : > { %v11627_v47 = vpop.f32.mrf.mxu0  ;;  %v11820_v58 = vpop.f32.mrf.mxu1 }
 0x509   : > { %v20436_v30 = vpack.c.bf16 %v12031_v57, %v12029_v3  ;;  %v12032_v31 = vmax.f32 %v11813_v54, %v11968_v62  ;;  %v11819_v19 = vadd.f32 %v11818_v37, %v11626_v15  ;;  %v11628_v51 = vadd.f32 %v11627_v47, %v20229_v1 }
 0x50a   : > { %v11629_v34 = vpop.f32.mrf.mxu0  ;;  %v11822_v16 = vpop.f32.mrf.mxu1  ;;  %v11969_v21 = vmul.f32 0.2, %v11817_v26 }
 0x50b   : > { %v11630_v24 = vadd.f32 %v11629_v34, %v20234_v56  ;;  %v20440_v61 = vpack.c.bf16 %v12032_v31, %v12030_v44  ;;  %v11821_v10 = vadd.f32 %v11820_v58, %v11628_v51  ;;  %v11970_v22 = vmul.f32 0.2, %v11819_v19 }
 0x50c   : > { %v11633_v14 = vpop.f32.mrf.mxu0  ;;  %v11826_v2 = vpop.f32.mrf.mxu1  ;;  %v12033_v17 = vmax.f32 %v11817_v26, %v11969_v21 }
 0x50d   : > { %v11823_v42 = vadd.f32 %v11822_v16, %v11630_v24  ;;  %v11634_v29 = vadd.f32 %v11633_v14, %v20239_v12  ;;  %v11971_v57 = vmul.f32 0.2, %v11821_v10  ;;  %v12034_v58 = vmax.f32 %v11819_v19, %v11970_v22 }
 0x50e   : > { %v11635_v36 = vpop.f32.mrf.mxu0  ;;  %v11828_v54 = vpop.f32.mrf.mxu1 }
 0x50f   : > { %v11972_v4 = vmul.f32 0.2, %v11823_v42  ;;  %v11827_v3 = vadd.f32 %v11826_v2, %v11634_v29  ;;  %v11636_v1 = vadd.f32 %v11635_v36, %v20242_v59  ;;  %v12035_v37 = vmax.f32 %v11821_v10, %v11971_v57 }
 0x510   : > { %v11637_v56 = vpop.f32.mrf.mxu0  ;;  %v11830_v62 = vpop.f32.mrf.mxu1 }
 0x511   : > { %v12036_v15 = vmax.f32 %v11823_v42, %v11972_v4  ;;  %v11829_v47 = vadd.f32 %v11828_v54, %v11636_v1  ;;  %v11638_v51 = vadd.f32 %v11637_v56, %v20245_v20  ;;  %v20445_v44 = vpack.c.bf16 %v12035_v37, %v12033_v17 }
 0x512   : > { %v11639_v12 = vpop.f32.mrf.mxu0  ;;  %v11832_v31 = vpop.f32.mrf.mxu1  ;;  %v11973_v34 = vmul.f32 0.2, %v11827_v3 }
 0x513   : > { %v11831_v16 = vadd.f32 %v11830_v62, %v11638_v51  ;;  %v11640_v24 = vadd.f32 %v11639_v12, %v20250_v8  ;;  %v20448_v59 = vpack.c.bf16 %v12036_v15, %v12034_v58  ;;  %v11974_v26 = vmul.f32 0.2, %v11829_v47 }
 0x514   : > { %v11643_v14 = vpop.f32.mrf.mxu0  ;;  %v11836_v2 = vpop.f32.mrf.mxu1  ;;  %v12037_v19 = vmax.f32 %v11827_v3, %v11973_v34  ;;  %v21762_v34 = vld [vmem:[#allocation21_spill] sm:$0xff] }
 0x515   : > { %v11975_v21 = vmul.f32 0.2, %v11831_v16  ;;  %v11833_v10 = vadd.f32 %v11832_v31, %v11640_v24  ;;  %v11644_v42 = vadd.f32 %v11643_v14, %v20255_v27  ;;  %v12038_v8 = vmax.f32 %v11829_v47, %v11974_v26 }
 0x516   : > { %v11645_v29 = vpop.f32.mrf.mxu0  ;;  %v11838_v20 = vpop.f32.mrf.mxu1 }
 0x517   : > { %v12039_v22 = vmax.f32 %v11831_v16, %v11975_v21  ;;  %v11976_v57 = vmul.f32 0.2, %v11833_v10  ;;  %v11646_v36 = vadd.f32 %v11645_v29, %v20258_v35  ;;  %v11837_v54 = vadd.f32 %v11836_v2, %v11644_v42 }
 0x518   : > { %v11647_v4 = vpop.f32.mrf.mxu0  ;;  %v11840_v1 = vpop.f32.mrf.mxu1  ;;  %v11274_v16 = vadd.f32 %v20277_v23, %v21762_v34  ;;  %v21763_v23 = vld [vmem:[#allocation175_spill] sm:$0xff] }
 0x519   : > { %v20452_v17 = vpack.c.bf16 %v12039_v22, %v12037_v19  ;;  %v12040_v37 = vmax.f32 %v11833_v10, %v11976_v57  ;;  %v11839_v56 = vadd.f32 %v11838_v20, %v11646_v36  ;;  %v11648_v62 = vadd.f32 %v11647_v4, %v20261_v25 }
 0x51a   : > { %v11649_v15 = vpop.f32.mrf.mxu0  ;;  %v11842_v51 = vpop.f32.mrf.mxu1  ;;  %v11977_v3 = vmul.f32 0.2, %v11837_v54  ;;  %v11467_v22 = vadd.f32 %v20279_v45, %v11274_v16 }
 0x51b   : > { %v11650_v27 = vadd.f32 %v11649_v15, %v20266_v39  ;;  %v20456_v58 = vpack.c.bf16 %v12040_v37, %v12038_v8  ;;  %v11841_v12 = vadd.f32 %v11840_v1, %v11648_v62  ;;  %v11978_v14 = vmul.f32 0.2, %v11839_v56  ;;  %v15338_v62 = vld [vmem:[%s20902_s1 + $0x4] ss:$8 sps:$4 sm:$0xff]  }
 0x51c   : > { %v11653_v31 = vpop.f32.mrf.mxu0  ;;  %v11846_v35 = vpop.f32.mrf.mxu1  ;;  %v12041_v42 = vmax.f32 %v11837_v54, %v11977_v3  ;;  %12205 = vmatprep.mubr.bf16.mxu0 %v15338_v62 }
 0x51d   : > { %v11843_v47 = vadd.f32 %v11842_v51, %v11650_v27  ;;  %v11654_v24 = vadd.f32 %v11653_v31, %v20271_v52  ;;  %v11979_v2 = vmul.f32 0.2, %v11841_v12  ;;  %v12042_v1 = vmax.f32 %v11839_v56, %v11978_v14  ;;  %v21764_v51 = vld [vmem:[#allocation23_spill] sm:$0xff] }
 0x51e   : > { %v11655_v26 = vpop.f32.mrf.mxu0  ;;  %v11848_v25 = vpop.f32.mrf.mxu1  ;;  %v11284_v27 = vadd.f32 %v20294_v46, %v21764_v51 }
 0x51f   : > { %v11980_v21 = vmul.f32 0.2, %v11843_v47  ;;  %v11847_v10 = vadd.f32 %v11846_v35, %v11654_v24  ;;  %v11656_v39 = vadd.f32 %v11655_v26, %v20274_v50  ;;  %v12043_v29 = vmax.f32 %v11841_v12, %v11979_v2 }
 0x520   : > { %v11657_v20 = vpop.f32.mrf.mxu0  ;;  %v11850_v19 = vpop.f32.mrf.mxu1 }
 0x521   : > { %v12044_v57 = vmax.f32 %v11843_v47, %v11980_v21  ;;  %v11849_v36 = vadd.f32 %v11848_v25, %v11656_v39  ;;  %v11658_v4 = vadd.f32 %v11657_v20, %v21763_v23  ;;  %v20464_v52 = vpack.c.bf16 %v12043_v29, %v12041_v42  ;;  %v21765_v39 = vld [vmem:[#allocation177_spill] sm:$0xff] }
 0x522   : > { %v11659_v8 = vpop.f32.mrf.mxu0  ;;  %v11852_v37 = vpop.f32.mrf.mxu1  ;;  %v11981_v50 = vmul.f32 0.2, %v11847_v10  ;;  %v11477_v42 = vadd.f32 %v21765_v39, %v11284_v27 }
 0x523   : > { %v11851_v54 = vadd.f32 %v11850_v19, %v11658_v4  ;;  %v11660_v15 = vadd.f32 %v11659_v8, %v11467_v22  ;;  %v20471_v12 = vpack.c.bf16 %v12044_v57, %v12042_v1  ;;  %v11982_v56 = vmul.f32 0.2, %v11849_v36  ;;  %v21766_v57 = vld [vmem:[#allocation142_spill] sm:$0xff] }
 0x524   : > { %v11663_v45 = vpop.f32.mrf.mxu0  ;;  %v11856_v3 = vpop.f32.mrf.mxu1  ;;  %v12045_v24 = vmax.f32 %v11847_v10, %v11981_v50  ;;  %v21767_v50 = vld [vmem:[#allocation138_spill] sm:$0xff] }
 0x525   : > { %v11983_v31 = vmul.f32 0.2, %v11851_v54  ;;  %v11853_v35 = vadd.f32 %v11852_v37, %v11660_v15  ;;  %v11664_v34 = vadd.f32 %v11663_v45, %v20288_v18  ;;  %v12046_v29 = vmax.f32 %v11849_v36, %v11982_v56 }
 0x526   : > { %v11665_v16 = vpop.f32.mrf.mxu0  ;;  %v11858_v47 = vpop.f32.mrf.mxu1 }
 0x527   : > { %v12047_v14 = vmax.f32 %v11851_v54, %v11983_v31  ;;  %v11984_v2 = vmul.f32 0.2, %v11853_v35  ;;  %v11666_v26 = vadd.f32 %v11665_v16, %v20291_v9  ;;  %v11857_v25 = vadd.f32 %v11856_v3, %v11664_v34 }
 0x528   : > { %v11667_v21 = vpop.f32.mrf.mxu0  ;;  %v11860_v46 = vpop.f32.mrf.mxu1  ;;  %v11294_v54 = vadd.f32 %v20311_v28, %v21767_v50  ;;  %v21769_v28 = vld [vmem:[#allocation107_spill] sm:$0xff] }
 0x529   : > { %v20476_v20 = vpack.c.bf16 %v12047_v14, %v12045_v24  ;;  %v12048_v19 = vmax.f32 %v11853_v35, %v11984_v2  ;;  %v11859_v22 = vadd.f32 %v11858_v47, %v11666_v26  ;;  %v11668_v23 = vadd.f32 %v11667_v21, %v21766_v57  ;;  %v21768_v35 = vld [vmem:[#allocation85_spill] sm:$0xff] }
 0x52a   : > { %v11669_v18 = vpop.f32.mrf.mxu0  ;;  %v11862_v4 = vpop.f32.mrf.mxu1  ;;  %v11985_v8 = vmul.f32 0.2, %v11857_v25  ;;  %v11487_v2 = vadd.f32 %v20313_v5, %v11294_v54 }
 0x52b   : > { %v11670_v1 = vadd.f32 %v11669_v18, %v11477_v42  ;;  %v20479_v10 = vpack.c.bf16 %v12048_v19, %v12046_v29  ;;  %v11861_v37 = vadd.f32 %v11860_v46, %v11668_v23  ;;  %v11986_v51 = vmul.f32 0.2, %v11859_v22  ;;  %v21770_v18 = vld [vmem:[#allocation76_spill] sm:$0xff] }
 0x52c   : > { %v11673_v9 = vpop.f32.mrf.mxu0  ;;  %v11866_v62 = vpop.f32.mrf.mxu1  ;;  %v12049_v16 = vmax.f32 %v11857_v25, %v11985_v8  ;;  %v11304_v25 = vadd.f32 %v20326_v32, %v21770_v18 }
 0x52d   : > { %v11863_v15 = vadd.f32 %v11862_v4, %v11670_v1  ;;  %v11674_v36 = vadd.f32 %v11673_v9, %v20305_v7  ;;  %v11987_v27 = vmul.f32 0.2, %v11861_v37  ;;  %v12050_v39 = vmax.f32 %v11859_v22, %v11986_v51 }
 0x52e   : > { %v11675_v45 = vpop.f32.mrf.mxu0  ;;  %v11868_v3 = vpop.f32.mrf.mxu1  ;;  %v11497_v32 = vadd.f32 %v20328_v40, %v11304_v25  ;;  %v21774_v40 = vld [vmem:[#allocation178_spill] sm:$0xff] }
 0x52f   : > { %v11988_v56 = vmul.f32 0.2, %v11863_v15  ;;  %v11867_v31 = vadd.f32 %v11866_v62, %v11674_v36  ;;  %v11676_v34 = vadd.f32 %v11675_v45, %v21768_v35  ;;  %v12051_v47 = vmax.f32 %v11861_v37, %v11987_v27  ;;  %v21771_v62 = vld [vmem:[#allocation145_spill] sm:$0xff] }
 0x530   : > { %v11677_v24 = vpop.f32.mrf.mxu0  ;;  %v11870_v14 = vpop.f32.mrf.mxu1 }
 0x531   : > { %v12052_v26 = vmax.f32 %v11863_v15, %v11988_v56  ;;  %v11869_v21 = vadd.f32 %v11868_v3, %v11676_v34  ;;  %v11678_v46 = vadd.f32 %v11677_v24, %v21769_v28  ;;  %v20487_v7 = vpack.c.bf16 %v12051_v47, %v12049_v16  ;;  %v21772_v24 = vld [vmem:[#allocation93_spill] sm:$0xff] }
 0x532   : > { %v11679_v42 = vpop.f32.mrf.mxu0  ;;  %v11872_v29 = vpop.f32.mrf.mxu1  ;;  %v11989_v19 = vmul.f32 0.2, %v11867_v31 }
 0x533   : > { %v11871_v57 = vadd.f32 %v11870_v14, %v11678_v46  ;;  %v11680_v23 = vadd.f32 %v11679_v42, %v11487_v2  ;;  %v20491_v8 = vpack.c.bf16 %v12052_v26, %v12050_v39  ;;  %v11990_v5 = vmul.f32 0.2, %v11869_v21 }
 0x534   : > { %v11683_v4 = vpop.f32.mrf.mxu0  ;;  %v11876_v1 = vpop.f32.mrf.mxu1  ;;  %v12053_v15 = vmax.f32 %v11867_v31, %v11989_v19 }
 0x535   : > { %v11991_v37 = vmul.f32 0.2, %v11871_v57  ;;  %v11873_v9 = vadd.f32 %v11872_v29, %v11680_v23  ;;  %v11684_v50 = vadd.f32 %v11683_v4, %v21771_v62  ;;  %v12054_v35 = vmax.f32 %v11869_v21, %v11990_v5  ;;  %v21773_v29 = vld [vmem:[#allocation24_spill] sm:$0xff] }
 0x536   : > { %v11685_v22 = vpop.f32.mrf.mxu0  ;;  %v11878_v54 = vpop.f32.mrf.mxu1  ;;  %v11314_v19 = vadd.f32 %v20339_v41, %v21773_v29  ;;  %v21775_v41 = vld [vmem:[#allocation179_spill] sm:$0xff] }
 0x537   : > { %v12055_v36 = vmax.f32 %v11871_v57, %v11991_v37  ;;  %v11992_v51 = vmul.f32 0.2, %v11873_v9  ;;  %v11686_v27 = vadd.f32 %v11685_v22, %v20323_v0  ;;  %v11877_v45 = vadd.f32 %v11876_v1, %v11684_v50 }
 0x538   : > { %v11687_v3 = vpop.f32.mrf.mxu0  ;;  %v11880_v56 = vpop.f32.mrf.mxu1 }
 0x539   : > { %v20496_v34 = vpack.c.bf16 %v12055_v36, %v12053_v15  ;;  %v12056_v16 = vmax.f32 %v11873_v9, %v11992_v51  ;;  %v11879_v47 = vadd.f32 %v11878_v54, %v11686_v27  ;;  %v11688_v14 = vadd.f32 %v11687_v3, %v21772_v24 }
 0x53a   : > { %v11689_v2 = vpop.f32.mrf.mxu0  ;;  %v11882_v26 = vpop.f32.mrf.mxu1  ;;  %v11993_v46 = vmul.f32 0.2, %v11877_v45  ;;  %v11507_v54 = vadd.f32 %v20341_v38, %v11314_v19 }
 0x53b   : > { %v11690_v28 = vadd.f32 %v11689_v2, %v11497_v32  ;;  %v12114_v31 = vpack.c.bf16 %v12056_v16, %v12054_v35  ;;  %v11881_v39 = vadd.f32 %v11880_v56, %v11688_v14  ;;  %v11994_v23 = vmul.f32 0.2, %v11879_v47  ;;  %v21776_v14 = vld [vmem:[#allocation26_spill] sm:$0xff] }
 0x53c   : > { %v11693_v42 = vpop.f32.mrf.mxu0  ;;  %v11886_v0 = vpop.f32.mrf.mxu1  ;;  %v12057_v9 = vmax.f32 %v11877_v45, %v11993_v46 }
 0x53d   : > { %v11883_v57 = vadd.f32 %v11882_v26, %v11690_v28  ;;  %v11694_v21 = vadd.f32 %v11693_v42, %v21774_v40  ;;  %v11995_v18 = vmul.f32 0.2, %v11881_v39  ;;  %v12058_v27 = vmax.f32 %v11879_v47, %v11994_v23  ;;  %v21778_v23 = vld [vmem:[#allocation144_spill] sm:$0xff] }
 0x53e   : > { %v11695_v25 = vpop.f32.mrf.mxu0  ;;  %v11888_v4 = vpop.f32.mrf.mxu1 }
 0x53f   : > { %v11996_v1 = vmul.f32 0.2, %v11883_v57  ;;  %v11887_v5 = vadd.f32 %v11886_v0, %v11694_v21  ;;  %v11696_v37 = vadd.f32 %v11695_v25, %v20336_v43  ;;  %v12059_v62 = vmax.f32 %v11881_v39, %v11995_v18  ;;  %v21777_v39 = vld [vmem:[#allocation181_spill] sm:$0xff] }
 0x540   : > { %v11697_v50 = vpop.f32.mrf.mxu0  ;;  %v11890_v22 = vpop.f32.mrf.mxu1  ;;  %v11324_v43 = vadd.f32 %v20352_v63, %v21776_v14 }
 0x541   : > { %v12060_v15 = vmax.f32 %v11883_v57, %v11996_v1  ;;  %v11889_v36 = vadd.f32 %v11888_v4, %v11696_v37  ;;  %v11698_v51 = vadd.f32 %v11697_v50, %v21775_v41  ;;  %v12115_v3 = vpack.c.bf16 %v12059_v62, %v12057_v9 }
 0x542   : > { %v11997_v56 = vmul.f32 0.2, %v11887_v5  ;;  %v11699_v32 = vpop.f32.mrf.mxu0  ;;  %v11892_v35 = vpop.f32.mrf.mxu1  ;;  %v11517_v63 = vadd.f32 %v21778_v23, %v11324_v43  ;;  %v21781_v43 = vld [vmem:[#allocation147_spill] sm:$0xff] }
 0x543   : > { %v11891_v16 = vadd.f32 %v11890_v22, %v11698_v51  ;;  %v11700_v24 = vadd.f32 %v11699_v32, %v11507_v54  ;;  %v12116_v26 = vpack.c.bf16 %v12060_v15, %v12058_v27  ;;  %v11998_v28 = vmul.f32 0.2, %v11889_v36  ;;  %v21780_v27 = vld [vmem:[#allocation110_spill] sm:$0xff] }
 0x544   : > { %v11703_v45 = vpop.f32.mrf.mxu0  ;;  %v11896_v2 = vpop.f32.mrf.mxu1  ;;  %v12061_v0 = vmax.f32 %v11887_v5, %v11997_v56  ;;  %v21779_v5 = vld [vmem:[#allocation53_spill] sm:$0xff] }
 0x545   : > { %v11999_v46 = vmul.f32 0.2, %v11891_v16  ;;  %v11893_v38 = vadd.f32 %v11892_v35, %v11700_v24  ;;  %v11704_v42 = vadd.f32 %v11703_v45, %v21777_v39  ;;  %12173 = vmatprep.subr.bf16.mxu0 %v12116_v26  ;;  %v12062_v4 = vmax.f32 %v11889_v36, %v11998_v28 }
 0x546   : > { %v11705_v47 = vpop.f32.mrf.mxu0  ;;  %v11898_v29 = vpop.f32.mrf.mxu1  ;;  %12174 = vmatpush1.bf16.msra.mxu0 %v12115_v3 }
 0x547   : > { %v12063_v19 = vmax.f32 %v11891_v16, %v11999_v46  ;;  %v12000_v57 = vmul.f32 0.2, %v11893_v38  ;;  %v11897_v40 = vadd.f32 %v11896_v2, %v11704_v42  ;;  %v11706_v21 = vadd.f32 %v11705_v47, %v20349_v13  ;;  %12175 = vmatprep.subr.bf16.mxu0 %v12114_v31 }
 0x548   : > { %v11707_v18 = vpop.f32.mrf.mxu0  ;;  %v11900_v25 = vpop.f32.mrf.mxu1 }
 0x549   : > { %v20510_v1 = vpack.c.bf16 %v12063_v19, %v12061_v0  ;;  %v12064_v37 = vmax.f32 %v11893_v38, %v12000_v57  ;;  %v11899_v9 = vadd.f32 %v11898_v29, %v11706_v21  ;;  %v11708_v62 = vadd.f32 %v11707_v18, %v21779_v5  ;;  %v21782_v38 = vld [vmem:[#allocation96_spill] sm:$0xff] }
 0x54a   : > { %v11709_v50 = vpop.f32.mrf.mxu0  ;;  %v11902_v22 = vpop.f32.mrf.mxu1  ;;  %12176 = vmatpush1.bf16.msra.mxu0 %v20496_v34  ;;  %v12001_v13 = vmul.f32 0.2, %v11897_v40  ;;  %v21783_v21 = vld [vmem:[#allocation116_spill] sm:$0xff] }
 0x54b   : > { %v11710_v54 = vadd.f32 %v11709_v50, %v11517_v63  ;;  %v20514_v15 = vpack.c.bf16 %v12064_v37, %v12062_v4  ;;  %v11901_v41 = vadd.f32 %v11900_v25, %v11708_v62  ;;  %12177 = vmatprep.subr.bf16.mxu0 %v20491_v8  ;;  %v12002_v56 = vmul.f32 0.2, %v11899_v9  ;;  %v21784_v4 = vld [vmem:[#allocation146_spill] sm:$0xff] }
 0x54c   : > { %v11713_v31 = vpop.f32.mrf.mxu0  ;;  %v11906_v51 = vpop.f32.mrf.mxu1  ;;  %v12065_v34 = vmax.f32 %v11897_v40, %v12001_v13 }
 0x54d   : > { %v11903_v36 = vadd.f32 %v11902_v22, %v11710_v54  ;;  %v11714_v3 = vadd.f32 %v11713_v31, %v21780_v27  ;;  %v12003_v32 = vmul.f32 0.2, %v11901_v41  ;;  %v12066_v42 = vmax.f32 %v11899_v9, %v12002_v56  ;;  %v21785_v54 = vld [vmem:[#allocation183_spill] sm:$0xff] }
 0x54e   : > { %v11715_v35 = vpop.f32.mrf.mxu0  ;;  %v11908_v16 = vpop.f32.mrf.mxu1  ;;  %12178 = vmatpush1.bf16.msra.mxu0 %v20487_v7 }
 0x54f   : > { %v12004_v24 = vmul.f32 0.2, %v11903_v36  ;;  %v11907_v14 = vadd.f32 %v11906_v51, %v11714_v3  ;;  %v11716_v45 = vadd.f32 %v11715_v35, %v21781_v43  ;;  %v12067_v2 = vmax.f32 %v11901_v41, %v12003_v32  ;;  %12179 = vmatprep.subr.bf16.mxu0 %v20479_v10  ;;  %v21786_v3 = vld [vmem:[#allocation34_spill] sm:$0xff] }
 0x550   : > { %v11717_v8 = vpop.f32.mrf.mxu0  ;;  %v11910_v26 = vpop.f32.mrf.mxu1 }
 0x551   : > { %v12068_v28 = vmax.f32 %v11903_v36, %v12004_v24  ;;  %v11909_v46 = vadd.f32 %v11908_v16, %v11716_v45  ;;  %v11718_v39 = vadd.f32 %v11717_v8, %v21782_v38  ;;  %v20522_v0 = vpack.c.bf16 %v12067_v2, %v12065_v34  ;;  %v21787_v16 = vld [vmem:[#allocation58_spill] sm:$0xff]  ;;  %v15348_v8 = vld [vmem:[%s20907_s6 + $0x70] ss:$8 sps:$4 sm:$0xff]  }
 0x552   : > { %v11719_v47 = vpop.f32.mrf.mxu0  ;;  %v11912_v29 = vpop.f32.mrf.mxu1  ;;  %v12005_v19 = vmul.f32 0.2, %v11907_v14  ;;  %12180 = vmatpush1.bf16.msra.mxu0 %v20476_v20 }
 0x553   : > { %v11911_v57 = vadd.f32 %v11910_v26, %v11718_v39  ;;  %v11720_v23 = vadd.f32 %v11719_v47, %v21783_v21  ;;  %12181 = vmatprep.subr.bf16.mxu0 %v20471_v12  ;;  %v20527_v40 = vpack.c.bf16 %v12068_v28, %v12066_v42  ;;  %v12006_v63 = vmul.f32 0.2, %v11909_v46  ;;  %v15350_v26 = vld [vmem:[%s20907_s6 + $0x74] ss:$8 sps:$4 sm:$0xff]   ;;  %v15351_v21 = vld [vmem:[%s20907_s6 + $0x60] ss:$8 sps:$4 sm:$0xff]  }
 0x554   : > { %v11723_v10 = vpop.f32.mrf.mxu0  ;;  %v11916_v7 = vpop.f32.mrf.mxu1  ;;  %v12069_v62 = vmax.f32 %v11907_v14, %v12005_v19  ;;  %12474 = vmatprep.subr.bf16.mxu1 %v15350_v26 }
 0x555   : > { %v12007_v18 = vmul.f32 0.2, %v11911_v57  ;;  %v11913_v25 = vadd.f32 %v11912_v29, %v11720_v23  ;;  %v11724_v37 = vadd.f32 %v11723_v10, %v21784_v4  ;;  %v12070_v31 = vmax.f32 %v11909_v46, %v12006_v63  ;;  %12475 = vmatpush1.bf16.msra.mxu1 %v15348_v8 }
 0x556   : > { %v11725_v9 = vpop.f32.mrf.mxu0  ;;  %v11918_v5 = vpop.f32.mrf.mxu1  ;;  %12182 = vmatpush1.bf16.msra.mxu0 %v20464_v52 }
 0x557   : > { %v12071_v50 = vmax.f32 %v11911_v57, %v12007_v18  ;;  %v12008_v22 = vmul.f32 0.2, %v11913_v25  ;;  %v11726_v13 = vadd.f32 %v11725_v9, %v21785_v54  ;;  %v11917_v20 = vadd.f32 %v11916_v7, %v11724_v37  ;;  %12183 = vmatprep.subr.bf16.mxu0 %v20456_v58  ;;  %v21788_v7 = vld [vmem:[#allocation114_spill] sm:$0xff]  ;;  %v21789_v9 = vld [vmem:[#allocation149_spill] sm:$0xff] }
 0x558   : > { %v11727_v12 = vpop.f32.mrf.mxu0  ;;  %v11920_v41 = vpop.f32.mrf.mxu1  ;;  %v15354_v54 = vld [vmem:[%s20907_s6 + $0x50] ss:$8 sps:$4 sm:$0xff]  }
 0x559   : > { %v20533_v51 = vpack.c.bf16 %v12071_v50, %v12069_v62  ;;  %v12072_v36 = vmax.f32 %v11913_v25, %v12008_v22  ;;  %v11919_v27 = vadd.f32 %v11918_v5, %v11726_v13  ;;  %v11728_v56 = vadd.f32 %v11727_v12, %v21786_v3 }
 0x55a   : > { %v11729_v32 = vpop.f32.mrf.mxu0  ;;  %v11922_v35 = vpop.f32.mrf.mxu1  ;;  %12184 = vmatpush1.bf16.msra.mxu0 %v20452_v17  ;;  %v12009_v52 = vmul.f32 0.2, %v11917_v20 }
 0x55b   : > { %v11730_v24 = vadd.f32 %v11729_v32, %v21787_v16  ;;  %v20538_v14 = vpack.c.bf16 %v12072_v36, %v12070_v31  ;;  %v11921_v43 = vadd.f32 %v11920_v41, %v11728_v56  ;;  %12185 = vmatprep.subr.bf16.mxu0 %v20448_v59  ;;  %v12010_v17 = vmul.f32 0.2, %v11919_v27  ;;  %v15353_v59 = vld [vmem:[%s20907_s6 + $0x64] ss:$8 sps:$4 sm:$0xff]  }
 0x55c   : > { %v11733_v58 = vpop.f32.mrf.mxu0  ;;  %v11926_v45 = vpop.f32.mrf.mxu1  ;;  %v12073_v47 = vmax.f32 %v11917_v20, %v12009_v52  ;;  %12476 = vmatprep.subr.bf16.mxu1 %v15353_v59  ;;  %v15359_v31 = vld [vmem:[%s20907_s6 + $0x44] ss:$8 sps:$4 sm:$0xff]  }
 0x55d   : > { %v11923_v34 = vadd.f32 %v11922_v35, %v11730_v24  ;;  %v11734_v2 = vadd.f32 %v11733_v58, %v20383_v53  ;;  %v12011_v28 = vmul.f32 0.2, %v11921_v43  ;;  %12477 = vmatpush1.bf16.msra.mxu1 %v15351_v21 }
 0x55e   : > { %v11735_v46 = vpop.f32.mrf.mxu0  ;;  %v11928_v38 = vpop.f32.mrf.mxu1  ;;  %12186 = vmatpush1.bf16.msra.mxu0 %v20445_v44  ;;  %v12074_v44 = vmax.f32 %v11919_v27, %v12010_v17 }
 0x55f   : > { %v12012_v39 = vmul.f32 0.2, %v11923_v34  ;;  %v11927_v42 = vadd.f32 %v11926_v45, %v11734_v2  ;;  %v11736_v53 = vadd.f32 %v11735_v46, %v20386_v6  ;;  %v12075_v29 = vmax.f32 %v11921_v43, %v12011_v28  ;;  %12187 = vmatprep.subr.bf16.mxu0 %v20440_v61  ;;  %v15356_v6 = vld [vmem:[%s20907_s6 + $0x54] ss:$8 sps:$4 sm:$0xff]  }
 0x560   : > { %v11737_v19 = vpop.f32.mrf.mxu0  ;;  %v11930_v57 = vpop.f32.mrf.mxu1  ;;  %12478 = vmatprep.subr.bf16.mxu1 %v15356_v6  ;;  %v15362_v45 = vld [vmem:[%s20907_s6 + $0x34] ss:$8 sps:$4 sm:$0xff]  }
 0x561   : > { %v12076_v23 = vmax.f32 %v11923_v34, %v12012_v39  ;;  %v11929_v10 = vadd.f32 %v11928_v38, %v11736_v53  ;;  %v11738_v63 = vadd.f32 %v11737_v19, %v21788_v7  ;;  %v20561_v18 = vpack.c.bf16 %v12075_v29, %v12073_v47  ;;  %12479 = vmatpush1.bf16.msra.mxu1 %v15354_v54  ;;  %v15360_v39 = vld [vmem:[%s20907_s6 + $0x30] ss:$8 sps:$4 sm:$0xff]  }
 0x562   : > { %v11739_v61 = vpop.f32.mrf.mxu0  ;;  %v11932_v25 = vpop.f32.mrf.mxu1  ;;  %v12013_v4 = vmul.f32 0.2, %v11927_v42  ;;  %12188 = vmatpush1.bf16.msra.mxu0 %v20436_v30  ;;  %12480 = vmatprep.subr.bf16.mxu1 %v15359_v31 }
 0x563   : > { %v11931_v37 = vadd.f32 %v11930_v57, %v11738_v63  ;;  %v11740_v5 = vadd.f32 %v11739_v61, %v21789_v9  ;;  %v20565_v22 = vpack.c.bf16 %v12076_v23, %v12074_v44  ;;  %v12014_v13 = vmul.f32 0.2, %v11929_v10 }
 0x564   : > { %v11743_v62 = vpop.f32.mrf.mxu0  ;;  %v11936_v50 = vpop.f32.mrf.mxu1  ;;  %v12077_v27 = vmax.f32 %v11927_v42, %v12013_v4 }
 0x565   : > { %v12015_v20 = vmul.f32 0.2, %v11931_v37  ;;  %v11933_v12 = vadd.f32 %v11932_v25, %v11740_v5  ;;  %v11744_v41 = vadd.f32 %v11743_v62, %v20395_v11  ;;  %v15357_v11 = vld [vmem:[%s20907_s6 + $0x40] ss:$8 sps:$4 sm:$0xff]   ;;  %v12078_v52 = vmax.f32 %v11929_v10, %v12014_v13  ;;  %v21791_v13 = vld [vmem:[#allocation120_spill] sm:$0xff] }
 0x566   : > { %v11745_v30 = vpop.f32.mrf.mxu0  ;;  %v11938_v36 = vpop.f32.mrf.mxu1  ;;  %12481 = vmatpush1.bf16.msra.mxu1 %v15357_v11  ;;  %v21790_v25 = vld [vmem:[#allocation99_spill] sm:$0xff] }
 0x567   : > { %v12079_v3 = vmax.f32 %v11931_v37, %v12015_v20  ;;  %v12016_v56 = vmul.f32 0.2, %v11933_v12  ;;  %v11746_v32 = vadd.f32 %v11745_v30, %v20398_v33  ;;  %v11937_v35 = vadd.f32 %v11936_v50, %v11744_v41  ;;  %12482 = vmatprep.subr.bf16.mxu1 %v15362_v45  ;;  %v15368_v37 = vld [vmem:[%s20907_s6 + $0x14] ss:$8 sps:$4 sm:$0xff]   ;;  %v15366_v30 = vld [vmem:[%s20907_s6 + $0x10] ss:$8 sps:$4 sm:$0xff]  }
 0x568   : > { %v11747_v16 = vpop.f32.mrf.mxu0  ;;  %v11940_v24 = vpop.f32.mrf.mxu1  ;;  %v21793_v45 = vld [vmem:[#allocation185_spill] sm:$0xff] }
 0x569   : > { %v20578_v43 = vpack.c.bf16 %v12079_v3, %v12077_v27  ;;  %v12080_v58 = vmax.f32 %v11933_v12, %v12016_v56  ;;  %v11939_v34 = vadd.f32 %v11938_v36, %v11746_v32  ;;  %v11748_v33 = vadd.f32 %v11747_v16, %v20401_v55  ;;  %v15365_v55 = vld [vmem:[%s20907_s6 + $0x24] ss:$8 sps:$4 sm:$0xff]   ;;  %v21792_v56 = vld [vmem:[#allocation148_spill] sm:$0xff] }
 0x56a   : > { %v11749_v2 = vpop.f32.mrf.mxu0  ;;  %v11942_v8 = vpop.f32.mrf.mxu1  ;;  %v12017_v28 = vmul.f32 0.2, %v11937_v35  ;;  %12483 = vmatpush1.bf16.msra.mxu1 %v15360_v39  ;;  %v15374_v39 = vld [vmem:[%s20907_s6 + $0xf4] ss:$8 sps:$4 sm:$0xff]  }
 0x56b   : > { %v11750_v26 = vadd.f32 %v11749_v2, %v20404_v60  ;;  %v20585_v17 = vpack.c.bf16 %v12080_v58, %v12078_v52  ;;  %v11941_v46 = vadd.f32 %v11940_v24, %v11748_v33  ;;  %v12018_v60 = vmul.f32 0.2, %v11939_v34  ;;  %12484 = vmatprep.subr.bf16.mxu1 %v15365_v55 }
 0x56c   : > { %v11753_v38 = vpop.f32.mrf.mxu0  ;;  %v11946_v59 = vpop.f32.mrf.mxu1  ;;  %v12081_v10 = vmax.f32 %v11937_v35, %v12017_v28  ;;  %v15371_v35 = vld [vmem:[%s20907_s6 + $0x4] ss:$8 sps:$4 sm:$0xff]  }
 0x56d   : > { %v11943_v42 = vadd.f32 %v11942_v8, %v11750_v26  ;;  %v11754_v53 = vadd.f32 %v11753_v38, %v20407_v49  ;;  %v12019_v47 = vmul.f32 0.2, %v11941_v46  ;;  %v15363_v49 = vld [vmem:[%s20907_s6 + $0x20] ss:$8 sps:$4 sm:$0xff]   ;;  %v12082_v9 = vmax.f32 %v11939_v34, %v12018_v60  ;;  %v21795_v60 = vld [vmem:[#allocation65_spill] sm:$0xff] }
 0x56e   : > { %v11755_v29 = vpop.f32.mrf.mxu0  ;;  %v11948_v19 = vpop.f32.mrf.mxu1  ;;  %12485 = vmatpush1.bf16.msra.mxu1 %v15363_v49  ;;  %v15369_v26 = vld [vmem:[%s20907_s6] ss:$8 sps:$4 sm:$0xff]  }
 0x56f   : > { %v12020_v57 = vmul.f32 0.2, %v11943_v42  ;;  %v11947_v21 = vadd.f32 %v11946_v59, %v11754_v53  ;;  %v11756_v23 = vadd.f32 %v11755_v29, %v20410_v48  ;;  %v12083_v7 = vmax.f32 %v11941_v46, %v12019_v47  ;;  %12486 = vmatprep.subr.bf16.mxu1 %v15368_v37 }
 0x570   : > { %v11757_v63 = vpop.f32.mrf.mxu0  ;;  %v11950_v6 = vpop.f32.mrf.mxu1 }
 0x571   : > { %v12084_v44 = vmax.f32 %v11943_v42, %v12020_v57  ;;  %v11949_v61 = vadd.f32 %v11948_v19, %v11756_v23  ;;  %v11758_v4 = vadd.f32 %v11757_v63, %v21790_v25  ;;  %v20602_v48 = vpack.c.bf16 %v12083_v7, %v12081_v10  ;;  %v21794_v42 = vld [vmem:[#allocation36_spill] sm:$0xff]  ;;  %v15377_v63 = vld [vmem:[%s20907_s6 + $0xe4] ss:$8 sps:$4 sm:$0xff]   ;;  %v15375_v25 = vld [vmem:[%s20907_s6 + $0xe0] ss:$8 sps:$4 sm:$0xff]  }
 0x572   : > { %v11759_v5 = vpop.f32.mrf.mxu0  ;;  %v11952_v62 = vpop.f32.mrf.mxu1  ;;  %v12021_v50 = vmul.f32 0.2, %v11947_v21  ;;  %12487 = vmatpush1.bf16.msra.mxu1 %v15366_v30  ;;  %v15372_v23 = vld [vmem:[%s20907_s6 + $0xf0] ss:$8 sps:$4 sm:$0xff]   ;;  %v15405_v30 = vld [vmem:[%s15674_s12 + $0x188] sm:$0xff] }
 0x573   : > { %v11951_v54 = vadd.f32 %v11950_v6, %v11758_v4  ;;  %v11760_v20 = vadd.f32 %v11759_v5, %v21791_v13  ;;  %v12128_v31 = vpack.c.bf16 %v12084_v44, %v12082_v9  ;;  %v12022_v36 = vmul.f32 0.2, %v11949_v61  ;;  %12488 = vmatprep.subr.bf16.mxu1 %v15371_v35  ;;  %v15380_v9 = vld [vmem:[%s20907_s6 + $0xd4] ss:$8 sps:$4 sm:$0xff]   ;;  %v15381_v13 = vld [vmem:[%s20907_s6 + $0xc0] ss:$8 sps:$4 sm:$0xff]  }
 0x574   : > { %v11763_v12 = vpop.f32.mrf.mxu0  ;;  %v11956_v41 = vpop.f32.mrf.mxu1  ;;  %v12085_v11 = vmax.f32 %v11947_v21, %v12021_v50  ;;  %v15378_v50 = vld [vmem:[%s20907_s6 + $0xd0] ss:$8 sps:$4 sm:$0xff]  }
 0x575   : > { %v12023_v27 = vmul.f32 0.2, %v11951_v54  ;;  %v11953_v3 = vadd.f32 %v11952_v62, %v11760_v20  ;;  %v11764_v32 = vadd.f32 %v11763_v12, %v21792_v56  ;;  %v12086_v28 = vmax.f32 %v11949_v61, %v12022_v36  ;;  %v15386_v20 = vld [vmem:[%s20907_s6 + $0xb4] ss:$8 sps:$4 sm:$0xff]   ;;  %v15384_v12 = vld [vmem:[%s20907_s6 + $0xb0] ss:$8 sps:$4 sm:$0xff]  }
 0x576   : > { %v11765_v16 = vpop.f32.mrf.mxu0  ;;  %v11958_v24 = vpop.f32.mrf.mxu1  ;;  %12489 = vmatpush1.bf16.msra.mxu1 %v15369_v26  ;;  %v12671_v36 = vrot.slane %v15405_v30, 1  ;;  %v15408_v56 = vld [vmem:[%s15674_s12 + $0xc8] sm:$0xff] }
 0x577   : > { %v12087_v52 = vmax.f32 %v11951_v54, %v12023_v27  ;;  %v12024_v58 = vmul.f32 0.2, %v11953_v3  ;;  %v11766_v34 = vadd.f32 %v11765_v16, %v21793_v45  ;;  %v11957_v33 = vadd.f32 %v11956_v41, %v11764_v32  ;;  %12490 = vmatprep.subr.bf16.mxu1 %v15374_v39  ;;  %v15383_v54 = vld [vmem:[%s20907_s6 + $0xc4] ss:$8 sps:$4 sm:$0xff]   ;;  %v15411_v16 = vld [vmem:[%s15674_s12 + $0x170] sm:$0xff]  ;;  %v15417_v39 = vld [vmem:[%s15674_s12 + $0x158] sm:$0xff] }
 0x578   : > { %v11767_v2 = vpop.f32.mrf.mxu0  ;;  %v11960_v8 = vpop.f32.mrf.mxu1  ;;  %v15404_v41 = vld [vmem:[%s15674_s12 + $0x180] sm:$0xff]  ;;  %v12631_v32 = vrot.slane %v15408_v56, 1 }
 0x579   : > { %v12129_v46 = vpack.c.bf16 %v12087_v52, %v12085_v11  ;;  %v12088_v38 = vmax.f32 %v11953_v3, %v12024_v58  ;;  %v11959_v59 = vadd.f32 %v11958_v24, %v11766_v34  ;;  %v11768_v53 = vadd.f32 %v11767_v2, %v21794_v42 }
 0x57a   : > { %v11769_v55 = vpop.f32.mrf.mxu0  ;;  %v12025_v19 = vmul.f32 0.2, %v11957_v33  ;;  %v11962_v21 = vpop.f32.mrf.mxu1  ;;  %12491 = vmatpush2.bf16.msra.mxu1 %v15372_v23  ;;  %v12666_v24 = vrot.slane %v15411_v16, 1  ;;  %v12661_v42 = vrot.slane %v15417_v39, 1  ;;  %v20717_v16 = vld [vmem:[%s20902_s1 + $0x10] ss:$8 sps:$4 sm:$0xff]  }
 0x57b   : > { %v11770_v47 = vadd.f32 %v11769_v55, %v21795_v60  ;;  %v12130_v29 = vpack.c.bf16 %v12088_v38, %v12086_v28  ;;  %v11961_v57 = vadd.f32 %v11960_v8, %v11768_v53  ;;  %v12026_v10 = vmul.f32 0.2, %v11959_v59  ;;  %12492 = vmatprep.subr.bf16.mxu1 %v15377_v63  ;;  %v15413_v8 = vld [vmem:[%s15674_s12 + $0xa8] sm:$0xff]  ;;  %v15415_v28 = vld [vmem:[%s15674_s12 + $0xb8] sm:$0x3]  ;;  %v15416_v38 = vld [vmem:[%s15674_s12 + $0x150] sm:$0xff] }
 0x57c   : > { %v12089_v44 = vmax.f32 %v11957_v33, %v12025_v19  ;;  %v12625_v26 = vrot.slane %v15413_v8, 1  ;;  %v15418_v53 = vld [vmem:[%s15674_s12 + $0x160] sm:$0x3]  ;;  %v15420_v19 = vld [vmem:[%s15674_s12 + $0x98] sm:$0xff]  ;;  %v15434_v8 = vld [vmem:[%s15674_s12 + $0x108] sm:$0xff] }
 0x57d   : > { %v11963_v7 = vadd.f32 %v11962_v21, %v11770_v47  ;;  %v12027_v6 = vmul.f32 0.2, %v11961_v57  ;;  %v12090_v4 = vmax.f32 %v11959_v59, %v12026_v10  ;;  %v12660_v59 = vrot.slane %v15416_v38, 1  ;;  %v15419_v47 = vld [vmem:[%s15674_s12 + $0x90] sm:$0xff]  ;;  %v15421_v21 = vld [vmem:[%s15674_s12 + $0xa0] sm:$0x3] }
 0x57e   : > { %12493 = vmatpush2.bf16.msra.mxu1 %v15375_v25  ;;  %v12663_v55 = vrot.slane %v15418_v53, 1  ;;  %v12623_v23 = vrot.slane %v15421_v21, 1  ;;  %v15422_v25 = vld [vmem:[%s15674_s12 + $0x138] sm:$0xff] }
 0x57f   : > { %v12028_v49 = vmul.f32 0.2, %v11963_v7  ;;  %v12091_v61 = vmax.f32 %v11961_v57, %v12027_v6  ;;  %12494 = vmatprep.subr.bf16.mxu1 %v15380_v9  ;;  %v12621_v57 = vrot.slane %v15420_v19, 1  ;;  %v20693_v6 = vld [vmem:[%s20902_s1 + $0x14] ss:$8 sps:$4 sm:$0xff]  }
 0x580   : > { %v15438_v19 = vld [vmem:[%s15674_s12 + $0x50] sm:$0xff]  ;;  %v15439_v21 = vld [vmem:[%s15674_s12 + $0x58] sm:$0x3] }
 0x581   : > { %v12092_v37 = vmax.f32 %v11963_v7, %v12028_v49  ;;  %v12131_v5 = vpack.c.bf16 %v12091_v61, %v12089_v44  ;;  %v12662_v49 = vsel %vm1238_vm0, %v12660_v59, %v12661_v42  ;;  %v12664_v44 = vsel %vm1238_vm0, %v12661_v42, %v12663_v55 }
 0x582   : > { %12495 = vmatpush2.bf16.msra.mxu1 %v15378_v50  ;;  %v15425_v50 = vld [vmem:[%s15674_s12 + $0x78] sm:$0xff]  ;;  %v12720_v56 = vpack.c.bf16 %v12664_v44, %v12662_v49  ;;  %v15442_v49 = vld [vmem:[%s15674_s12 + $0x100] sm:$0x3] }
 0x583   : > { %v12132_v62 = vpack.c.bf16 %v12092_v37, %v12090_v4  ;;  %12496 = vmatprep.subr.bf16.mxu1 %v15383_v54  ;;  %v12655_v4 = vrot.slane %v15422_v25, 1  ;;  %v15423_v37 = vld [vmem:[%s15674_s12 + $0x140] sm:$0xff]  ;;  %v12615_v54 = vrot.slane %v15425_v50, 1  ;;  %v12643_v44 = vrot.slane %v15442_v49, 1  ;;  %v15398_v49 = vld [vmem:[%s20909_s8 + $0x28] sm:$0xff]  }
 0x584   : > { %v12656_v9 = vrot.slane %v15423_v37, 1  ;;  %v15347_v37 = vld [vmem:[%s20902_s1 + $0x34] ss:$8 sps:$4 sm:$0xff]  }
 0x585   : > { %12189 = vmatprep.subr.bf16.mxu0 %v12132_v62 }
 0x586   : > { %12190 = vmatpush2.bf16.msra.mxu0 %v12131_v5  ;;  %12497 = vmatpush2.bf16.msra.mxu1 %v15381_v13  ;;  %v15424_v5 = vld [vmem:[%s15674_s12 + $0x148] sm:$0x3]  ;;  %v15426_v13 = vld [vmem:[%s15674_s12 + $0x80] sm:$0xff] }
 0x587   : > { %12191 = vmatprep.subr.bf16.mxu0 %v12130_v29  ;;  %12498 = vmatprep.subr.bf16.mxu1 %v15386_v20  ;;  %v12620_v29 = vrot.slane %v15419_v47, 1  ;;  %v12658_v62 = vrot.slane %v15424_v5, 1  ;;  %v12616_v20 = vrot.slane %v15426_v13, 1  ;;  %v15437_v47 = vld [vmem:[%s15674_s12 + $0x48] sm:$0xff] }
 0x589   : > { %v12622_v61 = vsel %vm1238_vm0, %v12620_v29, %v12621_v57  ;;  %v12605_v29 = vrot.slane %v15437_v47, 1 }
 0x58a   : > { %12192 = vmatpush2.bf16.msra.mxu0 %v12129_v46  ;;  %12499 = vmatpush2.bf16.msra.mxu1 %v15384_v12  ;;  %v12628_v46 = vrot.slane %v15415_v28, 1  ;;  %v15427_v12 = vld [vmem:[%s15674_s12 + $0x88] sm:$0x3]  ;;  %v15436_v28 = vld [vmem:[%s15674_s12 + $0x118] sm:$0x3] }
 0x58b   : > { %12193 = vmatprep.subr.bf16.mxu0 %v12128_v31  ;;  %v12670_v31 = vrot.slane %v15404_v41, 1  ;;  %v12618_v41 = vrot.slane %v15427_v12, 1  ;;  %v15445_v12 = vld [vmem:[%s15674_s12 + $0x40] sm:$0x3] }
 0x58d   : > { %v12672_v52 = vsel %vm1238_vm0, %v12670_v31, %v12671_v36  ;;  %v15428_v31 = vld [vmem:[%s15674_s12 + $0x120] sm:$0xff] }
 0x58e   : > { %12194 = vmatpush2.bf16.msra.mxu0 %v20602_v48  ;;  %v15406_v48 = vld [vmem:[%s15674_s12 + $0x190] sm:$0x3]  ;;  %v12650_v30 = vrot.slane %v15428_v31, 1  ;;  %v15446_v31 = vld [vmem:[%s15674_s12 + $0xd8] sm:$0xff] }
 0x58f   : > { %12195 = vmatprep.subr.bf16.mxu0 %v20585_v17  ;;  %v12673_v27 = vrot.slane %v15406_v48, 1  ;;  %v15407_v17 = vld [vmem:[%s15674_s12 + $0xc0] sm:$0xff] }
 0x590   : > { %v12630_v3 = vrot.slane %v15407_v17, 1  ;;  %v15430_v17 = vld [vmem:[%s15674_s12 + $0x130] sm:$0x3] }
 0x591   : > { %v12674_v58 = vsel %vm1238_vm0, %v12671_v36, %v12673_v27  ;;  %v15429_v36 = vld [vmem:[%s15674_s12 + $0x128] sm:$0xff] }
 0x592   : > { %12196 = vmatpush2.bf16.msra.mxu0 %v20578_v43  ;;  %v15409_v43 = vld [vmem:[%s15674_s12 + $0xd0] sm:$0x3]  ;;  %v12632_v45 = vsel %vm1238_vm0, %v12630_v3, %v12631_v32  ;;  %v12722_v60 = vpack.c.bf16 %v12674_v58, %v12672_v52  ;;  %v12651_v48 = vrot.slane %v15429_v36, 1  ;;  %v12653_v3 = vrot.slane %v15430_v17, 1  ;;  %v15432_v52 = vld [vmem:[%s15674_s12 + $0x68] sm:$0xff]  ;;  %v15447_v36 = vld [vmem:[%s15674_s12 + $0xe0] sm:$0xff] }
 0x593   : > { %12197 = vmatprep.subr.bf16.mxu0 %v20565_v22  ;;  %v12633_v35 = vrot.slane %v15409_v43, 1  ;;  %v15410_v22 = vld [vmem:[%s15674_s12 + $0x168] sm:$0xff]  ;;  %v12657_v43 = vsel %vm1238_vm0, %v12655_v4, %v12656_v9  ;;  %v12611_v58 = vrot.slane %v15432_v52, 1 }
 0x595   : > { %v12634_v34 = vsel %vm1238_vm0, %v12631_v32, %v12633_v35  ;;  %v12659_v35 = vsel %vm1238_vm0, %v12656_v9, %v12658_v62  ;;  %v15443_v9 = vld [vmem:[%s15674_s12 + $0x30] sm:$0xff]  ;;  %v15444_v62 = vld [vmem:[%s15674_s12 + $0x38] sm:$0xff] }
 0x596   : > { %12198 = vmatpush2.bf16.msra.mxu0 %v20561_v18  ;;  %v12665_v18 = vrot.slane %v15410_v22, 1  ;;  %v12714_v10 = vpack.c.bf16 %v12634_v34, %v12632_v45  ;;  %v12617_v22 = vsel %vm1238_vm0, %v12615_v54, %v12616_v20  ;;  %v15433_v45 = vld [vmem:[%s15674_s12 + $0x70] sm:$0x3]  ;;  %v12719_v38 = vpack.c.bf16 %v12659_v35, %v12657_v43  ;;  %v15449_v35 = vld [vmem:[%s15674_s12 + $0x18] sm:$0xff] }
 0x597   : > { %12199 = vmatprep.subr.bf16.mxu0 %v20538_v14  ;;  %v15412_v14 = vld [vmem:[%s15674_s12 + $0x178] sm:$0x3]  ;;  %v12613_v34 = vrot.slane %v15433_v45, 1  ;;  %v12600_v5 = vrot.slane %v15443_v9, 1  ;;  %v12601_v50 = vrot.slane %v15444_v62, 1 }
 0x598   : > { %v12668_v11 = vrot.slane %v15412_v14, 1  ;;  %v12667_v33 = vsel %vm1238_vm0, %v12665_v18, %v12666_v24  ;;  %v12619_v18 = vsel %vm1238_vm0, %v12616_v20, %v12618_v41  ;;  %v15431_v14 = vld [vmem:[%s15674_s12 + $0x60] sm:$0xff]  ;;  %v12603_v41 = vrot.slane %v15445_v12, 1  ;;  %v15345_v45 = vld [vmem:[%s20902_s1 + $0x30] ss:$8 sps:$4 sm:$0xff]  }
 0x599   : > { %v12711_v59 = vpack.c.bf16 %v12619_v18, %v12617_v22  ;;  %v12614_v53 = vsel %vm1238_vm0, %v12611_v58, %v12613_v34  ;;  %v12595_v22 = vrot.slane %v15449_v35, 1  ;;  %v15450_v18 = vld [vmem:[%s15674_s12 + $0x20] sm:$0xff] }
 0x59a   : > { %12200 = vmatpush2.bf16.msra.mxu0 %v20533_v51  ;;  %v12669_v2 = vsel %vm1238_vm0, %v12666_v24, %v12668_v11  ;;  %v15414_v51 = vld [vmem:[%s15674_s12 + $0xb0] sm:$0xff]  ;;  %v12652_v24 = vsel %vm1238_vm0, %v12650_v30, %v12651_v48  ;;  %v12610_v11 = vrot.slane %v15431_v14, 1  ;;  %v12635_v30 = vrot.slane %v15446_v31, 1  ;;  %v15451_v14 = vld [vmem:[%s15674_s12 + $0x28] sm:$0x3] }
 0x59b   : > { %12201 = vmatprep.subr.bf16.mxu0 %v20527_v40  ;;  %v12626_v40 = vrot.slane %v15414_v51, 1  ;;  %v12721_v7 = vpack.c.bf16 %v12669_v2, %v12667_v33  ;;  %v20726_v33 = vld [vmem:[%s20902_s1 + $0x24] ss:$8 sps:$4 sm:$0xff]   ;;  %v12654_v2 = vsel %vm1238_vm0, %v12651_v48, %v12653_v3  ;;  %v15435_v51 = vld [vmem:[%s15674_s12 + $0x110] sm:$0xff]  ;;  %v12636_v48 = vrot.slane %v15447_v36, 1 }
 0x59c   : > { %v12718_v39 = vpack.c.bf16 %v12654_v2, %v12652_v24  ;;  %v12612_v42 = vsel %vm1238_vm0, %v12610_v11, %v12611_v58  ;;  %v12604_v43 = vsel %vm1238_vm0, %v12601_v50, %v12603_v41  ;;  %v12596_v24 = vrot.slane %v15450_v18, 1 }
 0x59d   : > { %v12629_v63 = vsel %vm1238_vm0, %v12626_v40, %v12628_v46  ;;  %v12648_v46 = vrot.slane %v15436_v28, 1  ;;  %v12598_v11 = vrot.slane %v15451_v14, 1  ;;  %v12637_v52 = vsel %vm1238_vm0, %v12635_v30, %v12636_v48  ;;  %v15387_v28 = vld [vmem:[%s20907_s6 + $0xa0] ss:$8 sps:$4 sm:$0xff]  }
 0x59e   : > { %12202 = vmatpush2.bf16.msra.mxu0 %v20522_v0  ;;  %v20685_v0 = vld [vmem:[%s20902_s1] ss:$8 sps:$4 sm:$0xff]  }
 0x59f   : > { %12203 = vmatprep.subr.bf16.mxu0 %v20514_v15  ;;  %v12627_v15 = vsel %vm1238_vm0, %v12625_v26, %v12626_v40  ;;  %v12645_v26 = vrot.slane %v15434_v8, 1  ;;  %v12646_v40 = vrot.slane %v15435_v51, 1  ;;  %v12597_v8 = vsel %vm1238_vm0, %v12595_v22, %v12596_v24 }
 0x5a0   : > { %v12713_v27 = vpack.c.bf16 %v12629_v63, %v12627_v15  ;;  %v15441_v15 = vld [vmem:[%s15674_s12 + $0xf8] sm:$0xff] }
 0x5a1   : > { %v12647_v55 = vsel %vm1238_vm0, %v12645_v26, %v12646_v40  ;;  %v12641_v63 = vrot.slane %v15441_v15, 1  ;;  %v12599_v26 = vsel %vm1238_vm0, %v12596_v24, %v12598_v11 }
 0x5a2   : > { %12204 = vmatpush2.bf16.msra.mxu0 %v20510_v1  ;;  %v12624_v1 = vsel %vm1238_vm0, %v12621_v57, %v12623_v23  ;;  %v12606_v57 = vrot.slane %v15438_v19, 1  ;;  %v12608_v23 = vrot.slane %v15439_v21, 1  ;;  %v12707_v51 = vpack.c.bf16 %v12599_v26, %v12597_v8 }
 0x5a3   : > { %14689 = vmatprep.subr.bf16.mxu0 %v12722_v60  ;;  %v12712_v32 = vpack.c.bf16 %v12624_v1, %v12622_v61  ;;  %v12649_v60 = vsel %vm1238_vm0, %v12646_v40, %v12648_v46  ;;  %v15342_v61 = vld [vmem:[%s20902_s1 + $0x20] ss:$8 sps:$4 sm:$0xff]   ;;  %v12710_v1 = vpack.c.bf16 %v12614_v53, %v12612_v42  ;;  %v12644_v20 = vsel %vm1238_vm0, %v12641_v63, %v12643_v44  ;;  %v15452_v40 = vld [vmem:[%s20902_s1 + $0x4] ss:$8 sps:$4 sm:$0xff]  }
 0x5a4   : > { %v12717_v25 = vpack.c.bf16 %v12649_v60, %v12647_v55  ;;  %v12607_v4 = vsel %vm1238_vm0, %v12605_v29, %v12606_v57  ;;  %v12609_v54 = vsel %vm1238_vm0, %v12606_v57, %v12608_v23  ;;  %v15389_v46 = vld [vmem:[%s20907_s6 + $0xa4] ss:$8 sps:$4 sm:$0xff]  }
 0x5a5   : > { %12206 = vmatmul.mubr.bf16.vlgmr.msra.gmra.mxu0 %v20685_v0  ;;  %v12709_v3 = vpack.c.bf16 %v12609_v54, %v12607_v4  ;;  %12500 = vmatprep.subr.bf16.mxu1 %v15389_v46 }
 0x5a6   : > { %14690 = vmatpush3.bf16.msra.mxu0 %v12714_v10  ;;  %12215 = vmatprep.mubr.bf16.mxu0 %v20693_v6  ;;  %v15440_v10 = vld [vmem:[%s15674_s12 + $0xf0] sm:$0xff] }
 0x5a7   : > { %14691 = vmatprep.subr.bf16.mxu0 %v12721_v7  ;;  %v12640_v7 = vrot.slane %v15440_v10, 1  ;;  %12501 = vmatpush2.bf16.msra.mxu1 %v15387_v28  ;;  %v15397_v10 = vld [vmem:[%s20909_s8 + $0x30] sm:$0xff]  }
 0x5a9   : > { %v12642_v13 = vsel %vm1238_vm0, %v12640_v7, %v12641_v63 }
 0x5aa   : > { %14692 = vmatpush3.bf16.msra.mxu0 %v12713_v27  ;;  %v15448_v27 = vld [vmem:[%s15674_s12 + $0xe8] sm:$0x3]  ;;  %s13048_s12 = sshll.u32 %s350_s29, 7 }
 0x5ab   : > { %14693 = vmatprep.subr.bf16.mxu0 %v12720_v56  ;;  %v12638_v17 = vrot.slane %v15448_v27, 1  ;;  %v12716_v56 = vpack.c.bf16 %v12644_v20, %v12642_v13  ;;  %v15400_v13 = vld [vmem:[%s20909_s8 + $0x18] sm:$0xff]   ;;  %v15401_v27 = vld [vmem:[%s20909_s8 + $0x10] sm:$0xff]   ;;  %s20828_s30 = scalar_lea.vmem [#allocation3], %s13048_s12  ;;  %s15516_s12 = smov [#allocation3]  }
 0x5ac   : > { %s12982_s21 = sshll.u32 %s20828_s30, 4  ;;  %s15457_s11 = sshll.u32 %s15516_s12, 4  ;;  %s20855_s21 = int_to_ptr.vmem [resolvable:$true] %s12982_s21  ;;  %s15458_s11 = int_to_ptr.vmem [resolvable:$false] %s15457_s11 }
 0x5ad   : > { %12216 = vmatmul.mubr.bf16.gmra.mxu0 %v20717_v16  ;;  %v12639_v58 = vsel %vm1238_vm0, %v12636_v48, %v12638_v17  ;;  %s15453_s28 = scalar_lea.vmem %s20855_s21, 2048  ;;  %s15459_s18 = scalar_lea.vmem %s15458_s11, 4096 }
 0x5ae   : > { %14694 = vmatpush3.bf16.msra.mxu0 %v12712_v32  ;;  %12225 = vmatprep.mubr.bf16.mxu0 %v20726_v33  ;;  %v12602_v32 = vsel %vm1238_vm0, %v12600_v5, %v12601_v50  ;;  %v12715_v2 = vpack.c.bf16 %v12639_v58, %v12637_v52  ;;  %v15399_v5 = vld [vmem:[%s20909_s8 + $0x20] sm:$0xff]   ;;  %p15454_p11 = scmp.ne.s32.totalorder %s20855_s21, %s15453_s28  ;;  %p15460_p0 = scmp.lt.s32.totalorder %s20855_s21, %s15458_s11 }
 0x5af   : > { %14695 = vmatprep.subr.bf16.mxu0 %v12719_v38  ;;  %v12708_v34 = vpack.c.bf16 %v12604_v43, %v12602_v32  ;;  %v15396_v38 = vld [vmem:[%s20909_s8 + $0x38] sm:$0xff]   ;;  %v15402_v32 = vld [vmem:[%s20909_s8 + $0x8] sm:$0xff]   ;;  %v15403_v52 = vld [vmem:[%s20909_s8] sm:$0xff]   ;;  %p15461_p1 = scmp.lt.s32.totalorder %s15459_s18, %s15453_s28 }
 0x5b0   : > { %p15455_p12 = pnand %p15454_p11, %p15612_p5 }
 0x5b1   : > { %p15462_p2 = por %p15461_p1, %p15460_p0 }
 0x5b2   : > { %14696 = vmatpush3.bf16.msra.mxu0 %v12711_v59  ;;  %p15456_p13 = pneg %p15455_p12 }
 0x5b3   : > { %14697 = vmatprep.subr.bf16.mxu0 %v12718_v39 }
 0x5b4   : > { %p15463_p3 = pnand %p15462_p2, %p15456_p13 }
 0x5b5   : > { %12226 = vmatmul.mubr.bf16.gmra.mxu0 %v15342_v61 }
 0x5b6   : > { %14698 = vmatpush3.bf16.msra.mxu0 %v12710_v1  ;;  %12235 = vmatprep.mubr.bf16.mxu0 %v15347_v37 }
 0x5b7   : > { %14699 = vmatprep.subr.bf16.mxu0 %v12717_v25 }
 0x5ba   : > { %14700 = vmatpush3.bf16.msra.mxu0 %v12709_v3 }
 0x5bb   : > { %14701 = vmatprep.subr.bf16.mxu0 %v12716_v56 }
 0x5bd   : > { %12236 = vmatmul.mubr.bf16.gmra.mxu0 %v15345_v45 }
 0x5be   : > { %14702 = vmatpush3.bf16.msra.mxu0 %v12708_v34  ;;  %12755 = vmatprep.mubr.bf16.mxu0 %v15452_v40 }
 0x5bf   : > { %14703 = vmatprep.subr.bf16.mxu0 %v12715_v2 }
 0x5c2   : > { %14704 = vmatpush3.bf16.msra.mxu0 %v12707_v51 }
 0x5c5   : > { %12756 = vmatmul.mubr.bf16.vlgmr.msra.gmra.mxu0 %v20685_v0  ;;  %v15390_v0 = vld [vmem:[%s20907_s6 + $0x90] ss:$8 sps:$4 sm:$0xff]  }
 0x5c6   : > { %12763 = vmatprep.mubr.bf16.mxu0 %v20693_v6  ;;  %v15392_v6 = vld [vmem:[%s20907_s6 + $0x94] ss:$8 sps:$4 sm:$0xff]  }
 0x5c7   : > { %12502 = vmatprep.subr.bf16.mxu1 %v15392_v6 }
 0x5c8   : > { %12503 = vmatpush2.bf16.msra.mxu1 %v15390_v0 }
 0x5cd   : > { %12764 = vmatmul.mubr.bf16.gmra.mxu0 %v20717_v16  ;;  %v15395_v16 = vld [vmem:[%s20907_s6 + $0x84] ss:$8 sps:$4 sm:$0xff]  }
 0x5ce   : > { %12771 = vmatprep.mubr.bf16.mxu0 %v20726_v33  ;;  %v15393_v33 = vld [vmem:[%s20907_s6 + $0x80] ss:$8 sps:$4 sm:$0xff]   ;;  %12504 = vmatprep.subr.bf16.mxu1 %v15395_v16 }
 0x5cf   : > { %12505 = vmatpush2.bf16.msra.mxu1 %v15393_v33 }
 0x5d0   : > { %14741 = vmatprep.subr.bf16.mxu1 %v15396_v38 }
 0x5d5   : > { %12772 = vmatmul.mubr.bf16.gmra.mxu0 %v15342_v61 }
 0x5d6   : > { %12779 = vmatprep.mubr.bf16.mxu0 %v15347_v37 }
 0x5dd   : > { %12780 = vmatmul.mubr.bf16.gmra.mxu0 %v15345_v45 }
 0x665   : > { %v12207_v59 = vpop.f32.mrf.mxu0 }
 0x666   : > { %v12246_v29 = vmul.f32 0.04, %v12207_v59 }
 0x667   : > { %v12209_v39 = vpop.f32.mrf.mxu0 }
 0x668   : > { %v12247_v60 = vmul.f32 0.04, %v12209_v39 }
 0x669   : > { %v12211_v42 = vpop.f32.mrf.mxu0 }
 0x66a   : > { %v12248_v53 = vmul.f32 0.04, %v12211_v42 }
 0x66b   : > { %v12213_v55 = vpop.f32.mrf.mxu0 }
 0x66c   : > { %v12249_v47 = vmul.f32 0.04, %v12213_v55  ;;  %v12262_v21 = vpack.c.bf16 %v12248_v53, %v12246_v29 }
 0x66d   : > { %v12217_v19 = vpop.f32.mrf.mxu0 }
 0x66e   : > { %v12263_v57 = vpack.c.bf16 %v12249_v47, %v12247_v60  ;;  %v12250_v1 = vmul.f32 0.04, %v12217_v19 }
 0x66f   : > { %v12219_v23 = vpop.f32.mrf.mxu0 }
 0x670   : > { %12506 = vmatprep.mubr.bf16.mxu1 %v12263_v57  ;;  %v12251_v44 = vmul.f32 0.04, %v12219_v23 }
 0x671   : > { %v12221_v7 = vpop.f32.mrf.mxu0  ;;  %12507 = vmatmul.mubr.bf16.vlgmr.msra.gmra.mxu1 %v12262_v21 }
 0x672   : > { %14742 = vmatpush3.bf16.msra.mxu1 %v15396_v38  ;;  %v12252_v15 = vmul.f32 0.04, %v12221_v7 }
 0x673   : > { %v12223_v63 = vpop.f32.mrf.mxu0  ;;  %14743 = vmatprep.subr.bf16.mxu1 %v15397_v10 }
 0x674   : > { %v12253_v61 = vmul.f32 0.04, %v12223_v63  ;;  %v12264_v37 = vpack.c.bf16 %v12252_v15, %v12250_v1  ;;  %v12302_v1 = vld [vmem:[%s20908_s7] sm:$0x3] }
 0x675   : > { %v12227_v25 = vpop.f32.mrf.mxu0 }
 0x676   : > { %v12265_v4 = vpack.c.bf16 %v12253_v61, %v12251_v44  ;;  %14744 = vmatpush3.bf16.msra.mxu1 %v15397_v10  ;;  %v12254_v41 = vmul.f32 0.04, %v12227_v25  ;;  %v21796_v25 = vld [vmem:[#allocation37_spill] sm:$0xff] }
 0x677   : > { %v12229_v9 = vpop.f32.mrf.mxu0  ;;  %14745 = vmatprep.subr.bf16.mxu1 %v15398_v49 }
 0x678   : > { %12516 = vmatprep.mubr.bf16.mxu1 %v12265_v4  ;;  %v12255_v20 = vmul.f32 0.04, %v12229_v9  ;;  %v12307_v4 = vrot.slane %v12302_v1, %v21796_v25 }
 0x679   : > { %v12231_v62 = vpop.f32.mrf.mxu0  ;;  %12517 = vmatmul.mubr.bf16.gmra.mxu1 %v12264_v37 }
 0x67a   : > { %14746 = vmatpush3.bf16.msra.mxu1 %v15398_v49  ;;  %v12256_v50 = vmul.f32 0.04, %v12231_v62 }
 0x67b   : > { %v12233_v54 = vpop.f32.mrf.mxu0  ;;  %14747 = vmatprep.subr.bf16.mxu1 %v15399_v5 }
 0x67c   : > { %v12257_v12 = vmul.f32 0.04, %v12233_v54  ;;  %v12266_v36 = vpack.c.bf16 %v12256_v50, %v12254_v41 }
 0x67d   : > { %v12237_v31 = vpop.f32.mrf.mxu0 }
 0x67e   : > { %v12267_v30 = vpack.c.bf16 %v12257_v12, %v12255_v20  ;;  %14748 = vmatpush3.bf16.msra.mxu1 %v15399_v5  ;;  %v12258_v22 = vmul.f32 0.04, %v12237_v31 }
 0x67f   : > { %v12239_v48 = vpop.f32.mrf.mxu0  ;;  %14749 = vmatprep.subr.bf16.mxu1 %v15400_v13 }
 0x680   : > { %12526 = vmatprep.mubr.bf16.mxu1 %v12267_v30  ;;  %v12259_v43 = vmul.f32 0.04, %v12239_v48 }
 0x681   : > { %v12241_v17 = vpop.f32.mrf.mxu0  ;;  %12527 = vmatmul.mubr.bf16.gmra.mxu1 %v12266_v36 }
 0x682   : > { %14750 = vmatpush3.bf16.msra.mxu1 %v15400_v13  ;;  %v12260_v3 = vmul.f32 0.04, %v12241_v17 }
 0x683   : > { %v12243_v56 = vpop.f32.mrf.mxu0  ;;  %14751 = vmatprep.subr.bf16.mxu1 %v15401_v27 }
 0x684   : > { %v12261_v35 = vmul.f32 0.04, %v12243_v56  ;;  %v12268_v14 = vpack.c.bf16 %v12260_v3, %v12258_v22 }
 0x685   : > { %v14705_v18 = vpop.f32.mrf.mxu0 }
 0x686   : > { %v12269_v24 = vpack.c.bf16 %v12261_v35, %v12259_v43  ;;  %14752 = vmatpush3.bf16.msra.mxu1 %v15401_v27 }
 0x687   : > { %v14706_v11 = vpop.f32.mrf.mxu0  ;;  %14753 = vmatprep.subr.bf16.mxu1 %v15402_v32 }
 0x688   : > { %12536 = vmatprep.mubr.bf16.mxu1 %v12269_v24  ;;  %v14707_v45 = vadd.f32 %v14706_v11, %v14705_v18 }
 0x689   : > { %12537 = vmatmul.mubr.bf16.gmra.mxu1 %v12268_v14  ;;  %v14708_v58 = vpop.f32.mrf.mxu0 }
 0x68a   : > { %14754 = vmatpush3.bf16.msra.mxu1 %v15402_v32  ;;  %v12788_v26 = vmul.f32 0.04, %v14707_v45 }
 0x68b   : > { %v14709_v34 = vpop.f32.mrf.mxu0  ;;  %14755 = vmatprep.subr.bf16.mxu1 %v15403_v52 }
 0x68c   : > { %v14710_v2 = vadd.f32 %v14709_v34, %v14708_v58 }
 0x68d   : > { %v14711_v8 = vpop.f32.mrf.mxu0 }
 0x68e   : > { %v12789_v51 = vmul.f32 0.04, %v14710_v2  ;;  %14756 = vmatpush3.bf16.msra.mxu1 %v15403_v52 }
 0x68f   : > { %v14712_v40 = vpop.f32.mrf.mxu0 }
 0x690   : > { %v12796_v28 = vpack.c.bf16 %v12789_v51, %v12788_v26  ;;  %v14713_v0 = vadd.f32 %v14712_v40, %v14711_v8 }
 0x691   : > { %v14714_v46 = vpop.f32.mrf.mxu0 }
 0x692   : > { %14757 = vmatprep.mubr.bf16.mxu1 %v12796_v28  ;;  %v12790_v38 = vmul.f32 0.04, %v14713_v0 }
 0x693   : > { %v14715_v6 = vpop.f32.mrf.mxu0 }
 0x694   : > { %v14716_v16 = vadd.f32 %v14715_v6, %v14714_v46 }
 0x695   : > { %v14717_v33 = vpop.f32.mrf.mxu0 }
 0x696   : > { %v12791_v59 = vmul.f32 0.04, %v14716_v16 }
 0x697   : > { %v14718_v39 = vpop.f32.mrf.mxu0 }
 0x698   : > { %v12797_v42 = vpack.c.bf16 %v12791_v59, %v12790_v38  ;;  %v14719_v55 = vadd.f32 %v14718_v39, %v14717_v33 }
 0x699   : > { %v14720_v53 = vpop.f32.mrf.mxu0 }
 0x69a   : > { %14758 = vmatmul.mubr.bf16.vlgmr.msra.gmra.mxu1 %v12797_v42  ;;  %v12792_v19 = vmul.f32 0.04, %v14719_v55 }
 0x69b   : > { %v14721_v60 = vpop.f32.mrf.mxu0 }
 0x69c   : > { %v14722_v47 = vadd.f32 %v14721_v60, %v14720_v53 }
 0x69d   : > { %v14723_v29 = vpop.f32.mrf.mxu0 }
 0x69e   : > { %v12793_v57 = vmul.f32 0.04, %v14722_v47 }
 0x69f   : > { %v14724_v21 = vpop.f32.mrf.mxu0 }
 0x6a0   : > { %v12798_v23 = vpack.c.bf16 %v12793_v57, %v12792_v19  ;;  %v14725_v7 = vadd.f32 %v14724_v21, %v14723_v29 }
 0x6a1   : > { %v14726_v10 = vpop.f32.mrf.mxu0 }
 0x6a2   : > { %14761 = vmatprep.mubr.bf16.mxu1 %v12798_v23  ;;  %v12794_v49 = vmul.f32 0.04, %v14725_v7 }
 0x6a3   : > { %v14727_v15 = vpop.f32.mrf.mxu0 }
 0x6a4   : > { %v14728_v63 = vadd.f32 %v14727_v15, %v14726_v10 }
 0x6a6   : > { %v12795_v44 = vmul.f32 0.04, %v14728_v63 }
 0x6a8   : > { %v12799_v61 = vpack.c.bf16 %v12795_v44, %v12794_v49 }
 0x6aa   : > { %14762 = vmatmul.mubr.bf16.gmra.mxu1 %v12799_v61 }
 0x731   : > { %v12508_v37 = vpop.f32.mrf.mxu1 }
 0x732   : > { %v12509_v9 = vadd.f32 %v12508_v37, %v12307_v4 }
 0x733   : > { %v12510_v5 = vpop.f32.mrf.mxu1 }
 0x734   : > { %v12936_v62 = vadd.f32 %v12788_v26, %v12509_v9  ;;  %v14098_v26 = vld [vmem:[%s20910_s9] ss:$0 sm:$0xff] }
 0x735   : > { %v12512_v50 = vpop.f32.mrf.mxu1 }
 0x736   : > { %12952 = vst [vmem:[%s20828_s30] sm:$0xff] %v12936_v62  ;;  %v12513_v54 = vadd.f32 %v12512_v50, %v12307_v4 }
 0x737   : > { %v12514_v13 = vpop.f32.mrf.mxu1 }
 0x738   : > { %v12938_v20 = vadd.f32 %v12789_v51, %v12513_v54  ;;  %v21797_v51 = vld [vmem:[#allocation38_spill] sm:$0xff] }
 0x739   : > { %v12518_v12 = vpop.f32.mrf.mxu1  ;;  %v12311_v40 = vrot.slane %v12302_v1, %v21797_v51 }
 0x73a   : > { %12954 = vst [vmem:[%s20828_s30 + $0x10] sm:$0xff] %v12938_v20  ;;  %v12519_v41 = vadd.f32 %v12518_v12, %v12307_v4 }
 0x73b   : > { %v12520_v31 = vpop.f32.mrf.mxu1  ;;  %v12511_v16 = vadd.f32 %v12510_v5, %v12311_v40  ;;  %v12515_v60 = vadd.f32 %v12514_v13, %v12311_v40 }
 0x73c   : > { %v12940_v30 = vadd.f32 %v12790_v38, %v12519_v41  ;;  %v12521_v46 = vadd.f32 %v12520_v31, %v12311_v40 }
 0x73d   : > { %v12522_v36 = vpop.f32.mrf.mxu1 }
 0x73e   : > { %12956 = vst [vmem:[%s20828_s30 + $0x20] sm:$0xff] %v12940_v30  ;;  %v12523_v48 = vadd.f32 %v12522_v36, %v12307_v4 }
 0x73f   : > { %v12524_v27 = vpop.f32.mrf.mxu1 }
 0x740   : > { %v12942_v17 = vadd.f32 %v12791_v59, %v12523_v48  ;;  %v12525_v39 = vadd.f32 %v12524_v27, %v12311_v40 }
 0x741   : > { %v12528_v3 = vpop.f32.mrf.mxu1 }
 0x742   : > { %12958 = vst [vmem:[%s20828_s30 + $0x30] sm:$0xff] %v12942_v17  ;;  %v12529_v56 = vadd.f32 %v12528_v3, %v12307_v4 }
 0x743   : > { %v12530_v32 = vpop.f32.mrf.mxu1 }
 0x744   : > { %v12944_v43 = vadd.f32 %v12792_v19, %v12529_v56  ;;  %v12531_v7 = vadd.f32 %v12530_v32, %v12311_v40 }
 0x745   : > { %v12532_v35 = vpop.f32.mrf.mxu1 }
 0x746   : > { %12960 = vst [vmem:[%s20828_s30 + $0x40] sm:$0xff] %v12944_v43  ;;  %v12533_v22 = vadd.f32 %v12532_v35, %v12307_v4 }
 0x747   : > { %v12534_v18 = vpop.f32.mrf.mxu1 }
 0x748   : > { %v12946_v24 = vadd.f32 %v12793_v57, %v12533_v22 }
 0x749   : > { %v12538_v14 = vpop.f32.mrf.mxu1 }
 0x74a   : > { %12962 = vst [vmem:[%s20828_s30 + $0x50] sm:$0xff] %v12946_v24  ;;  %v12539_v11 = vadd.f32 %v12538_v14, %v12307_v4 }
 0x74b   : > { %v12540_v52 = vpop.f32.mrf.mxu1 }
 0x74c   : > { %v12948_v58 = vadd.f32 %v12794_v49, %v12539_v11  ;;  %v12541_v21 = vadd.f32 %v12540_v52, %v12311_v40 }
 0x74d   : > { %v12542_v45 = vpop.f32.mrf.mxu1 }
 0x74e   : > { %12964 = vst [vmem:[%s20828_s30 + $0x60] sm:$0xff] %v12948_v58  ;;  %v12543_v34 = vadd.f32 %v12542_v45, %v12307_v4  ;;  %v12535_v4 = vadd.f32 %v12534_v18, %v12311_v40 }
 0x74f   : > { %v12544_v8 = vpop.f32.mrf.mxu1 }
 0x750   : > { %v12950_v2 = vadd.f32 %v12795_v44, %v12543_v34  ;;  %v12545_v44 = vadd.f32 %v12544_v8, %v12311_v40 }
 0x752   : > { %12966 = vst [vmem:[%s20828_s30 + $0x70] sm:$0xff] %v12950_v2 }
 0x75a   : > { %v14759_v28 = vpop.f32.mrf.mxu1 }
 0x75b   : > { %v12914_v0 = vadd.f32 %v14759_v28, %v14098_v26 }
 0x75c   : > { %v12905_v6 = vpop.f32.mrf.mxu1 }
 0x75d   : > { %v12941_v33 = vadd.f32 %v12914_v0, %v12521_v46  ;;  %v12906_v38 = vadd.f32 %v14098_v26, %v12905_v6 }
 0x75e   : > { %v14760_v59 = vpop.f32.mrf.mxu1 }
 0x75f   : > { %12957 = vst [vmem:[%s20828_s30 + $0x28] sm:$0xff] %v12941_v33  ;;  %v12937_v42 = vadd.f32 %v12906_v38, %v12511_v16  ;;  %v12917_v53 = vadd.f32 %v14760_v59, %v14098_v26 }
 0x760   : > { %v12908_v55 = vpop.f32.mrf.mxu1 }
 0x761   : > { %12953 = vst [vmem:[%s20828_s30 + $0x8] sm:$0xff] %v12937_v42  ;;  %v12943_v47 = vadd.f32 %v12917_v53, %v12525_v39  ;;  %v12909_v29 = vadd.f32 %v14098_v26, %v12908_v55 }
 0x763   : > { %12959 = vst [vmem:[%s20828_s30 + $0x38] sm:$0xff] %v12943_v47  ;;  %v12939_v19 = vadd.f32 %v12909_v29, %v12515_v60 }
 0x765   : > { %12955 = vst [vmem:[%s20828_s30 + $0x18] sm:$0xff] %v12939_v19 }
 0x76a   : > { %v14763_v57 = vpop.f32.mrf.mxu1 }
 0x76b   : > { %v12930_v23 = vadd.f32 %v14763_v57, %v14098_v26 }
 0x76c   : > { %v12921_v10 = vpop.f32.mrf.mxu1 }
 0x76d   : > { %v12949_v15 = vadd.f32 %v12930_v23, %v12541_v21  ;;  %v12922_v63 = vadd.f32 %v14098_v26, %v12921_v10 }
 0x76e   : > { %v14764_v49 = vpop.f32.mrf.mxu1 }
 0x76f   : > { %12965 = vst [vmem:[%s20828_s30 + $0x68] sm:$0xff] %v12949_v15  ;;  %v12945_v61 = vadd.f32 %v12922_v63, %v12531_v7  ;;  %v12933_v1 = vadd.f32 %v14764_v49, %v14098_v26 }
 0x770   : > { %v12924_v25 = vpop.f32.mrf.mxu1 }
 0x771   : > { %12961 = vst [vmem:[%s20828_s30 + $0x48] sm:$0xff] %v12945_v61  ;;  %v12951_v37 = vadd.f32 %v12933_v1, %v12545_v44  ;;  %v12925_v9 = vadd.f32 %v14098_v26, %v12924_v25 }
 0x773   : > { %12967 = vst [vmem:[%s20828_s30 + $0x78] sm:$0xff] %v12951_v37  ;;  %v12947_v5 = vadd.f32 %v12925_v9, %v12535_v4 }
 0x775   : > { %12963 = vst [vmem:[%s20828_s30 + $0x58] sm:$0xff] %v12947_v5 }
 0x776   : > { %15466 = shalt.err (!%p15463_p3)
}
 0x777   : > { %s15467_s29 = scalar_lea.hbm %s20853_s27, 2048  ;;  %s15471_s26 = scalar_lea.hbm %s20911_s10, 4096 }
 0x778   : > { %p15468_p4 = scmp.ne.s32.totalorder %s20853_s27, %s15467_s29  ;;  %p15472_p9 = scmp.lt.s32.totalorder %s20853_s27, %s20911_s10 }
 0x779   : > { %p15473_p10 = scmp.lt.s32.totalorder %s15471_s26, %s15467_s29 }
 0x77a   : > { %p15469_p7 = pnand %p15468_p4, %p15612_p5 }
 0x77b   : > { %p15474_p11 = por %p15473_p10, %p15472_p9 }
 0x77c   : > { %p15470_p8 = pneg %p15469_p7 }
 0x77e   : > { %p15475_p12 = pnand %p15474_p11, %p15470_p8 }
 0x780   : > { %15478 = shalt.err (!%p15475_p12)
}
 0x781   : > { %s15517_s28 = smov 256   ;;  %s15518_s11 = smov 16  }
 0x782   : > { %14766 = dma.vmem_to_hbm [thread:$0]  (%p15612_p5), %s20855_s21, 2048, %s20853_s27, %s20861_s17, %s15517_s28, %s15517_s28, %s15518_s11  }
 0x783 PF: > { %p14772_p13 = scmp.ge.s32.totalorder %s15513_s16, 2  ;;  %s12997_s18 = sand.u32 1, %s15501_s13  }
 0x784   : > { %s12998_s29 = scalar_lea.sflag [#allocation4], %s12997_s18 }
 0x785   : > { %p14769_p0 = pnand %p14772_p13, %p15616_p6 }
 0x787   : > { %p14770_p1 = pneg %p14769_p0 }
 0x789   : > { %15496 = dma.done.wait (%p14770_p1), %s12998_s29, 2048  }
 0x78a   : > { %15498 = vsyncadd (%p14770_p1), %s12998_s29, 4294965248  ;;  %p20_p2 = scmp.ge.s32.totalorder %s15599_s19, 4   ;;  %s21798_s13 = smov %s15505_s14 }
 0x78b   : > { %s21799_s14 = smov %s15509_s15  ;;  %s21800_s15 = smov %s15610_s22 }
 0x78c   : > { %s21801_s16 = smov %s15599_s19  ;;  %22 = sbr.rel (!%p20_p2) target bundleno = 3 (0x3), region = 95 }
 0x791   :  { %13003 = vsyncpa [#allocation4], 1 }
 0x792   :  { %13005 = vsyncpa [#allocation4 + $0x1], 1 }

</bundles_post_ra>
